<compile_context>
chip_gen: v7x
topology: tpu7x:2x2x1
jax: 0.10.0
libtpu: 0.0.40
codegen_flags: <defaults>
</compile_context>

<pallas_src>
import math

import jax
import jax.numpy as jnp
from jax.experimental import pallas as pl
from jax.experimental.pallas import tpu as pltpu

_EPS = 1e-5
_LANES = 128


def _round_up(x, m):
    return (x + m - 1) // m * m


def _vmem_limit_bytes():
    try:
        cap = int(pltpu.get_tpu_info().vmem_capacity_bytes)
    except Exception:
        cap = 64 * 1024 * 1024
    return max(32 * 1024 * 1024, min(cap * 3 // 4, 112 * 1024 * 1024))


def _make_plane_mask(h, w):
    """(HR*P, 1) f32 mask: 1.0 at valid interior positions of the stored plane.

    Plane storage layout: HR = H + 4 rows, P = W + 2 cols; valid data lives at
    rows [2, H+2) and cols [1, W+1); rows 1 / H+2 and cols 0 / W+1 are the conv
    zero border; rows 0 / H+3 are slack so flattened tap slices never go OOB.
    """
    p, hr = w + 2, h + 4
    row = jnp.arange(hr)
    col = jnp.arange(p)
    m = ((row >= 2) & (row <= h + 1))[:, None] & ((col >= 1) & (col <= w))[None, :]
    return m.astype(jnp.float32).reshape(hr * p, 1)


# -----------------------------------------------------------------------------
# Kernel 1: 3x3x3 conv over the flattened "wide plane" layout + per-(n, d) BN
# partial statistics.  grid = (N, D); the three depth taps come in as three
# depth-shifted input specs (clamped at the boundary and gated in-kernel); the
# 27 weight taps are a single VMEM-resident slab.  Optionally fuses the previous
# block's BatchNorm affine + ReLU onto the loaded input (used for conv2).
# -----------------------------------------------------------------------------
def _make_conv_kernel(h, w, c_pad, fuse_input):
    p = w + 2
    hp = h * p
    r = (h + 4) * p

    def kernel(*refs):
        if fuse_input:
            (mask_ref, w_ref, scale_ref, shift_ref,
             x0_ref, x1_ref, x2_ref, y_ref, st_ref) = refs
        else:
            mask_ref, w_ref, x0_ref, x1_ref, x2_ref, y_ref, st_ref = refs
            scale_ref = shift_ref = None

        j = pl.program_id(1)
        n_d = pl.num_programs(1)

        def prep(x_ref, gate):
            x = x_ref[0, 0]                                   # (R, C_in) bf16
            if fuse_input:
                # Fused BN1 affine + ReLU1; the where-mask re-creates the exact
                # zero halo (and kills any stale border contents).
                xf = x.astype(jnp.float32) * scale_ref[...] + shift_ref[...]
                xf = jnp.maximum(xf, 0.0)
                x = jnp.where(mask_ref[...] > 0.5, xf, 0.0).astype(jnp.bfloat16)
            if gate is not None:
                # Depth halo: zero the whole plane outside the volume.
                x = jnp.where(gate, x, jnp.zeros_like(x))
            return x

        x_refs = (x0_ref, x1_ref, x2_ref)
        gates = (j > 0, None, j < n_d - 1)

        # Chained 27-tap accumulation; each in-plane tap is a contiguous row
        # slice of the flattened plane (no H/W-merge relayout).
        acc = jnp.zeros((hp, c_pad), jnp.float32)
        for kd in range(3):
            xk = prep(x_refs[kd], gates[kd])
            for kh in range(3):
                for kw in range(3):
                    start = (kh + 1) * p + kw - 1
                    acc = acc + jnp.dot(
                        xk[start:start + hp, :],
                        w_ref[kd, kh * 3 + kw],
                        preferred_element_type=jnp.float32)

        # Store raw conv output (bf16) at the interior rows; zero the border
        # rows so the stored tensor holds no stale garbage.
        y_ref[0, 0, 0:2 * p, :] = jnp.zeros((2 * p, c_pad), y_ref.dtype)
        y_ref[0, 0, 2 * p:2 * p + hp, :] = acc.astype(y_ref.dtype)
        y_ref[0, 0, 2 * p + hp:r, :] = jnp.zeros((2 * p, c_pad), y_ref.dtype)

        # BN partial stats [sum, sum of squares] from the f32 accumulator,
        # restricted to valid spatial positions.
        valid = mask_ref[2 * p:2 * p + hp, :] > 0.5
        acc_m = jnp.where(valid, acc, 0.0)
        s = jnp.sum(acc_m, axis=0, keepdims=True)
        q = jnp.sum(acc_m * acc_m, axis=0, keepdims=True)
        st_ref[...] = jnp.concatenate([s, q], axis=0).reshape(1, 1, 2, c_pad)

    return kernel


def _conv3d_stats(x, w_taps, mask, scale_in, shift_in, *, h, w, c_pad, fuse_input):
    """x: (N, D, R, C_in) bf16 flattened wide-plane layout.
    w_taps: (3, 9, C_in, C_pad) bf16.  Returns (y_raw bf16 (N, D, R, C_pad),
    stats f32 (N, D, 2, C_pad))."""
    n, d, r, c_in = x.shape
    kernel = _make_conv_kernel(h, w, c_pad, fuse_input)

    in_specs = [
        pl.BlockSpec((r, 1), lambda i, j: (0, 0)),                       # mask (resident)
        pl.BlockSpec((3, 9, c_in, c_pad), lambda i, j: (0, 0, 0, 0)),    # 27 taps (resident)
    ]
    args = [mask, w_taps]
    if fuse_input:
        in_specs += [pl.BlockSpec((1, c_in), lambda i, j: (0, 0)),
                     pl.BlockSpec((1, c_in), lambda i, j: (0, 0))]
        args += [scale_in, shift_in]
    in_specs += [
        pl.BlockSpec((1, 1, r, c_in), lambda i, j: (i, jnp.maximum(j - 1, 0), 0, 0)),
        pl.BlockSpec((1, 1, r, c_in), lambda i, j: (i, j, 0, 0)),
        pl.BlockSpec((1, 1, r, c_in), lambda i, j: (i, jnp.minimum(j + 1, d - 1), 0, 0)),
    ]
    args += [x, x, x]

    return pl.pallas_call(
        kernel,
        out_shape=(jax.ShapeDtypeStruct((n, d, r, c_pad), jnp.bfloat16),
                   jax.ShapeDtypeStruct((n, d, 2, c_pad), jnp.float32)),
        grid=(n, d),
        in_specs=in_specs,
        out_specs=(pl.BlockSpec((1, 1, r, c_pad), lambda i, j: (i, j, 0, 0)),
                   pl.BlockSpec((1, 1, 2, c_pad), lambda i, j: (i, j, 0, 0))),
        compiler_params=pltpu.CompilerParams(
            dimension_semantics=("parallel", "parallel"),
            vmem_limit_bytes=_vmem_limit_bytes(),
        ),
    )(*args)


# -----------------------------------------------------------------------------
# Kernel 2: lane-dense BatchNorm affine + ReLU for the final output.
# -----------------------------------------------------------------------------
def _bn_relu_kernel(y_ref, scale_ref, shift_ref, o_ref):
    y = y_ref[0, 0].astype(jnp.float32)
    o_ref[0, 0] = jnp.maximum(y * scale_ref[...] + shift_ref[...], 0.0)


def _bn_relu_apply(y, scale, shift):
    n, d, r, c = y.shape
    return pl.pallas_call(
        _bn_relu_kernel,
        out_shape=jax.ShapeDtypeStruct((n, d, r, c), jnp.float32),
        grid=(n, d),
        in_specs=[pl.BlockSpec((1, 1, r, c), lambda i, j: (i, j, 0, 0)),
                  pl.BlockSpec((1, c), lambda i, j: (0, 0)),
                  pl.BlockSpec((1, c), lambda i, j: (0, 0))],
        out_specs=pl.BlockSpec((1, 1, r, c), lambda i, j: (i, j, 0, 0)),
        compiler_params=pltpu.CompilerParams(
            dimension_semantics=("parallel", "parallel"),
            vmem_limit_bytes=_vmem_limit_bytes(),
        ),
    )(y, scale, shift)


# -----------------------------------------------------------------------------
# JAX glue
# -----------------------------------------------------------------------------
def _weight_to_taps(w_oidhw, c_out_pad, c_in_pad=None):
    # PyTorch Conv3d weight (C_out, C_in, kD, kH, kW) -> (3, 9, C_in[_pad], C_out_pad) bf16.
    c_out, c_in = w_oidhw.shape[0], w_oidhw.shape[1]
    w = jnp.transpose(w_oidhw, (2, 3, 4, 1, 0)).reshape(3, 9, c_in, c_out)
    pad_in = 0 if c_in_pad is None else c_in_pad - c_in
    w = jnp.pad(w, ((0, 0), (0, 0), (0, pad_in), (0, c_out_pad - c_out)))
    return w.astype(jnp.bfloat16)


def _bn_affine(stats, gamma, beta, c_pad, count, eps):
    # Combine per-(n, d) [sum, sumsq] partials into global batch stats (biased var),
    # then fold BN into a per-channel affine: y = conv * scale + shift.
    tot = jnp.sum(stats, axis=(0, 1))                    # (2, C_pad)
    mean = tot[0] / count
    var = jnp.maximum(tot[1] / count - mean * mean, 0.0)
    inv_std = jax.lax.rsqrt(var + eps)
    g = jnp.pad(gamma, (0, c_pad - gamma.shape[0]))      # padded channels: gamma=0, beta=0 -> stay 0
    b = jnp.pad(beta, (0, c_pad - beta.shape[0]))
    scale = g * inv_std
    shift = b - mean * scale
    return scale, shift


def init_double_block_params(key, in_ch, out_ch):
    ks = jax.random.split(key, 6)
    s1 = 1.0 / math.sqrt(in_ch * 27.0)
    s2 = 1.0 / math.sqrt(out_ch * 27.0)
    return {
        "w1": jax.random.normal(ks[0], (out_ch, in_ch, 3, 3, 3), jnp.float32) * s1,
        "b1": jax.random.normal(ks[1], (out_ch,), jnp.float32) * 0.01,   # cancelled by train-mode BN
        "gamma1": 1.0 + 0.1 * jax.random.normal(ks[2], (out_ch,), jnp.float32),
        "beta1": 0.1 * jax.random.normal(ks[3], (out_ch,), jnp.float32),
        "w2": jax.random.normal(ks[4], (out_ch, out_ch, 3, 3, 3), jnp.float32) * s2,
        "b2": jax.random.normal(ks[5], (out_ch,), jnp.float32) * 0.01,   # cancelled by train-mode BN
        "gamma2": jnp.ones((out_ch,), jnp.float32),
        "beta2": jnp.zeros((out_ch,), jnp.float32),
    }


def double_block_forward(x_ncdhw, params, eps=_EPS):
    """x_ncdhw: (N, C_in, D, H, W) f32 -> (N, C_out, D, H, W) f32."""
    n, c_in, d, h, w = x_ncdhw.shape
    c_out = params["w1"].shape[0]
    c_pad = _round_up(c_out, _LANES)
    p, hr = w + 2, h + 4
    r = hr * p
    count = n * d * h * w

    mask = _make_plane_mask(h, w)

    # NCDHW -> NDHWC bf16, pad each plane to the (H+4, W+2) storage layout, flatten.
    x = jnp.transpose(x_ncdhw, (0, 2, 3, 4, 1)).astype(jnp.bfloat16)
    x = jnp.pad(x, ((0, 0), (0, 0), (2, 2), (1, 1), (0, 0))).reshape(n, d, r, c_in)

    # ---- conv1 (+ BN1 partial stats) ----
    w1 = _weight_to_taps(params["w1"], c_pad)
    y1_raw, st1 = _conv3d_stats(x, w1, mask, None, None,
                                h=h, w=w, c_pad=c_pad, fuse_input=False)
    scale1, shift1 = _bn_affine(st1, params["gamma1"], params["beta1"], c_pad, count, eps)

    # ---- conv2 with BN1-affine + ReLU1 fused onto its input (+ BN2 partial stats) ----
    w2 = _weight_to_taps(params["w2"], c_pad, c_in_pad=c_pad)
    y2_raw, st2 = _conv3d_stats(y1_raw, w2, mask,
                                scale1.reshape(1, c_pad).astype(jnp.float32),
                                shift1.reshape(1, c_pad).astype(jnp.float32),
                                h=h, w=w, c_pad=c_pad, fuse_input=True)
    scale2, shift2 = _bn_affine(st2, params["gamma2"], params["beta2"], c_pad, count, eps)

    # ---- BN2 + ReLU2, then unpack the wide-plane layout back to NCDHW ----
    y2 = _bn_relu_apply(y2_raw,
                        scale2.reshape(1, c_pad).astype(jnp.float32),
                        shift2.reshape(1, c_pad).astype(jnp.float32))
    y2 = y2.reshape(n, d, hr, p, c_pad)[:, :, 2:h + 2, 1:w + 1, :c_out]
    return jnp.transpose(y2, (0, 4, 1, 2, 3))


# -----------------------------------------------------------------------------
# Pure-JAX reference (f32, HIGHEST precision) for a correctness spot-check.
# -----------------------------------------------------------------------------
def _reference_forward(x_ncdhw, params, eps=_EPS):
    def block(x, wgt, b, gamma, beta):
        y = jax.lax.conv_general_dilated(
            x, wgt, window_strides=(1, 1, 1),
            padding=((1, 1), (1, 1), (1, 1)),
            dimension_numbers=("NCDHW", "OIDHW", "NCDHW"),
            precision=jax.lax.Precision.HIGHEST)
        y = y + b.reshape(1, -1, 1, 1, 1)
        mean = jnp.mean(y, axis=(0, 2, 3, 4), keepdims=True)
        var = jnp.mean(jnp.square(y - mean), axis=(0, 2, 3, 4), keepdims=True)
        y = (y - mean) * jax.lax.rsqrt(var + eps)
        y = y * gamma.reshape(1, -1, 1, 1, 1) + beta.reshape(1, -1, 1, 1, 1)
        return jnp.maximum(y, 0.0)

    y = block(x_ncdhw, params["w1"], params["b1"], params["gamma1"], params["beta1"])
    return block(y, params["w2"], params["b2"], params["gamma2"], params["beta2"])


if __name__ == "__main__":
    key = jax.random.PRNGKey(0)
    k_x, k_p = jax.random.split(key)

    batch, in_ch, out_ch = 2, 4, 8
    D = H = W = 8

    x = jax.random.normal(k_x, (batch, in_ch, D, H, W), jnp.float32)
    params = init_double_block_params(k_p, in_ch, out_ch)

    out = jax.jit(double_block_forward)(x, params)
    jax.block_until_ready(out)

    assert out.shape == (batch, out_ch, D, H, W)
    assert bool(jnp.all(jnp.isfinite(out)))
    assert bool(jnp.all(out >= 0.0))  # ReLU output

    # Spot-check against an f32 reference (kernel uses bf16 MXU inputs and bf16
    # activation storage, hence the loose tolerance; indexing/statistics bugs
    # would show up as O(1) errors).
    ref = _reference_forward(x, params)
    max_err = float(jnp.max(jnp.abs(out - ref)))
    assert max_err < 2e-1, f"max |err| vs reference = {max_err}"

    # TODO(synk): BatchNorm running_mean/running_var buffer updates (a training-time
    # side effect of nn.BatchNorm3d) are not emulated; forward output is unaffected.
    print("KERNEL_OK")
</pallas_src>

<mosaic_0001>
module attributes {stable_mosaic.version = 11 : i64} {
  func.func @kernel(%arg0: i32, %arg1: i32, %arg2: memref<120x1xf32, #tpu.memory_space<vmem>>, %arg3: memref<3x9x4x128xbf16, #tpu.memory_space<vmem>>, %arg4: memref<1x1x120x4xbf16, #tpu.memory_space<vmem>>, %arg5: memref<1x1x120x4xbf16, #tpu.memory_space<vmem>>, %arg6: memref<1x1x120x4xbf16, #tpu.memory_space<vmem>>, %arg7: memref<1x1x120x128xbf16, #tpu.memory_space<vmem>>, %arg8: memref<1x1x2x128xf32, #tpu.memory_space<vmem>>) attributes {dimension_semantics = [#tpu.dimension_semantics<parallel>, #tpu.dimension_semantics<parallel>], iteration_bounds = array<i64: 2, 8>, scalar_prefetch = 0 : i64, scratch_operands = 0 : i64, tpu.core_type = #tpu.core_type<tc>, window_params = [{pipeline_mode = #tpu.pipeline_mode<synchronous>, transform_indices = @transform_0, window_bounds = array<i64: 120, 1>}, {pipeline_mode = #tpu.pipeline_mode<synchronous>, transform_indices = @transform_1, window_bounds = array<i64: 3, 9, 4, 128>}, {transform_indices = @transform_2, window_bounds = array<i64: 1, 1, 120, 4>}, {transform_indices = @transform_3, window_bounds = array<i64: 1, 1, 120, 4>}, {transform_indices = @transform_4, window_bounds = array<i64: 1, 1, 120, 4>}, {transform_indices = @transform_5, window_bounds = array<i64: 1, 1, 120, 128>}, {transform_indices = @transform_6, window_bounds = array<i64: 1, 1, 2, 128>}]} {
    %c0_i32 = arith.constant 0 : i32
    %0 = arith.cmpi sgt, %arg1, %c0_i32 : i32
    %c7_i32 = arith.constant 7 : i32
    %1 = arith.cmpi slt, %arg1, %c7_i32 : i32
    %cst = arith.constant 0.000000e+00 : f32
    %2 = vector.broadcast %cst : f32 to vector<80x128xf32>
    %c0 = arith.constant 0 : index
    %c0_0 = arith.constant 0 : index
    %c0_1 = arith.constant 0 : index
    %c0_2 = arith.constant 0 : index
    %3 = vector.load %arg4[%c0, %c0_0, %c0_1, %c0_2] : memref<1x1x120x4xbf16, #tpu.memory_space<vmem>>, vector<1x1x120x4xbf16>
    %4 = vector.shape_cast %3 : vector<1x1x120x4xbf16> to vector<120x4xbf16>
    %cst_3 = arith.constant 0.000000e+00 : bf16
    %5 = vector.broadcast %cst_3 : bf16 to vector<120x4xbf16>
    %6 = arith.select %0, %4, %5 : vector<120x4xbf16>
    %7 = vector.extract_strided_slice %6 {offsets = [9, 0], sizes = [80, 4], strides = [1, 1]} : vector<120x4xbf16> to vector<80x4xbf16>
    %c0_4 = arith.constant 0 : index
    %c0_5 = arith.constant 0 : index
    %c0_6 = arith.constant 0 : index
    %c0_7 = arith.constant 0 : index
    %8 = vector.load %arg3[%c0_4, %c0_5, %c0_6, %c0_7] : memref<3x9x4x128xbf16, #tpu.memory_space<vmem>>, vector<1x1x4x128xbf16>
    %9 = vector.shape_cast %8 : vector<1x1x4x128xbf16> to vector<4x128xbf16>
    %cst_8 = arith.constant dense<0.000000e+00> : vector<80x128xf32>
    %10 = tpu.matmul %7, %9, %cst_8 {dimension_numbers = #tpu.dot_dimension_numbers<[1], [0], [0], [1], [0, 0, 1, 1], [], []>} : vector<80x4xbf16>, vector<4x128xbf16>, vector<80x128xf32> -> vector<80x128xf32>
    %11 = arith.addf %2, %10 : vector<80x128xf32>
    %12 = vector.extract_strided_slice %6 {offsets = [10, 0], sizes = [80, 4], strides = [1, 1]} : vector<120x4xbf16> to vector<80x4xbf16>
    %c0_9 = arith.constant 0 : index
    %c1 = arith.constant 1 : index
    %c0_10 = arith.constant 0 : index
    %c0_11 = arith.constant 0 : index
    %13 = vector.load %arg3[%c0_9, %c1, %c0_10, %c0_11] : memref<3x9x4x128xbf16, #tpu.memory_space<vmem>>, vector<1x1x4x128xbf16>
    %14 = vector.shape_cast %13 : vector<1x1x4x128xbf16> to vector<4x128xbf16>
    %cst_12 = arith.constant dense<0.000000e+00> : vector<80x128xf32>
    %15 = tpu.matmul %12, %14, %cst_12 {dimension_numbers = #tpu.dot_dimension_numbers<[1], [0], [0], [1], [0, 0, 1, 1], [], []>} : vector<80x4xbf16>, vector<4x128xbf16>, vector<80x128xf32> -> vector<80x128xf32>
    %16 = arith.addf %11, %15 : vector<80x128xf32>
    %17 = vector.extract_strided_slice %6 {offsets = [11, 0], sizes = [80, 4], strides = [1, 1]} : vector<120x4xbf16> to vector<80x4xbf16>
    %c0_13 = arith.constant 0 : index
    %c2 = arith.constant 2 : index
    %c0_14 = arith.constant 0 : index
    %c0_15 = arith.constant 0 : index
    %18 = vector.load %arg3[%c0_13, %c2, %c0_14, %c0_15] : memref<3x9x4x128xbf16, #tpu.memory_space<vmem>>, vector<1x1x4x128xbf16>
    %19 = vector.shape_cast %18 : vector<1x1x4x128xbf16> to vector<4x128xbf16>
    %cst_16 = arith.constant dense<0.000000e+00> : vector<80x128xf32>
    %20 = tpu.matmul %17, %19, %cst_16 {dimension_numbers = #tpu.dot_dimension_numbers<[1], [0], [0], [1], [0, 0, 1, 1], [], []>} : vector<80x4xbf16>, vector<4x128xbf16>, vector<80x128xf32> -> vector<80x128xf32>
    %21 = arith.addf %16, %20 : vector<80x128xf32>
    %22 = vector.extract_strided_slice %6 {offsets = [19, 0], sizes = [80, 4], strides = [1, 1]} : vector<120x4xbf16> to vector<80x4xbf16>
    %c0_17 = arith.constant 0 : index
    %c3 = arith.constant 3 : index
    %c0_18 = arith.constant 0 : index
    %c0_19 = arith.constant 0 : index
    %23 = vector.load %arg3[%c0_17, %c3, %c0_18, %c0_19] : memref<3x9x4x128xbf16, #tpu.memory_space<vmem>>, vector<1x1x4x128xbf16>
    %24 = vector.shape_cast %23 : vector<1x1x4x128xbf16> to vector<4x128xbf16>
    %cst_20 = arith.constant dense<0.000000e+00> : vector<80x128xf32>
    %25 = tpu.matmul %22, %24, %cst_20 {dimension_numbers = #tpu.dot_dimension_numbers<[1], [0], [0], [1], [0, 0, 1, 1], [], []>} : vector<80x4xbf16>, vector<4x128xbf16>, vector<80x128xf32> -> vector<80x128xf32>
    %26 = arith.addf %21, %25 : vector<80x128xf32>
    %27 = vector.extract_strided_slice %6 {offsets = [20, 0], sizes = [80, 4], strides = [1, 1]} : vector<120x4xbf16> to vector<80x4xbf16>
    %c0_21 = arith.constant 0 : index
    %c4 = arith.constant 4 : index
    %c0_22 = arith.constant 0 : index
    %c0_23 = arith.constant 0 : index
    %28 = vector.load %arg3[%c0_21, %c4, %c0_22, %c0_23] : memref<3x9x4x128xbf16, #tpu.memory_space<vmem>>, vector<1x1x4x128xbf16>
    %29 = vector.shape_cast %28 : vector<1x1x4x128xbf16> to vector<4x128xbf16>
    %cst_24 = arith.constant dense<0.000000e+00> : vector<80x128xf32>
    %30 = tpu.matmul %27, %29, %cst_24 {dimension_numbers = #tpu.dot_dimension_numbers<[1], [0], [0], [1], [0, 0, 1, 1], [], []>} : vector<80x4xbf16>, vector<4x128xbf16>, vector<80x128xf32> -> vector<80x128xf32>
    %31 = arith.addf %26, %30 : vector<80x128xf32>
    %32 = vector.extract_strided_slice %6 {offsets = [21, 0], sizes = [80, 4], strides = [1, 1]} : vector<120x4xbf16> to vector<80x4xbf16>
    %c0_25 = arith.constant 0 : index
    %c5 = arith.constant 5 : index
    %c0_26 = arith.constant 0 : index
    %c0_27 = arith.constant 0 : index
    %33 = vector.load %arg3[%c0_25, %c5, %c0_26, %c0_27] : memref<3x9x4x128xbf16, #tpu.memory_space<vmem>>, vector<1x1x4x128xbf16>
    %34 = vector.shape_cast %33 : vector<1x1x4x128xbf16> to vector<4x128xbf16>
    %cst_28 = arith.constant dense<0.000000e+00> : vector<80x128xf32>
    %35 = tpu.matmul %32, %34, %cst_28 {dimension_numbers = #tpu.dot_dimension_numbers<[1], [0], [0], [1], [0, 0, 1, 1], [], []>} : vector<80x4xbf16>, vector<4x128xbf16>, vector<80x128xf32> -> vector<80x128xf32>
    %36 = arith.addf %31, %35 : vector<80x128xf32>
    %37 = vector.extract_strided_slice %6 {offsets = [29, 0], sizes = [80, 4], strides = [1, 1]} : vector<120x4xbf16> to vector<80x4xbf16>
    %c0_29 = arith.constant 0 : index
    %c6 = arith.constant 6 : index
    %c0_30 = arith.constant 0 : index
    %c0_31 = arith.constant 0 : index
    %38 = vector.load %arg3[%c0_29, %c6, %c0_30, %c0_31] : memref<3x9x4x128xbf16, #tpu.memory_space<vmem>>, vector<1x1x4x128xbf16>
    %39 = vector.shape_cast %38 : vector<1x1x4x128xbf16> to vector<4x128xbf16>
    %cst_32 = arith.constant dense<0.000000e+00> : vector<80x128xf32>
    %40 = tpu.matmul %37, %39, %cst_32 {dimension_numbers = #tpu.dot_dimension_numbers<[1], [0], [0], [1], [0, 0, 1, 1], [], []>} : vector<80x4xbf16>, vector<4x128xbf16>, vector<80x128xf32> -> vector<80x128xf32>
    %41 = arith.addf %36, %40 : vector<80x128xf32>
    %42 = vector.extract_strided_slice %6 {offsets = [30, 0], sizes = [80, 4], strides = [1, 1]} : vector<120x4xbf16> to vector<80x4xbf16>
    %c0_33 = arith.constant 0 : index
    %c7 = arith.constant 7 : index
    %c0_34 = arith.constant 0 : index
    %c0_35 = arith.constant 0 : index
    %43 = vector.load %arg3[%c0_33, %c7, %c0_34, %c0_35] : memref<3x9x4x128xbf16, #tpu.memory_space<vmem>>, vector<1x1x4x128xbf16>
    %44 = vector.shape_cast %43 : vector<1x1x4x128xbf16> to vector<4x128xbf16>
    %cst_36 = arith.constant dense<0.000000e+00> : vector<80x128xf32>
    %45 = tpu.matmul %42, %44, %cst_36 {dimension_numbers = #tpu.dot_dimension_numbers<[1], [0], [0], [1], [0, 0, 1, 1], [], []>} : vector<80x4xbf16>, vector<4x128xbf16>, vector<80x128xf32> -> vector<80x128xf32>
    %46 = arith.addf %41, %45 : vector<80x128xf32>
    %47 = vector.extract_strided_slice %6 {offsets = [31, 0], sizes = [80, 4], strides = [1, 1]} : vector<120x4xbf16> to vector<80x4xbf16>
    %c0_37 = arith.constant 0 : index
    %c8 = arith.constant 8 : index
    %c0_38 = arith.constant 0 : index
    %c0_39 = arith.constant 0 : index
    %48 = vector.load %arg3[%c0_37, %c8, %c0_38, %c0_39] : memref<3x9x4x128xbf16, #tpu.memory_space<vmem>>, vector<1x1x4x128xbf16>
    %49 = vector.shape_cast %48 : vector<1x1x4x128xbf16> to vector<4x128xbf16>
    %cst_40 = arith.constant dense<0.000000e+00> : vector<80x128xf32>
    %50 = tpu.matmul %47, %49, %cst_40 {dimension_numbers = #tpu.dot_dimension_numbers<[1], [0], [0], [1], [0, 0, 1, 1], [], []>} : vector<80x4xbf16>, vector<4x128xbf16>, vector<80x128xf32> -> vector<80x128xf32>
    %51 = arith.addf %46, %50 : vector<80x128xf32>
    %c0_41 = arith.constant 0 : index
    %c0_42 = arith.constant 0 : index
    %c0_43 = arith.constant 0 : index
    %c0_44 = arith.constant 0 : index
    %52 = vector.load %arg5[%c0_41, %c0_42, %c0_43, %c0_44] : memref<1x1x120x4xbf16, #tpu.memory_space<vmem>>, vector<1x1x120x4xbf16>
    %53 = vector.shape_cast %52 : vector<1x1x120x4xbf16> to vector<120x4xbf16>
    %54 = vector.extract_strided_slice %53 {offsets = [9, 0], sizes = [80, 4], strides = [1, 1]} : vector<120x4xbf16> to vector<80x4xbf16>
    %c1_45 = arith.constant 1 : index
    %c0_46 = arith.constant 0 : index
    %c0_47 = arith.constant 0 : index
    %c0_48 = arith.constant 0 : index
    %55 = vector.load %arg3[%c1_45, %c0_46, %c0_47, %c0_48] : memref<3x9x4x128xbf16, #tpu.memory_space<vmem>>, vector<1x1x4x128xbf16>
    %56 = vector.shape_cast %55 : vector<1x1x4x128xbf16> to vector<4x128xbf16>
    %cst_49 = arith.constant dense<0.000000e+00> : vector<80x128xf32>
    %57 = tpu.matmul %54, %56, %cst_49 {dimension_numbers = #tpu.dot_dimension_numbers<[1], [0], [0], [1], [0, 0, 1, 1], [], []>} : vector<80x4xbf16>, vector<4x128xbf16>, vector<80x128xf32> -> vector<80x128xf32>
    %58 = arith.addf %51, %57 : vector<80x128xf32>
    %59 = vector.extract_strided_slice %53 {offsets = [10, 0], sizes = [80, 4], strides = [1, 1]} : vector<120x4xbf16> to vector<80x4xbf16>
    %c1_50 = arith.constant 1 : index
    %c1_51 = arith.constant 1 : index
    %c0_52 = arith.constant 0 : index
    %c0_53 = arith.constant 0 : index
    %60 = vector.load %arg3[%c1_50, %c1_51, %c0_52, %c0_53] : memref<3x9x4x128xbf16, #tpu.memory_space<vmem>>, vector<1x1x4x128xbf16>
    %61 = vector.shape_cast %60 : vector<1x1x4x128xbf16> to vector<4x128xbf16>
    %cst_54 = arith.constant dense<0.000000e+00> : vector<80x128xf32>
    %62 = tpu.matmul %59, %61, %cst_54 {dimension_numbers = #tpu.dot_dimension_numbers<[1], [0], [0], [1], [0, 0, 1, 1], [], []>} : vector<80x4xbf16>, vector<4x128xbf16>, vector<80x128xf32> -> vector<80x128xf32>
    %63 = arith.addf %58, %62 : vector<80x128xf32>
    %64 = vector.extract_strided_slice %53 {offsets = [11, 0], sizes = [80, 4], strides = [1, 1]} : vector<120x4xbf16> to vector<80x4xbf16>
    %c1_55 = arith.constant 1 : index
    %c2_56 = arith.constant 2 : index
    %c0_57 = arith.constant 0 : index
    %c0_58 = arith.constant 0 : index
    %65 = vector.load %arg3[%c1_55, %c2_56, %c0_57, %c0_58] : memref<3x9x4x128xbf16, #tpu.memory_space<vmem>>, vector<1x1x4x128xbf16>
    %66 = vector.shape_cast %65 : vector<1x1x4x128xbf16> to vector<4x128xbf16>
    %cst_59 = arith.constant dense<0.000000e+00> : vector<80x128xf32>
    %67 = tpu.matmul %64, %66, %cst_59 {dimension_numbers = #tpu.dot_dimension_numbers<[1], [0], [0], [1], [0, 0, 1, 1], [], []>} : vector<80x4xbf16>, vector<4x128xbf16>, vector<80x128xf32> -> vector<80x128xf32>
    %68 = arith.addf %63, %67 : vector<80x128xf32>
    %69 = vector.extract_strided_slice %53 {offsets = [19, 0], sizes = [80, 4], strides = [1, 1]} : vector<120x4xbf16> to vector<80x4xbf16>
    %c1_60 = arith.constant 1 : index
    %c3_61 = arith.constant 3 : index
    %c0_62 = arith.constant 0 : index
    %c0_63 = arith.constant 0 : index
    %70 = vector.load %arg3[%c1_60, %c3_61, %c0_62, %c0_63] : memref<3x9x4x128xbf16, #tpu.memory_space<vmem>>, vector<1x1x4x128xbf16>
    %71 = vector.shape_cast %70 : vector<1x1x4x128xbf16> to vector<4x128xbf16>
    %cst_64 = arith.constant dense<0.000000e+00> : vector<80x128xf32>
    %72 = tpu.matmul %69, %71, %cst_64 {dimension_numbers = #tpu.dot_dimension_numbers<[1], [0], [0], [1], [0, 0, 1, 1], [], []>} : vector<80x4xbf16>, vector<4x128xbf16>, vector<80x128xf32> -> vector<80x128xf32>
    %73 = arith.addf %68, %72 : vector<80x128xf32>
    %74 = vector.extract_strided_slice %53 {offsets = [20, 0], sizes = [80, 4], strides = [1, 1]} : vector<120x4xbf16> to vector<80x4xbf16>
    %c1_65 = arith.constant 1 : index
    %c4_66 = arith.constant 4 : index
    %c0_67 = arith.constant 0 : index
    %c0_68 = arith.constant 0 : index
    %75 = vector.load %arg3[%c1_65, %c4_66, %c0_67, %c0_68] : memref<3x9x4x128xbf16, #tpu.memory_space<vmem>>, vector<1x1x4x128xbf16>
    %76 = vector.shape_cast %75 : vector<1x1x4x128xbf16> to vector<4x128xbf16>
    %cst_69 = arith.constant dense<0.000000e+00> : vector<80x128xf32>
    %77 = tpu.matmul %74, %76, %cst_69 {dimension_numbers = #tpu.dot_dimension_numbers<[1], [0], [0], [1], [0, 0, 1, 1], [], []>} : vector<80x4xbf16>, vector<4x128xbf16>, vector<80x128xf32> -> vector<80x128xf32>
    %78 = arith.addf %73, %77 : vector<80x128xf32>
    %79 = vector.extract_strided_slice %53 {offsets = [21, 0], sizes = [80, 4], strides = [1, 1]} : vector<120x4xbf16> to vector<80x4xbf16>
    %c1_70 = arith.constant 1 : index
    %c5_71 = arith.constant 5 : index
    %c0_72 = arith.constant 0 : index
    %c0_73 = arith.constant 0 : index
    %80 = vector.load %arg3[%c1_70, %c5_71, %c0_72, %c0_73] : memref<3x9x4x128xbf16, #tpu.memory_space<vmem>>, vector<1x1x4x128xbf16>
    %81 = vector.shape_cast %80 : vector<1x1x4x128xbf16> to vector<4x128xbf16>
    %cst_74 = arith.constant dense<0.000000e+00> : vector<80x128xf32>
    %82 = tpu.matmul %79, %81, %cst_74 {dimension_numbers = #tpu.dot_dimension_numbers<[1], [0], [0], [1], [0, 0, 1, 1], [], []>} : vector<80x4xbf16>, vector<4x128xbf16>, vector<80x128xf32> -> vector<80x128xf32>
    %83 = arith.addf %78, %82 : vector<80x128xf32>
    %84 = vector.extract_strided_slice %53 {offsets = [29, 0], sizes = [80, 4], strides = [1, 1]} : vector<120x4xbf16> to vector<80x4xbf16>
    %c1_75 = arith.constant 1 : index
    %c6_76 = arith.constant 6 : index
    %c0_77 = arith.constant 0 : index
    %c0_78 = arith.constant 0 : index
    %85 = vector.load %arg3[%c1_75, %c6_76, %c0_77, %c0_78] : memref<3x9x4x128xbf16, #tpu.memory_space<vmem>>, vector<1x1x4x128xbf16>
    %86 = vector.shape_cast %85 : vector<1x1x4x128xbf16> to vector<4x128xbf16>
    %cst_79 = arith.constant dense<0.000000e+00> : vector<80x128xf32>
    %87 = tpu.matmul %84, %86, %cst_79 {dimension_numbers = #tpu.dot_dimension_numbers<[1], [0], [0], [1], [0, 0, 1, 1], [], []>} : vector<80x4xbf16>, vector<4x128xbf16>, vector<80x128xf32> -> vector<80x128xf32>
    %88 = arith.addf %83, %87 : vector<80x128xf32>
    %89 = vector.extract_strided_slice %53 {offsets = [30, 0], sizes = [80, 4], strides = [1, 1]} : vector<120x4xbf16> to vector<80x4xbf16>
    %c1_80 = arith.constant 1 : index
    %c7_81 = arith.constant 7 : index
    %c0_82 = arith.constant 0 : index
    %c0_83 = arith.constant 0 : index
    %90 = vector.load %arg3[%c1_80, %c7_81, %c0_82, %c0_83] : memref<3x9x4x128xbf16, #tpu.memory_space<vmem>>, vector<1x1x4x128xbf16>
    %91 = vector.shape_cast %90 : vector<1x1x4x128xbf16> to vector<4x128xbf16>
    %cst_84 = arith.constant dense<0.000000e+00> : vector<80x128xf32>
    %92 = tpu.matmul %89, %91, %cst_84 {dimension_numbers = #tpu.dot_dimension_numbers<[1], [0], [0], [1], [0, 0, 1, 1], [], []>} : vector<80x4xbf16>, vector<4x128xbf16>, vector<80x128xf32> -> vector<80x128xf32>
    %93 = arith.addf %88, %92 : vector<80x128xf32>
    %94 = vector.extract_strided_slice %53 {offsets = [31, 0], sizes = [80, 4], strides = [1, 1]} : vector<120x4xbf16> to vector<80x4xbf16>
    %c1_85 = arith.constant 1 : index
    %c8_86 = arith.constant 8 : index
    %c0_87 = arith.constant 0 : index
    %c0_88 = arith.constant 0 : index
    %95 = vector.load %arg3[%c1_85, %c8_86, %c0_87, %c0_88] : memref<3x9x4x128xbf16, #tpu.memory_space<vmem>>, vector<1x1x4x128xbf16>
    %96 = vector.shape_cast %95 : vector<1x1x4x128xbf16> to vector<4x128xbf16>
    %cst_89 = arith.constant dense<0.000000e+00> : vector<80x128xf32>
    %97 = tpu.matmul %94, %96, %cst_89 {dimension_numbers = #tpu.dot_dimension_numbers<[1], [0], [0], [1], [0, 0, 1, 1], [], []>} : vector<80x4xbf16>, vector<4x128xbf16>, vector<80x128xf32> -> vector<80x128xf32>
    %98 = arith.addf %93, %97 : vector<80x128xf32>
    %c0_90 = arith.constant 0 : index
    %c0_91 = arith.constant 0 : index
    %c0_92 = arith.constant 0 : index
    %c0_93 = arith.constant 0 : index
    %99 = vector.load %arg6[%c0_90, %c0_91, %c0_92, %c0_93] : memref<1x1x120x4xbf16, #tpu.memory_space<vmem>>, vector<1x1x120x4xbf16>
    %100 = vector.shape_cast %99 : vector<1x1x120x4xbf16> to vector<120x4xbf16>
    %cst_94 = arith.constant 0.000000e+00 : bf16
    %101 = vector.broadcast %cst_94 : bf16 to vector<120x4xbf16>
    %102 = arith.select %1, %100, %101 : vector<120x4xbf16>
    %103 = vector.extract_strided_slice %102 {offsets = [9, 0], sizes = [80, 4], strides = [1, 1]} : vector<120x4xbf16> to vector<80x4xbf16>
    %c2_95 = arith.constant 2 : index
    %c0_96 = arith.constant 0 : index
    %c0_97 = arith.constant 0 : index
    %c0_98 = arith.constant 0 : index
    %104 = vector.load %arg3[%c2_95, %c0_96, %c0_97, %c0_98] : memref<3x9x4x128xbf16, #tpu.memory_space<vmem>>, vector<1x1x4x128xbf16>
    %105 = vector.shape_cast %104 : vector<1x1x4x128xbf16> to vector<4x128xbf16>
    %cst_99 = arith.constant dense<0.000000e+00> : vector<80x128xf32>
    %106 = tpu.matmul %103, %105, %cst_99 {dimension_numbers = #tpu.dot_dimension_numbers<[1], [0], [0], [1], [0, 0, 1, 1], [], []>} : vector<80x4xbf16>, vector<4x128xbf16>, vector<80x128xf32> -> vector<80x128xf32>
    %107 = arith.addf %98, %106 : vector<80x128xf32>
    %108 = vector.extract_strided_slice %102 {offsets = [10, 0], sizes = [80, 4], strides = [1, 1]} : vector<120x4xbf16> to vector<80x4xbf16>
    %c2_100 = arith.constant 2 : index
    %c1_101 = arith.constant 1 : index
    %c0_102 = arith.constant 0 : index
    %c0_103 = arith.constant 0 : index
    %109 = vector.load %arg3[%c2_100, %c1_101, %c0_102, %c0_103] : memref<3x9x4x128xbf16, #tpu.memory_space<vmem>>, vector<1x1x4x128xbf16>
    %110 = vector.shape_cast %109 : vector<1x1x4x128xbf16> to vector<4x128xbf16>
    %cst_104 = arith.constant dense<0.000000e+00> : vector<80x128xf32>
    %111 = tpu.matmul %108, %110, %cst_104 {dimension_numbers = #tpu.dot_dimension_numbers<[1], [0], [0], [1], [0, 0, 1, 1], [], []>} : vector<80x4xbf16>, vector<4x128xbf16>, vector<80x128xf32> -> vector<80x128xf32>
    %112 = arith.addf %107, %111 : vector<80x128xf32>
    %113 = vector.extract_strided_slice %102 {offsets = [11, 0], sizes = [80, 4], strides = [1, 1]} : vector<120x4xbf16> to vector<80x4xbf16>
    %c2_105 = arith.constant 2 : index
    %c2_106 = arith.constant 2 : index
    %c0_107 = arith.constant 0 : index
    %c0_108 = arith.constant 0 : index
    %114 = vector.load %arg3[%c2_105, %c2_106, %c0_107, %c0_108] : memref<3x9x4x128xbf16, #tpu.memory_space<vmem>>, vector<1x1x4x128xbf16>
    %115 = vector.shape_cast %114 : vector<1x1x4x128xbf16> to vector<4x128xbf16>
    %cst_109 = arith.constant dense<0.000000e+00> : vector<80x128xf32>
    %116 = tpu.matmul %113, %115, %cst_109 {dimension_numbers = #tpu.dot_dimension_numbers<[1], [0], [0], [1], [0, 0, 1, 1], [], []>} : vector<80x4xbf16>, vector<4x128xbf16>, vector<80x128xf32> -> vector<80x128xf32>
    %117 = arith.addf %112, %116 : vector<80x128xf32>
    %118 = vector.extract_strided_slice %102 {offsets = [19, 0], sizes = [80, 4], strides = [1, 1]} : vector<120x4xbf16> to vector<80x4xbf16>
    %c2_110 = arith.constant 2 : index
    %c3_111 = arith.constant 3 : index
    %c0_112 = arith.constant 0 : index
    %c0_113 = arith.constant 0 : index
    %119 = vector.load %arg3[%c2_110, %c3_111, %c0_112, %c0_113] : memref<3x9x4x128xbf16, #tpu.memory_space<vmem>>, vector<1x1x4x128xbf16>
    %120 = vector.shape_cast %119 : vector<1x1x4x128xbf16> to vector<4x128xbf16>
    %cst_114 = arith.constant dense<0.000000e+00> : vector<80x128xf32>
    %121 = tpu.matmul %118, %120, %cst_114 {dimension_numbers = #tpu.dot_dimension_numbers<[1], [0], [0], [1], [0, 0, 1, 1], [], []>} : vector<80x4xbf16>, vector<4x128xbf16>, vector<80x128xf32> -> vector<80x128xf32>
    %122 = arith.addf %117, %121 : vector<80x128xf32>
    %123 = vector.extract_strided_slice %102 {offsets = [20, 0], sizes = [80, 4], strides = [1, 1]} : vector<120x4xbf16> to vector<80x4xbf16>
    %c2_115 = arith.constant 2 : index
    %c4_116 = arith.constant 4 : index
    %c0_117 = arith.constant 0 : index
    %c0_118 = arith.constant 0 : index
    %124 = vector.load %arg3[%c2_115, %c4_116, %c0_117, %c0_118] : memref<3x9x4x128xbf16, #tpu.memory_space<vmem>>, vector<1x1x4x128xbf16>
    %125 = vector.shape_cast %124 : vector<1x1x4x128xbf16> to vector<4x128xbf16>
    %cst_119 = arith.constant dense<0.000000e+00> : vector<80x128xf32>
    %126 = tpu.matmul %123, %125, %cst_119 {dimension_numbers = #tpu.dot_dimension_numbers<[1], [0], [0], [1], [0, 0, 1, 1], [], []>} : vector<80x4xbf16>, vector<4x128xbf16>, vector<80x128xf32> -> vector<80x128xf32>
    %127 = arith.addf %122, %126 : vector<80x128xf32>
    %128 = vector.extract_strided_slice %102 {offsets = [21, 0], sizes = [80, 4], strides = [1, 1]} : vector<120x4xbf16> to vector<80x4xbf16>
    %c2_120 = arith.constant 2 : index
    %c5_121 = arith.constant 5 : index
    %c0_122 = arith.constant 0 : index
    %c0_123 = arith.constant 0 : index
    %129 = vector.load %arg3[%c2_120, %c5_121, %c0_122, %c0_123] : memref<3x9x4x128xbf16, #tpu.memory_space<vmem>>, vector<1x1x4x128xbf16>
    %130 = vector.shape_cast %129 : vector<1x1x4x128xbf16> to vector<4x128xbf16>
    %cst_124 = arith.constant dense<0.000000e+00> : vector<80x128xf32>
    %131 = tpu.matmul %128, %130, %cst_124 {dimension_numbers = #tpu.dot_dimension_numbers<[1], [0], [0], [1], [0, 0, 1, 1], [], []>} : vector<80x4xbf16>, vector<4x128xbf16>, vector<80x128xf32> -> vector<80x128xf32>
    %132 = arith.addf %127, %131 : vector<80x128xf32>
    %133 = vector.extract_strided_slice %102 {offsets = [29, 0], sizes = [80, 4], strides = [1, 1]} : vector<120x4xbf16> to vector<80x4xbf16>
    %c2_125 = arith.constant 2 : index
    %c6_126 = arith.constant 6 : index
    %c0_127 = arith.constant 0 : index
    %c0_128 = arith.constant 0 : index
    %134 = vector.load %arg3[%c2_125, %c6_126, %c0_127, %c0_128] : memref<3x9x4x128xbf16, #tpu.memory_space<vmem>>, vector<1x1x4x128xbf16>
    %135 = vector.shape_cast %134 : vector<1x1x4x128xbf16> to vector<4x128xbf16>
    %cst_129 = arith.constant dense<0.000000e+00> : vector<80x128xf32>
    %136 = tpu.matmul %133, %135, %cst_129 {dimension_numbers = #tpu.dot_dimension_numbers<[1], [0], [0], [1], [0, 0, 1, 1], [], []>} : vector<80x4xbf16>, vector<4x128xbf16>, vector<80x128xf32> -> vector<80x128xf32>
    %137 = arith.addf %132, %136 : vector<80x128xf32>
    %138 = vector.extract_strided_slice %102 {offsets = [30, 0], sizes = [80, 4], strides = [1, 1]} : vector<120x4xbf16> to vector<80x4xbf16>
    %c2_130 = arith.constant 2 : index
    %c7_131 = arith.constant 7 : index
    %c0_132 = arith.constant 0 : index
    %c0_133 = arith.constant 0 : index
    %139 = vector.load %arg3[%c2_130, %c7_131, %c0_132, %c0_133] : memref<3x9x4x128xbf16, #tpu.memory_space<vmem>>, vector<1x1x4x128xbf16>
    %140 = vector.shape_cast %139 : vector<1x1x4x128xbf16> to vector<4x128xbf16>
    %cst_134 = arith.constant dense<0.000000e+00> : vector<80x128xf32>
    %141 = tpu.matmul %138, %140, %cst_134 {dimension_numbers = #tpu.dot_dimension_numbers<[1], [0], [0], [1], [0, 0, 1, 1], [], []>} : vector<80x4xbf16>, vector<4x128xbf16>, vector<80x128xf32> -> vector<80x128xf32>
    %142 = arith.addf %137, %141 : vector<80x128xf32>
    %143 = vector.extract_strided_slice %102 {offsets = [31, 0], sizes = [80, 4], strides = [1, 1]} : vector<120x4xbf16> to vector<80x4xbf16>
    %c2_135 = arith.constant 2 : index
    %c8_136 = arith.constant 8 : index
    %c0_137 = arith.constant 0 : index
    %c0_138 = arith.constant 0 : index
    %144 = vector.load %arg3[%c2_135, %c8_136, %c0_137, %c0_138] : memref<3x9x4x128xbf16, #tpu.memory_space<vmem>>, vector<1x1x4x128xbf16>
    %145 = vector.shape_cast %144 : vector<1x1x4x128xbf16> to vector<4x128xbf16>
    %cst_139 = arith.constant dense<0.000000e+00> : vector<80x128xf32>
    %146 = tpu.matmul %143, %145, %cst_139 {dimension_numbers = #tpu.dot_dimension_numbers<[1], [0], [0], [1], [0, 0, 1, 1], [], []>} : vector<80x4xbf16>, vector<4x128xbf16>, vector<80x128xf32> -> vector<80x128xf32>
    %147 = arith.addf %142, %146 : vector<80x128xf32>
    %cst_140 = arith.constant 0.000000e+00 : bf16
    %148 = vector.broadcast %cst_140 : bf16 to vector<20x128xbf16>
    %c0_141 = arith.constant 0 : index
    %c0_142 = arith.constant 0 : index
    %c0_143 = arith.constant 0 : index
    %c0_144 = arith.constant 0 : index
    %149 = vector.load %arg7[%c0_141, %c0_142, %c0_143, %c0_144] : memref<1x1x120x128xbf16, #tpu.memory_space<vmem>>, vector<1x1x20x128xbf16>
    %150 = vector.shape_cast %149 : vector<1x1x20x128xbf16> to vector<20x128xbf16>
    %151 = vector.shape_cast %148 : vector<20x128xbf16> to vector<1x1x20x128xbf16>
    tpu.vector_store %arg7[%c0_141, %c0_142, %c0_143, %c0_144], %151 {strides = array<i32>} : memref<1x1x120x128xbf16, #tpu.memory_space<vmem>>, vector<1x1x20x128xbf16>,
    %152 = arith.truncf %147 : vector<80x128xf32> to vector<80x128xbf16>
    %c0_145 = arith.constant 0 : index
    %c0_146 = arith.constant 0 : index
    %c20 = arith.constant 20 : index
    %c0_147 = arith.constant 0 : index
    %153 = vector.load %arg7[%c0_145, %c0_146, %c20, %c0_147] : memref<1x1x120x128xbf16, #tpu.memory_space<vmem>>, vector<1x1x80x128xbf16>
    %154 = vector.shape_cast %153 : vector<1x1x80x128xbf16> to vector<80x128xbf16>
    %155 = vector.shape_cast %152 : vector<80x128xbf16> to vector<1x1x80x128xbf16>
    tpu.vector_store %arg7[%c0_145, %c0_146, %c20, %c0_147], %155 {strides = array<i32>} : memref<1x1x120x128xbf16, #tpu.memory_space<vmem>>, vector<1x1x80x128xbf16>,
    %cst_148 = arith.constant 0.000000e+00 : bf16
    %156 = vector.broadcast %cst_148 : bf16 to vector<20x128xbf16>
    %c0_149 = arith.constant 0 : index
    %c0_150 = arith.constant 0 : index
    %c100 = arith.constant 100 : index
    %c0_151 = arith.constant 0 : index
    %157 = vector.load %arg7[%c0_149, %c0_150, %c100, %c0_151] : memref<1x1x120x128xbf16, #tpu.memory_space<vmem>>, vector<1x1x20x128xbf16>
    %158 = vector.shape_cast %157 : vector<1x1x20x128xbf16> to vector<20x128xbf16>
    %159 = vector.shape_cast %156 : vector<20x128xbf16> to vector<1x1x20x128xbf16>
    tpu.vector_store %arg7[%c0_149, %c0_150, %c100, %c0_151], %159 {strides = array<i32>} : memref<1x1x120x128xbf16, #tpu.memory_space<vmem>>, vector<1x1x20x128xbf16>,
    %c20_152 = arith.constant 20 : index
    %c0_153 = arith.constant 0 : index
    %160 = vector.load %arg2[%c20_152, %c0_153] : memref<120x1xf32, #tpu.memory_space<vmem>>, vector<80x1xf32>
    %cst_154 = arith.constant 5.000000e-01 : f32
    %161 = vector.broadcast %cst_154 : f32 to vector<80x1xf32>
    %162 = arith.cmpf ogt, %160, %161 : vector<80x1xf32>
    %cst_155 = arith.constant 0.000000e+00 : f32
    %163 = vector.shape_cast %162 : vector<80x1xi1> to vector<80x1xi1>
    %164 = vector.broadcast %163 : vector<80x1xi1> to vector<80x128xi1>
    %165 = vector.broadcast %cst_155 : f32 to vector<80x128xf32>
    %166 = arith.select %164, %147, %165 : vector<80x128xi1>, vector<80x128xf32>
    %cst_156 = arith.constant dense<0.000000e+00> : vector<128xf32>
    %167 = vector.multi_reduction <add>, %166, %cst_156 [0] : vector<80x128xf32> to vector<128xf32>
    %168 = vector.shape_cast %167 : vector<128xf32> to vector<1x128xf32>
    %169 = arith.mulf %166, %166 : vector<80x128xf32>
    %cst_157 = arith.constant dense<0.000000e+00> : vector<128xf32>
    %170 = vector.multi_reduction <add>, %169, %cst_157 [0] : vector<80x128xf32> to vector<128xf32>
    %171 = vector.shape_cast %170 : vector<128xf32> to vector<1x128xf32>
    %172 = tpu.concatenate %168, %171 in 0 : vector<1x128xf32>, vector<1x128xf32> -> vector<2x128xf32>
    %173 = vector.shape_cast %172 : vector<2x128xf32> to vector<1x1x2x128xf32>
    %c0_158 = arith.constant 0 : index
    %c0_159 = arith.constant 0 : index
    %c0_160 = arith.constant 0 : index
    %c0_161 = arith.constant 0 : index
    %174 = vector.load %arg8[%c0_158, %c0_159, %c0_160, %c0_161] : memref<1x1x2x128xf32, #tpu.memory_space<vmem>>, vector<1x1x2x128xf32>
    tpu.vector_store %arg8[%c0_158, %c0_159, %c0_160, %c0_161], %173 {strides = array<i32>} : memref<1x1x2x128xf32, #tpu.memory_space<vmem>>, vector<1x1x2x128xf32>,
    return
  }
  func.func @transform_0(%arg0: i32, %arg1: i32) -> (i32, i32) {
    %c0_i32 = arith.constant 0 : i32
    %c0_i32_0 = arith.constant 0 : i32
    %c0_i32_1 = arith.constant 0 : i32
    return %c0_i32, %c0_i32_0 : i32, i32
  }
  func.func @transform_1(%arg0: i32, %arg1: i32) -> (i32, i32, i32, i32) {
    %c0_i32 = arith.constant 0 : i32
    %c0_i32_0 = arith.constant 0 : i32
    %c0_i32_1 = arith.constant 0 : i32
    %c0_i32_2 = arith.constant 0 : i32
    %c0_i32_3 = arith.constant 0 : i32
    return %c0_i32, %c0_i32_0, %c0_i32_1, %c0_i32_2 : i32, i32, i32, i32
  }
  func.func @transform_2(%arg0: i32, %arg1: i32) -> (i32, i32, i32, i32) {
    %c1_i32 = arith.constant 1 : i32
    %0 = arith.subi %arg1, %c1_i32 : i32
    %c0_i32 = arith.constant 0 : i32
    %1 = arith.maxsi %0, %c0_i32 : i32
    %c0_i32_0 = arith.constant 0 : i32
    %c0_i32_1 = arith.constant 0 : i32
    %c0_i32_2 = arith.constant 0 : i32
    return %arg0, %1, %c0_i32_0, %c0_i32_1 : i32, i32, i32, i32
  }
  func.func @transform_3(%arg0: i32, %arg1: i32) -> (i32, i32, i32, i32) {
    %c0_i32 = arith.constant 0 : i32
    %c0_i32_0 = arith.constant 0 : i32
    %c0_i32_1 = arith.constant 0 : i32
    return %arg0, %arg1, %c0_i32, %c0_i32_0 : i32, i32, i32, i32
  }
  func.func @transform_4(%arg0: i32, %arg1: i32) -> (i32, i32, i32, i32) {
    %c1_i32 = arith.constant 1 : i32
    %0 = arith.addi %arg1, %c1_i32 : i32
    %c7_i32 = arith.constant 7 : i32
    %1 = arith.minsi %0, %c7_i32 : i32
    %c0_i32 = arith.constant 0 : i32
    %c0_i32_0 = arith.constant 0 : i32
    %c0_i32_1 = arith.constant 0 : i32
    return %arg0, %1, %c0_i32, %c0_i32_0 : i32, i32, i32, i32
  }
  func.func @transform_5(%arg0: i32, %arg1: i32) -> (i32, i32, i32, i32) {
    %c0_i32 = arith.constant 0 : i32
    %c0_i32_0 = arith.constant 0 : i32
    %c0_i32_1 = arith.constant 0 : i32
    return %arg0, %arg1, %c0_i32, %c0_i32_0 : i32, i32, i32, i32
  }
  func.func @transform_6(%arg0: i32, %arg1: i32) -> (i32, i32, i32, i32) {
    %c0_i32 = arith.constant 0 : i32
    %c0_i32_0 = arith.constant 0 : i32
    %c0_i32_1 = arith.constant 0 : i32
    return %arg0, %arg1, %c0_i32, %c0_i32_0 : i32, i32, i32, i32
  }
}

module attributes {stable_mosaic.version = 11 : i64} {
  func.func @kernel(%arg0: i32, %arg1: i32, %arg2: memref<120x1xf32, #tpu.memory_space<vmem>>, %arg3: memref<3x9x128x128xbf16, #tpu.memory_space<vmem>>, %arg4: memref<1x128xf32, #tpu.memory_space<vmem>>, %arg5: memref<1x128xf32, #tpu.memory_space<vmem>>, %arg6: memref<1x1x120x128xbf16, #tpu.memory_space<vmem>>, %arg7: memref<1x1x120x128xbf16, #tpu.memory_space<vmem>>, %arg8: memref<1x1x120x128xbf16, #tpu.memory_space<vmem>>, %arg9: memref<1x1x120x128xbf16, #tpu.memory_space<vmem>>, %arg10: memref<1x1x2x128xf32, #tpu.memory_space<vmem>>) attributes {dimension_semantics = [#tpu.dimension_semantics<parallel>, #tpu.dimension_semantics<parallel>], iteration_bounds = array<i64: 2, 8>, scalar_prefetch = 0 : i64, scratch_operands = 0 : i64, tpu.core_type = #tpu.core_type<tc>, window_params = [{pipeline_mode = #tpu.pipeline_mode<synchronous>, transform_indices = @transform_0, window_bounds = array<i64: 120, 1>}, {pipeline_mode = #tpu.pipeline_mode<synchronous>, transform_indices = @transform_1, window_bounds = array<i64: 3, 9, 128, 128>}, {pipeline_mode = #tpu.pipeline_mode<synchronous>, transform_indices = @transform_2, window_bounds = array<i64: 1, 128>}, {pipeline_mode = #tpu.pipeline_mode<synchronous>, transform_indices = @transform_3, window_bounds = array<i64: 1, 128>}, {transform_indices = @transform_4, window_bounds = array<i64: 1, 1, 120, 128>}, {transform_indices = @transform_5, window_bounds = array<i64: 1, 1, 120, 128>}, {transform_indices = @transform_6, window_bounds = array<i64: 1, 1, 120, 128>}, {transform_indices = @transform_7, window_bounds = array<i64: 1, 1, 120, 128>}, {transform_indices = @transform_8, window_bounds = array<i64: 1, 1, 2, 128>}]} {
    %c0_i32 = arith.constant 0 : i32
    %0 = arith.cmpi sgt, %arg1, %c0_i32 : i32
    %c7_i32 = arith.constant 7 : i32
    %1 = arith.cmpi slt, %arg1, %c7_i32 : i32
    %cst = arith.constant 0.000000e+00 : f32
    %2 = vector.broadcast %cst : f32 to vector<80x128xf32>
    %c0 = arith.constant 0 : index
    %c0_0 = arith.constant 0 : index
    %c0_1 = arith.constant 0 : index
    %c0_2 = arith.constant 0 : index
    %3 = vector.load %arg6[%c0, %c0_0, %c0_1, %c0_2] : memref<1x1x120x128xbf16, #tpu.memory_space<vmem>>, vector<1x1x120x128xbf16>
    %4 = vector.shape_cast %3 : vector<1x1x120x128xbf16> to vector<120x128xbf16>
    %5 = arith.extf %4 : vector<120x128xbf16> to vector<120x128xf32>
    %c0_3 = arith.constant 0 : index
    %c0_4 = arith.constant 0 : index
    %6 = vector.load %arg4[%c0_3, %c0_4] : memref<1x128xf32, #tpu.memory_space<vmem>>, vector<1x128xf32>
    %7 = vector.broadcast %6 : vector<1x128xf32> to vector<120x128xf32>
    %8 = arith.mulf %5, %7 : vector<120x128xf32>
    %c0_5 = arith.constant 0 : index
    %c0_6 = arith.constant 0 : index
    %9 = vector.load %arg5[%c0_5, %c0_6] : memref<1x128xf32, #tpu.memory_space<vmem>>, vector<1x128xf32>
    %10 = vector.broadcast %9 : vector<1x128xf32> to vector<120x128xf32>
    %11 = arith.addf %8, %10 : vector<120x128xf32>
    %cst_7 = arith.constant 0.000000e+00 : f32
    %12 = vector.broadcast %cst_7 : f32 to vector<120x128xf32>
    %13 = arith.maximumf %11, %12 : vector<120x128xf32>
    %c0_8 = arith.constant 0 : index
    %c0_9 = arith.constant 0 : index
    %14 = vector.load %arg2[%c0_8, %c0_9] : memref<120x1xf32, #tpu.memory_space<vmem>>, vector<120x1xf32>
    %cst_10 = arith.constant 5.000000e-01 : f32
    %15 = vector.broadcast %cst_10 : f32 to vector<120x1xf32>
    %16 = arith.cmpf ogt, %14, %15 : vector<120x1xf32>
    %cst_11 = arith.constant 0.000000e+00 : f32
    %17 = vector.shape_cast %16 : vector<120x1xi1> to vector<120x1xi1>
    %18 = vector.broadcast %17 : vector<120x1xi1> to vector<120x128xi1>
    %19 = vector.broadcast %cst_11 : f32 to vector<120x128xf32>
    %20 = arith.select %18, %13, %19 : vector<120x128xi1>, vector<120x128xf32>
    %21 = arith.truncf %20 : vector<120x128xf32> to vector<120x128xbf16>
    %cst_12 = arith.constant 0.000000e+00 : bf16
    %22 = vector.broadcast %cst_12 : bf16 to vector<120x128xbf16>
    %23 = arith.select %0, %21, %22 : vector<120x128xbf16>
    %24 = vector.extract_strided_slice %23 {offsets = [9, 0], sizes = [80, 128], strides = [1, 1]} : vector<120x128xbf16> to vector<80x128xbf16>
    %c0_13 = arith.constant 0 : index
    %c0_14 = arith.constant 0 : index
    %c0_15 = arith.constant 0 : index
    %c0_16 = arith.constant 0 : index
    %25 = vector.load %arg3[%c0_13, %c0_14, %c0_15, %c0_16] : memref<3x9x128x128xbf16, #tpu.memory_space<vmem>>, vector<1x1x128x128xbf16>
    %26 = vector.shape_cast %25 : vector<1x1x128x128xbf16> to vector<128x128xbf16>
    %cst_17 = arith.constant dense<0.000000e+00> : vector<80x128xf32>
    %27 = tpu.matmul %24, %26, %cst_17 {dimension_numbers = #tpu.dot_dimension_numbers<[1], [0], [0], [1], [0, 0, 1, 1], [], []>} : vector<80x128xbf16>, vector<128x128xbf16>, vector<80x128xf32> -> vector<80x128xf32>
    %28 = arith.addf %2, %27 : vector<80x128xf32>
    %29 = vector.extract_strided_slice %23 {offsets = [10, 0], sizes = [80, 128], strides = [1, 1]} : vector<120x128xbf16> to vector<80x128xbf16>
    %c0_18 = arith.constant 0 : index
    %c1 = arith.constant 1 : index
    %c0_19 = arith.constant 0 : index
    %c0_20 = arith.constant 0 : index
    %30 = vector.load %arg3[%c0_18, %c1, %c0_19, %c0_20] : memref<3x9x128x128xbf16, #tpu.memory_space<vmem>>, vector<1x1x128x128xbf16>
    %31 = vector.shape_cast %30 : vector<1x1x128x128xbf16> to vector<128x128xbf16>
    %cst_21 = arith.constant dense<0.000000e+00> : vector<80x128xf32>
    %32 = tpu.matmul %29, %31, %cst_21 {dimension_numbers = #tpu.dot_dimension_numbers<[1], [0], [0], [1], [0, 0, 1, 1], [], []>} : vector<80x128xbf16>, vector<128x128xbf16>, vector<80x128xf32> -> vector<80x128xf32>
    %33 = arith.addf %28, %32 : vector<80x128xf32>
    %34 = vector.extract_strided_slice %23 {offsets = [11, 0], sizes = [80, 128], strides = [1, 1]} : vector<120x128xbf16> to vector<80x128xbf16>
    %c0_22 = arith.constant 0 : index
    %c2 = arith.constant 2 : index
    %c0_23 = arith.constant 0 : index
    %c0_24 = arith.constant 0 : index
    %35 = vector.load %arg3[%c0_22, %c2, %c0_23, %c0_24] : memref<3x9x128x128xbf16, #tpu.memory_space<vmem>>, vector<1x1x128x128xbf16>
    %36 = vector.shape_cast %35 : vector<1x1x128x128xbf16> to vector<128x128xbf16>
    %cst_25 = arith.constant dense<0.000000e+00> : vector<80x128xf32>
    %37 = tpu.matmul %34, %36, %cst_25 {dimension_numbers = #tpu.dot_dimension_numbers<[1], [0], [0], [1], [0, 0, 1, 1], [], []>} : vector<80x128xbf16>, vector<128x128xbf16>, vector<80x128xf32> -> vector<80x128xf32>
    %38 = arith.addf %33, %37 : vector<80x128xf32>
    %39 = vector.extract_strided_slice %23 {offsets = [19, 0], sizes = [80, 128], strides = [1, 1]} : vector<120x128xbf16> to vector<80x128xbf16>
    %c0_26 = arith.constant 0 : index
    %c3 = arith.constant 3 : index
    %c0_27 = arith.constant 0 : index
    %c0_28 = arith.constant 0 : index
    %40 = vector.load %arg3[%c0_26, %c3, %c0_27, %c0_28] : memref<3x9x128x128xbf16, #tpu.memory_space<vmem>>, vector<1x1x128x128xbf16>
    %41 = vector.shape_cast %40 : vector<1x1x128x128xbf16> to vector<128x128xbf16>
    %cst_29 = arith.constant dense<0.000000e+00> : vector<80x128xf32>
    %42 = tpu.matmul %39, %41, %cst_29 {dimension_numbers = #tpu.dot_dimension_numbers<[1], [0], [0], [1], [0, 0, 1, 1], [], []>} : vector<80x128xbf16>, vector<128x128xbf16>, vector<80x128xf32> -> vector<80x128xf32>
    %43 = arith.addf %38, %42 : vector<80x128xf32>
    %44 = vector.extract_strided_slice %23 {offsets = [20, 0], sizes = [80, 128], strides = [1, 1]} : vector<120x128xbf16> to vector<80x128xbf16>
    %c0_30 = arith.constant 0 : index
    %c4 = arith.constant 4 : index
    %c0_31 = arith.constant 0 : index
    %c0_32 = arith.constant 0 : index
    %45 = vector.load %arg3[%c0_30, %c4, %c0_31, %c0_32] : memref<3x9x128x128xbf16, #tpu.memory_space<vmem>>, vector<1x1x128x128xbf16>
    %46 = vector.shape_cast %45 : vector<1x1x128x128xbf16> to vector<128x128xbf16>
    %cst_33 = arith.constant dense<0.000000e+00> : vector<80x128xf32>
    %47 = tpu.matmul %44, %46, %cst_33 {dimension_numbers = #tpu.dot_dimension_numbers<[1], [0], [0], [1], [0, 0, 1, 1], [], []>} : vector<80x128xbf16>, vector<128x128xbf16>, vector<80x128xf32> -> vector<80x128xf32>
    %48 = arith.addf %43, %47 : vector<80x128xf32>
    %49 = vector.extract_strided_slice %23 {offsets = [21, 0], sizes = [80, 128], strides = [1, 1]} : vector<120x128xbf16> to vector<80x128xbf16>
    %c0_34 = arith.constant 0 : index
    %c5 = arith.constant 5 : index
    %c0_35 = arith.constant 0 : index
    %c0_36 = arith.constant 0 : index
    %50 = vector.load %arg3[%c0_34, %c5, %c0_35, %c0_36] : memref<3x9x128x128xbf16, #tpu.memory_space<vmem>>, vector<1x1x128x128xbf16>
    %51 = vector.shape_cast %50 : vector<1x1x128x128xbf16> to vector<128x128xbf16>
    %cst_37 = arith.constant dense<0.000000e+00> : vector<80x128xf32>
    %52 = tpu.matmul %49, %51, %cst_37 {dimension_numbers = #tpu.dot_dimension_numbers<[1], [0], [0], [1], [0, 0, 1, 1], [], []>} : vector<80x128xbf16>, vector<128x128xbf16>, vector<80x128xf32> -> vector<80x128xf32>
    %53 = arith.addf %48, %52 : vector<80x128xf32>
    %54 = vector.extract_strided_slice %23 {offsets = [29, 0], sizes = [80, 128], strides = [1, 1]} : vector<120x128xbf16> to vector<80x128xbf16>
    %c0_38 = arith.constant 0 : index
    %c6 = arith.constant 6 : index
    %c0_39 = arith.constant 0 : index
    %c0_40 = arith.constant 0 : index
    %55 = vector.load %arg3[%c0_38, %c6, %c0_39, %c0_40] : memref<3x9x128x128xbf16, #tpu.memory_space<vmem>>, vector<1x1x128x128xbf16>
    %56 = vector.shape_cast %55 : vector<1x1x128x128xbf16> to vector<128x128xbf16>
    %cst_41 = arith.constant dense<0.000000e+00> : vector<80x128xf32>
    %57 = tpu.matmul %54, %56, %cst_41 {dimension_numbers = #tpu.dot_dimension_numbers<[1], [0], [0], [1], [0, 0, 1, 1], [], []>} : vector<80x128xbf16>, vector<128x128xbf16>, vector<80x128xf32> -> vector<80x128xf32>
    %58 = arith.addf %53, %57 : vector<80x128xf32>
    %59 = vector.extract_strided_slice %23 {offsets = [30, 0], sizes = [80, 128], strides = [1, 1]} : vector<120x128xbf16> to vector<80x128xbf16>
    %c0_42 = arith.constant 0 : index
    %c7 = arith.constant 7 : index
    %c0_43 = arith.constant 0 : index
    %c0_44 = arith.constant 0 : index
    %60 = vector.load %arg3[%c0_42, %c7, %c0_43, %c0_44] : memref<3x9x128x128xbf16, #tpu.memory_space<vmem>>, vector<1x1x128x128xbf16>
    %61 = vector.shape_cast %60 : vector<1x1x128x128xbf16> to vector<128x128xbf16>
    %cst_45 = arith.constant dense<0.000000e+00> : vector<80x128xf32>
    %62 = tpu.matmul %59, %61, %cst_45 {dimension_numbers = #tpu.dot_dimension_numbers<[1], [0], [0], [1], [0, 0, 1, 1], [], []>} : vector<80x128xbf16>, vector<128x128xbf16>, vector<80x128xf32> -> vector<80x128xf32>
    %63 = arith.addf %58, %62 : vector<80x128xf32>
    %64 = vector.extract_strided_slice %23 {offsets = [31, 0], sizes = [80, 128], strides = [1, 1]} : vector<120x128xbf16> to vector<80x128xbf16>
    %c0_46 = arith.constant 0 : index
    %c8 = arith.constant 8 : index
    %c0_47 = arith.constant 0 : index
    %c0_48 = arith.constant 0 : index
    %65 = vector.load %arg3[%c0_46, %c8, %c0_47, %c0_48] : memref<3x9x128x128xbf16, #tpu.memory_space<vmem>>, vector<1x1x128x128xbf16>
    %66 = vector.shape_cast %65 : vector<1x1x128x128xbf16> to vector<128x128xbf16>
    %cst_49 = arith.constant dense<0.000000e+00> : vector<80x128xf32>
    %67 = tpu.matmul %64, %66, %cst_49 {dimension_numbers = #tpu.dot_dimension_numbers<[1], [0], [0], [1], [0, 0, 1, 1], [], []>} : vector<80x128xbf16>, vector<128x128xbf16>, vector<80x128xf32> -> vector<80x128xf32>
    %68 = arith.addf %63, %67 : vector<80x128xf32>
    %c0_50 = arith.constant 0 : index
    %c0_51 = arith.constant 0 : index
    %c0_52 = arith.constant 0 : index
    %c0_53 = arith.constant 0 : index
    %69 = vector.load %arg7[%c0_50, %c0_51, %c0_52, %c0_53] : memref<1x1x120x128xbf16, #tpu.memory_space<vmem>>, vector<1x1x120x128xbf16>
    %70 = vector.shape_cast %69 : vector<1x1x120x128xbf16> to vector<120x128xbf16>
    %71 = arith.extf %70 : vector<120x128xbf16> to vector<120x128xf32>
    %c0_54 = arith.constant 0 : index
    %c0_55 = arith.constant 0 : index
    %72 = vector.load %arg4[%c0_54, %c0_55] : memref<1x128xf32, #tpu.memory_space<vmem>>, vector<1x128xf32>
    %73 = vector.broadcast %72 : vector<1x128xf32> to vector<120x128xf32>
    %74 = arith.mulf %71, %73 : vector<120x128xf32>
    %c0_56 = arith.constant 0 : index
    %c0_57 = arith.constant 0 : index
    %75 = vector.load %arg5[%c0_56, %c0_57] : memref<1x128xf32, #tpu.memory_space<vmem>>, vector<1x128xf32>
    %76 = vector.broadcast %75 : vector<1x128xf32> to vector<120x128xf32>
    %77 = arith.addf %74, %76 : vector<120x128xf32>
    %cst_58 = arith.constant 0.000000e+00 : f32
    %78 = vector.broadcast %cst_58 : f32 to vector<120x128xf32>
    %79 = arith.maximumf %77, %78 : vector<120x128xf32>
    %c0_59 = arith.constant 0 : index
    %c0_60 = arith.constant 0 : index
    %80 = vector.load %arg2[%c0_59, %c0_60] : memref<120x1xf32, #tpu.memory_space<vmem>>, vector<120x1xf32>
    %cst_61 = arith.constant 5.000000e-01 : f32
    %81 = vector.broadcast %cst_61 : f32 to vector<120x1xf32>
    %82 = arith.cmpf ogt, %80, %81 : vector<120x1xf32>
    %cst_62 = arith.constant 0.000000e+00 : f32
    %83 = vector.shape_cast %82 : vector<120x1xi1> to vector<120x1xi1>
    %84 = vector.broadcast %83 : vector<120x1xi1> to vector<120x128xi1>
    %85 = vector.broadcast %cst_62 : f32 to vector<120x128xf32>
    %86 = arith.select %84, %79, %85 : vector<120x128xi1>, vector<120x128xf32>
    %87 = arith.truncf %86 : vector<120x128xf32> to vector<120x128xbf16>
    %88 = vector.extract_strided_slice %87 {offsets = [9, 0], sizes = [80, 128], strides = [1, 1]} : vector<120x128xbf16> to vector<80x128xbf16>
    %c1_63 = arith.constant 1 : index
    %c0_64 = arith.constant 0 : index
    %c0_65 = arith.constant 0 : index
    %c0_66 = arith.constant 0 : index
    %89 = vector.load %arg3[%c1_63, %c0_64, %c0_65, %c0_66] : memref<3x9x128x128xbf16, #tpu.memory_space<vmem>>, vector<1x1x128x128xbf16>
    %90 = vector.shape_cast %89 : vector<1x1x128x128xbf16> to vector<128x128xbf16>
    %cst_67 = arith.constant dense<0.000000e+00> : vector<80x128xf32>
    %91 = tpu.matmul %88, %90, %cst_67 {dimension_numbers = #tpu.dot_dimension_numbers<[1], [0], [0], [1], [0, 0, 1, 1], [], []>} : vector<80x128xbf16>, vector<128x128xbf16>, vector<80x128xf32> -> vector<80x128xf32>
    %92 = arith.addf %68, %91 : vector<80x128xf32>
    %93 = vector.extract_strided_slice %87 {offsets = [10, 0], sizes = [80, 128], strides = [1, 1]} : vector<120x128xbf16> to vector<80x128xbf16>
    %c1_68 = arith.constant 1 : index
    %c1_69 = arith.constant 1 : index
    %c0_70 = arith.constant 0 : index
    %c0_71 = arith.constant 0 : index
    %94 = vector.load %arg3[%c1_68, %c1_69, %c0_70, %c0_71] : memref<3x9x128x128xbf16, #tpu.memory_space<vmem>>, vector<1x1x128x128xbf16>
    %95 = vector.shape_cast %94 : vector<1x1x128x128xbf16> to vector<128x128xbf16>
    %cst_72 = arith.constant dense<0.000000e+00> : vector<80x128xf32>
    %96 = tpu.matmul %93, %95, %cst_72 {dimension_numbers = #tpu.dot_dimension_numbers<[1], [0], [0], [1], [0, 0, 1, 1], [], []>} : vector<80x128xbf16>, vector<128x128xbf16>, vector<80x128xf32> -> vector<80x128xf32>
    %97 = arith.addf %92, %96 : vector<80x128xf32>
    %98 = vector.extract_strided_slice %87 {offsets = [11, 0], sizes = [80, 128], strides = [1, 1]} : vector<120x128xbf16> to vector<80x128xbf16>
    %c1_73 = arith.constant 1 : index
    %c2_74 = arith.constant 2 : index
    %c0_75 = arith.constant 0 : index
    %c0_76 = arith.constant 0 : index
    %99 = vector.load %arg3[%c1_73, %c2_74, %c0_75, %c0_76] : memref<3x9x128x128xbf16, #tpu.memory_space<vmem>>, vector<1x1x128x128xbf16>
    %100 = vector.shape_cast %99 : vector<1x1x128x128xbf16> to vector<128x128xbf16>
    %cst_77 = arith.constant dense<0.000000e+00> : vector<80x128xf32>
    %101 = tpu.matmul %98, %100, %cst_77 {dimension_numbers = #tpu.dot_dimension_numbers<[1], [0], [0], [1], [0, 0, 1, 1], [], []>} : vector<80x128xbf16>, vector<128x128xbf16>, vector<80x128xf32> -> vector<80x128xf32>
    %102 = arith.addf %97, %101 : vector<80x128xf32>
    %103 = vector.extract_strided_slice %87 {offsets = [19, 0], sizes = [80, 128], strides = [1, 1]} : vector<120x128xbf16> to vector<80x128xbf16>
    %c1_78 = arith.constant 1 : index
    %c3_79 = arith.constant 3 : index
    %c0_80 = arith.constant 0 : index
    %c0_81 = arith.constant 0 : index
    %104 = vector.load %arg3[%c1_78, %c3_79, %c0_80, %c0_81] : memref<3x9x128x128xbf16, #tpu.memory_space<vmem>>, vector<1x1x128x128xbf16>
    %105 = vector.shape_cast %104 : vector<1x1x128x128xbf16> to vector<128x128xbf16>
    %cst_82 = arith.constant dense<0.000000e+00> : vector<80x128xf32>
    %106 = tpu.matmul %103, %105, %cst_82 {dimension_numbers = #tpu.dot_dimension_numbers<[1], [0], [0], [1], [0, 0, 1, 1], [], []>} : vector<80x128xbf16>, vector<128x128xbf16>, vector<80x128xf32> -> vector<80x128xf32>
    %107 = arith.addf %102, %106 : vector<80x128xf32>
    %108 = vector.extract_strided_slice %87 {offsets = [20, 0], sizes = [80, 128], strides = [1, 1]} : vector<120x128xbf16> to vector<80x128xbf16>
    %c1_83 = arith.constant 1 : index
    %c4_84 = arith.constant 4 : index
    %c0_85 = arith.constant 0 : index
    %c0_86 = arith.constant 0 : index
    %109 = vector.load %arg3[%c1_83, %c4_84, %c0_85, %c0_86] : memref<3x9x128x128xbf16, #tpu.memory_space<vmem>>, vector<1x1x128x128xbf16>
    %110 = vector.shape_cast %109 : vector<1x1x128x128xbf16> to vector<128x128xbf16>
    %cst_87 = arith.constant dense<0.000000e+00> : vector<80x128xf32>
    %111 = tpu.matmul %108, %110, %cst_87 {dimension_numbers = #tpu.dot_dimension_numbers<[1], [0], [0], [1], [0, 0, 1, 1], [], []>} : vector<80x128xbf16>, vector<128x128xbf16>, vector<80x128xf32> -> vector<80x128xf32>
    %112 = arith.addf %107, %111 : vector<80x128xf32>
    %113 = vector.extract_strided_slice %87 {offsets = [21, 0], sizes = [80, 128], strides = [1, 1]} : vector<120x128xbf16> to vector<80x128xbf16>
    %c1_88 = arith.constant 1 : index
    %c5_89 = arith.constant 5 : index
    %c0_90 = arith.constant 0 : index
    %c0_91 = arith.constant 0 : index
    %114 = vector.load %arg3[%c1_88, %c5_89, %c0_90, %c0_91] : memref<3x9x128x128xbf16, #tpu.memory_space<vmem>>, vector<1x1x128x128xbf16>
    %115 = vector.shape_cast %114 : vector<1x1x128x128xbf16> to vector<128x128xbf16>
    %cst_92 = arith.constant dense<0.000000e+00> : vector<80x128xf32>
    %116 = tpu.matmul %113, %115, %cst_92 {dimension_numbers = #tpu.dot_dimension_numbers<[1], [0], [0], [1], [0, 0, 1, 1], [], []>} : vector<80x128xbf16>, vector<128x128xbf16>, vector<80x128xf32> -> vector<80x128xf32>
    %117 = arith.addf %112, %116 : vector<80x128xf32>
    %118 = vector.extract_strided_slice %87 {offsets = [29, 0], sizes = [80, 128], strides = [1, 1]} : vector<120x128xbf16> to vector<80x128xbf16>
    %c1_93 = arith.constant 1 : index
    %c6_94 = arith.constant 6 : index
    %c0_95 = arith.constant 0 : index
    %c0_96 = arith.constant 0 : index
    %119 = vector.load %arg3[%c1_93, %c6_94, %c0_95, %c0_96] : memref<3x9x128x128xbf16, #tpu.memory_space<vmem>>, vector<1x1x128x128xbf16>
    %120 = vector.shape_cast %119 : vector<1x1x128x128xbf16> to vector<128x128xbf16>
    %cst_97 = arith.constant dense<0.000000e+00> : vector<80x128xf32>
    %121 = tpu.matmul %118, %120, %cst_97 {dimension_numbers = #tpu.dot_dimension_numbers<[1], [0], [0], [1], [0, 0, 1, 1], [], []>} : vector<80x128xbf16>, vector<128x128xbf16>, vector<80x128xf32> -> vector<80x128xf32>
    %122 = arith.addf %117, %121 : vector<80x128xf32>
    %123 = vector.extract_strided_slice %87 {offsets = [30, 0], sizes = [80, 128], strides = [1, 1]} : vector<120x128xbf16> to vector<80x128xbf16>
    %c1_98 = arith.constant 1 : index
    %c7_99 = arith.constant 7 : index
    %c0_100 = arith.constant 0 : index
    %c0_101 = arith.constant 0 : index
    %124 = vector.load %arg3[%c1_98, %c7_99, %c0_100, %c0_101] : memref<3x9x128x128xbf16, #tpu.memory_space<vmem>>, vector<1x1x128x128xbf16>
    %125 = vector.shape_cast %124 : vector<1x1x128x128xbf16> to vector<128x128xbf16>
    %cst_102 = arith.constant dense<0.000000e+00> : vector<80x128xf32>
    %126 = tpu.matmul %123, %125, %cst_102 {dimension_numbers = #tpu.dot_dimension_numbers<[1], [0], [0], [1], [0, 0, 1, 1], [], []>} : vector<80x128xbf16>, vector<128x128xbf16>, vector<80x128xf32> -> vector<80x128xf32>
    %127 = arith.addf %122, %126 : vector<80x128xf32>
    %128 = vector.extract_strided_slice %87 {offsets = [31, 0], sizes = [80, 128], strides = [1, 1]} : vector<120x128xbf16> to vector<80x128xbf16>
    %c1_103 = arith.constant 1 : index
    %c8_104 = arith.constant 8 : index
    %c0_105 = arith.constant 0 : index
    %c0_106 = arith.constant 0 : index
    %129 = vector.load %arg3[%c1_103, %c8_104, %c0_105, %c0_106] : memref<3x9x128x128xbf16, #tpu.memory_space<vmem>>, vector<1x1x128x128xbf16>
    %130 = vector.shape_cast %129 : vector<1x1x128x128xbf16> to vector<128x128xbf16>
    %cst_107 = arith.constant dense<0.000000e+00> : vector<80x128xf32>
    %131 = tpu.matmul %128, %130, %cst_107 {dimension_numbers = #tpu.dot_dimension_numbers<[1], [0], [0], [1], [0, 0, 1, 1], [], []>} : vector<80x128xbf16>, vector<128x128xbf16>, vector<80x128xf32> -> vector<80x128xf32>
    %132 = arith.addf %127, %131 : vector<80x128xf32>
    %c0_108 = arith.constant 0 : index
    %c0_109 = arith.constant 0 : index
    %c0_110 = arith.constant 0 : index
    %c0_111 = arith.constant 0 : index
    %133 = vector.load %arg8[%c0_108, %c0_109, %c0_110, %c0_111] : memref<1x1x120x128xbf16, #tpu.memory_space<vmem>>, vector<1x1x120x128xbf16>
    %134 = vector.shape_cast %133 : vector<1x1x120x128xbf16> to vector<120x128xbf16>
    %135 = arith.extf %134 : vector<120x128xbf16> to vector<120x128xf32>
    %c0_112 = arith.constant 0 : index
    %c0_113 = arith.constant 0 : index
    %136 = vector.load %arg4[%c0_112, %c0_113] : memref<1x128xf32, #tpu.memory_space<vmem>>, vector<1x128xf32>
    %137 = vector.broadcast %136 : vector<1x128xf32> to vector<120x128xf32>
    %138 = arith.mulf %135, %137 : vector<120x128xf32>
    %c0_114 = arith.constant 0 : index
    %c0_115 = arith.constant 0 : index
    %139 = vector.load %arg5[%c0_114, %c0_115] : memref<1x128xf32, #tpu.memory_space<vmem>>, vector<1x128xf32>
    %140 = vector.broadcast %139 : vector<1x128xf32> to vector<120x128xf32>
    %141 = arith.addf %138, %140 : vector<120x128xf32>
    %cst_116 = arith.constant 0.000000e+00 : f32
    %142 = vector.broadcast %cst_116 : f32 to vector<120x128xf32>
    %143 = arith.maximumf %141, %142 : vector<120x128xf32>
    %c0_117 = arith.constant 0 : index
    %c0_118 = arith.constant 0 : index
    %144 = vector.load %arg2[%c0_117, %c0_118] : memref<120x1xf32, #tpu.memory_space<vmem>>, vector<120x1xf32>
    %cst_119 = arith.constant 5.000000e-01 : f32
    %145 = vector.broadcast %cst_119 : f32 to vector<120x1xf32>
    %146 = arith.cmpf ogt, %144, %145 : vector<120x1xf32>
    %cst_120 = arith.constant 0.000000e+00 : f32
    %147 = vector.shape_cast %146 : vector<120x1xi1> to vector<120x1xi1>
    %148 = vector.broadcast %147 : vector<120x1xi1> to vector<120x128xi1>
    %149 = vector.broadcast %cst_120 : f32 to vector<120x128xf32>
    %150 = arith.select %148, %143, %149 : vector<120x128xi1>, vector<120x128xf32>
    %151 = arith.truncf %150 : vector<120x128xf32> to vector<120x128xbf16>
    %cst_121 = arith.constant 0.000000e+00 : bf16
    %152 = vector.broadcast %cst_121 : bf16 to vector<120x128xbf16>
    %153 = arith.select %1, %151, %152 : vector<120x128xbf16>
    %154 = vector.extract_strided_slice %153 {offsets = [9, 0], sizes = [80, 128], strides = [1, 1]} : vector<120x128xbf16> to vector<80x128xbf16>
    %c2_122 = arith.constant 2 : index
    %c0_123 = arith.constant 0 : index
    %c0_124 = arith.constant 0 : index
    %c0_125 = arith.constant 0 : index
    %155 = vector.load %arg3[%c2_122, %c0_123, %c0_124, %c0_125] : memref<3x9x128x128xbf16, #tpu.memory_space<vmem>>, vector<1x1x128x128xbf16>
    %156 = vector.shape_cast %155 : vector<1x1x128x128xbf16> to vector<128x128xbf16>
    %cst_126 = arith.constant dense<0.000000e+00> : vector<80x128xf32>
    %157 = tpu.matmul %154, %156, %cst_126 {dimension_numbers = #tpu.dot_dimension_numbers<[1], [0], [0], [1], [0, 0, 1, 1], [], []>} : vector<80x128xbf16>, vector<128x128xbf16>, vector<80x128xf32> -> vector<80x128xf32>
    %158 = arith.addf %132, %157 : vector<80x128xf32>
    %159 = vector.extract_strided_slice %153 {offsets = [10, 0], sizes = [80, 128], strides = [1, 1]} : vector<120x128xbf16> to vector<80x128xbf16>
    %c2_127 = arith.constant 2 : index
    %c1_128 = arith.constant 1 : index
    %c0_129 = arith.constant 0 : index
    %c0_130 = arith.constant 0 : index
    %160 = vector.load %arg3[%c2_127, %c1_128, %c0_129, %c0_130] : memref<3x9x128x128xbf16, #tpu.memory_space<vmem>>, vector<1x1x128x128xbf16>
    %161 = vector.shape_cast %160 : vector<1x1x128x128xbf16> to vector<128x128xbf16>
    %cst_131 = arith.constant dense<0.000000e+00> : vector<80x128xf32>
    %162 = tpu.matmul %159, %161, %cst_131 {dimension_numbers = #tpu.dot_dimension_numbers<[1], [0], [0], [1], [0, 0, 1, 1], [], []>} : vector<80x128xbf16>, vector<128x128xbf16>, vector<80x128xf32> -> vector<80x128xf32>
    %163 = arith.addf %158, %162 : vector<80x128xf32>
    %164 = vector.extract_strided_slice %153 {offsets = [11, 0], sizes = [80, 128], strides = [1, 1]} : vector<120x128xbf16> to vector<80x128xbf16>
    %c2_132 = arith.constant 2 : index
    %c2_133 = arith.constant 2 : index
    %c0_134 = arith.constant 0 : index
    %c0_135 = arith.constant 0 : index
    %165 = vector.load %arg3[%c2_132, %c2_133, %c0_134, %c0_135] : memref<3x9x128x128xbf16, #tpu.memory_space<vmem>>, vector<1x1x128x128xbf16>
    %166 = vector.shape_cast %165 : vector<1x1x128x128xbf16> to vector<128x128xbf16>
    %cst_136 = arith.constant dense<0.000000e+00> : vector<80x128xf32>
    %167 = tpu.matmul %164, %166, %cst_136 {dimension_numbers = #tpu.dot_dimension_numbers<[1], [0], [0], [1], [0, 0, 1, 1], [], []>} : vector<80x128xbf16>, vector<128x128xbf16>, vector<80x128xf32> -> vector<80x128xf32>
    %168 = arith.addf %163, %167 : vector<80x128xf32>
    %169 = vector.extract_strided_slice %153 {offsets = [19, 0], sizes = [80, 128], strides = [1, 1]} : vector<120x128xbf16> to vector<80x128xbf16>
    %c2_137 = arith.constant 2 : index
    %c3_138 = arith.constant 3 : index
    %c0_139 = arith.constant 0 : index
    %c0_140 = arith.constant 0 : index
    %170 = vector.load %arg3[%c2_137, %c3_138, %c0_139, %c0_140] : memref<3x9x128x128xbf16, #tpu.memory_space<vmem>>, vector<1x1x128x128xbf16>
    %171 = vector.shape_cast %170 : vector<1x1x128x128xbf16> to vector<128x128xbf16>
    %cst_141 = arith.constant dense<0.000000e+00> : vector<80x128xf32>
    %172 = tpu.matmul %169, %171, %cst_141 {dimension_numbers = #tpu.dot_dimension_numbers<[1], [0], [0], [1], [0, 0, 1, 1], [], []>} : vector<80x128xbf16>, vector<128x128xbf16>, vector<80x128xf32> -> vector<80x128xf32>
    %173 = arith.addf %168, %172 : vector<80x128xf32>
    %174 = vector.extract_strided_slice %153 {offsets = [20, 0], sizes = [80, 128], strides = [1, 1]} : vector<120x128xbf16> to vector<80x128xbf16>
    %c2_142 = arith.constant 2 : index
    %c4_143 = arith.constant 4 : index
    %c0_144 = arith.constant 0 : index
    %c0_145 = arith.constant 0 : index
    %175 = vector.load %arg3[%c2_142, %c4_143, %c0_144, %c0_145] : memref<3x9x128x128xbf16, #tpu.memory_space<vmem>>, vector<1x1x128x128xbf16>
    %176 = vector.shape_cast %175 : vector<1x1x128x128xbf16> to vector<128x128xbf16>
    %cst_146 = arith.constant dense<0.000000e+00> : vector<80x128xf32>
    %177 = tpu.matmul %174, %176, %cst_146 {dimension_numbers = #tpu.dot_dimension_numbers<[1], [0], [0], [1], [0, 0, 1, 1], [], []>} : vector<80x128xbf16>, vector<128x128xbf16>, vector<80x128xf32> -> vector<80x128xf32>
    %178 = arith.addf %173, %177 : vector<80x128xf32>
    %179 = vector.extract_strided_slice %153 {offsets = [21, 0], sizes = [80, 128], strides = [1, 1]} : vector<120x128xbf16> to vector<80x128xbf16>
    %c2_147 = arith.constant 2 : index
    %c5_148 = arith.constant 5 : index
    %c0_149 = arith.constant 0 : index
    %c0_150 = arith.constant 0 : index
    %180 = vector.load %arg3[%c2_147, %c5_148, %c0_149, %c0_150] : memref<3x9x128x128xbf16, #tpu.memory_space<vmem>>, vector<1x1x128x128xbf16>
    %181 = vector.shape_cast %180 : vector<1x1x128x128xbf16> to vector<128x128xbf16>
    %cst_151 = arith.constant dense<0.000000e+00> : vector<80x128xf32>
    %182 = tpu.matmul %179, %181, %cst_151 {dimension_numbers = #tpu.dot_dimension_numbers<[1], [0], [0], [1], [0, 0, 1, 1], [], []>} : vector<80x128xbf16>, vector<128x128xbf16>, vector<80x128xf32> -> vector<80x128xf32>
    %183 = arith.addf %178, %182 : vector<80x128xf32>
    %184 = vector.extract_strided_slice %153 {offsets = [29, 0], sizes = [80, 128], strides = [1, 1]} : vector<120x128xbf16> to vector<80x128xbf16>
    %c2_152 = arith.constant 2 : index
    %c6_153 = arith.constant 6 : index
    %c0_154 = arith.constant 0 : index
    %c0_155 = arith.constant 0 : index
    %185 = vector.load %arg3[%c2_152, %c6_153, %c0_154, %c0_155] : memref<3x9x128x128xbf16, #tpu.memory_space<vmem>>, vector<1x1x128x128xbf16>
    %186 = vector.shape_cast %185 : vector<1x1x128x128xbf16> to vector<128x128xbf16>
    %cst_156 = arith.constant dense<0.000000e+00> : vector<80x128xf32>
    %187 = tpu.matmul %184, %186, %cst_156 {dimension_numbers = #tpu.dot_dimension_numbers<[1], [0], [0], [1], [0, 0, 1, 1], [], []>} : vector<80x128xbf16>, vector<128x128xbf16>, vector<80x128xf32> -> vector<80x128xf32>
    %188 = arith.addf %183, %187 : vector<80x128xf32>
    %189 = vector.extract_strided_slice %153 {offsets = [30, 0], sizes = [80, 128], strides = [1, 1]} : vector<120x128xbf16> to vector<80x128xbf16>
    %c2_157 = arith.constant 2 : index
    %c7_158 = arith.constant 7 : index
    %c0_159 = arith.constant 0 : index
    %c0_160 = arith.constant 0 : index
    %190 = vector.load %arg3[%c2_157, %c7_158, %c0_159, %c0_160] : memref<3x9x128x128xbf16, #tpu.memory_space<vmem>>, vector<1x1x128x128xbf16>
    %191 = vector.shape_cast %190 : vector<1x1x128x128xbf16> to vector<128x128xbf16>
    %cst_161 = arith.constant dense<0.000000e+00> : vector<80x128xf32>
    %192 = tpu.matmul %189, %191, %cst_161 {dimension_numbers = #tpu.dot_dimension_numbers<[1], [0], [0], [1], [0, 0, 1, 1], [], []>} : vector<80x128xbf16>, vector<128x128xbf16>, vector<80x128xf32> -> vector<80x128xf32>
    %193 = arith.addf %188, %192 : vector<80x128xf32>
    %194 = vector.extract_strided_slice %153 {offsets = [31, 0], sizes = [80, 128], strides = [1, 1]} : vector<120x128xbf16> to vector<80x128xbf16>
    %c2_162 = arith.constant 2 : index
    %c8_163 = arith.constant 8 : index
    %c0_164 = arith.constant 0 : index
    %c0_165 = arith.constant 0 : index
    %195 = vector.load %arg3[%c2_162, %c8_163, %c0_164, %c0_165] : memref<3x9x128x128xbf16, #tpu.memory_space<vmem>>, vector<1x1x128x128xbf16>
    %196 = vector.shape_cast %195 : vector<1x1x128x128xbf16> to vector<128x128xbf16>
    %cst_166 = arith.constant dense<0.000000e+00> : vector<80x128xf32>
    %197 = tpu.matmul %194, %196, %cst_166 {dimension_numbers = #tpu.dot_dimension_numbers<[1], [0], [0], [1], [0, 0, 1, 1], [], []>} : vector<80x128xbf16>, vector<128x128xbf16>, vector<80x128xf32> -> vector<80x128xf32>
    %198 = arith.addf %193, %197 : vector<80x128xf32>
    %cst_167 = arith.constant 0.000000e+00 : bf16
    %199 = vector.broadcast %cst_167 : bf16 to vector<20x128xbf16>
    %c0_168 = arith.constant 0 : index
    %c0_169 = arith.constant 0 : index
    %c0_170 = arith.constant 0 : index
    %c0_171 = arith.constant 0 : index
    %200 = vector.load %arg9[%c0_168, %c0_169, %c0_170, %c0_171] : memref<1x1x120x128xbf16, #tpu.memory_space<vmem>>, vector<1x1x20x128xbf16>
    %201 = vector.shape_cast %200 : vector<1x1x20x128xbf16> to vector<20x128xbf16>
    %202 = vector.shape_cast %199 : vector<20x128xbf16> to vector<1x1x20x128xbf16>
    tpu.vector_store %arg9[%c0_168, %c0_169, %c0_170, %c0_171], %202 {strides = array<i32>} : memref<1x1x120x128xbf16, #tpu.memory_space<vmem>>, vector<1x1x20x128xbf16>,
    %203 = arith.truncf %198 : vector<80x128xf32> to vector<80x128xbf16>
    %c0_172 = arith.constant 0 : index
    %c0_173 = arith.constant 0 : index
    %c20 = arith.constant 20 : index
    %c0_174 = arith.constant 0 : index
    %204 = vector.load %arg9[%c0_172, %c0_173, %c20, %c0_174] : memref<1x1x120x128xbf16, #tpu.memory_space<vmem>>, vector<1x1x80x128xbf16>
    %205 = vector.shape_cast %204 : vector<1x1x80x128xbf16> to vector<80x128xbf16>
    %206 = vector.shape_cast %203 : vector<80x128xbf16> to vector<1x1x80x128xbf16>
    tpu.vector_store %arg9[%c0_172, %c0_173, %c20, %c0_174], %206 {strides = array<i32>} : memref<1x1x120x128xbf16, #tpu.memory_space<vmem>>, vector<1x1x80x128xbf16>,
    %cst_175 = arith.constant 0.000000e+00 : bf16
    %207 = vector.broadcast %cst_175 : bf16 to vector<20x128xbf16>
    %c0_176 = arith.constant 0 : index
    %c0_177 = arith.constant 0 : index
    %c100 = arith.constant 100 : index
    %c0_178 = arith.constant 0 : index
    %208 = vector.load %arg9[%c0_176, %c0_177, %c100, %c0_178] : memref<1x1x120x128xbf16, #tpu.memory_space<vmem>>, vector<1x1x20x128xbf16>
    %209 = vector.shape_cast %208 : vector<1x1x20x128xbf16> to vector<20x128xbf16>
    %210 = vector.shape_cast %207 : vector<20x128xbf16> to vector<1x1x20x128xbf16>
    tpu.vector_store %arg9[%c0_176, %c0_177, %c100, %c0_178], %210 {strides = array<i32>} : memref<1x1x120x128xbf16, #tpu.memory_space<vmem>>, vector<1x1x20x128xbf16>,
    %c20_179 = arith.constant 20 : index
    %c0_180 = arith.constant 0 : index
    %211 = vector.load %arg2[%c20_179, %c0_180] : memref<120x1xf32, #tpu.memory_space<vmem>>, vector<80x1xf32>
    %cst_181 = arith.constant 5.000000e-01 : f32
    %212 = vector.broadcast %cst_181 : f32 to vector<80x1xf32>
    %213 = arith.cmpf ogt, %211, %212 : vector<80x1xf32>
    %cst_182 = arith.constant 0.000000e+00 : f32
    %214 = vector.shape_cast %213 : vector<80x1xi1> to vector<80x1xi1>
    %215 = vector.broadcast %214 : vector<80x1xi1> to vector<80x128xi1>
    %216 = vector.broadcast %cst_182 : f32 to vector<80x128xf32>
    %217 = arith.select %215, %198, %216 : vector<80x128xi1>, vector<80x128xf32>
    %cst_183 = arith.constant dense<0.000000e+00> : vector<128xf32>
    %218 = vector.multi_reduction <add>, %217, %cst_183 [0] : vector<80x128xf32> to vector<128xf32>
    %219 = vector.shape_cast %218 : vector<128xf32> to vector<1x128xf32>
    %220 = arith.mulf %217, %217 : vector<80x128xf32>
    %cst_184 = arith.constant dense<0.000000e+00> : vector<128xf32>
    %221 = vector.multi_reduction <add>, %220, %cst_184 [0] : vector<80x128xf32> to vector<128xf32>
    %222 = vector.shape_cast %221 : vector<128xf32> to vector<1x128xf32>
    %223 = tpu.concatenate %219, %222 in 0 : vector<1x128xf32>, vector<1x128xf32> -> vector<2x128xf32>
    %224 = vector.shape_cast %223 : vector<2x128xf32> to vector<1x1x2x128xf32>
    %c0_185 = arith.constant 0 : index
    %c0_186 = arith.constant 0 : index
    %c0_187 = arith.constant 0 : index
    %c0_188 = arith.constant 0 : index
    %225 = vector.load %arg10[%c0_185, %c0_186, %c0_187, %c0_188] : memref<1x1x2x128xf32, #tpu.memory_space<vmem>>, vector<1x1x2x128xf32>
    tpu.vector_store %arg10[%c0_185, %c0_186, %c0_187, %c0_188], %224 {strides = array<i32>} : memref<1x1x2x128xf32, #tpu.memory_space<vmem>>, vector<1x1x2x128xf32>,
    return
  }
  func.func @transform_0(%arg0: i32, %arg1: i32) -> (i32, i32) {
    %c0_i32 = arith.constant 0 : i32
    %c0_i32_0 = arith.constant 0 : i32
    %c0_i32_1 = arith.constant 0 : i32
    return %c0_i32, %c0_i32_0 : i32, i32
  }
  func.func @transform_1(%arg0: i32, %arg1: i32) -> (i32, i32, i32, i32) {
    %c0_i32 = arith.constant 0 : i32
    %c0_i32_0 = arith.constant 0 : i32
    %c0_i32_1 = arith.constant 0 : i32
    %c0_i32_2 = arith.constant 0 : i32
    %c0_i32_3 = arith.constant 0 : i32
    return %c0_i32, %c0_i32_0, %c0_i32_1, %c0_i32_2 : i32, i32, i32, i32
  }
  func.func @transform_2(%arg0: i32, %arg1: i32) -> (i32, i32) {
    %c0_i32 = arith.constant 0 : i32
    %c0_i32_0 = arith.constant 0 : i32
    %c0_i32_1 = arith.constant 0 : i32
    return %c0_i32, %c0_i32_0 : i32, i32
  }
  func.func @transform_3(%arg0: i32, %arg1: i32) -> (i32, i32) {
    %c0_i32 = arith.constant 0 : i32
    %c0_i32_0 = arith.constant 0 : i32
    %c0_i32_1 = arith.constant 0 : i32
    return %c0_i32, %c0_i32_0 : i32, i32
  }
  func.func @transform_4(%arg0: i32, %arg1: i32) -> (i32, i32, i32, i32) {
    %c1_i32 = arith.constant 1 : i32
    %0 = arith.subi %arg1, %c1_i32 : i32
    %c0_i32 = arith.constant 0 : i32
    %1 = arith.maxsi %0, %c0_i32 : i32
    %c0_i32_0 = arith.constant 0 : i32
    %c0_i32_1 = arith.constant 0 : i32
    %c0_i32_2 = arith.constant 0 : i32
    return %arg0, %1, %c0_i32_0, %c0_i32_1 : i32, i32, i32, i32
  }
  func.func @transform_5(%arg0: i32, %arg1: i32) -> (i32, i32, i32, i32) {
    %c0_i32 = arith.constant 0 : i32
    %c0_i32_0 = arith.constant 0 : i32
    %c0_i32_1 = arith.constant 0 : i32
    return %arg0, %arg1, %c0_i32, %c0_i32_0 : i32, i32, i32, i32
  }
  func.func @transform_6(%arg0: i32, %arg1: i32) -> (i32, i32, i32, i32) {
    %c1_i32 = arith.constant 1 : i32
    %0 = arith.addi %arg1, %c1_i32 : i32
    %c7_i32 = arith.constant 7 : i32
    %1 = arith.minsi %0, %c7_i32 : i32
    %c0_i32 = arith.constant 0 : i32
    %c0_i32_0 = arith.constant 0 : i32
    %c0_i32_1 = arith.constant 0 : i32
    return %arg0, %1, %c0_i32, %c0_i32_0 : i32, i32, i32, i32
  }
  func.func @transform_7(%arg0: i32, %arg1: i32) -> (i32, i32, i32, i32) {
    %c0_i32 = arith.constant 0 : i32
    %c0_i32_0 = arith.constant 0 : i32
    %c0_i32_1 = arith.constant 0 : i32
    return %arg0, %arg1, %c0_i32, %c0_i32_0 : i32, i32, i32, i32
  }
  func.func @transform_8(%arg0: i32, %arg1: i32) -> (i32, i32, i32, i32) {
    %c0_i32 = arith.constant 0 : i32
    %c0_i32_0 = arith.constant 0 : i32
    %c0_i32_1 = arith.constant 0 : i32
    return %arg0, %arg1, %c0_i32, %c0_i32_0 : i32, i32, i32, i32
  }
}

module attributes {stable_mosaic.version = 11 : i64} {
  func.func @_bn_relu_kernel(%arg0: i32, %arg1: i32, %arg2: memref<1x1x120x128xbf16, #tpu.memory_space<vmem>>, %arg3: memref<1x128xf32, #tpu.memory_space<vmem>>, %arg4: memref<1x128xf32, #tpu.memory_space<vmem>>, %arg5: memref<1x1x120x128xf32, #tpu.memory_space<vmem>>) attributes {dimension_semantics = [#tpu.dimension_semantics<parallel>, #tpu.dimension_semantics<parallel>], iteration_bounds = array<i64: 2, 8>, scalar_prefetch = 0 : i64, scratch_operands = 0 : i64, tpu.core_type = #tpu.core_type<tc>, window_params = [{transform_indices = @transform_0, window_bounds = array<i64: 1, 1, 120, 128>}, {pipeline_mode = #tpu.pipeline_mode<synchronous>, transform_indices = @transform_1, window_bounds = array<i64: 1, 128>}, {pipeline_mode = #tpu.pipeline_mode<synchronous>, transform_indices = @transform_2, window_bounds = array<i64: 1, 128>}, {transform_indices = @transform_3, window_bounds = array<i64: 1, 1, 120, 128>}]} {
    %c0 = arith.constant 0 : index
    %c0_0 = arith.constant 0 : index
    %c0_1 = arith.constant 0 : index
    %c0_2 = arith.constant 0 : index
    %0 = vector.load %arg2[%c0, %c0_0, %c0_1, %c0_2] : memref<1x1x120x128xbf16, #tpu.memory_space<vmem>>, vector<1x1x120x128xbf16>
    %1 = vector.shape_cast %0 : vector<1x1x120x128xbf16> to vector<120x128xbf16>
    %2 = arith.extf %1 : vector<120x128xbf16> to vector<120x128xf32>
    %c0_3 = arith.constant 0 : index
    %c0_4 = arith.constant 0 : index
    %3 = vector.load %arg3[%c0_3, %c0_4] : memref<1x128xf32, #tpu.memory_space<vmem>>, vector<1x128xf32>
    %4 = vector.broadcast %3 : vector<1x128xf32> to vector<120x128xf32>
    %5 = arith.mulf %2, %4 : vector<120x128xf32>
    %c0_5 = arith.constant 0 : index
    %c0_6 = arith.constant 0 : index
    %6 = vector.load %arg4[%c0_5, %c0_6] : memref<1x128xf32, #tpu.memory_space<vmem>>, vector<1x128xf32>
    %7 = vector.broadcast %6 : vector<1x128xf32> to vector<120x128xf32>
    %8 = arith.addf %5, %7 : vector<120x128xf32>
    %cst = arith.constant 0.000000e+00 : f32
    %9 = vector.broadcast %cst : f32 to vector<120x128xf32>
    %10 = arith.maximumf %8, %9 : vector<120x128xf32>
    %c0_7 = arith.constant 0 : index
    %c0_8 = arith.constant 0 : index
    %c0_9 = arith.constant 0 : index
    %c0_10 = arith.constant 0 : index
    %11 = vector.load %arg5[%c0_7, %c0_8, %c0_9, %c0_10] : memref<1x1x120x128xf32, #tpu.memory_space<vmem>>, vector<1x1x120x128xf32>
    %12 = vector.shape_cast %11 : vector<1x1x120x128xf32> to vector<120x128xf32>
    %13 = vector.shape_cast %10 : vector<120x128xf32> to vector<1x1x120x128xf32>
    tpu.vector_store %arg5[%c0_7, %c0_8, %c0_9, %c0_10], %13 {strides = array<i32>} : memref<1x1x120x128xf32, #tpu.memory_space<vmem>>, vector<1x1x120x128xf32>,
    return
  }
  func.func @transform_0(%arg0: i32, %arg1: i32) -> (i32, i32, i32, i32) {
    %c0_i32 = arith.constant 0 : i32
    %c0_i32_0 = arith.constant 0 : i32
    %c0_i32_1 = arith.constant 0 : i32
    return %arg0, %arg1, %c0_i32, %c0_i32_0 : i32, i32, i32, i32
  }
  func.func @transform_1(%arg0: i32, %arg1: i32) -> (i32, i32) {
    %c0_i32 = arith.constant 0 : i32
    %c0_i32_0 = arith.constant 0 : i32
    %c0_i32_1 = arith.constant 0 : i32
    return %c0_i32, %c0_i32_0 : i32, i32
  }
  func.func @transform_2(%arg0: i32, %arg1: i32) -> (i32, i32) {
    %c0_i32 = arith.constant 0 : i32
    %c0_i32_0 = arith.constant 0 : i32
    %c0_i32_1 = arith.constant 0 : i32
    return %c0_i32, %c0_i32_0 : i32, i32
  }
  func.func @transform_3(%arg0: i32, %arg1: i32) -> (i32, i32, i32, i32) {
    %c0_i32 = arith.constant 0 : i32
    %c0_i32_0 = arith.constant 0 : i32
    %c0_i32_1 = arith.constant 0 : i32
    return %arg0, %arg1, %c0_i32, %c0_i32_0 : i32, i32, i32, i32
  }
}

</mosaic_0001>

<bundles_post_ra>
// kernel: double_block_forward.5
= control target key start
LH: loop header
LB: loop body
LE: loop exit
PB: predicated region body
PF: predicated region fallthrough
CT: control target
= control target key end

     0   :  { %s553_s12 = smov 0   ;;  %s555_s13 = smov 0   ;;  %s675_s0 = inlined_call_operand.vmem [shape: bf16[2,8,120,128], index: 0, kind: input, shape index: {}]   ;;  %s676_s1 = inlined_call_operand.vmem [shape: f32[1,128], index: 1, kind: input, shape index: {}]   ;;  %s677_s2 = inlined_call_operand.vmem [shape: f32[1,128], index: 2, kind: input, shape index: {}]   ;;  %s678_s3 = inlined_call_operand.vmem [shape: f32[2,8,120,128], index: 3, kind: output, shape index: {}]  }
   0x1   :  { %s557_s14 = smov 0   ;;  %s559_s15 = smov 0  }
   0x2   :  { %s561_s16 = smov 0  }
   0x3 LB: > { %s22_s17 = sadd.s32 1, %s523_s14  ;;  %s25_s18 = sadd.s32 1, %s527_s15  ;;  %s531_s16 = sphi %s561_s16, %s13_s16   ;;  %s527_s15 = sphi %s559_s15, %s682_s15   ;;  %s523_s14 = sphi %s557_s14, %s681_s14   ;;  %s519_s13 = sphi %s555_s13, %s680_s13   ;;  %s515_s12 = sphi %s553_s12, %s679_s12  }
   0x4   : > { %p23_p0 = scmp.ge.s32.totalorder %s22_s17, 8  ;;  %p410_p1 = scmp.ge.s32.totalorder %s531_s16, 1 }
   0x5   : > { %p157_p2 = scmp.lt.s32.totalorder %s531_s16, 17 }
   0x6   : > { %s684_s17 = smov (%p23_p0, %s22_s17), 0  ;;  %s686_s18 = smov (!%p23_p0, %s25_s18), %s527_s15 }
   0x7   : > { %p158_p3 = pnand %p410_p1, %p157_p2  ;;  %p27_p4 = scmp.ge.s32.totalorder %s686_s18, 2 }
   0x8   : > { %p189_p5 = scmp.lt.s32.totalorder (!%p158_p3), %s519_s13, 1  ;;  %p191_p6 = scmp.lt.s32.totalorder (!%p158_p3), %s515_s12, 7  ;;  %v594_v0 = vld [vmem:[%s676_s1] ss:$0 sm:$0xff] (!%p158_p3) }
   0x9   : > { %s688_s18 = smov (%p27_p4, %s686_s18), 0  ;;  %161 = sbr.rel (%p158_p3) target bundleno = 44 (0x2c), region = 32 }
   0xa   : > { %v603_v9 = vld [vmem:[%s677_s2] ss:$0 sm:$0xff] (!%p158_p3) }
  0x10   : > { %s690_s13 = smov (!%p189_p5, %s519_s13), 1  ;;  %s692_s12 = smov (!%p191_p6, %s515_s12), 7 }
  0x11   : > { %s452_s19 = smul.u32 120, %s690_s13 }
  0x12   : > { %s451_s20 = smul.u32 15, %s692_s12 }
  0x14   : > { %s583_s21 = sadd.s32 %s452_s19, %s451_s20 }
  0x15   : > { %s411_s22 = sshll.u32 %s583_s21, 2  ;;  %s412_s30 = sshll.u32 %s583_s21, 3 }
  0x16   : > { %s589_s25 = scalar_lea.vmem %s675_s0, %s411_s22  ;;  %s621_s6 = scalar_lea.vmem %s678_s3, %s412_s30 }
  0x17   : > { %v418_v1 = vld [vmem:[%s589_s25] sm:$0xff]   ;;  %v445_v2 = vld [vmem:[%s589_s25 + $0x8] sm:$0xff]   ;;  %v446_v3 = vld [vmem:[%s589_s25 + $0x10] sm:$0xff]  }
  0x18   : > { %v419_v4 = vunpack.c.l.bf16 %v418_v1  ;;  %v420_v5 = vunpack.c.h.bf16 %v418_v1  ;;  %v423_v6 = vunpack.c.l.bf16 %v445_v2  ;;  %v424_v7 = vunpack.c.h.bf16 %v445_v2  ;;  %v447_v8 = vld [vmem:[%s589_s25 + $0x18] sm:$0xff]   ;;  %v448_v30 = vld [vmem:[%s589_s25 + $0x20] sm:$0xff]   ;;  %v449_v31 = vld [vmem:[%s589_s25 + $0x28] sm:$0xff]  }
  0x19   : > { %v427_v10 = vunpack.c.l.bf16 %v446_v3  ;;  %v428_v11 = vunpack.c.h.bf16 %v446_v3  ;;  %v431_v12 = vunpack.c.l.bf16 %v447_v8  ;;  %v432_v13 = vunpack.c.h.bf16 %v447_v8  ;;  %v450_v32 = vld [vmem:[%s589_s25 + $0x30] sm:$0xff]   ;;  %v221_v37 = vld [vmem:[%s589_s25 + $0x38] sm:$0xf] }
  0x1a   : > { %v244_v14 = vmul.f32 %v419_v4, %v594_v0  ;;  %v245_v15 = vmul.f32 %v420_v5, %v594_v0  ;;  %v246_v16 = vmul.f32 %v423_v6, %v594_v0  ;;  %v247_v17 = vmul.f32 %v424_v7, %v594_v0 }
  0x1b   : > { %v248_v18 = vmul.f32 %v427_v10, %v594_v0  ;;  %v249_v19 = vmul.f32 %v428_v11, %v594_v0  ;;  %v250_v20 = vmul.f32 %v431_v12, %v594_v0  ;;  %v251_v21 = vmul.f32 %v432_v13, %v594_v0 }
  0x1c   : > { %v266_v22 = vadd.f32 %v603_v9, %v244_v14  ;;  %v267_v23 = vadd.f32 %v603_v9, %v245_v15  ;;  %v268_v24 = vadd.f32 %v603_v9, %v246_v16  ;;  %v269_v25 = vadd.f32 %v603_v9, %v247_v17 }
  0x1d   : > { %v270_v26 = vadd.f32 %v603_v9, %v248_v18  ;;  %v271_v27 = vadd.f32 %v603_v9, %v249_v19  ;;  %v272_v28 = vadd.f32 %v603_v9, %v250_v20  ;;  %v273_v29 = vadd.f32 %v603_v9, %v251_v21 }
  0x1e   : > { %v281_v33 = vmax.f32 %v266_v22, 0.0  ;;  %v282_v34 = vmax.f32 %v267_v23, 0.0  ;;  %v283_v35 = vmax.f32 %v268_v24, 0.0  ;;  %v284_v36 = vmax.f32 %v269_v25, 0.0 }
  0x1f   : > { %v285_v38 = vmax.f32 %v270_v26, 0.0  ;;  %v286_v39 = vmax.f32 %v271_v27, 0.0  ;;  %v287_v40 = vmax.f32 %v272_v28, 0.0  ;;  %v288_v41 = vmax.f32 %v273_v29, 0.0 }
  0x20   : > { %296 = vst [vmem:[%s621_s6] sm:$0xff] %v281_v33  ;;  %297 = vst [vmem:[%s621_s6 + $0x8] sm:$0xff] %v282_v34  ;;  %v435_v42 = vunpack.c.l.bf16 %v448_v30  ;;  %v436_v43 = vunpack.c.h.bf16 %v448_v30  ;;  %v439_v44 = vunpack.c.l.bf16 %v449_v31  ;;  %v440_v45 = vunpack.c.h.bf16 %v449_v31 }
  0x21   : > { %298 = vst [vmem:[%s621_s6 + $0x10] sm:$0xff] %v283_v35  ;;  %299 = vst [vmem:[%s621_s6 + $0x18] sm:$0xff] %v284_v36  ;;  %v443_v46 = vunpack.c.l.bf16 %v450_v32  ;;  %v444_v47 = vunpack.c.h.bf16 %v450_v32  ;;  %v236_v48 = vunpack.c.l.bf16 %v221_v37 }
  0x22   : > { %300 = vst [vmem:[%s621_s6 + $0x20] sm:$0xff] %v285_v38  ;;  %301 = vst [vmem:[%s621_s6 + $0x28] sm:$0xff] %v286_v39  ;;  %v252_v49 = vmul.f32 %v435_v42, %v594_v0  ;;  %v253_v50 = vmul.f32 %v436_v43, %v594_v0  ;;  %v254_v51 = vmul.f32 %v439_v44, %v594_v0 }
  0x23   : > { %302 = vst [vmem:[%s621_s6 + $0x30] sm:$0xff] %v287_v40  ;;  %303 = vst [vmem:[%s621_s6 + $0x38] sm:$0xff] %v288_v41  ;;  %v255_v52 = vmul.f32 %v440_v45, %v594_v0  ;;  %v256_v53 = vmul.f32 %v443_v46, %v594_v0  ;;  %v257_v54 = vmul.f32 %v444_v47, %v594_v0 }
  0x24   : > { %v258_v55 = vmul.f32 %v594_v0, %v236_v48  ;;  %v274_v56 = vadd.f32 %v603_v9, %v252_v49  ;;  %v275_v57 = vadd.f32 %v603_v9, %v253_v50  ;;  %v276_v58 = vadd.f32 %v603_v9, %v254_v51 }
  0x25   : > { %v277_v59 = vadd.f32 %v603_v9, %v255_v52  ;;  %v278_v60 = vadd.f32 %v603_v9, %v256_v53  ;;  %v279_v61 = vadd.f32 %v603_v9, %v257_v54 }
  0x26   : > { %v280_v62 = vadd.f32 %v603_v9, %v258_v55  ;;  %v289_v63 = vmax.f32 %v274_v56, 0.0  ;;  %v290_v0 = vmax.f32 %v275_v57, 0.0  ;;  %v291_v1 = vmax.f32 %v276_v58, 0.0 }
  0x27   : > { %v292_v2 = vmax.f32 %v277_v59, 0.0  ;;  %v293_v3 = vmax.f32 %v278_v60, 0.0  ;;  %v294_v4 = vmax.f32 %v279_v61, 0.0 }
  0x28   : > { %v295_v5 = vmax.f32 %v280_v62, 0.0  ;;  %304 = vst [vmem:[%s621_s6 + $0x40] sm:$0xff] %v289_v63  ;;  %305 = vst [vmem:[%s621_s6 + $0x48] sm:$0xff] %v290_v0 }
  0x29   : > { %306 = vst [vmem:[%s621_s6 + $0x50] sm:$0xff] %v291_v1  ;;  %307 = vst [vmem:[%s621_s6 + $0x58] sm:$0xff] %v292_v2 }
  0x2a   : > { %308 = vst [vmem:[%s621_s6 + $0x60] sm:$0xff] %v293_v3  ;;  %309 = vst [vmem:[%s621_s6 + $0x68] sm:$0xff] %v294_v4 }
  0x2b   : > { %310 = vst [vmem:[%s621_s6 + $0x70] sm:$0xff] %v295_v5 }
  0x2c PF: > { %s13_s16 = sadd.s32 1, %s531_s16   ;;  %s679_s12 = smov %s523_s14 }
  0x2d   : > { %p10_p7 = scmp.ge.s32.totalorder %s13_s16, 18   ;;  %s680_s13 = smov %s527_s15 }
  0x2e   : > { %s681_s14 = smov %s684_s17  ;;  %s682_s15 = smov %s688_s18 }
  0x2f   :  { %12 = sbr.rel (!%p10_p7) target bundleno = 3 (0x3), region = 62 }

// kernel: double_block_forward.3
= control target key start
LH: loop header
LB: loop body
LE: loop exit
PB: predicated region body
PF: predicated region fallthrough
CT: control target
= control target key end

     0   :  { %s6140_s21 = smov 0   ;;  %s6142_s22 = smov 0   ;;  %s7894_s0 = inlined_call_operand.vmem [shape: f32[120,1], index: 0, kind: input, shape index: {}]   ;;  %s7895_s1 = inlined_call_operand.vmem [shape: bf16[3,9,4,128], index: 1, kind: input, shape index: {}]   ;;  %s7896_s2 = inlined_call_operand.vmem [shape: bf16[2,8,120,4], index: 2, kind: input, shape index: {}, may-alias: {2,3,4}]   ;;  %s7897_s3 = inlined_call_operand.vmem [shape: bf16[2,8,120,4], index: 3, kind: input, shape index: {}, may-alias: {2,3,4}]   ;;  %s7898_s4 = inlined_call_operand.vmem [shape: bf16[2,8,120,4], index: 4, kind: input, shape index: {}, may-alias: {2,3,4}]   ;;  %s7899_s5 = inlined_call_operand.vmem [shape: bf16[2,8,120,128], index: 5, kind: output, shape index: {0}]   ;;  %s7900_s6 = inlined_call_operand.vmem [shape: f32[2,8,2,128], index: 6, kind: output, shape index: {1}]  }
   0x1   :  { %s6144_s23 = smov 0   ;;  %s6146_s24 = smov 0  }
   0x2   :  { %s6148_s25 = smov 0  }
   0x3 LB: > { %s26_s26 = sadd.s32 1, %s6092_s23  ;;  %s29_s27 = sadd.s32 1, %s6096_s24  ;;  %s6100_s25 = sphi %s6148_s25, %s17_s25   ;;  %s6096_s24 = sphi %s6146_s24, %s8036_s24   ;;  %s6092_s23 = sphi %s6144_s23, %s8035_s23   ;;  %s6088_s22 = sphi %s6142_s22, %s8034_s22   ;;  %s6084_s21 = sphi %s6140_s21, %s8033_s21  }
   0x4   : > { %p27_p0 = scmp.ge.s32.totalorder %s26_s26, 8  ;;  %p4487_p1 = scmp.ge.s32.totalorder %s6100_s25, 1 }
   0x5   : > { %p293_p2 = scmp.lt.s32.totalorder %s6100_s25, 17 }
   0x6   : > { %s8038_s26 = smov (%p27_p0, %s26_s26), 0  ;;  %s8040_s27 = smov (!%p27_p0, %s29_s27), %s6096_s24 }
   0x7   : > { %p294_p3 = pnand %p4487_p1, %p293_p2  ;;  %p31_p4 = scmp.ge.s32.totalorder %s8040_s27, 2 }
   0x9   : > { %s8042_s27 = smov (%p31_p4, %s8040_s27), 0  ;;  %297 = sbr.rel (%p294_p3) target bundleno = 804 (0x324), region = 40 }
  0x10   : > { %vm510_vm0 = vcmask 1041408   ;;  %v4606_v0 = vld [vmem:[%s7895_s1 + $0x1a] sm:$0x3]  ;;  %p366_p5 = scmp.lt.s32.totalorder %s6088_s22, 1  ;;  %v7942_v1 = vmov 0.0   ;;  %vm6103_vm1 = vmmov 0  }
  0x11   : > { %5178 = vmatprep.subr.bf16.mxu0 %v7942_v1  ;;  %v6177_v2 = vsel %vm510_vm0, %v4606_v0, 0  ;;  %5180 = vmatprep.mubr.msk.bf16.mxu0 %vm6103_vm1, %v7942_v1  ;;  %p380_p6 = scmp.lt.s32.totalorder %s6084_s21, 7  ;;  %v4503_v3 = vld [vmem:[%s7895_s1 + $0x2] sm:$0x3]  ;;  %s4488_s10 = sadd.s32 4294967295, %s6084_s21  ;;  %vm1018_vm2 = vcmask 1045504  }
  0x12   : > { %7961 = vst [vmem:[#allocation2_spill] sm:$0xff] %v6177_v2  ;;  %5179 = vmatpush3.bf16.msra.mxu0 %v6177_v2  ;;  %4892 = vmatprep.subr.bf16.mxu1 %v7942_v1  ;;  %s8044_s22 = smov (!%p366_p5, %s6088_s22), 1  ;;  %v512_v4 = vsel %vm510_vm0, %v4503_v3, 0  ;;  %p364_p7 = scmp.gt.s32.totalorder %s4488_s10, 0  ;;  %v4612_v8 = vld [vmem:[%s7895_s1 + $0x1c] sm:$0x3] }
  0x13   : > { %5200 = vmatprep.subr.bf16.mxu0 %v7942_v1  ;;  %s6193_s8 = scalar_select %p380_p6, %s6084_s21, 7  ;;  %4894 = vmatprep.mubr.msk.bf16.mxu1 %vm6103_vm1, %v7942_v1  ;;  %vm494_vm3 = vcmask 31744   ;;  %v2389_v19 = vsel %vm510_vm0, %v4612_v8, 0  ;;  %v451_v41 = vld [vmem:[%s7895_s1] sm:$0x3]  ;;  %vm482_vm5 = vcmask 1046528  }
  0x14   : > { %s6199_s9 = smul.u32 120, %s8044_s22  ;;  %4893 = vmatpush3.bf16.msra.mxu1 %v512_v4  ;;  %p420_p8 = scmp.gt.s32.totalorder %s6084_s21, 0  ;;  %v648_v51 = vsel %vm510_vm0, %v451_v41, 0  ;;  %vm1133_vm6 = vsmask.f32 5376  ;;  %vm1400_vm10 = vcmask 1044480  }
  0x15   : > { %s6000_s11 = smul.u32 15, %s6193_s8  ;;  %4914 = vmatprep.subr.bf16.mxu1 %v7942_v1  ;;  %p4489_p9 = scmp.lt.s32.totalorder %s4488_s10, 7  ;;  %vm587_vm7 = vsmask.f32 7424  ;;  %vm725_vm8 = vsmask.f32 6400 }
  0x16   : > { %s365_s19 = scalar_select %p364_p7, %s4488_s10, 0  ;;  %vm1515_vm9 = vsmask.f32 4352 }
  0x17   : > { %s6205_s12 = sadd.s32 %s6000_s11, %s6199_s9  ;;  %s387_s18 = sadd.s32 1, %s6084_s21 }
  0x18   : > { %s4495_s13 = sshll.u32 %s6205_s12, 2  ;;  %s8046_s19 = smov (!%p4489_p9, %s365_s19), 7 }
  0x19   : > { %s6214_s16 = scalar_lea.vmem %s7897_s3, %s4495_s13  ;;  %s5998_s28 = smul.u32 15, %s8046_s19 }
  0x1a   : > { %v1640_v5 = vld [vmem:[%s6214_s16 + $0x4] sm:$0xf]  ;;  %v1641_v6 = vld [vmem:[%s6214_s16 + $0x8] sm:$0xf]  ;;  %v6219_v7 = vld [vmem:[%s6214_s16 + $0xc] sm:$0xf]  ;;  %s7540_s17 = scalar_lea.vmem %s7899_s5, %s4495_s13 }
  0x1b   : > { %v6225_v9 = vld [vmem:[%s6214_s16 + $0x10] sm:$0xf]  ;;  %v6228_v10 = vld [vmem:[%s6214_s16 + $0x14] sm:$0xf]  ;;  %v6230_v11 = vcombine.low %v1640_v5, %v1641_v6  ;;  %v6233_v12 = vcombine.low %v1641_v6, %v6219_v7  ;;  %s435_s20 = scalar_select %p420_p8, 1, 0 }
  0x1c   : > { %v6237_v13 = vcombine.low %v6225_v9, %v6228_v10  ;;  %v6240_v14 = vld [vmem:[%s6214_s16 + $0x18] sm:$0xf]  ;;  %v6243_v15 = vld [vmem:[%s6214_s16 + $0x1c] sm:$0xf]  ;;  %s372_s29 = sadd.s32 %s6199_s9, %s5998_s28  ;;  %v6257_v22 = vld [vmem:[%s6214_s16 + $0x20] sm:$0xf] }
  0x1d   : > { %7962 = vst [vmem:[#allocation3_spill] sm:$0xff] %v6230_v11  ;;  %7963 = vst [vmem:[#allocation4_spill] sm:$0xff] %v6233_v12  ;;  %v2236_v16 = vrot.slane %v6233_v12, 2  ;;  %v6250_v18 = vcombine.low %v6240_v14, %v6243_v15  ;;  %v436_v20 = vstv %s435_s20  ;;  %s4494_s30 = sshll.u32 %s372_s29, 2  ;;  %v6267_v25 = vld [vmem:[%s6214_s16 + $0x24] sm:$0xf] }
  0x1e   : > { %7964 = vst [vmem:[#allocation5_spill] sm:$0xff] %v6237_v13  ;;  %v2237_v17 = vrot.slane %v6237_v13, 2  ;;  %vm6259_vm4 = vcmp.eq.s32.totalorder %v436_v20, 1  ;;  %s6272_s11 = scalar_lea.vmem %s7896_s2, %s4494_s30  ;;  %v6287_v33 = vcombine.low %v6257_v22, %v6267_v25  ;;  %v7913_v46 = vshrl.u32 %v6233_v12, 16  ;;  %v4618_v20 = vld [vmem:[%s7895_s1 + $0x1e] sm:$0x3] }
  0x1f   : > { %7965 = vst [vmem:[#allocation6_spill] sm:$0xff] %v6250_v18  ;;  %v2239_v24 = vrot.slane %v6250_v18, 2  ;;  %v422_v26 = vld [vmem:[%s6272_s11 + $0x4] sm:$0xf]  ;;  %v423_v27 = vld [vmem:[%s6272_s11 + $0x8] sm:$0xf] }
  0x20   : > { %v2238_v21 = vsel %vm1018_vm2, %v2236_v16, %v2237_v17  ;;  %v424_v28 = vld [vmem:[%s6272_s11 + $0xc] sm:$0xf]  ;;  %v425_v29 = vld [vmem:[%s6272_s11 + $0x10] sm:$0xf]  ;;  %v438_v30 = vsel %vm6259_vm4, %v422_v26, 0  ;;  %v439_v31 = vsel %vm6259_vm4, %v423_v27, 0 }
  0x21   : > { %5181 = vmatmul.mubr.msk.bf16.vlgmr.msra.gmra.mrb[0].mxu0 %vm494_vm3, %v2238_v21  ;;  %v440_v32 = vsel %vm6259_vm4, %v424_v28, 0  ;;  %7968 = vst [vmem:[#allocation7_spill] sm:$0xff] %v6287_v33  ;;  %v441_v34 = vsel %vm6259_vm4, %v425_v29, 0  ;;  %v6291_v35 = vcombine.low %v438_v30, %v439_v31  ;;  %v2240_v37 = vsel %vm1018_vm2, %v2237_v17, %v2239_v24  ;;  %v426_v38 = vld [vmem:[%s6272_s11 + $0x14] sm:$0xf]  ;;  %p6850_p10 = scmp.lt.s32.totalorder %s387_s18, 7 }
  0x22   : > { %5201 = vmatpush3.bf16.msra.mxu0 %v2389_v19  ;;  %5184 = vmatprep.mubr.msk.bf16.mxu0 %vm6103_vm1, %v7942_v1  ;;  %v6293_v36 = vcombine.low %v439_v31, %v440_v32  ;;  %v427_v39 = vld [vmem:[%s6272_s11 + $0x18] sm:$0xf]  ;;  %v6298_v40 = vcombine.low %v440_v32, %v441_v34  ;;  %v442_v42 = vsel %vm6259_vm4, %v426_v38, 0  ;;  %v7912_v49 = vshll.u32 %v6233_v12, 16  ;;  %v428_v55 = vld [vmem:[%s6272_s11 + $0x1c] sm:$0xf] }
  0x23   : > { %5222 = vmatprep.subr.bf16.mxu0 %v7942_v1  ;;  %v6307_v43 = vsel %vm6259_vm4, %v427_v39, 0  ;;  %v483_v44 = vrot.slane %v6291_v35, 1  ;;  %v6310_v45 = vcombine.low %v441_v34, %v442_v42  ;;  %v7909_v50 = vshrl.u32 %v6237_v13, 16  ;;  %v429_v56 = vld [vmem:[%s6272_s11 + $0x20] sm:$0xf]  ;;  %s8048_s18 = smov (!%p6850_p10, %s387_s18), 7 }
  0x24   : > { %v484_v47 = vrot.slane %v6298_v40, 1  ;;  %v6316_v48 = vcombine.low %v442_v42, %v6307_v43  ;;  %v7901_v52 = vrot.slane %v6287_v33, 2  ;;  %v7908_v53 = vshll.u32 %v6237_v13, 16  ;;  %v430_v8 = vld [vmem:[%s6272_s11 + $0x24] sm:$0xf]  ;;  %s8050_s18 = smov (!%p6850_p10, %s8048_s18), 7 }
  0x25   : > { %v2350_v58 = vrot.slane %v7913_v46, 2  ;;  %v2351_v59 = vrot.slane %v7912_v49, 3  ;;  %v2353_v60 = vrot.slane %v7909_v50, 2  ;;  %v6343_v62 = vsel %vm6259_vm4, %v428_v55, 0  ;;  %v431_v19 = vld [vmem:[%s6272_s11 + $0x28] sm:$0xf] }
  0x26   : > { %v485_v54 = vsel %vm482_vm5, %v483_v44, %v484_v47  ;;  %v486_v57 = vrot.slane %v6316_v48, 1  ;;  %v2242_v61 = vsel %vm1018_vm2, %v2239_v24, %v7901_v52  ;;  %v6347_v63 = vsel %vm6259_vm4, %v429_v56, 0  ;;  %v6392_v34 = vld [vmem:[%s6214_s16 + $0x28] sm:$0xf]  ;;  %v6399_v41 = vld [vmem:[%s6214_s16 + $0x2c] sm:$0xf] }
  0x27   : > { %4895 = vmatmul.mubr.msk.bf16.vlgmr.msra.gmra.mrb[0].mxu1 %vm494_vm3, %v485_v54  ;;  %v2354_v0 = vrot.slane %v7908_v53, 3  ;;  %v6356_v4 = vcombine.low %v6343_v62, %v6347_v63  ;;  %v2352_v5 = vor.u32 %v2351_v59, %v2350_v58  ;;  %v7907_v16 = vshrl.u32 %v6250_v18, 16  ;;  %v432_v42 = vld [vmem:[%s6272_s11 + $0x2c] sm:$0xf]  ;;  %s6001_s29 = smul.u32 15, %s8050_s18 }
  0x28   : > { %4915 = vmatpush3.bf16.msra.mxu1 %v648_v51  ;;  %4898 = vmatprep.mubr.msk.bf16.mxu1 %vm6103_vm1, %v7942_v1  ;;  %v487_v3 = vsel %vm482_vm5, %v484_v47, %v486_v57  ;;  %v7906_v17 = vshll.u32 %v6250_v18, 16  ;;  %v6373_v24 = vsel %vm6259_vm4, %v430_v8, 0  ;;  %v6378_v27 = vsel %vm6259_vm4, %v431_v19, 0  ;;  %s2867_s7 = scalar_select %p380_p6, 1, 0 }
  0x29   : > { %5185 = vmatmul.mubr.msk.bf16.gmra.mrb[4].mxu0 %vm494_vm3, %v2240_v37  ;;  %4936 = vmatprep.subr.bf16.mxu1 %v7942_v1  ;;  %7969 = vst [vmem:[#allocation8_spill] sm:$0xff] %v6356_v4  ;;  %v2355_v6 = vor.u32 %v2354_v0, %v2353_v60  ;;  %v488_v21 = vrot.slane %v6356_v4, 1  ;;  %v2357_v28 = vrot.slane %v7907_v16, 2  ;;  %v2529_v30 = vsel %vm510_vm0, %v4618_v20, 0  ;;  %s396_s30 = sadd.s32 %s6001_s29, %s6199_s9  ;;  %s4501_s9 = sshll.u32 %s8044_s22, 3 }
  0x2a   : > { %5188 = vmatprep.mubr.msk.bf16.mxu0 %vm6103_vm1, %v7942_v1  ;;  %v2358_v29 = vrot.slane %v7906_v17, 3  ;;  %v6389_v32 = vcombine.low %v6373_v24, %v6378_v27  ;;  %v7905_v38 = vshrl.u32 %v6287_v33, 16  ;;  %v7904_v39 = vshll.u32 %v6287_v33, 16  ;;  %s4499_s10 = sshll.u32 %s396_s30, 2 }
  0x2b   : > { %v2356_v26 = vsel %vm1133_vm6, %v2352_v5, %v2355_v6  ;;  %v489_v31 = vsel %vm482_vm5, %v486_v57, %v488_v21  ;;  %v6409_v47 = vcombine.low %v6392_v34, %v6399_v41  ;;  %v6414_v54 = vsel %vm6259_vm4, %v432_v42, 0  ;;  %v6438_v5 = vld [vmem:[%s6214_s16 + $0x30] sm:$0xf]  ;;  %s6900_s15 = scalar_lea.vmem %s7898_s4, %s4499_s10 }
  0x2c   : > { %7970 = vst [vmem:[#allocation9_spill] sm:$0xff] %v6389_v32  ;;  %v2359_v37 = vor.u32 %v2358_v29, %v2357_v28  ;;  %v490_v44 = vrot.slane %v6389_v32, 1  ;;  %v2361_v55 = vrot.slane %v7905_v38, 2  ;;  %v2362_v56 = vrot.slane %v7904_v39, 3 }
  0x2d   : > { %7971 = vst [vmem:[#allocation10_spill] sm:$0xff] %v6409_v47  ;;  %v6424_v58 = vcombine.low %v6414_v54, %v6414_v54  ;;  %v6428_v59 = vcombine.low %v6219_v7, %v6225_v9  ;;  %v7903_v0 = vshrl.u32 %v6409_v47, 16  ;;  %v7918_v7 = vshll.u32 %v6291_v35, 16 }
  0x2e   : > { %v2360_v51 = vsel %vm1133_vm6, %v2355_v6, %v2359_v37  ;;  %v491_v57 = vsel %vm482_vm5, %v488_v21, %v490_v44  ;;  %v2363_v60 = vor.u32 %v2362_v56, %v2361_v55  ;;  %v6442_v6 = vcombine.low %v6228_v10, %v6240_v14 }
  0x2f   : > { %4899 = vmatmul.mubr.msk.bf16.gmra.mrb[4].mxu1 %vm494_vm3, %v487_v3  ;;  %v7902_v3 = vshll.u32 %v6409_v47, 16  ;;  %v492_v9 = vrot.slane %v6424_v58, 1  ;;  %v6454_v19 = vcombine.low %v6438_v5, %v6438_v5  ;;  %v6457_v20 = vshll.u32 %v6428_v59, 16 }
  0x30   : > { %4902 = vmatprep.mubr.msk.bf16.mxu1 %vm6103_vm1, %v7942_v1  ;;  %v2364_v10 = vsel %vm1133_vm6, %v2359_v37, %v2363_v60  ;;  %v2365_v14 = vrot.slane %v7903_v0, 2  ;;  %v6468_v28 = vshll.u32 %v6442_v6, 16  ;;  %v7919_v29 = vshrl.u32 %v6291_v35, 16 }
  0x31   : > { %5189 = vmatmul.mubr.msk.bf16.gmra.mrb[8].mxu0 %vm494_vm3, %v2242_v61  ;;  %v4520_v61 = vld [vmem:[%s7895_s1 + $0x4] sm:$0x3]  ;;  %7972 = vst [vmem:[#allocation11_spill] sm:$0xff] %v6454_v19  ;;  %v2366_v21 = vrot.slane %v7902_v3, 3  ;;  %v7925_v37 = vshrl.u32 %v6293_v36, 16  ;;  %v7924_v42 = vshll.u32 %v6293_v36, 16  ;;  %v493_v55 = vsel %vm482_vm5, %v490_v44, %v492_v9 }
  0x32   : > { %5202 = vmatprep.mubr.msk.bf16.mxu0 %vm6103_vm1, %v7942_v1  ;;  %v6450_v8 = vsel %vm510_vm0, %v4520_v61, 0  ;;  %v7911_v56 = vshrl.u32 %v6454_v19, 16  ;;  %v7920_v61 = vshll.u32 %v6310_v45, 16  ;;  %v6506_v38 = vshll.u32 %v6316_v48, 16 }
  0x33   : > { %v2367_v52 = vor.u32 %v2366_v21, %v2365_v14  ;;  %v865_v3 = vrot.slane %v7925_v37, 1  ;;  %v868_v0 = vrot.slane %v7924_v42, 2  ;;  %v6500_v14 = vcombine.low %v6307_v43, %v6343_v62 }
  0x34   : > { %v876_v39 = vrot.slane %v7920_v61, 2  ;;  %v6510_v16 = vcombine.low %v6347_v63, %v6373_v24  ;;  %v2369_v43 = vrot.slane %v7911_v56, 2  ;;  %v6524_v24 = vshrl.u32 %v6442_v6, 16 }
  0x35   : > { %v869_v17 = vor.u32 %v868_v0, %v865_v3  ;;  %v7914_v53 = vshll.u32 %v6500_v14, 16  ;;  %v7975_v18 = vshll.u32 %v6293_v36, 16  ;;  %v7978_v12 = vshll.u32 %v6310_v45, 16 }
  0x36   : > { %v7916_v3 = vshrl.u32 %v6510_v16, 16  ;;  %v7917_v63 = vshll.u32 %v6510_v16, 16 }
  0x37   : > { %4903 = vmatmul.mubr.msk.bf16.gmra.mrb[8].mxu1 %vm494_vm3, %v489_v31  ;;  %v593_v31 = vrot.slane %v7918_v7, 1  ;;  %v1135_v13 = vrot.slane %v7975_v18, 3  ;;  %v7980_v18 = vshll.u32 %v6291_v35, 16 }
  0x38   : > { %4906 = vmatprep.mubr.msk.bf16.mxu1 %vm6103_vm1, %v7942_v1  ;;  %v891_v56 = vrot.slane %v7916_v3, 1  ;;  %v894_v49 = vrot.slane %v7917_v63, 2 }
  0x39   : > { %5203 = vmatmul.mubr.msk.bf16.vlgmr.msra.gmra.mrb[0].mxu0 %vm494_vm3, %v2356_v26  ;;  %v6465_v26 = vshrl.u32 %v6428_v59, 16  ;;  %v594_v21 = vor.u32 %v593_v31, %v7919_v29  ;;  %v2368_v31 = vsel %vm1133_vm6, %v2363_v60, %v2367_v52 }
  0x3a   : > { %5223 = vmatpush3.bf16.msra.mxu0 %v2529_v30  ;;  %5206 = vmatprep.mubr.msk.bf16.mxu0 %vm6103_vm1, %v7942_v1  ;;  %v6472_v30 = vshll.u32 %v6298_v40, 16 }
  0x3b   : > { %5244 = vmatprep.subr.bf16.mxu0 %v7942_v1  ;;  %v2480_v63 = vrot.slane %v6465_v26, 2 }
  0x3c   : > { %v598_v9 = vrot.slane %v6472_v30, 1 }
  0x3e   : > { %v599_v46 = vsel %vm587_vm7, %v594_v21, %v598_v9 }
  0x3f   : > { %4907 = vmatmul.mubr.msk.bf16.gmra.mrb[12].mxu1 %vm494_vm3, %v491_v57  ;;  %v7910_v57 = vshll.u32 %v6454_v19, 16 }
  0x40   : > { %4910 = vmatprep.mubr.msk.bf16.mxu1 %vm6103_vm1, %v7942_v1 }
  0x41   : > { %5207 = vmatmul.mubr.msk.bf16.gmra.mrb[4].mxu0 %vm494_vm3, %v2360_v51  ;;  %v7923_v51 = vshrl.u32 %v6310_v45, 16  ;;  %v2370_v0 = vrot.slane %v7910_v57, 3  ;;  %v606_v57 = vrot.slane %v6506_v38, 1 }
  0x42   : > { %5210 = vmatprep.mubr.msk.bf16.mxu0 %vm6103_vm1, %v7942_v1 }
  0x43   : > { %v873_v44 = vrot.slane %v7923_v51, 1  ;;  %v2371_v3 = vor.u32 %v2370_v0, %v2369_v43  ;;  %v6565_v0 = vshrl.u32 %v6316_v48, 16 }
  0x45   : > { %v877_v62 = vor.u32 %v876_v39, %v873_v44  ;;  %v885_v44 = vrot.slane %v7914_v53, 2 }
  0x47   : > { %4911 = vmatmul.mubr.msk.bf16.gmra.mrb[16].mxu1 %vm494_vm3, %v493_v55  ;;  %v7915_v55 = vshrl.u32 %v6500_v14, 16  ;;  %v6527_v50 = vsel %vm725_vm8, %v869_v17, %v877_v62  ;;  %v6541_v17 = vcombine.low %v6243_v15, %v6257_v22  ;;  %v6554_v15 = vcombine.low %v6399_v41, %v6438_v5 }
  0x48   : > { %4916 = vmatprep.mubr.msk.bf16.mxu1 %vm6103_vm1, %v7942_v1  ;;  %v895_v22 = vor.u32 %v894_v49, %v891_v56  ;;  %v6568_v41 = vshll.u32 %v6356_v4, 16  ;;  %v6571_v49 = vld [vmem:[%s6214_s16 + $0x34] ss:$0 sps:$4 sm:$0xff]   ;;  %v2484_v56 = vrot.slane %v6468_v28, 3 }
  0x49   : > { %5211 = vmatmul.mubr.msk.bf16.gmra.mrb[8].mxu0 %vm494_vm3, %v2364_v10  ;;  %v6494_v10 = vshrl.u32 %v6298_v40, 16  ;;  %v882_v39 = vrot.slane %v7915_v55, 1  ;;  %v6547_v55 = vcombine.low %v6378_v27, %v6414_v54  ;;  %v6591_v29 = vshll.u32 %v6541_v17, 16 }
  0x4a   : > { %5214 = vmatprep.mubr.msk.bf16.mxu0 %vm6103_vm1, %v7942_v1  ;;  %v6614_v42 = vshrl.u32 %v6541_v17, 16 }
  0x4b   : > { %v602_v60 = vor.u32 %v6494_v10, %v598_v9  ;;  %v886_v53 = vor.u32 %v885_v44, %v882_v39  ;;  %v2481_v9 = vrot.slane %v6457_v20, 3  ;;  %v7922_v27 = vshll.u32 %v6547_v55, 16 }
  0x4c   : > { %v2372_v44 = vsel %vm1133_vm6, %v2367_v52, %v2371_v3  ;;  %v7926_v52 = vshll.u32 %v6571_v49, 16 }
  0x4d   : > { %v6558_v21 = vsel %vm725_vm8, %v877_v62, %v886_v53  ;;  %v607_v43 = vsel %vm587_vm7, %v602_v60, %v606_v57  ;;  %v6574_v5 = vsel %vm725_vm8, %v886_v53, %v895_v22  ;;  %v903_v39 = vrot.slane %v7922_v27, 2 }
  0x4e   : > { %v7929_v53 = vshrl.u32 %v6554_v15, 16  ;;  %v1019_v60 = vrot.slane %v6293_v36, 2  ;;  %v2482_v7 = vor.u32 %v2481_v9, %v2480_v63  ;;  %v7927_v27 = vshrl.u32 %v6571_v49, 16 }
  0x4f   : > { %4917 = vmatmul.mubr.msk.bf16.vlgmr.msra.gmra.mrb[0].mxu1 %vm494_vm3, %v599_v46  ;;  %v2483_v46 = vrot.slane %v6524_v24, 2 }
  0x50   : > { %4937 = vmatpush3.bf16.msra.mxu1 %v6450_v8  ;;  %4920 = vmatprep.mubr.msk.bf16.mxu1 %vm6103_vm1, %v7942_v1  ;;  %v7928_v8 = vshll.u32 %v6554_v15, 16  ;;  %v2745_v3 = vrot.slane %v7929_v53, 3 }
  0x51   : > { %5215 = vmatmul.mubr.msk.bf16.gmra.mrb[12].mxu0 %vm494_vm3, %v2368_v31  ;;  %v7921_v31 = vshrl.u32 %v6547_v55, 16  ;;  %4958 = vmatprep.subr.bf16.mxu1 %v7942_v1  ;;  %v2485_v63 = vor.u32 %v2484_v56, %v2483_v46  ;;  %v2749_v46 = vrot.slane %v7927_v27, 3 }
  0x52   : > { %5218 = vmatprep.mubr.msk.bf16.mxu0 %vm6103_vm1, %v7942_v1  ;;  %v2746_v51 = vrot.slane %v7928_v8, 4 }
  0x53   : > { %v900_v62 = vrot.slane %v7921_v31, 1  ;;  %v1020_v31 = vrot.slane %v6310_v45, 2 }
  0x54   : > { %v6616_v37 = vor.u32 %v2746_v51, %v2745_v3  ;;  %v4626_v51 = vld [vmem:[%s7895_s1 + $0x20] sm:$0x3] }
  0x55   : > { %v6593_v61 = vor.u32 %v903_v39, %v900_v62  ;;  %v6608_v62 = vsel %vm1018_vm2, %v1019_v60, %v1020_v31  ;;  %v1022_v39 = vrot.slane %v6500_v14, 2  ;;  %v6628_v60 = vcombine.low %v6267_v25, %v6392_v34 }
  0x56   : > { %v2486_v25 = vsel %vm1133_vm6, %v2482_v7, %v2485_v63  ;;  %v2487_v34 = vrot.slane %v6614_v42, 2  ;;  %v6656_v7 = vshll.u32 %v6389_v32, 16 }
  0x57   : > { %v6605_v9 = vsel %vm725_vm8, %v895_v22, %v6593_v61  ;;  %v2750_v22 = vrot.slane %v7926_v52, 4  ;;  %v6623_v56 = vsel %vm1018_vm2, %v1020_v31, %v1022_v39  ;;  %4921 = vmatmul.mubr.msk.bf16.gmra.mrb[4].mxu1 %vm494_vm3, %v607_v43  ;;  %v610_v52 = vor.u32 %v6565_v0, %v606_v57 }
  0x58   : > { %4924 = vmatprep.mubr.msk.bf16.mxu1 %vm6103_vm1, %v7942_v1  ;;  %v614_v31 = vrot.slane %v6568_v41, 1  ;;  %v2488_v43 = vrot.slane %v6591_v29, 3  ;;  %v7930_v57 = vrot.slane %v6547_v55, 2 }
  0x59   : > { %5219 = vmatmul.mubr.msk.bf16.gmra.mrb[16].mxu0 %vm494_vm3, %v2372_v44  ;;  %v1024_v44 = vrot.slane %v6510_v16, 2  ;;  %v2751_v3 = vor.u32 %v2750_v22, %v2749_v46  ;;  %v2643_v22 = vsel %vm510_vm0, %v4626_v51, 0 }
  0x5a   : > { %5224 = vmatprep.mubr.msk.bf16.mxu0 %vm6103_vm1, %v7942_v1  ;;  %v615_v8 = vsel %vm587_vm7, %v610_v52, %v614_v31  ;;  %v2489_v51 = vor.u32 %v2488_v43, %v2487_v34  ;;  %v6666_v52 = vshll.u32 %v6628_v60, 16 }
  0x5b   : > { %v6639_v27 = vsel %vm1018_vm2, %v1022_v39, %v1024_v44  ;;  %v6646_v46 = vsel %vm1515_vm9, %v6616_v37, %v2751_v3  ;;  %v6653_v39 = vshrl.u32 %v6356_v4, 16  ;;  %v6661_v53 = vsel %vm1018_vm2, %v1024_v44, %v7930_v57 }
  0x5c   : > { %v6669_v3 = vshrl.u32 %v6628_v60, 16  ;;  %v2492_v43 = vrot.slane %v6666_v52, 3  ;;  %v6681_v57 = vshrl.u32 %v6389_v32, 16 }
  0x5d   : > { %v618_v44 = vor.u32 %v6653_v39, %v614_v31 }
  0x5e   : > { %v2491_v34 = vrot.slane %v6669_v3, 2 }
  0x5f   : > { %4925 = vmatmul.mubr.msk.bf16.gmra.mrb[8].mxu1 %vm494_vm3, %v615_v8  ;;  %v7946_v8 = vshll.u32 %v6424_v58, 16 }
  0x60   : > { %4928 = vmatprep.mubr.msk.bf16.mxu1 %vm6103_vm1, %v7942_v1  ;;  %v2493_v31 = vor.u32 %v2492_v43, %v2491_v34  ;;  %v7977_v43 = vshrl.u32 %v6310_v45, 16 }
  0x61   : > { %5225 = vmatmul.mubr.msk.bf16.vlgmr.msra.gmra.mrb[0].mxu0 %vm494_vm3, %v2486_v25  ;;  %v622_v25 = vrot.slane %v6656_v7, 1  ;;  %v630_v47 = vrot.slane %v7946_v8, 1  ;;  %v1138_v8 = vrot.slane %v7978_v12, 3 }
  0x62   : > { %5245 = vmatpush3.bf16.msra.mxu0 %v2643_v22  ;;  %5228 = vmatprep.mubr.msk.bf16.mxu0 %vm6103_vm1, %v7942_v1  ;;  %v2490_v22 = vsel %vm1133_vm6, %v2485_v63, %v2489_v51  ;;  %v2494_v34 = vsel %vm1133_vm6, %v2489_v51, %v2493_v31  ;;  %v729_v51 = vrot.slane %v6494_v10, 1 }
  0x63   : > { %5266 = vmatprep.subr.bf16.mxu0 %v7942_v1  ;;  %v623_v19 = vsel %vm587_vm7, %v618_v44, %v622_v25  ;;  %v626_v63 = vor.u32 %v6681_v57, %v622_v25  ;;  %v7973_v44 = vshrl.u32 %v6554_v15, 16 }
  0x65   : > { %v2498_v33 = vrot.slane %v7973_v44, 2  ;;  %v7979_v44 = vshrl.u32 %v6291_v35, 16  ;;  %v7982_v35 = vshrl.u32 %v6500_v14, 16 }
  0x67   : > { %4929 = vmatmul.mubr.msk.bf16.gmra.mrb[12].mxu1 %vm494_vm3, %v623_v19  ;;  %v7976_v19 = vshll.u32 %v6554_v15, 16  ;;  %v726_v32 = vrot.slane %v7979_v44, 1  ;;  %v1141_v45 = vrot.slane %v7982_v35, 2  ;;  %v4526_v44 = vld [vmem:[%s7895_s1 + $0x6] sm:$0x3] }
  0x68   : > { %4932 = vmatprep.mubr.msk.bf16.mxu1 %vm6103_vm1, %v7942_v1 }
  0x69   : > { %5229 = vmatmul.mubr.msk.bf16.gmra.mrb[4].mxu0 %vm494_vm3, %v2490_v22  ;;  %v7974_v22 = vshrl.u32 %v6293_v36, 16  ;;  %v2501_v25 = vrot.slane %v7976_v19, 3  ;;  %v727_v36 = vrot.slane %v7980_v18, 2  ;;  %v730_v19 = vrot.slane %v6472_v30, 2 }
  0x6a   : > { %5232 = vmatprep.mubr.msk.bf16.mxu0 %vm6103_vm1, %v7942_v1  ;;  %v1137_v1 = vrot.slane %v7977_v43, 2  ;;  %v7981_v43 = vmov 0.0   ;;  %v734_v18 = vrot.slane %v6506_v38, 2 }
  0x6b   : > { %v1134_v2 = vrot.slane %v7974_v22, 2  ;;  %v631_v22 = vsel %vm587_vm7, %v626_v63, %v630_v47  ;;  %v2502_v12 = vor.u32 %v2501_v25, %v2498_v33  ;;  %v7984_v33 = vshll.u32 %v6571_v49, 16 }
  0x6c   : > { %v1139_v4 = vor.u32 %v1138_v8, %v1137_v1  ;;  %v728_v1 = vor.u32 %v727_v36, %v726_v32  ;;  %v7983_v8 = vshrl.u32 %v6571_v49, 16  ;;  %v931_v36 = vsel %vm510_vm0, %v4526_v44, 0 }
  0x6d   : > { %v1136_v11 = vor.u32 %v1135_v13, %v1134_v2  ;;  %v731_v13 = vor.u32 %v730_v19, %v729_v51  ;;  %v2503_v47 = vsel %vm1133_vm6, %v2493_v31, %v2502_v12  ;;  %v733_v31 = vrot.slane %v6565_v0, 1 }
  0x6e   : > { %v2507_v63 = vrot.slane %v7983_v8, 2 }
  0x6f   : > { %v6718_v2 = vsel %vm1133_vm6, %v1136_v11, %v1139_v4  ;;  %4933 = vmatmul.mubr.msk.bf16.gmra.mrb[16].mxu1 %vm494_vm3, %v631_v22  ;;  %v7985_v11 = vshll.u32 %v6500_v14, 16  ;;  %v732_v22 = vsel %vm725_vm8, %v728_v1, %v731_v13  ;;  %v735_v19 = vor.u32 %v734_v18, %v733_v31 }
  0x70   : > { %4938 = vmatprep.mubr.msk.bf16.mxu1 %vm6103_vm1, %v7981_v43  ;;  %v7986_v1 = vshrl.u32 %v6510_v16, 16  ;;  %v7989_v18 = vshll.u32 %v6547_v55, 16 }
  0x71   : > { %5233 = vmatmul.mubr.msk.bf16.gmra.mrb[8].mxu0 %vm494_vm3, %v2494_v34  ;;  %v2510_v34 = vrot.slane %v7984_v33, 3  ;;  %v1142_v25 = vrot.slane %v7985_v11, 3  ;;  %v737_v33 = vrot.slane %v6653_v39, 1  ;;  %v433_v11 = vld [vmem:[%s6272_s11 + $0x30] sm:$0xf] }
  0x72   : > { %5236 = vmatprep.mubr.msk.bf16.mxu0 %vm6103_vm1, %v7981_v43  ;;  %v1145_v35 = vrot.slane %v7986_v1, 2  ;;  %v6772_v44 = vsel %vm6259_vm4, %v433_v11, 0 }
  0x73   : > { %v1143_v32 = vor.u32 %v1142_v25, %v1141_v45  ;;  %v2511_v14 = vor.u32 %v2510_v34, %v2507_v63  ;;  %v7987_v45 = vshll.u32 %v6510_v16, 16  ;;  %v738_v34 = vrot.slane %v6568_v41, 2 }
  0x74   : > { %v2616_v16 = vrot.slane %v6428_v59, 3 }
  0x75   : > { %v6743_v51 = vsel %vm1133_vm6, %v1139_v4, %v1143_v32  ;;  %v2512_v8 = vsel %vm1133_vm6, %v2502_v12, %v2511_v14  ;;  %v736_v4 = vsel %vm725_vm8, %v731_v13, %v735_v19  ;;  %v2617_v12 = vrot.slane %v6442_v6, 3  ;;  %v4632_v13 = vld [vmem:[%s7895_s1 + $0x22] sm:$0x3] }
  0x76   : > { %v2769_v1 = vsel %vm510_vm0, %v4632_v13, 0 }
  0x77   : > { %4939 = vmatmul.mubr.msk.bf16.vlgmr.msra.gmra.mrb[0].mxu1 %vm494_vm3, %v732_v22  ;;  %v7988_v22 = vshrl.u32 %v6547_v55, 16  ;;  %v2618_v14 = vsel %vm1400_vm10, %v2616_v16, %v2617_v12 }
  0x78   : > { %4959 = vmatpush3.bf16.msra.mxu1 %v931_v36  ;;  %4942 = vmatprep.mubr.msk.bf16.mxu1 %vm6103_vm1, %v7981_v43  ;;  %v1150_v36 = vrot.slane %v7989_v18, 3 }
  0x79   : > { %5237 = vmatmul.mubr.msk.bf16.gmra.mrb[12].mxu0 %vm494_vm3, %v2503_v47  ;;  %v1146_v47 = vrot.slane %v7987_v45, 3  ;;  %4980 = vmatprep.subr.bf16.mxu1 %v7981_v43  ;;  %v1149_v31 = vrot.slane %v7988_v22, 2 }
  0x7a   : > { %5240 = vmatprep.mubr.msk.bf16.mxu0 %vm6103_vm1, %v7981_v43 }
  0x7b   : > { %v1147_v63 = vor.u32 %v1146_v47, %v1145_v35  ;;  %v6784_v35 = vcombine.low %v6772_v44, %v6772_v44  ;;  %v1151_v45 = vor.u32 %v1150_v36, %v1149_v31 }
  0x7d   : > { %v6760_v25 = vsel %vm1133_vm6, %v1143_v32, %v1147_v63  ;;  %v739_v32 = vor.u32 %v738_v34, %v737_v33  ;;  %v6791_v33 = vsel %vm1133_vm6, %v1147_v63, %v1151_v45  ;;  %v2619_v34 = vrot.slane %v6541_v17, 3 }
  0x7e   : > { %v907_v11 = vshrl.u32 %v6784_v35, 16  ;;  %v745_v63 = vshrl.u32 %v6424_v58, 16 }
  0x7f   : > { %4943 = vmatmul.mubr.msk.bf16.gmra.mrb[4].mxu1 %vm494_vm3, %v736_v4  ;;  %v740_v47 = vsel %vm725_vm8, %v735_v19, %v739_v32  ;;  %v742_v4 = vrot.slane %v6656_v7, 2  ;;  %v910_v19 = vshll.u32 %v6784_v35, 16  ;;  %v2620_v31 = vsel %vm1400_vm10, %v2617_v12, %v2619_v34 }
  0x80   : > { %4946 = vmatprep.mubr.msk.bf16.mxu1 %vm6103_vm1, %v7981_v43  ;;  %v1153_v13 = vrot.slane %v907_v11, 2 }
  0x81   : > { %5241 = vmatmul.mubr.msk.bf16.gmra.mrb[16].mxu0 %vm494_vm3, %v2512_v8  ;;  %v741_v8 = vrot.slane %v6681_v57, 1  ;;  %v1154_v22 = vrot.slane %v910_v19, 3 }
  0x82   : > { %5246 = vmatprep.mubr.msk.bf16.mxu0 %vm6103_vm1, %v7981_v43 }
  0x83   : > { %v743_v16 = vor.u32 %v742_v4, %v741_v8  ;;  %v1155_v18 = vor.u32 %v1154_v22, %v1153_v13  ;;  %v2621_v4 = vrot.slane %v6628_v60, 3  ;;  %v2730_v22 = vrot.slane %v6465_v26, 3 }
  0x85   : > { %v744_v36 = vsel %vm725_vm8, %v739_v32, %v743_v16  ;;  %v6813_v8 = vsel %vm1133_vm6, %v1151_v45, %v1155_v18  ;;  %v2622_v32 = vsel %vm1400_vm10, %v2619_v34, %v2621_v4  ;;  %v2623_v45 = vrot.slane %v6554_v15, 3  ;;  %v4538_v34 = vld [vmem:[%s7895_s1 + $0x8] sm:$0x3] }
  0x86   : > { %v1046_v13 = vsel %vm510_vm0, %v4538_v34, 0  ;;  %v2734_v18 = vrot.slane %v6468_v28, 4  ;;  %v912_v34 = vrot.slane %v910_v19, 2 }
  0x87   : > { %4947 = vmatmul.mubr.msk.bf16.gmra.mrb[8].mxu1 %vm494_vm3, %v740_v47 }
  0x88   : > { %4950 = vmatprep.mubr.msk.bf16.mxu1 %vm6103_vm1, %v7981_v43 }
  0x89   : > { %5247 = vmatmul.mubr.msk.bf16.vlgmr.msra.gmra.mrb[0].mxu0 %vm494_vm3, %v2618_v14  ;;  %v747_v14 = vrot.slane %v745_v63, 1  ;;  %v2624_v63 = vsel %vm1400_vm10, %v2621_v4, %v2623_v45  ;;  %v2738_v4 = vrot.slane %v6591_v29, 4 }
  0x8a   : > { %5267 = vmatpush3.bf16.msra.mxu0 %v2769_v1  ;;  %5250 = vmatprep.mubr.msk.bf16.mxu0 %vm6103_vm1, %v7981_v43  ;;  %v7990_v1 = vshll.u32 %v6424_v58, 16 }
  0x8b   : > { %5288 = vmatprep.subr.bf16.mxu0 %v7981_v43 }
  0x8c   : > { %v748_v47 = vrot.slane %v7990_v1, 2 }
  0x8e   : > { %v749_v12 = vor.u32 %v748_v47, %v747_v14  ;;  %v4638_v14 = vld [vmem:[%s7895_s1 + $0x24] sm:$0x3]  ;;  %v2737_v47 = vrot.slane %v6614_v42, 3 }
  0x8f   : > { %4951 = vmatmul.mubr.msk.bf16.gmra.mrb[12].mxu1 %vm494_vm3, %v744_v36 }
  0x90   : > { %4954 = vmatprep.mubr.msk.bf16.mxu1 %vm6103_vm1, %v7981_v43  ;;  %v750_v58 = vsel %vm725_vm8, %v743_v16, %v749_v12  ;;  %v2625_v16 = vrot.slane %v6571_v49, 3  ;;  %v2733_v49 = vrot.slane %v6524_v24, 3  ;;  %v2973_v12 = vsel %vm510_vm0, %v4638_v14, 0  ;;  %v4544_v14 = vld [vmem:[%s7895_s1 + $0xa] sm:$0x3] }
  0x91   : > { %5251 = vmatmul.mubr.msk.bf16.gmra.mrb[4].mxu0 %vm494_vm3, %v2620_v31  ;;  %v2731_v31 = vrot.slane %v6457_v20, 4 }
  0x92   : > { %5254 = vmatprep.mubr.msk.bf16.mxu0 %vm6103_vm1, %v7981_v43  ;;  %v2626_v15 = vsel %vm1400_vm10, %v2623_v45, %v2625_v16  ;;  %v2735_v36 = vor.u32 %v2734_v18, %v2733_v49  ;;  %v2742_v45 = vrot.slane %v6666_v52, 4  ;;  %v2856_v18 = vld [vmem:[%s6900_s15 + $0xc] sm:$0xf] }
  0x97   : > { %4955 = vmatmul.mubr.msk.bf16.gmra.mrb[16].mxu1 %vm494_vm3, %v750_v58  ;;  %v2741_v58 = vrot.slane %v6669_v3, 3 }
  0x98   : > { %4960 = vmatprep.mubr.msk.bf16.mxu1 %vm6103_vm1, %v7981_v43 }
  0x99   : > { %5255 = vmatmul.mubr.msk.bf16.gmra.mrb[8].mxu0 %vm494_vm3, %v2622_v32 }
  0x9a   : > { %5258 = vmatprep.mubr.msk.bf16.mxu0 %vm6103_vm1, %v7981_v43 }
  0x9f   : > { %4961 = vmatmul.mubr.msk.bf16.vlgmr.msra.gmra.mrb[0].mxu1 %vm494_vm3, %v6527_v50  ;;  %v2732_v50 = vor.u32 %v2731_v31, %v2730_v22 }
  0xa0   : > { %4981 = vmatpush3.bf16.msra.mxu1 %v1046_v13  ;;  %4964 = vmatprep.mubr.msk.bf16.mxu1 %vm6103_vm1, %v7981_v43  ;;  %v2854_v13 = vld [vmem:[%s6900_s15 + $0x4] sm:$0xf] }
  0xa1   : > { %5259 = vmatmul.mubr.msk.bf16.gmra.mrb[12].mxu0 %vm494_vm3, %v2624_v63  ;;  %5002 = vmatprep.subr.bf16.mxu1 %v7981_v43  ;;  %v2736_v1 = vsel %vm1515_vm9, %v2732_v50, %v2735_v36  ;;  %v909_v63 = vrot.slane %v907_v11, 1  ;;  %v2868_v11 = vstv %s2867_s7  ;;  %v2857_v50 = vld [vmem:[%s6900_s15 + $0x10] sm:$0xf] }
  0xa2   : > { %5262 = vmatprep.mubr.msk.bf16.mxu0 %vm6103_vm1, %v7981_v43  ;;  %vm6905_vm11 = vcmp.eq.s32.totalorder %v2868_v11, 1 }
  0xa3   : > { %v913_v16 = vor.u32 %v912_v34, %v909_v63  ;;  %v2870_v31 = vsel %vm6905_vm11, %v2854_v13, 0  ;;  %v2861_v13 = vld [vmem:[%s6900_s15 + $0x20] sm:$0xf] }
  0xa5   : > { %v914_v22 = vsel %vm725_vm8, %v6593_v61, %v913_v16 }
  0xa7   : > { %4965 = vmatmul.mubr.msk.bf16.gmra.mrb[4].mxu1 %vm494_vm3, %v6558_v21  ;;  %v2739_v21 = vor.u32 %v2738_v4, %v2737_v47  ;;  %v6939_v47 = vsel %vm6905_vm11, %v2857_v50, 0  ;;  %v1173_v4 = vsel %vm510_vm0, %v4544_v14, 0  ;;  %v7005_v50 = vsel %vm6905_vm11, %v2861_v13, 0 }
  0xa8   : > { %4968 = vmatprep.mubr.msk.bf16.mxu1 %vm6103_vm1, %v7981_v43 }
  0xa9   : > { %5263 = vmatmul.mubr.msk.bf16.gmra.mrb[16].mxu0 %vm494_vm3, %v2626_v15  ;;  %v2740_v32 = vsel %vm1515_vm9, %v2735_v36, %v2739_v21  ;;  %v2855_v15 = vld [vmem:[%s6900_s15 + $0x8] sm:$0xf] }
  0xaa   : > { %5268 = vmatprep.mubr.msk.bf16.mxu0 %vm6103_vm1, %v7981_v43  ;;  %v6918_v49 = vsel %vm6905_vm11, %v2855_v15, 0 }
  0xab   : > { %v6928_v36 = vcombine.low %v2870_v31, %v6918_v49 }
  0xaf   : > { %4969 = vmatmul.mubr.msk.bf16.gmra.mrb[8].mxu1 %vm494_vm3, %v6574_v5  ;;  %v2743_v5 = vor.u32 %v2742_v45, %v2741_v58  ;;  %v7951_v58 = vshrl.u32 %v6928_v36, 16 }
  0xb0   : > { %4972 = vmatprep.mubr.msk.bf16.mxu1 %vm6103_vm1, %v7981_v43 }
  0xb1   : > { %5269 = vmatmul.mubr.msk.bf16.vlgmr.msra.gmra.mrb[0].mxu0 %vm494_vm3, %v2736_v1  ;;  %v2744_v19 = vsel %vm1515_vm9, %v2739_v21, %v2743_v5  ;;  %v2748_v61 = vsel %vm1515_vm9, %v2743_v5, %v6616_v37  ;;  %v6935_v1 = vsel %vm6905_vm11, %v2856_v18, 0  ;;  %v2858_v21 = vld [vmem:[%s6900_s15 + $0x14] sm:$0xf] }
  0xb2   : > { %5289 = vmatpush3.bf16.msra.mxu0 %v2973_v12  ;;  %5272 = vmatprep.mubr.msk.bf16.mxu0 %vm6103_vm1, %v7981_v43  ;;  %v6947_v37 = vcombine.low %v6935_v1, %v6939_v47  ;;  %v7950_v12 = vshll.u32 %v6928_v36, 16 }
  0xb3   : > { %5310 = vmatprep.subr.bf16.mxu0 %v7981_v43 }
  0xb4   : > { %v2918_v45 = vrot.slane %v7950_v12, 1  ;;  %v6960_v63 = vshll.u32 %v6947_v37, 16 }
  0xb6   : > { %v2919_v5 = vor.u32 %v2918_v45, %v7951_v58  ;;  %v2923_v16 = vrot.slane %v6960_v63, 1 }
  0xb7   : > { %4973 = vmatmul.mubr.msk.bf16.gmra.mrb[12].mxu1 %vm494_vm3, %v6605_v9 }
  0xb8   : > { %4976 = vmatprep.mubr.msk.bf16.mxu1 %vm6103_vm1, %v7981_v43  ;;  %v2924_v15 = vsel %vm587_vm7, %v2919_v5, %v2923_v16 }
  0xb9   : > { %5273 = vmatmul.mubr.msk.bf16.gmra.mrb[4].mxu0 %vm494_vm3, %v2740_v32  ;;  %v2859_v32 = vld [vmem:[%s6900_s15 + $0x18] sm:$0xf] }
  0xba   : > { %5276 = vmatprep.mubr.msk.bf16.mxu0 %vm6103_vm1, %v7981_v43  ;;  %v6969_v34 = vsel %vm6905_vm11, %v2859_v32, 0  ;;  %v2863_v32 = vld [vmem:[%s6900_s15 + $0x28] sm:$0xf] }
  0xbf   : > { %4977 = vmatmul.mubr.msk.bf16.gmra.mrb[16].mxu1 %vm494_vm3, %v914_v22  ;;  %v6993_v22 = vshrl.u32 %v6947_v37, 16 }
  0xc0   : > { %4982 = vmatprep.mubr.msk.bf16.mxu1 %vm6103_vm1, %v7981_v43 }
  0xc1   : > { %5277 = vmatmul.mubr.msk.bf16.gmra.mrb[8].mxu0 %vm494_vm3, %v2744_v19  ;;  %v4650_v19 = vld [vmem:[%s7895_s1 + $0x26] sm:$0x3] }
  0xc2   : > { %5280 = vmatprep.mubr.msk.bf16.mxu0 %vm6103_vm1, %v7981_v43 }
  0xc7   : > { %4983 = vmatmul.mubr.msk.bf16.vlgmr.msra.gmra.mrb[0].mxu1 %vm494_vm3, %v6608_v62  ;;  %v6965_v62 = vsel %vm6905_vm11, %v2858_v21, 0  ;;  %v2862_v21 = vld [vmem:[%s6900_s15 + $0x24] sm:$0xf] }
  0xc8   : > { %5003 = vmatpush3.bf16.msra.mxu1 %v1173_v4  ;;  %4986 = vmatprep.mubr.msk.bf16.mxu1 %vm6103_vm1, %v7981_v43  ;;  %v6980_v11 = vcombine.low %v6965_v62, %v6969_v34 }
  0xc9   : > { %5281 = vmatmul.mubr.msk.bf16.gmra.mrb[12].mxu0 %vm494_vm3, %v2748_v61  ;;  %5024 = vmatprep.subr.bf16.mxu1 %v7981_v43  ;;  %v2927_v61 = vor.u32 %v6993_v22, %v2923_v16 }
  0xca   : > { %5284 = vmatprep.mubr.msk.bf16.mxu0 %vm6103_vm1, %v7981_v43  ;;  %v6996_v31 = vshll.u32 %v6980_v11, 16  ;;  %v7025_v5 = vshrl.u32 %v6980_v11, 16 }
  0xcc   : > { %v2931_v14 = vrot.slane %v6996_v31, 1 }
  0xce   : > { %v2932_v45 = vsel %vm587_vm7, %v2927_v61, %v2931_v14  ;;  %v1028_v61 = vrot.slane %v6784_v35, 2 }
  0xcf   : > { %4987 = vmatmul.mubr.msk.bf16.gmra.mrb[4].mxu1 %vm494_vm3, %v6623_v56  ;;  %v3087_v56 = vsel %vm510_vm0, %v4650_v19, 0  ;;  %v7032_v19 = vsel %vm6905_vm11, %v2862_v21, 0 }
  0xd0   : > { %4990 = vmatprep.mubr.msk.bf16.mxu1 %vm6103_vm1, %v7981_v43 }
  0xd1   : > { %5285 = vmatmul.mubr.msk.bf16.gmra.mrb[16].mxu0 %vm494_vm3, %v6646_v46  ;;  %v2860_v46 = vld [vmem:[%s6900_s15 + $0x1c] sm:$0xf] }
  0xd2   : > { %5290 = vmatprep.mubr.msk.bf16.mxu0 %vm6103_vm1, %v7981_v43  ;;  %v7001_v18 = vsel %vm6905_vm11, %v2860_v46, 0  ;;  %v2935_v46 = vor.u32 %v7025_v5, %v2931_v14 }
  0xd3   : > { %v7014_v4 = vcombine.low %v7001_v18, %v7005_v50 }
  0xd5   : > { %7994 = vst [vmem:[#allocation12_spill] sm:$0xff] %v7014_v4  ;;  %v7028_v16 = vshll.u32 %v7014_v4, 16 }
  0xd7   : > { %4991 = vmatmul.mubr.msk.bf16.gmra.mrb[8].mxu1 %vm494_vm3, %v6639_v27  ;;  %v7036_v27 = vsel %vm6905_vm11, %v2863_v32, 0  ;;  %v2939_v13 = vrot.slane %v7028_v16, 1  ;;  %v7055_v32 = vshrl.u32 %v7014_v4, 16 }
  0xd8   : > { %4994 = vmatprep.mubr.msk.bf16.mxu1 %vm6103_vm1, %v7981_v43 }
  0xd9   : > { %5291 = vmatmul.mubr.msk.bf16.vlgmr.msra.gmra.mrb[0].mxu0 %vm494_vm3, %v2924_v15  ;;  %v7045_v15 = vcombine.low %v7032_v19, %v7036_v27  ;;  %v2940_v21 = vsel %vm587_vm7, %v2935_v46, %v2939_v13  ;;  %v2943_v35 = vor.u32 %v7055_v32, %v2939_v13  ;;  %v4550_v13 = vld [vmem:[%s7895_s1 + $0xc] sm:$0x3] }
  0xda   : > { %5311 = vmatpush3.bf16.msra.mxu0 %v3087_v56  ;;  %5294 = vmatprep.mubr.msk.bf16.mxu0 %vm6103_vm1, %v7981_v43  ;;  %v2864_v56 = vld [vmem:[%s6900_s15 + $0x2c] sm:$0xf] }
  0xdb   : > { %5332 = vmatprep.subr.bf16.mxu0 %v7981_v43  ;;  %7995 = vst [vmem:[#allocation13_spill] sm:$0xff] %v7045_v15  ;;  %v7058_v14 = vshll.u32 %v7045_v15, 16 }
  0xdd   : > { %v2947_v46 = vrot.slane %v7058_v14, 1 }
  0xdf   : > { %4995 = vmatmul.mubr.msk.bf16.gmra.mrb[12].mxu1 %vm494_vm3, %v6661_v53  ;;  %v7996_v53 = vrot.slane %v6547_v55, 2  ;;  %v2948_v55 = vsel %vm587_vm7, %v2943_v35, %v2947_v46 }
  0xe0   : > { %4998 = vmatprep.mubr.msk.bf16.mxu1 %vm6103_vm1, %v7981_v43 }
  0xe1   : > { %5295 = vmatmul.mubr.msk.bf16.gmra.mrb[4].mxu0 %vm494_vm3, %v2932_v45  ;;  %v7062_v45 = vsel %vm6905_vm11, %v2864_v56, 0  ;;  %v1029_v12 = vsel %vm1018_vm2, %v7996_v53, %v1028_v61  ;;  %v7081_v56 = vshrl.u32 %v7045_v15, 16 }
  0xe2   : > { %5298 = vmatprep.mubr.msk.bf16.mxu0 %vm6103_vm1, %v7981_v43  ;;  %v7074_v58 = vcombine.low %v7062_v45, %v7062_v45 }
  0xe4   : > { %v7952_v61 = vshll.u32 %v7074_v58, 16 }
  0xe6   : > { %v2955_v53 = vrot.slane %v7952_v61, 1  ;;  %v1271_v61 = vrot.slane %v6653_v39, 2 }
  0xe7   : > { %4999 = vmatmul.mubr.msk.bf16.gmra.mrb[16].mxu1 %vm494_vm3, %v1029_v12  ;;  %v2951_v12 = vor.u32 %v7081_v56, %v2947_v46  ;;  %v3060_v46 = vrot.slane %v6928_v36, 1 }
  0xe8   : > { %5004 = vmatprep.mubr.msk.bf16.mxu1 %vm6103_vm1, %v7981_v43 }
  0xe9   : > { %5299 = vmatmul.mubr.msk.bf16.gmra.mrb[8].mxu0 %vm494_vm3, %v2940_v21  ;;  %v1313_v21 = vsel %vm510_vm0, %v4550_v13, 0  ;;  %v2956_v35 = vsel %vm587_vm7, %v2951_v12, %v2955_v53  ;;  %v3063_v12 = vrot.slane %v6980_v11, 1  ;;  %v3065_v53 = vrot.slane %v7014_v4, 1 }
  0xea   : > { %5302 = vmatprep.mubr.msk.bf16.mxu0 %vm6103_vm1, %v7981_v43 }
  0xef   : > { %5005 = vmatmul.mubr.msk.bf16.vlgmr.msra.gmra.mrb[0].mxu1 %vm494_vm3, %v6718_v2  ;;  %v4656_v2 = vld [vmem:[%s7895_s1 + $0x28] sm:$0x3] }
  0xf0   : > { %5025 = vmatpush3.bf16.msra.mxu1 %v1313_v21  ;;  %5008 = vmatprep.mubr.msk.bf16.mxu1 %vm6103_vm1, %v7981_v43  ;;  %v3215_v21 = vsel %vm510_vm0, %v4656_v2, 0  ;;  %v1268_v2 = vrot.slane %v6506_v38, 3 }
  0xf1   : > { %5303 = vmatmul.mubr.msk.bf16.gmra.mrb[12].mxu0 %vm494_vm3, %v2948_v55  ;;  %5046 = vmatprep.subr.bf16.mxu1 %v7981_v43  ;;  %v3061_v55 = vrot.slane %v6947_v37, 1 }
  0xf2   : > { %5306 = vmatprep.mubr.msk.bf16.mxu0 %vm6103_vm1, %v7981_v43 }
  0xf3   : > { %v3062_v13 = vsel %vm482_vm5, %v3060_v46, %v3061_v55  ;;  %v1265_v46 = vrot.slane %v6472_v30, 3 }
  0xf7   : > { %5009 = vmatmul.mubr.msk.bf16.gmra.mrb[4].mxu1 %vm494_vm3, %v6743_v51  ;;  %v3064_v51 = vsel %vm482_vm5, %v3061_v55, %v3063_v12  ;;  %v1267_v55 = vrot.slane %v6565_v0, 2 }
  0xf8   : > { %5012 = vmatprep.mubr.msk.bf16.mxu1 %vm6103_vm1, %v7981_v43 }
  0xf9   : > { %5307 = vmatmul.mubr.msk.bf16.gmra.mrb[16].mxu0 %vm494_vm3, %v2956_v35  ;;  %v1264_v35 = vrot.slane %v6494_v10, 2 }
  0xfa   : > { %5312 = vmatprep.mubr.msk.bf16.mxu0 %vm6103_vm1, %v7981_v43 }
  0xff   : > { %5013 = vmatmul.mubr.msk.bf16.gmra.mrb[8].mxu1 %vm494_vm3, %v6760_v25  ;;  %v3066_v25 = vsel %vm482_vm5, %v3063_v12, %v3065_v53 }
 0x100   : > { %5016 = vmatprep.mubr.msk.bf16.mxu1 %vm6103_vm1, %v7981_v43 }
 0x101   : > { %5313 = vmatmul.mubr.msk.bf16.vlgmr.msra.gmra.mrb[0].mxu0 %vm494_vm3, %v3062_v13  ;;  %v1266_v13 = vor.u32 %v1265_v46, %v1264_v35  ;;  %v7997_v46 = vshrl.u32 %v6928_v36, 16 }
 0x102   : > { %5333 = vmatpush3.bf16.msra.mxu0 %v3215_v21  ;;  %5316 = vmatprep.mubr.msk.bf16.mxu0 %vm6103_vm1, %v7981_v43  ;;  %v1269_v21 = vor.u32 %v1268_v2, %v1267_v55  ;;  %v7998_v2 = vshll.u32 %v6928_v36, 16 }
 0x103   : > { %5354 = vmatprep.subr.bf16.mxu0 %v7981_v43  ;;  %v3174_v55 = vrot.slane %v7997_v46, 1 }
 0x107   : > { %5017 = vmatmul.mubr.msk.bf16.gmra.mrb[12].mxu1 %vm494_vm3, %v6791_v33  ;;  %v3067_v33 = vrot.slane %v7045_v15, 1  ;;  %v1272_v15 = vrot.slane %v6568_v41, 3 }
 0x108   : > { %5020 = vmatprep.mubr.msk.bf16.mxu1 %vm6103_vm1, %v7981_v43 }
 0x109   : > { %5317 = vmatmul.mubr.msk.bf16.gmra.mrb[4].mxu0 %vm494_vm3, %v3064_v51  ;;  %v3068_v12 = vsel %vm482_vm5, %v3065_v53, %v3067_v33  ;;  %v4558_v51 = vld [vmem:[%s7895_s1 + $0xe] sm:$0x3]  ;;  %v1273_v53 = vor.u32 %v1272_v15, %v1271_v61  ;;  %v1275_v15 = vrot.slane %v6681_v57, 2  ;;  %v1276_v61 = vrot.slane %v6656_v7, 3 }
 0x10a   : > { %5320 = vmatprep.mubr.msk.bf16.mxu0 %vm6103_vm1, %v7981_v43  ;;  %v1428_v4 = vsel %vm510_vm0, %v4558_v51, 0  ;;  %v3178_v51 = vrot.slane %v6960_v63, 2 }
 0x10f   : > { %5021 = vmatmul.mubr.msk.bf16.gmra.mrb[16].mxu1 %vm494_vm3, %v6813_v8  ;;  %v3069_v8 = vrot.slane %v7074_v58, 1 }
 0x110   : > { %5026 = vmatprep.mubr.msk.bf16.mxu1 %vm6103_vm1, %v7981_v43 }
 0x111   : > { %5321 = vmatmul.mubr.msk.bf16.gmra.mrb[8].mxu0 %vm494_vm3, %v3066_v25  ;;  %v1270_v25 = vsel %vm1133_vm6, %v1266_v13, %v1269_v21  ;;  %v3070_v35 = vsel %vm482_vm5, %v3067_v33, %v3069_v8  ;;  %v3175_v13 = vrot.slane %v7998_v2, 2  ;;  %v7174_v33 = vcombine.low %v6414_v54, %v6772_v44  ;;  %v434_v8 = vld [vmem:[%s6272_s11 + $0x34] sm:$0xf] }
 0x112   : > { %5324 = vmatprep.mubr.msk.bf16.mxu0 %vm6103_vm1, %v7981_v43  ;;  %v3182_v2 = vrot.slane %v6996_v31, 2 }
 0x113   : > { %v3176_v36 = vor.u32 %v3175_v13, %v3174_v55  ;;  %v1280_v46 = vshrl.u32 %v7174_v33, 16  ;;  %v1283_v54 = vshll.u32 %v7174_v33, 16  ;;  %v3181_v55 = vrot.slane %v7025_v5, 1 }
 0x114   : > { %v450_v13 = vsel %vm6259_vm4, %v434_v8, 0 }
 0x115   : > { %v3183_v23 = vor.u32 %v3182_v2, %v3181_v55 }
 0x117   : > { %5027 = vmatmul.mubr.msk.bf16.vlgmr.msra.gmra.mrb[0].mxu1 %vm494_vm3, %v1270_v25 }
 0x118   : > { %5047 = vmatpush3.bf16.msra.mxu1 %v1428_v4  ;;  %5030 = vmatprep.mubr.msk.bf16.mxu1 %vm6103_vm1, %v7981_v43  ;;  %v1274_v4 = vsel %vm1133_vm6, %v1269_v21, %v1273_v53  ;;  %v4662_v21 = vld [vmem:[%s7895_s1 + $0x2a] sm:$0x3] }
 0x119   : > { %5325 = vmatmul.mubr.msk.bf16.gmra.mrb[12].mxu0 %vm494_vm3, %v3068_v12  ;;  %v3177_v12 = vrot.slane %v6993_v22, 1  ;;  %5068 = vmatprep.subr.bf16.mxu1 %v7981_v43 }
 0x11a   : > { %5328 = vmatprep.mubr.msk.bf16.mxu0 %vm6103_vm1, %v7981_v43 }
 0x11b   : > { %v3179_v25 = vor.u32 %v3178_v51, %v3177_v12  ;;  %v3379_v12 = vsel %vm510_vm0, %v4662_v21, 0 }
 0x11d   : > { %v3180_v44 = vsel %vm725_vm8, %v3176_v36, %v3179_v25  ;;  %v3184_v21 = vsel %vm725_vm8, %v3179_v25, %v3183_v23 }
 0x11f   : > { %5031 = vmatmul.mubr.msk.bf16.gmra.mrb[4].mxu1 %vm494_vm3, %v1274_v4  ;;  %v1282_v4 = vrot.slane %v1280_v46, 2 }
 0x120   : > { %5034 = vmatprep.mubr.msk.bf16.mxu1 %vm6103_vm1, %v7981_v43 }
 0x121   : > { %5329 = vmatmul.mubr.msk.bf16.gmra.mrb[16].mxu0 %vm494_vm3, %v3070_v35  ;;  %v1277_v35 = vor.u32 %v1276_v61, %v1275_v15  ;;  %v1285_v15 = vrot.slane %v1283_v54, 3  ;;  %v7199_v61 = vcombine.low %v450_v13, %v450_v13  ;;  %v3186_v13 = vrot.slane %v7028_v16, 2 }
 0x122   : > { %5334 = vmatprep.mubr.msk.bf16.mxu0 %vm6103_vm1, %v7981_v43 }
 0x123   : > { %v1278_v51 = vsel %vm1133_vm6, %v1273_v53, %v1277_v35  ;;  %v1286_v53 = vor.u32 %v1285_v15, %v1282_v4  ;;  %v1289_v36 = vshrl.u32 %v7199_v61, 16  ;;  %v7955_v8 = vshll.u32 %v7199_v61, 16 }
 0x124   : > { %v3189_v4 = vrot.slane %v7081_v56, 1  ;;  %v3190_v15 = vrot.slane %v7058_v14, 2 }
 0x125   : > { %v1287_v55 = vsel %vm1133_vm6, %v1277_v35, %v1286_v53  ;;  %v1291_v2 = vrot.slane %v1289_v36, 2 }
 0x127   : > { %5035 = vmatmul.mubr.msk.bf16.gmra.mrb[8].mxu1 %vm494_vm3, %v1278_v51 }
 0x128   : > { %5038 = vmatprep.mubr.msk.bf16.mxu1 %vm6103_vm1, %v7981_v43 }
 0x129   : > { %5335 = vmatmul.mubr.msk.bf16.vlgmr.msra.gmra.mrb[0].mxu0 %vm494_vm3, %v3180_v44  ;;  %v3185_v44 = vrot.slane %v7055_v32, 1 }
 0x12a   : > { %5355 = vmatpush3.bf16.msra.mxu0 %v3379_v12  ;;  %5338 = vmatprep.mubr.msk.bf16.mxu0 %vm6103_vm1, %v7981_v43  ;;  %v1294_v12 = vrot.slane %v7955_v8, 3  ;;  %v3193_v8 = vshrl.u32 %v7074_v58, 16 }
 0x12b   : > { %5376 = vmatprep.subr.bf16.mxu0 %v7981_v43  ;;  %v3187_v51 = vor.u32 %v3186_v13, %v3185_v44  ;;  %v3191_v44 = vor.u32 %v3190_v15, %v3189_v4  ;;  %v1401_v13 = vrot.slane %v6298_v40, 3  ;;  %v4564_v40 = vld [vmem:[%s7895_s1 + $0x10] sm:$0x3] }
 0x12c   : > { %v1295_v25 = vor.u32 %v1294_v12, %v1291_v2  ;;  %v7240_v12 = vcombine.low %v6918_v49, %v6935_v1  ;;  %v1555_v49 = vsel %vm510_vm0, %v4564_v40, 0 }
 0x12d   : > { %v3188_v35 = vsel %vm725_vm8, %v3183_v23, %v3187_v51  ;;  %v1402_v23 = vrot.slane %v6316_v48, 3 }
 0x12e   : > { %v3314_v1 = vshll.u32 %v7240_v12, 16 }
 0x12f   : > { %5039 = vmatmul.mubr.msk.bf16.gmra.mrb[12].mxu1 %vm494_vm3, %v1287_v55  ;;  %v3195_v55 = vrot.slane %v3193_v8, 1  ;;  %v1403_v48 = vsel %vm1400_vm10, %v1401_v13, %v1402_v23  ;;  %v3311_v8 = vshrl.u32 %v7240_v12, 16 }
 0x130   : > { %5042 = vmatprep.mubr.msk.bf16.mxu1 %vm6103_vm1, %v7981_v43  ;;  %v3316_v13 = vrot.slane %v3314_v1, 2 }
 0x131   : > { %5339 = vmatmul.mubr.msk.bf16.gmra.mrb[4].mxu0 %vm494_vm3, %v3184_v21  ;;  %v1296_v21 = vsel %vm1133_vm6, %v1286_v53, %v1295_v25  ;;  %v7999_v53 = vshll.u32 %v7074_v58, 16  ;;  %v3192_v25 = vsel %vm725_vm8, %v3187_v51, %v3191_v44  ;;  %v8000_v51 = vld [vmem:[#allocation8_spill] sm:$0xff] }
 0x132   : > { %5342 = vmatprep.mubr.msk.bf16.mxu0 %vm6103_vm1, %v7981_v43  ;;  %v1404_v4 = vrot.slane %v8000_v51, 3 }
 0x133   : > { %v3196_v2 = vrot.slane %v7999_v53, 2 }
 0x135   : > { %v3197_v58 = vor.u32 %v3196_v2, %v3195_v55  ;;  %v7274_v2 = vcombine.low %v6969_v34, %v7001_v18  ;;  %v4674_v34 = vld [vmem:[%s7895_s1 + $0x2c] sm:$0x3]  ;;  %v8001_v18 = vld [vmem:[#allocation9_spill] sm:$0xff] }
 0x137   : > { %5043 = vmatmul.mubr.msk.bf16.gmra.mrb[16].mxu1 %vm494_vm3, %v1296_v21  ;;  %v3198_v15 = vsel %vm725_vm8, %v3191_v44, %v3197_v58  ;;  %v3313_v21 = vrot.slane %v3311_v8, 1  ;;  %v1405_v44 = vsel %vm1400_vm10, %v1402_v23, %v1404_v4  ;;  %v7960_v58 = vshll.u32 %v7274_v2, 16 }
 0x138   : > { %5048 = vmatprep.mubr.msk.bf16.mxu1 %vm6103_vm1, %v7981_v43  ;;  %v1406_v23 = vrot.slane %v8001_v18, 3  ;;  %v7318_v18 = vcombine.low %v7036_v27, %v7062_v45  ;;  %v1410_v27 = vrot.slane %v7199_v61, 3 }
 0x139   : > { %5343 = vmatmul.mubr.msk.bf16.gmra.mrb[8].mxu0 %vm494_vm3, %v3188_v35  ;;  %v7245_v35 = vcombine.low %v6939_v47, %v6965_v62 }
 0x13a   : > { %5346 = vmatprep.mubr.msk.bf16.mxu0 %vm6103_vm1, %v7981_v43 }
 0x13b   : > { %v3319_v47 = vshrl.u32 %v7245_v35, 16  ;;  %v3322_v62 = vshll.u32 %v7245_v35, 16 }
 0x13d   : > { %v3321_v55 = vrot.slane %v3319_v47, 1  ;;  %v3324_v53 = vrot.slane %v3322_v62, 2 }
 0x13f   : > { %5049 = vmatmul.mubr.msk.bf16.vlgmr.msra.gmra.mrb[0].mxu1 %vm494_vm3, %v1403_v48  ;;  %v3325_v40 = vor.u32 %v3324_v53, %v3321_v55  ;;  %v3328_v48 = vshrl.u32 %v7274_v2, 16  ;;  %v1407_v55 = vsel %vm1400_vm10, %v1404_v4, %v1406_v23 }
 0x140   : > { %5069 = vmatpush3.bf16.msra.mxu1 %v1555_v49  ;;  %5052 = vmatprep.mubr.msk.bf16.mxu1 %vm6103_vm1, %v7981_v43 }
 0x141   : > { %5347 = vmatmul.mubr.msk.bf16.gmra.mrb[12].mxu0 %vm494_vm3, %v3192_v25  ;;  %5090 = vmatprep.subr.bf16.mxu1 %v7981_v43  ;;  %v3317_v25 = vor.u32 %v3316_v13, %v3313_v21  ;;  %v3330_v51 = vrot.slane %v3328_v48, 1  ;;  %v7297_v21 = vcombine.low %v7005_v50, %v7032_v19  ;;  %v3493_v13 = vsel %vm510_vm0, %v4674_v34, 0 }
 0x142   : > { %5350 = vmatprep.mubr.msk.bf16.mxu0 %vm6103_vm1, %v7981_v43  ;;  %v1408_v50 = vrot.slane %v7174_v33, 3  ;;  %v1535_v33 = vrot.slane %v1289_v36, 3 }
 0x143   : > { %v3326_v49 = vsel %vm725_vm8, %v3317_v25, %v3325_v40  ;;  %v7956_v25 = vshll.u32 %v7297_v21, 16 }
 0x145   : > { %v3342_v34 = vrot.slane %v7956_v25, 2  ;;  %v1517_v25 = vrot.slane %v6472_v30, 4 }
 0x147   : > { %5053 = vmatmul.mubr.msk.bf16.gmra.mrb[4].mxu1 %vm494_vm3, %v1405_v44  ;;  %v7957_v44 = vshrl.u32 %v7297_v21, 16 }
 0x148   : > { %5056 = vmatprep.mubr.msk.bf16.mxu1 %vm6103_vm1, %v7981_v43 }
 0x149   : > { %5351 = vmatmul.mubr.msk.bf16.gmra.mrb[16].mxu0 %vm494_vm3, %v3198_v15  ;;  %v3333_v15 = vrot.slane %v7960_v58, 2  ;;  %v3339_v4 = vrot.slane %v7957_v44, 1  ;;  %v1520_v44 = vrot.slane %v6506_v38, 4 }
 0x14a   : > { %5356 = vmatprep.mubr.msk.bf16.mxu0 %vm6103_vm1, %v7981_v43 }
 0x14b   : > { %v3334_v53 = vor.u32 %v3333_v15, %v3330_v51  ;;  %v1409_v51 = vsel %vm1400_vm10, %v1406_v23, %v1408_v50  ;;  %v3343_v15 = vor.u32 %v3342_v34, %v3339_v4 }
 0x14d   : > { %v3335_v19 = vsel %vm725_vm8, %v3325_v40, %v3334_v53  ;;  %v7959_v40 = vshrl.u32 %v7318_v18, 16  ;;  %v3344_v23 = vsel %vm725_vm8, %v3334_v53, %v3343_v15  ;;  %v1519_v53 = vrot.slane %v6565_v0, 3 }
 0x14f   : > { %5057 = vmatmul.mubr.msk.bf16.gmra.mrb[8].mxu1 %vm494_vm3, %v1407_v55 }
 0x150   : > { %5060 = vmatprep.mubr.msk.bf16.mxu1 %vm6103_vm1, %v7981_v43 }
 0x151   : > { %5357 = vmatmul.mubr.msk.bf16.vlgmr.msra.gmra.mrb[0].mxu0 %vm494_vm3, %v3326_v49  ;;  %v2865_v49 = vld [vmem:[%s6900_s15 + $0x30] sm:$0xf] }
 0x152   : > { %5377 = vmatpush3.bf16.msra.mxu0 %v3493_v13  ;;  %5360 = vmatprep.mubr.msk.bf16.mxu0 %vm6103_vm1, %v7981_v43  ;;  %v7958_v13 = vshll.u32 %v7318_v18, 16  ;;  %v7329_v55 = vsel %vm6905_vm11, %v2865_v49, 0  ;;  %v1411_v49 = vsel %vm1400_vm10, %v1408_v50, %v1410_v27  ;;  %v1521_v50 = vor.u32 %v1520_v44, %v1519_v53  ;;  %v4570_v27 = vld [vmem:[%s7895_s1 + $0x12] sm:$0x3] }
 0x153   : > { %5398 = vmatprep.subr.bf16.mxu0 %v7981_v43  ;;  %v7342_v34 = vcombine.low %v7329_v55, %v7329_v55  ;;  %v1524_v44 = vrot.slane %v6568_v41, 4  ;;  %v1527_v41 = vrot.slane %v6681_v57, 3  ;;  %v3466_v53 = vrot.slane %v7240_v12, 2  ;;  %v4686_v12 = vld [vmem:[%s7895_s1 + $0x30] sm:$0x3] }
 0x154   : > { %v3351_v4 = vrot.slane %v7958_v13, 2 }
 0x155   : > { %v3358_v58 = vshll.u32 %v7342_v34, 16 }
 0x157   : > { %5061 = vmatmul.mubr.msk.bf16.gmra.mrb[12].mxu1 %vm494_vm3, %v1409_v51  ;;  %v1516_v51 = vrot.slane %v6494_v10, 3  ;;  %v3360_v0 = vrot.slane %v3358_v58, 2 }
 0x158   : > { %5064 = vmatprep.mubr.msk.bf16.mxu1 %vm6103_vm1, %v7981_v43 }
 0x159   : > { %5361 = vmatmul.mubr.msk.bf16.gmra.mrb[4].mxu0 %vm494_vm3, %v3335_v19  ;;  %v3348_v19 = vrot.slane %v7959_v40, 1  ;;  %v3355_v40 = vshrl.u32 %v7342_v34, 16  ;;  %v1518_v10 = vor.u32 %v1517_v25, %v1516_v51  ;;  %v1743_v25 = vsel %vm510_vm0, %v4570_v27, 0 }
 0x15a   : > { %5364 = vmatprep.mubr.msk.bf16.mxu0 %vm6103_vm1, %v7981_v43  ;;  %v1528_v51 = vrot.slane %v6656_v7, 4  ;;  %v3469_v27 = vrot.slane %v7274_v2, 2 }
 0x15b   : > { %v3352_v13 = vor.u32 %v3351_v4, %v3348_v19  ;;  %v3357_v38 = vrot.slane %v3355_v40, 1  ;;  %v1523_v19 = vrot.slane %v6653_v39, 3 }
 0x15d   : > { %v3353_v30 = vsel %vm725_vm8, %v3343_v15, %v3352_v13  ;;  %v3361_v15 = vor.u32 %v3360_v0, %v3357_v38  ;;  %v1525_v4 = vor.u32 %v1524_v44, %v1523_v19  ;;  %v1531_v38 = vrot.slane %v1280_v46, 3 }
 0x15e   : > { %v1532_v0 = vrot.slane %v1283_v54, 4  ;;  %v8002_v54 = vshll.u32 %v7199_v61, 16 }
 0x15f   : > { %5065 = vmatmul.mubr.msk.bf16.gmra.mrb[16].mxu1 %vm494_vm3, %v1411_v49  ;;  %v3362_v49 = vsel %vm725_vm8, %v3352_v13, %v3361_v15  ;;  %v1526_v39 = vsel %vm1515_vm9, %v1521_v50, %v1525_v4  ;;  %v4680_v13 = vld [vmem:[%s7895_s1 + $0x2e] sm:$0x3] }
 0x160   : > { %5070 = vmatprep.mubr.msk.bf16.mxu1 %vm6103_vm1, %v7981_v43  ;;  %v3619_v7 = vsel %vm510_vm0, %v4680_v13, 0  ;;  %v1536_v44 = vrot.slane %v8002_v54, 4 }
 0x161   : > { %5365 = vmatmul.mubr.msk.bf16.gmra.mrb[8].mxu0 %vm494_vm3, %v3344_v23  ;;  %v1522_v23 = vsel %vm1515_vm9, %v1518_v10, %v1521_v50  ;;  %v3467_v10 = vrot.slane %v7245_v35, 2  ;;  %v1529_v50 = vor.u32 %v1528_v51, %v1527_v41  ;;  %v3473_v51 = vrot.slane %v7318_v18, 2 }
 0x162   : > { %5368 = vmatprep.mubr.msk.bf16.mxu0 %vm6103_vm1, %v7981_v43  ;;  %v1537_v15 = vor.u32 %v1536_v44, %v1535_v33  ;;  %v3584_v33 = vrot.slane %v3322_v62, 3  ;;  %v3587_v62 = vrot.slane %v3328_v48, 2  ;;  %v1717_v48 = vrot.slane %v6666_v52, 1 }
 0x163   : > { %v3468_v57 = vsel %vm1018_vm2, %v3466_v53, %v3467_v10  ;;  %v3470_v19 = vsel %vm1018_vm2, %v3467_v10, %v3469_v27  ;;  %v1693_v10 = vrot.slane %v6457_v20, 1 }
 0x167   : > { %5071 = vmatmul.mubr.msk.bf16.vlgmr.msra.gmra.mrb[0].mxu1 %vm494_vm3, %v1522_v23  ;;  %v1533_v23 = vor.u32 %v1532_v0, %v1531_v38  ;;  %v1697_v38 = vor.u32 %v6465_v26, %v1693_v10  ;;  %v1701_v0 = vrot.slane %v6468_v28, 1 }
 0x168   : > { %5091 = vmatpush3.bf16.msra.mxu1 %v1743_v25  ;;  %5074 = vmatprep.mubr.msk.bf16.mxu1 %vm6103_vm1, %v7981_v43  ;;  %v3471_v25 = vrot.slane %v7297_v21, 2 }
 0x169   : > { %5369 = vmatmul.mubr.msk.bf16.gmra.mrb[12].mxu0 %vm494_vm3, %v3353_v30  ;;  %5112 = vmatprep.subr.bf16.mxu1 %v7981_v43  ;;  %v1530_v30 = vsel %vm1515_vm9, %v1525_v4, %v1529_v50  ;;  %v1534_v46 = vsel %vm1515_vm9, %v1529_v50, %v1533_v23  ;;  %v8003_v4 = vld [vmem:[#allocation3_spill] sm:$0xff]  ;;  %v1538_v36 = vsel %vm1515_vm9, %v1533_v23, %v1537_v15  ;;  %v4582_v50 = vld [vmem:[%s7895_s1 + $0x14] sm:$0x3]  ;;  %v3580_v23 = vrot.slane %v3311_v8, 2 }
 0x16a   : > { %5372 = vmatprep.mubr.msk.bf16.mxu0 %vm6103_vm1, %v7981_v43  ;;  %v1684_v61 = vshrl.u32 %v8003_v4, 16  ;;  %v3474_v13 = vsel %vm1018_vm2, %v3471_v25, %v3473_v51  ;;  %v1702_v54 = vsel %vm587_vm7, %v1697_v38, %v1701_v0  ;;  %v1705_v35 = vor.u32 %v6524_v24, %v1701_v0 }
 0x16f   : > { %5075 = vmatmul.mubr.msk.bf16.gmra.mrb[4].mxu1 %vm494_vm3, %v1526_v39  ;;  %v3472_v39 = vsel %vm1018_vm2, %v3469_v27, %v3471_v25  ;;  %v8004_v25 = vshll.u32 %v7274_v2, 16 }
 0x170   : > { %5078 = vmatprep.mubr.msk.bf16.mxu1 %vm6103_vm1, %v7981_v43 }
 0x171   : > { %5373 = vmatmul.mubr.msk.bf16.gmra.mrb[16].mxu0 %vm494_vm3, %v3362_v49  ;;  %v1686_v49 = vshll.u32 %v8003_v4, 16  ;;  %v3588_v15 = vrot.slane %v8004_v25, 3 }
 0x172   : > { %5378 = vmatprep.mubr.msk.bf16.mxu0 %vm6103_vm1, %v7981_v43 }
 0x173   : > { %v1688_v41 = vrot.slane %v1686_v49, 1 }
 0x175   : > { %v1689_v53 = vor.u32 %v1688_v41, %v1684_v61  ;;  %v3589_v41 = vor.u32 %v3588_v15, %v3587_v62  ;;  %v4588_v62 = vld [vmem:[%s7895_s1 + $0x16] sm:$0x3] }
 0x177   : > { %5079 = vmatmul.mubr.msk.bf16.gmra.mrb[8].mxu1 %vm494_vm3, %v1530_v30  ;;  %v1857_v30 = vsel %vm510_vm0, %v4582_v50, 0 }
 0x178   : > { %5082 = vmatprep.mubr.msk.bf16.mxu1 %vm6103_vm1, %v7981_v43 }
 0x179   : > { %5379 = vmatmul.mubr.msk.bf16.vlgmr.msra.gmra.mrb[0].mxu0 %vm494_vm3, %v3468_v57  ;;  %v1694_v57 = vsel %vm587_vm7, %v1689_v53, %v1693_v10 }
 0x17a   : > { %5399 = vmatpush3.bf16.msra.mxu0 %v3619_v7  ;;  %5382 = vmatprep.mubr.msk.bf16.mxu0 %vm6103_vm1, %v7981_v43  ;;  %v3475_v7 = vrot.slane %v7342_v34, 2  ;;  %v3710_v34 = vrot.slane %v6993_v22, 2 }
 0x17b   : > { %5420 = vmatprep.subr.bf16.mxu0 %v7981_v43 }
 0x17c   : > { %v3476_v27 = vsel %vm1018_vm2, %v3473_v51, %v3475_v7  ;;  %v6061_v51 = vld [vmem:[%s6214_s16 + $0x2c] sm:$0xf]  ;;  %s416_s16 = sadd.s32 %s4501_s9, %s6193_s8 }
 0x17d   : > { %v7489_v53 = vcombine.low %v6061_v51, %v6061_v51  ;;  %v6104_v51 = vmov 0   ;;  %s4502_s14 = sshll.u32 %s416_s16, 1 }
 0x17e   : > { %4084 = vst [vmem:[%s7540_s17] sm:$0xf] %v6104_v51  ;;  %4085 = vst [vmem:[%s7540_s17 + $0x4] sm:$0xf] %v6104_v51  ;;  %6045 = vset.pattern.permute.xlu0 %v6104_v51  ;;  %6046 = vset.pattern.permute.xlu1 %v6104_v51  ;;  %s418_s12 = scalar_lea.vmem %s7900_s6, %s4502_s14 }
 0x17f   : > { %5083 = vmatmul.mubr.msk.bf16.gmra.mrb[12].mxu1 %vm494_vm3, %v1534_v46  ;;  %v3583_v46 = vrot.slane %v3319_v47, 2  ;;  %v1723_v38 = vshll.u32 %v7489_v53, 16  ;;  %4086 = vst [vmem:[%s7540_s17 + $0x8] sm:$0x3] %v6104_v51  ;;  %4171 = vst [vmem:[%s7540_s17 + $0x30] sm:$0xc] %v6104_v51 }
 0x180   : > { %5086 = vmatprep.mubr.msk.bf16.mxu1 %vm6103_vm1, %v7981_v43  ;;  %4172 = vst [vmem:[%s7540_s17 + $0x34] sm:$0xf] %v6104_v51  ;;  %4173 = vst [vmem:[%s7540_s17 + $0x38] sm:$0xf] %v6104_v51 }
 0x181   : > { %5383 = vmatmul.mubr.msk.bf16.gmra.mrb[4].mxu0 %vm494_vm3, %v3470_v19  ;;  %v3581_v19 = vrot.slane %v3314_v1, 3  ;;  %v3585_v8 = vor.u32 %v3584_v33, %v3583_v46  ;;  %v1709_v1 = vrot.slane %v6591_v29, 1  ;;  %v8008_v33 = vshll.u32 %v7318_v18, 16 }
 0x182   : > { %5386 = vmatprep.mubr.msk.bf16.mxu0 %vm6103_vm1, %v7981_v43 }
 0x183   : > { %v3582_v44 = vor.u32 %v3581_v19, %v3580_v23  ;;  %v1713_v2 = vor.u32 %v6614_v42, %v1709_v1  ;;  %v3590_v10 = vsel %vm1133_vm6, %v3585_v8, %v3589_v41  ;;  %v8007_v19 = vshrl.u32 %v7318_v18, 16 }
 0x184   : > { %v1830_v18 = vrot.slane %v8003_v4, 1 }
 0x185   : > { %v3586_v47 = vsel %vm1133_vm6, %v3582_v44, %v3585_v8  ;;  %v3595_v46 = vrot.slane %v8007_v19, 2 }
 0x187   : > { %5087 = vmatmul.mubr.msk.bf16.gmra.mrb[16].mxu1 %vm494_vm3, %v1538_v36  ;;  %v1710_v36 = vsel %vm587_vm7, %v1705_v35, %v1709_v1  ;;  %v3600_v35 = vrot.slane %v3358_v58, 3  ;;  %v1831_v1 = vrot.slane %v6428_v59, 1  ;;  %v1985_v58 = vsel %vm510_vm0, %v4588_v62, 0 }
 0x188   : > { %5092 = vmatprep.mubr.msk.bf16.mxu1 %vm6103_vm1, %v7981_v43 }
 0x189   : > { %5387 = vmatmul.mubr.msk.bf16.gmra.mrb[8].mxu0 %vm494_vm3, %v3472_v39  ;;  %v3759_v39 = vsel %vm510_vm0, %v4686_v12, 0  ;;  %v3599_v12 = vrot.slane %v3355_v40, 2  ;;  %v1832_v15 = vsel %vm482_vm5, %v1830_v18, %v1831_v1  ;;  %v1833_v40 = vrot.slane %v6442_v6, 1 }
 0x18a   : > { %5390 = vmatprep.mubr.msk.bf16.mxu0 %vm6103_vm1, %v7981_v43  ;;  %v3717_v18 = vrot.slane %v7055_v32, 2 }
 0x18b   : > { %v3601_v25 = vor.u32 %v3600_v35, %v3599_v12 }
 0x18f   : > { %5093 = vmatmul.mubr.msk.bf16.vlgmr.msra.gmra.mrb[0].mxu1 %vm494_vm3, %v1694_v57  ;;  %v8006_v57 = vshll.u32 %v7297_v21, 16 }
 0x190   : > { %5113 = vmatpush3.bf16.msra.mxu1 %v1857_v30  ;;  %5096 = vmatprep.mubr.msk.bf16.mxu1 %vm6103_vm1, %v7981_v43  ;;  %v1718_v30 = vsel %vm587_vm7, %v1713_v2, %v1717_v48  ;;  %v4175_v2 = vld [vmem:[%s7894_s0 + $0x1c] sm:$0xff] }
 0x191   : > { %5391 = vmatmul.mubr.msk.bf16.gmra.mrb[12].mxu0 %vm494_vm3, %v3474_v13  ;;  %5134 = vmatprep.subr.bf16.mxu1 %v7981_v43  ;;  %v8005_v13 = vshrl.u32 %v7297_v21, 16  ;;  %v3592_v7 = vrot.slane %v8006_v57, 3  ;;  %v1725_v21 = vrot.slane %v1723_v38, 1  ;;  %vm4185_vm14 = vcmp.gt.f32.partialorder %v4175_v2, 0.5 }
 0x192   : > { %5394 = vmatprep.mubr.msk.bf16.mxu0 %vm6103_vm1, %v7981_v43  ;;  %v7638_v2 = vcombine.low %v7062_v45, %v7329_v55  ;;  %v1839_v45 = vrot.slane %v7489_v53, 1 }
 0x193   : > { %v3591_v50 = vrot.slane %v8005_v13, 2  ;;  %v3714_v13 = vrot.slane %v6996_v31, 3 }
 0x195   : > { %v3593_v0 = vor.u32 %v3592_v7, %v3591_v50  ;;  %v4178_v7 = vld [vmem:[%s7894_s0 + $0x34] sm:$0xff] }
 0x196   : > { %vm4188_vm4 = vcmp.gt.f32.partialorder %v4178_v7, 0.5 }
 0x197   : > { %5097 = vmatmul.mubr.msk.bf16.gmra.mrb[4].mxu1 %vm494_vm3, %v1702_v54  ;;  %v3594_v23 = vsel %vm1133_vm6, %v3589_v41, %v3593_v0  ;;  %v3596_v54 = vrot.slane %v8008_v33, 3  ;;  %v4176_v41 = vld [vmem:[%s7894_s0 + $0x24] sm:$0xff]  ;;  %v4181_v33 = vld [vmem:[%s7894_s0 + $0x4c] sm:$0xff] }
 0x198   : > { %5100 = vmatprep.mubr.msk.bf16.mxu1 %vm6103_vm1, %v7981_v43  ;;  %vm4186_vm13 = vcmp.gt.f32.partialorder %v4176_v41, 0.5  ;;  %v3722_v41 = vrot.slane %v7058_v14, 3 }
 0x199   : > { %5395 = vmatmul.mubr.msk.bf16.gmra.mrb[16].mxu0 %vm494_vm3, %v3476_v27  ;;  %v1721_v27 = vor.u32 %v6669_v3, %v1717_v48  ;;  %v3597_v8 = vor.u32 %v3596_v54, %v3595_v46  ;;  %v3713_v48 = vrot.slane %v7025_v5, 2  ;;  %v4196_v57 = vsel %vm4186_vm13, 1, %v6104_v51  ;;  %v4180_v46 = vld [vmem:[%s7894_s0 + $0x44] sm:$0xff]  ;;  %v4694_v54 = vld [vmem:[%s7895_s1 + $0x32] sm:$0x3] }
 0x19a   : > { %5400 = vmatprep.mubr.msk.bf16.mxu0 %vm6103_vm1, %v7981_v43  ;;  %4211 = vperm.xlu1 %6046, %v4196_v57   ;;  %vm4191_vm13 = vcmp.gt.f32.partialorder %v4181_v33, 0.5  ;;  %v3873_v62 = vsel %vm510_vm0, %v4694_v54, 0  ;;  %v4594_v54 = vld [vmem:[%s7895_s1 + $0x18] sm:$0x3] }
 0x19b   : > { %v1726_v44 = vsel %vm587_vm7, %v1721_v27, %v1725_v21  ;;  %v3602_v59 = vsel %vm1133_vm6, %v3597_v8, %v3601_v25  ;;  %v1834_v27 = vsel %vm482_vm5, %v1831_v1, %v1833_v40  ;;  %v3715_v19 = vor.u32 %v3714_v13, %v3713_v48  ;;  %v2866_v48 = vld [vmem:[%s6900_s15 + $0x34] sm:$0xf] }
 0x19c   : > { %v3718_v1 = vrot.slane %v7028_v16, 3  ;;  %v3729_v13 = vshll.u32 %v7638_v2, 16 }
 0x19e   : > { %v3731_v7 = vrot.slane %v3729_v13, 3 }
 0x19f   : > { %5101 = vmatmul.mubr.msk.bf16.gmra.mrb[8].mxu1 %vm494_vm3, %v1710_v36  ;;  %v4174_v36 = vld [vmem:[%s7894_s0 + $0x14] sm:$0xff] }
 0x1a0   : > { %5104 = vmatprep.mubr.msk.bf16.mxu1 %vm6103_vm1, %v7981_v43  ;;  %vm4184_vm12 = vcmp.gt.f32.partialorder %v4174_v36, 0.5  ;;  %v3721_v36 = vrot.slane %v7081_v56, 2 }
 0x1a1   : > { %5401 = vmatmul.mubr.msk.bf16.vlgmr.msra.gmra.mrb[0].mxu0 %vm494_vm3, %v3586_v47  ;;  %v3598_v47 = vsel %vm1133_vm6, %v3593_v0, %v3597_v8  ;;  %v4194_v50 = vsel %vm4184_vm12, 1, %v6104_v51  ;;  %v4195_v0 = vsel %vm4185_vm14, 1, %v6104_v51  ;;  %v1835_v8 = vrot.slane %v6541_v17, 1  ;;  %v4183_v17 = vld [vmem:[%s7894_s0 + $0x5c] sm:$0xff] }
 0x1a2   : > { %5421 = vmatpush3.bf16.msra.mxu0 %v3759_v39  ;;  %5404 = vmatprep.mubr.msk.bf16.mxu0 %vm6103_vm1, %v7981_v43  ;;  %v3711_v39 = vrot.slane %v6960_v63, 3  ;;  %vm4190_vm12 = vcmp.gt.f32.partialorder %v4180_v46, 0.5 }
 0x1a3   : > { %5442 = vmatprep.subr.bf16.mxu0 %v7981_v43  ;;  %4205 = vperm.xlu0 %6045, %v4194_v50   ;;  %v4200_v25 = vsel %vm4190_vm12, 1, %v6104_v51  ;;  %v2882_v50 = vsel %vm6905_vm11, %v2866_v48, 0  ;;  %v8010_v48 = vld [vmem:[#allocation13_spill] sm:$0xff]  ;;  %vm4294_vm12 = vcmask 1040384  }
 0x1a7   : > { %5105 = vmatmul.mubr.msk.bf16.gmra.mrb[12].mxu1 %vm494_vm3, %v1718_v30  ;;  %v4179_v30 = vld [vmem:[%s7894_s0 + $0x3c] sm:$0xff]  ;;  %4208 = vperm.xlu0 %6045, %v4195_v0   ;;  %v1944_v0 = vrot.slane %v1684_v61, 1 }
 0x1a8   : > { %5108 = vmatprep.mubr.msk.bf16.mxu1 %vm6103_vm1, %v7981_v43  ;;  %vm4189_vm7 = vcmp.gt.f32.partialorder %v4179_v30, 0.5  ;;  %v7658_v30 = vcombine.low %v2882_v50, %v2882_v50 }
 0x1a9   : > { %5405 = vmatmul.mubr.msk.bf16.gmra.mrb[4].mxu0 %vm494_vm3, %v3590_v10  ;;  %v4177_v10 = vld [vmem:[%s7894_s0 + $0x2c] sm:$0xff]  ;;  %v4199_v12 = vsel %vm4189_vm7, 1, %v6104_v51 }
 0x1aa   : > { %5408 = vmatprep.mubr.msk.bf16.mxu0 %vm6103_vm1, %v7981_v43  ;;  %vm4187_vm15 = vcmp.gt.f32.partialorder %v4177_v10, 0.5  ;;  %v3735_v46 = vshrl.u32 %v7658_v30, 16  ;;  %v3738_v33 = vshll.u32 %v7658_v30, 16 }
 0x1ab   : > { %v4197_v21 = vsel %vm4187_vm15, 1, %v6104_v51  ;;  %vm4193_vm15 = vcmp.gt.f32.partialorder %v4183_v17, 0.5  ;;  %v3846_v17 = vrot.slane %v6947_v37, 3  ;;  %v1959_v37 = vrot.slane %v6669_v3, 1 }
 0x1ac   : > { %4214 = vperm.xlu1 %6046, %v4197_v21   ;;  %v1947_v21 = vrot.slane %v6465_v26, 1  ;;  %v3740_v26 = vrot.slane %v3738_v33, 3 }
 0x1af   : > { %5109 = vmatmul.mubr.msk.bf16.gmra.mrb[16].mxu1 %vm494_vm3, %v1726_v44  ;;  %v4198_v44 = vsel %vm4188_vm4, 1, %v6104_v51 }
 0x1b0   : > { %5114 = vmatprep.mubr.msk.bf16.mxu1 %vm6103_vm1, %v7981_v43  ;;  %4217 = vperm.xlu0 %6045, %v4198_v44  }
 0x1b1   : > { %5409 = vmatmul.mubr.msk.bf16.gmra.mrb[8].mxu0 %vm494_vm3, %v3594_v23  ;;  %v3712_v23 = vor.u32 %v3711_v39, %v3710_v34  ;;  %4220 = vperm.xlu1 %6046, %v4199_v12   ;;  %v4203_v34 = vsel %vm4193_vm15, 1, %v6104_v51  ;;  %v1952_v12 = vrot.slane %v6468_v28, 2  ;;  %v1955_v28 = vrot.slane %v6614_v42, 1 }
 0x1b2   : > { %5412 = vmatprep.mubr.msk.bf16.mxu0 %vm6103_vm1, %v7981_v43 }
 0x1b3   : > { %v3716_v35 = vsel %vm1133_vm6, %v3712_v23, %v3715_v19  ;;  %v1948_v23 = vrot.slane %v6457_v20, 2  ;;  %v3737_v20 = vrot.slane %v3735_v46, 2 }
 0x1b4   : > { %4223 = vperm.xlu0 %6045, %v4200_v25   ;;  %v3847_v25 = vrot.slane %v6980_v11, 3  ;;  %v1960_v11 = vrot.slane %v6666_v52, 2  ;;  %v1966_v52 = vrot.slane %v1723_v38, 2  ;;  %v8011_v38 = vld [vmem:[#allocation4_spill] sm:$0xff] }
 0x1b5   : > { %v1949_v4 = vor.u32 %v1948_v23, %v1947_v21 }
 0x1b6   : > { %v3848_v42 = vsel %vm1400_vm10, %v3846_v17, %v3847_v25  ;;  %v3964_v17 = vrot.slane %v6996_v31, 4 }
 0x1b7   : > { %5115 = vmatmul.mubr.msk.bf16.vlgmr.msra.gmra.mrb[0].mxu1 %vm494_vm3, %v1832_v15  ;;  %v1836_v15 = vsel %vm482_vm5, %v1833_v40, %v1835_v8  ;;  %v1837_v40 = vrot.slane %v6628_v60, 1  ;;  %v3723_v60 = vor.u32 %v3722_v41, %v3721_v36 }
 0x1b8   : > { %5135 = vmatpush3.bf16.msra.mxu1 %v1985_v58  ;;  %5118 = vmatprep.mubr.msk.bf16.mxu1 %vm6103_vm1, %v7981_v43  ;;  %v4201_v58 = vsel %vm4191_vm13, 1, %v6104_v51 }
 0x1b9   : > { %5413 = vmatmul.mubr.msk.bf16.gmra.mrb[12].mxu0 %vm494_vm3, %v3598_v47  ;;  %5156 = vmatprep.subr.bf16.mxu1 %v7981_v43  ;;  %v4182_v47 = vld [vmem:[%s7894_s0 + $0x54] sm:$0xff]  ;;  %v1838_v10 = vsel %vm482_vm5, %v1835_v8, %v1837_v40  ;;  %v1840_v9 = vsel %vm482_vm5, %v1837_v40, %v1839_v45  ;;  %v1951_v8 = vrot.slane %v6524_v24, 1  ;;  %v8012_v45 = vshrl.u32 %v8011_v38, 16 }
 0x1ba   : > { %5416 = vmatprep.mubr.msk.bf16.mxu0 %vm6103_vm1, %v7981_v43  ;;  %vm4192_vm14 = vcmp.gt.f32.partialorder %v4182_v47, 0.5  ;;  %4226 = vperm.xlu1 %6046, %v4201_v58  }
 0x1bb   : > { %v4202_v6 = vsel %vm4192_vm14, 1, %v6104_v51  ;;  %v3726_v51 = vshrl.u32 %v7638_v2, 16 }
 0x1bc   : > { %4229 = vperm.xlu0 %6045, %v4202_v6   ;;  %v8009_v6 = vld [vmem:[#allocation12_spill] sm:$0xff] }
 0x1bd   : > { %v3728_v57 = vrot.slane %v3726_v51, 2  ;;  %v3849_v40 = vrot.slane %v8009_v6, 3 }
 0x1be   : > { %4232 = vperm.xlu1 %6046, %v4203_v34   ;;  %v1963_v34 = vshrl.u32 %v7489_v53, 16 }
 0x1bf   : > { %5119 = vmatmul.mubr.msk.bf16.gmra.mrb[4].mxu1 %vm494_vm3, %v1834_v27  ;;  %v1945_v27 = vrot.slane %v1686_v49, 2  ;;  %v3850_v36 = vsel %vm1400_vm10, %v3847_v25, %v3849_v40 }
 0x1c0   : > { %5122 = vmatprep.mubr.msk.bf16.mxu1 %vm6103_vm1, %v7981_v43  ;;  %v1965_v41 = vrot.slane %v1963_v34, 1 }
 0x1c1   : > { %5417 = vmatmul.mubr.msk.bf16.gmra.mrb[16].mxu0 %vm494_vm3, %v3602_v59  ;;  %v3719_v59 = vor.u32 %v3718_v1, %v3717_v18  ;;  %v1946_v61 = vor.u32 %v1945_v27, %v1944_v0  ;;  %v3741_v18 = vor.u32 %v3740_v26, %v3737_v20  ;;  %v1953_v1 = vor.u32 %v1952_v12, %v1951_v8  ;;  %v8017_v26 = vld [vmem:[#allocation6_spill] sm:$0xff] }
 0x1c2   : > { %5422 = vmatprep.mubr.msk.bf16.mxu0 %vm6103_vm1, %v7981_v43  ;;  %v8019_v8 = vshll.u32 %v8017_v26, 16 }
 0x1c3   : > { %v3720_v39 = vsel %vm1133_vm6, %v3715_v19, %v3719_v59  ;;  %v3724_v55 = vsel %vm1133_vm6, %v3719_v59, %v3723_v60  ;;  %v3732_v19 = vor.u32 %v3731_v7, %v3728_v57  ;;  %v1950_v44 = vsel %vm725_vm8, %v1946_v61, %v1949_v4 }
 0x1c4   : > { %v1954_v24 = vsel %vm725_vm8, %v1949_v4, %v1953_v1  ;;  %v8013_v57 = vshll.u32 %v8011_v38, 16  ;;  %v2103_v12 = vrot.slane %v8019_v8, 2 }
 0x1c5   : > { %v3733_v49 = vsel %vm1133_vm6, %v3723_v60, %v3732_v19  ;;  %v3742_v47 = vsel %vm1133_vm6, %v3732_v19, %v3741_v18  ;;  %v1967_v60 = vor.u32 %v1966_v52, %v1965_v41  ;;  %v3853_v19 = vrot.slane %v7638_v2, 3  ;;  %v8020_v18 = vld [vmem:[#allocation2_spill] sm:$0xff] }
 0x1c6   : > { %v2086_v7 = vrot.slane %v8013_v57, 2  ;;  %v3975_v57 = vrot.slane %v3726_v51, 3  ;;  %v3979_v2 = vrot.slane %v3735_v46, 3 }
 0x1c7   : > { %5123 = vmatmul.mubr.msk.bf16.gmra.mrb[8].mxu1 %vm494_vm3, %v1836_v15  ;;  %v4700_v15 = vld [vmem:[%s7895_s1 + $0x34] sm:$0x3] }
 0x1c8   : > { %5126 = vmatprep.mubr.msk.bf16.mxu1 %vm6103_vm1, %v7981_v43 }
 0x1c9   : > { %5423 = vmatmul.mubr.msk.bf16.vlgmr.msra.gmra.mrb[0].mxu0 %vm494_vm3, %v3716_v35  ;;  %v2149_v35 = vsel %vm510_vm0, %v4594_v54, 0  ;;  %v8018_v54 = vshrl.u32 %v8017_v26, 16 }
 0x1ca   : > { %5443 = vmatpush3.bf16.msra.mxu0 %v3873_v62  ;;  %5426 = vmatprep.mubr.msk.bf16.mxu0 %vm6103_vm1, %v7981_v43  ;;  %v1956_v62 = vrot.slane %v6591_v29, 2  ;;  %v3999_v29 = vsel %vm510_vm0, %v4700_v15, 0  ;;  %v8021_v15 = vld [vmem:[#allocation7_spill] sm:$0xff] }
 0x1cb   : > { %5464 = vmatprep.subr.bf16.mxu0 %v7981_v43 }
 0x1cc   : > { %v1957_v58 = vor.u32 %v1956_v62, %v1955_v28  ;;  %v3961_v28 = vrot.slane %v6960_v63, 4  ;;  %v3963_v62 = vrot.slane %v7025_v5, 3  ;;  %v3967_v5 = vrot.slane %v7055_v32, 3 }
 0x1ce   : > { %v1958_v59 = vsel %vm725_vm8, %v1953_v1, %v1957_v58 }
 0x1cf   : > { %5127 = vmatmul.mubr.msk.bf16.gmra.mrb[12].mxu1 %vm494_vm3, %v1838_v10  ;;  %v3851_v10 = vrot.slane %v8010_v48, 3  ;;  %v3972_v48 = vrot.slane %v7058_v14, 4 }
 0x1d0   : > { %5130 = vmatprep.mubr.msk.bf16.mxu1 %vm6103_vm1, %v7981_v43 }
 0x1d1   : > { %5427 = vmatmul.mubr.msk.bf16.gmra.mrb[4].mxu0 %vm494_vm3, %v3720_v39  ;;  %v1961_v39 = vor.u32 %v1960_v11, %v1959_v37  ;;  %v3852_v50 = vsel %vm1400_vm10, %v3849_v40, %v3851_v10  ;;  %v3965_v37 = vor.u32 %v3964_v17, %v3963_v62  ;;  %v3968_v11 = vrot.slane %v7028_v16, 4  ;;  %v8024_v40 = vld [vmem:[#allocation10_spill] sm:$0xff] }
 0x1d2   : > { %5430 = vmatprep.mubr.msk.bf16.mxu0 %vm6103_vm1, %v7981_v43  ;;  %v8025_v34 = vshrl.u32 %v8024_v40, 16 }
 0x1d3   : > { %v1962_v3 = vsel %vm725_vm8, %v1957_v58, %v1961_v39  ;;  %v1968_v53 = vsel %vm725_vm8, %v1961_v39, %v1967_v60  ;;  %v8022_v58 = vshrl.u32 %v8021_v15, 16  ;;  %v3969_v52 = vor.u32 %v3968_v11, %v3967_v5  ;;  %v8027_v60 = vld [vmem:[#allocation11_spill] sm:$0xff] }
 0x1d4   : > { %v2118_v39 = vrot.slane %v8025_v34, 1  ;;  %v8029_v38 = vshll.u32 %v8027_v60, 16  ;;  %v2245_v46 = vrot.slane %v8027_v60, 2 }
 0x1d5   : > { %v3970_v32 = vsel %vm1515_vm9, %v3965_v37, %v3969_v52 }
 0x1d7   : > { %5131 = vmatmul.mubr.msk.bf16.gmra.mrb[16].mxu1 %vm494_vm3, %v1840_v9  ;;  %v8014_v9 = vld [vmem:[#allocation5_spill] sm:$0xff] }
 0x1d8   : > { %5136 = vmatprep.mubr.msk.bf16.mxu1 %vm6103_vm1, %v7981_v43  ;;  %v8015_v0 = vshrl.u32 %v8014_v9, 16  ;;  %v8016_v21 = vshll.u32 %v8014_v9, 16 }
 0x1d9   : > { %5431 = vmatmul.mubr.msk.bf16.gmra.mrb[8].mxu0 %vm494_vm3, %v3724_v55  ;;  %v2083_v55 = vrot.slane %v8012_v45, 1  ;;  %v2130_v45 = vrot.slane %v8029_v38, 2 }
 0x1da   : > { %5434 = vmatprep.mubr.msk.bf16.mxu0 %vm6103_vm1, %v7981_v43  ;;  %v2091_v27 = vrot.slane %v8015_v0, 1  ;;  %v2094_v23 = vrot.slane %v8016_v21, 2  ;;  %v8030_v21 = vrot.slane %v8021_v15, 2 }
 0x1db   : > { %v2087_v61 = vor.u32 %v2086_v7, %v2083_v55  ;;  %v3976_v7 = vrot.slane %v3729_v13, 4  ;;  %v3980_v13 = vrot.slane %v3738_v33, 4 }
 0x1dc   : > { %v2095_v4 = vor.u32 %v2094_v23, %v2091_v27  ;;  %v2243_v27 = vrot.slane %v8024_v40, 2 }
 0x1dd   : > { %v3977_v0 = vor.u32 %v3976_v7, %v3975_v57 }
 0x1de   : > { %v2096_v20 = vsel %vm725_vm8, %v2087_v61, %v2095_v4  ;;  %v2244_v23 = vsel %vm1018_vm2, %v8030_v21, %v2243_v27  ;;  %v2246_v33 = vsel %vm1018_vm2, %v2243_v27, %v2245_v46 }
 0x1df   : > { %5137 = vmatmul.mubr.msk.bf16.vlgmr.msra.gmra.mrb[0].mxu1 %vm494_vm3, %v1950_v44  ;;  %v2100_v44 = vrot.slane %v8018_v54, 1 }
 0x1e0   : > { %5157 = vmatpush3.bf16.msra.mxu1 %v2149_v35  ;;  %5140 = vmatprep.mubr.msk.bf16.mxu1 %vm6103_vm1, %v7981_v43  ;;  %v3855_v35 = vrot.slane %v7658_v30, 3 }
 0x1e1   : > { %5435 = vmatmul.mubr.msk.bf16.gmra.mrb[12].mxu0 %vm494_vm3, %v3733_v49  ;;  %5486 = vmatprep.subr.bf16.mxu1 %v7981_v43  ;;  %v3854_v49 = vsel %vm1400_vm10, %v3851_v10, %v3853_v19  ;;  %v2104_v1 = vor.u32 %v2103_v12, %v2100_v44 }
 0x1e2   : > { %5438 = vmatprep.mubr.msk.bf16.mxu0 %vm6103_vm1, %v7981_v43 }
 0x1e3   : > { %v2105_v25 = vsel %vm725_vm8, %v2095_v4, %v2104_v1 }
 0x1e7   : > { %5141 = vmatmul.mubr.msk.bf16.gmra.mrb[4].mxu1 %vm494_vm3, %v1954_v24  ;;  %v3960_v24 = vrot.slane %v6993_v22, 3 }
 0x1e8   : > { %5144 = vmatprep.mubr.msk.bf16.mxu1 %vm6103_vm1, %v7981_v43 }
 0x1e9   : > { %5439 = vmatmul.mubr.msk.bf16.gmra.mrb[16].mxu0 %vm494_vm3, %v3742_v47  ;;  %v3856_v47 = vsel %vm1400_vm10, %v3853_v19, %v3855_v35  ;;  %v3962_v22 = vor.u32 %v3961_v28, %v3960_v24  ;;  %v3981_v19 = vor.u32 %v3980_v13, %v3979_v2 }
 0x1ea   : > { %5444 = vmatprep.mubr.msk.bf16.mxu0 %vm6103_vm1, %v7981_v43 }
 0x1eb   : > { %v3966_v31 = vsel %vm1515_vm9, %v3962_v22, %v3965_v37  ;;  %v3982_v30 = vsel %vm1515_vm9, %v3977_v0, %v3981_v19 }
 0x1ef   : > { %5145 = vmatmul.mubr.msk.bf16.gmra.mrb[8].mxu1 %vm494_vm3, %v1958_v59 }
 0x1f0   : > { %5148 = vmatprep.mubr.msk.bf16.mxu1 %vm6103_vm1, %v7981_v43 }
 0x1f1   : > { %5445 = vmatmul.mubr.msk.bf16.vlgmr.msra.gmra.mrb[0].mxu0 %vm494_vm3, %v3848_v42  ;;  %v2109_v42 = vrot.slane %v8022_v58, 1 }
 0x1f2   : > { %5465 = vmatpush3.bf16.msra.mxu0 %v3999_v29  ;;  %5448 = vmatprep.mubr.msk.bf16.mxu0 %vm6103_vm1, %v7981_v43  ;;  %v8023_v29 = vshll.u32 %v8021_v15, 16 }
 0x1f4   : > { %v2112_v59 = vrot.slane %v8023_v29, 2 }
 0x1f6   : > { %v2113_v63 = vor.u32 %v2112_v59, %v2109_v42 }
 0x1f7   : > { %5149 = vmatmul.mubr.msk.bf16.gmra.mrb[12].mxu1 %vm494_vm3, %v1962_v3  ;;  %v3971_v3 = vrot.slane %v7081_v56, 3 }
 0x1f8   : > { %5152 = vmatprep.mubr.msk.bf16.mxu1 %vm6103_vm1, %v7981_v43  ;;  %v2114_v6 = vsel %vm725_vm8, %v2104_v1, %v2113_v63 }
 0x1f9   : > { %5449 = vmatmul.mubr.msk.bf16.gmra.mrb[4].mxu0 %vm494_vm3, %v3850_v36  ;;  %v8026_v36 = vshll.u32 %v8024_v40, 16  ;;  %v3973_v55 = vor.u32 %v3972_v48, %v3971_v3 }
 0x1fa   : > { %5452 = vmatprep.mubr.msk.bf16.mxu0 %vm6103_vm1, %v7981_v43 }
 0x1fb   : > { %v2121_v41 = vrot.slane %v8026_v36, 2  ;;  %v3974_v56 = vsel %vm1515_vm9, %v3969_v52, %v3973_v55  ;;  %v3978_v51 = vsel %vm1515_vm9, %v3973_v55, %v3977_v0 }
 0x1fd   : > { %v2122_v16 = vor.u32 %v2121_v41, %v2118_v39 }
 0x1ff   : > { %5153 = vmatmul.mubr.msk.bf16.gmra.mrb[16].mxu1 %vm494_vm3, %v1968_v53  ;;  %v2123_v10 = vsel %vm725_vm8, %v2113_v63, %v2122_v16 }
 0x200   : > { %5158 = vmatprep.mubr.msk.bf16.mxu1 %vm6103_vm1, %v7981_v43 }
 0x201   : > { %5453 = vmatmul.mubr.msk.bf16.gmra.mrb[8].mxu0 %vm494_vm3, %v3852_v50  ;;  %v8028_v50 = vshrl.u32 %v8027_v60, 16 }
 0x202   : > { %5456 = vmatprep.mubr.msk.bf16.mxu0 %vm6103_vm1, %v7981_v43 }
 0x203   : > { %v2127_v53 = vrot.slane %v8028_v50, 1 }
 0x205   : > { %v2131_v14 = vor.u32 %v2130_v45, %v2127_v53 }
 0x207   : > { %5159 = vmatmul.mubr.msk.bf16.vlgmr.msra.gmra.mrb[0].mxu1 %vm494_vm3, %v2096_v20  ;;  %v2132_v9 = vsel %vm725_vm8, %v2122_v16, %v2131_v14 }
 0x208   : > { %5487 = vmatpush3.bf16.msra.mxu1 %v8020_v18  ;;  %5162 = vmatprep.mubr.msk.bf16.mxu1 %vm6103_vm1, %v7981_v43 }
 0x209   : > { %5457 = vmatmul.mubr.msk.bf16.gmra.mrb[12].mxu0 %vm494_vm3, %v3854_v49 }
 0x20a   : > { %5460 = vmatprep.mubr.msk.bf16.mxu0 %vm6103_vm1, %v7981_v43 }
 0x20f   : > { %5163 = vmatmul.mubr.msk.bf16.gmra.mrb[4].mxu1 %vm494_vm3, %v2105_v25 }
 0x210   : > { %5166 = vmatprep.mubr.msk.bf16.mxu1 %vm6103_vm1, %v7981_v43 }
 0x211   : > { %5461 = vmatmul.mubr.msk.bf16.gmra.mrb[16].mxu0 %vm494_vm3, %v3856_v47 }
 0x212   : > { %5466 = vmatprep.mubr.msk.bf16.mxu0 %vm6103_vm1, %v7981_v43 }
 0x217   : > { %5167 = vmatmul.mubr.msk.bf16.gmra.mrb[8].mxu1 %vm494_vm3, %v2114_v6 }
 0x218   : > { %5170 = vmatprep.mubr.msk.bf16.mxu1 %vm6103_vm1, %v7981_v43 }
 0x219   : > { %5467 = vmatmul.mubr.msk.bf16.vlgmr.msra.gmra.mrb[0].mxu0 %vm494_vm3, %v3966_v31  ;;  %v4212_v24 = vpop.permute.xlu1 %4211 }
 0x21a   : > { %5470 = vmatprep.mubr.msk.bf16.mxu0 %vm6103_vm1, %v7981_v43  ;;  %vm4236_vm6 = vcmp.eq.s32.totalorder %v4212_v24, 1 }
 0x21f   : > { %5171 = vmatmul.mubr.msk.bf16.gmra.mrb[12].mxu1 %vm494_vm3, %v2123_v10 }
 0x220   : > { %5174 = vmatprep.mubr.msk.bf16.mxu1 %vm6103_vm1, %v7981_v43 }
 0x221   : > { %5471 = vmatmul.mubr.msk.bf16.gmra.mrb[4].mxu0 %vm494_vm3, %v3970_v32 }
 0x222   : > { %5474 = vmatprep.mubr.msk.bf16.mxu0 %vm6103_vm1, %v7981_v43  ;;  %v4206_v26 = vpop.permute.xlu0 %4205 }
 0x227   : > { %5175 = vmatmul.mubr.msk.bf16.gmra.mrb[16].mxu1 %vm494_vm3, %v2132_v9 }
 0x228   : > { %5192 = vmatprep.mubr.msk.bf16.mxu1 %vm6103_vm1, %v7981_v43 }
 0x229   : > { %5475 = vmatmul.mubr.msk.bf16.gmra.mrb[8].mxu0 %vm494_vm3, %v3974_v56 }
 0x22a   : > { %5478 = vmatprep.mubr.msk.bf16.mxu0 %vm6103_vm1, %v7981_v43 }
 0x22b   : > { %v4215_v41 = vpop.permute.xlu1 %4214 }
 0x22c   : > { %vm4237_vm8 = vcmp.eq.s32.totalorder %v4215_v41, 1 }
 0x22f   : > { %5193 = vmatmul.mubr.msk.bf16.vlgmr.msra.gmra.mrb[12].mxu1 %vm494_vm3, %v2244_v23 }
 0x230   : > { %5196 = vmatprep.mubr.msk.bf16.mxu1 %vm6103_vm1, %v7981_v43  ;;  %v4221_v23 = vpop.permute.xlu1 %4220 }
 0x231   : > { %5479 = vmatmul.mubr.msk.bf16.gmra.mrb[12].mxu0 %vm494_vm3, %v3978_v51  ;;  %vm4239_vm9 = vcmp.eq.s32.totalorder %v4221_v23, 1 }
 0x232   : > { %5482 = vmatprep.mubr.msk.bf16.mxu0 %vm6103_vm1, %v7981_v43  ;;  %v4209_v43 = vpop.permute.xlu0 %4208  ;;  %vm4234_vm1 = vcmp.eq.s32.totalorder %v4206_v26, 1 }
 0x233   : > { %vm4235_vm2 = vcmp.eq.s32.totalorder %v4209_v43, 1 }
 0x236   : > { %v4218_v51 = vpop.permute.xlu0 %4217 }
 0x237   : > { %5197 = vmatmul.mubr.msk.bf16.gmra.mrb[16].mxu1 %vm494_vm3, %v2246_v33 }
 0x239   : > { %5483 = vmatmul.mubr.msk.bf16.gmra.mrb[16].mxu0 %vm494_vm3, %v3982_v30  ;;  %vm4118_vm3 = vcmask 1045508  }
 0x23a   : > { %vm7841_vm5 = vmor %vm510_vm0, %vm4118_vm3  ;;  %vm4238_vm0 = vcmp.eq.s32.totalorder %v4218_v51, 1 }
 0x2da   : > { %v2185_v61 = vpop.f32.mrb[0].mxu1 }
 0x2db   : > { %v5160_v4 = vpop.f32.mrb[1].mxu1 }
 0x2dc   : > { %v2188_v49 = vpop.f32.mrb[2].mxu1 }
 0x2dd   : > { %v5161_v20 = vpop.f32.mrb[3].mxu1 }
 0x2e2   : > { %v2193_v54 = vpop.f32.mrb[4].mxu1 }
 0x2e3   : > { %v5164_v44 = vpop.f32.mrb[5].mxu1 }
 0x2e4   : > { %v2196_v8 = vpop.f32.mrb[6].mxu1 }
 0x2e5   : > { %v5165_v12 = vpop.f32.mrb[7].mxu1 }
 0x2ea   : > { %v2201_v28 = vpop.f32.mrb[8].mxu1 }
 0x2eb   : > { %v5168_v58 = vpop.f32.mrb[9].mxu1 }
 0x2ec   : > { %v4035_v35 = vpop.f32.mrb[0].mxu0  ;;  %v2204_v42 = vpop.f32.mrb[10].mxu1 }
 0x2ed   : > { %v5488_v18 = vadd.f32 %v4035_v35, %v2185_v61  ;;  %v5468_v1 = vpop.f32.mrb[1].mxu0  ;;  %v5169_v37 = vpop.f32.mrb[11].mxu1 }
 0x2ee   : > { %v4038_v47 = vpop.f32.mrb[2].mxu0 }
 0x2ef   : > { %v4720_v62 = vpack.c.bf16 %v5488_v18, %v5488_v18  ;;  %v4244_v17 = vsel %vm4234_vm1, %v5488_v18, 0.0  ;;  %v5489_v25 = vadd.f32 %v4038_v47, %v2188_v49  ;;  %v5469_v15 = vpop.f32.mrb[3].mxu0 }
 0x2f0   : > { %v4269_v63 = vmul.f32 %v4244_v17, %v4244_v17 }
 0x2f1   : > { %v4120_v29 = vrot.slane %v4720_v62, 6  ;;  %v4721_v59 = vpack.c.bf16 %v5489_v25, %v5489_v25  ;;  %v4245_v22 = vsel %vm4235_vm2, %v5489_v25, 0.0 }
 0x2f2   : > { %v4254_v5 = vadd.f32 %v4245_v22, %v4244_v17  ;;  %v4270_v11 = vmul.f32 %v4245_v22, %v4245_v22 }
 0x2f3   : > { %v4121_v6 = vrot.slane %v4120_v29, 4  ;;  %4160 = vst [vmem:[%s7540_s17 + $0x8] sm:$0xc] %v4120_v29  ;;  %v4122_v40 = vrot.slane %v4721_v59, 6  ;;  %v4224_v29 = vpop.permute.xlu0 %4223 }
 0x2f4   : > { %v4279_v34 = vadd.f32 %v4270_v11, %v4269_v63  ;;  %v4043_v39 = vpop.f32.mrb[4].mxu0  ;;  %vm4240_vm10 = vcmp.eq.s32.totalorder %v4224_v29, 1  ;;  %v4227_v63 = vpop.permute.xlu1 %4226 }
 0x2f5   : > { %v4123_v36 = vsel %vm7841_vm5, %v4121_v6, %v4122_v40  ;;  %v5490_v52 = vadd.f32 %v4043_v39, %v2193_v54  ;;  %v5472_v16 = vpop.f32.mrb[5].mxu0  ;;  %v4124_v38 = vrot.slane %v4122_v40, 4  ;;  %vm4241_vm11 = vcmp.eq.s32.totalorder %v4227_v63, 1 }
 0x2f6   : > { %4161 = vst [vmem:[%s7540_s17 + $0xc] sm:$0xf] %v4123_v36  ;;  %v4046_v32 = vpop.f32.mrb[6].mxu0 }
 0x2f7   : > { %v4722_v3 = vpack.c.bf16 %v5490_v52, %v5490_v52  ;;  %v4246_v48 = vsel %vm4236_vm6, %v5490_v52, 0.0  ;;  %v5491_v10 = vadd.f32 %v4046_v32, %v2196_v8  ;;  %v5473_v60 = vpop.f32.mrb[7].mxu0 }
 0x2f8   : > { %v4255_v50 = vadd.f32 %v4254_v5, %v4246_v48  ;;  %v4271_v53 = vmul.f32 %v4246_v48, %v4246_v48 }
 0x2f9   : > { %v4125_v45 = vrot.slane %v4722_v3, 6  ;;  %v4723_v55 = vpack.c.bf16 %v5491_v10, %v5491_v10  ;;  %v4247_v14 = vsel %vm4237_vm8, %v5491_v10, 0.0 }
 0x2fa   : > { %v4280_v56 = vadd.f32 %v4279_v34, %v4271_v53  ;;  %v4256_v57 = vadd.f32 %v4255_v50, %v4247_v14  ;;  %v4272_v7 = vmul.f32 %v4247_v14, %v4247_v14  ;;  %v4230_v50 = vpop.permute.xlu0 %4229 }
 0x2fb   : > { %v4126_v9 = vsel %vm7841_vm5, %v4124_v38, %v4125_v45  ;;  %v4127_v0 = vrot.slane %v4125_v45, 4  ;;  %v4128_v27 = vrot.slane %v4723_v55, 6  ;;  %vm4242_vm4 = vcmp.eq.s32.totalorder %v4230_v50, 1 }
 0x2fc   : > { %4162 = vst [vmem:[%s7540_s17 + $0x10] sm:$0xf] %v4126_v9  ;;  %v4281_v2 = vadd.f32 %v4280_v56, %v4272_v7  ;;  %v4051_v13 = vpop.f32.mrb[8].mxu0  ;;  %v4233_v7 = vpop.permute.xlu1 %4232 }
 0x2fd   : > { %v4129_v21 = vsel %vm7841_vm5, %v4127_v0, %v4128_v27  ;;  %v5492_v19 = vadd.f32 %v4051_v13, %v2201_v28  ;;  %v5476_v46 = vpop.f32.mrb[9].mxu0  ;;  %v4130_v54 = vrot.slane %v4128_v27, 4  ;;  %vm4243_vm7 = vcmp.eq.s32.totalorder %v4233_v7, 1 }
 0x2fe   : > { %4163 = vst [vmem:[%s7540_s17 + $0x14] sm:$0xf] %v4129_v21  ;;  %v4054_v30 = vpop.f32.mrb[10].mxu0 }
 0x2ff   : > { %v4724_v33 = vpack.c.bf16 %v5492_v19, %v5492_v19  ;;  %v4248_v61 = vsel %vm4238_vm0, %v5492_v19, 0.0  ;;  %v5493_v4 = vadd.f32 %v4054_v30, %v2204_v42  ;;  %v5477_v49 = vpop.f32.mrb[11].mxu0 }
 0x300   : > { %v4257_v20 = vadd.f32 %v4256_v57, %v4248_v61  ;;  %v4273_v26 = vmul.f32 %v4248_v61, %v4248_v61 }
 0x301   : > { %v4131_v44 = vrot.slane %v4724_v33, 6  ;;  %v4725_v8 = vpack.c.bf16 %v5493_v4, %v5493_v4  ;;  %v4249_v12 = vsel %vm4239_vm9, %v5493_v4, 0.0 }
 0x302   : > { %v4282_v43 = vadd.f32 %v4281_v2, %v4273_v26  ;;  %v4258_v35 = vadd.f32 %v4257_v20, %v4249_v12  ;;  %v4274_v18 = vmul.f32 %v4249_v12, %v4249_v12  ;;  %v2323_v58 = vpop.f32.mrb[12].mxu1 }
 0x303   : > { %v4132_v1 = vsel %vm7841_vm5, %v4130_v54, %v4131_v44  ;;  %v4133_v47 = vrot.slane %v4131_v44, 4  ;;  %v4134_v24 = vrot.slane %v4725_v8, 6  ;;  %v5194_v59 = vpop.f32.mrb[13].mxu1 }
 0x304   : > { %4164 = vst [vmem:[%s7540_s17 + $0x18] sm:$0xf] %v4132_v1  ;;  %v4283_v28 = vadd.f32 %v4282_v43, %v4274_v18  ;;  %v4059_v62 = vpop.f32.mrb[12].mxu0  ;;  %v2326_v37 = vpop.f32.mrb[14].mxu1 }
 0x305   : > { %v4135_v17 = vsel %vm7841_vm5, %v4133_v47, %v4134_v24  ;;  %v5480_v25 = vpop.f32.mrb[13].mxu0  ;;  %v5494_v22 = vadd.f32 %v4059_v62, %v2323_v58  ;;  %v5195_v5 = vpop.f32.mrb[15].mxu1  ;;  %v4136_v36 = vrot.slane %v4134_v24, 4 }
 0x306   : > { %4165 = vst [vmem:[%s7540_s17 + $0x1c] sm:$0xf] %v4135_v17  ;;  %v4062_v15 = vpop.f32.mrb[14].mxu0 }
 0x307   : > { %v5481_v42 = vpop.f32.mrb[15].mxu0  ;;  %v4726_v11 = vpack.c.bf16 %v5494_v22, %v5494_v22  ;;  %v4250_v6 = vsel %vm4240_vm10, %v5494_v22, 0.0  ;;  %v5495_v40 = vadd.f32 %v4062_v15, %v2326_v37 }
 0x308   : > { %v4259_v34 = vadd.f32 %v4258_v35, %v4250_v6  ;;  %v4275_v39 = vmul.f32 %v4250_v6, %v4250_v6 }
 0x309   : > { %v4137_v41 = vrot.slane %v4726_v11, 6  ;;  %v4727_v52 = vpack.c.bf16 %v5495_v40, %v5495_v40  ;;  %v4251_v16 = vsel %vm4241_vm11, %v5495_v40, 0.0 }
 0x30a   : > { %v4284_v3 = vadd.f32 %v4283_v28, %v4275_v39  ;;  %v4260_v48 = vadd.f32 %v4259_v34, %v4251_v16  ;;  %v4276_v10 = vmul.f32 %v4251_v16, %v4251_v16  ;;  %v2331_v56 = vpop.f32.mrb[16].mxu1 }
 0x30b   : > { %v4138_v53 = vsel %vm7841_vm5, %v4136_v36, %v4137_v41  ;;  %v4139_v38 = vrot.slane %v4137_v41, 4  ;;  %v4140_v45 = vrot.slane %v4727_v52, 6  ;;  %v5198_v0 = vpop.f32.mrb[17].mxu1 }
 0x30c   : > { %v4067_v32 = vpop.f32.mrb[16].mxu0  ;;  %4166 = vst [vmem:[%s7540_s17 + $0x20] sm:$0xf] %v4138_v53  ;;  %v4285_v14 = vadd.f32 %v4284_v3, %v4276_v10  ;;  %v2334_v51 = vpop.f32.mrb[18].mxu1 }
 0x30d   : > { %v5484_v60 = vpop.f32.mrb[17].mxu0  ;;  %v4141_v9 = vsel %vm7841_vm5, %v4139_v38, %v4140_v45  ;;  %v5496_v27 = vadd.f32 %v4067_v32, %v2331_v56  ;;  %v5199_v2 = vpop.f32.mrb[19].mxu1  ;;  %v4142_v30 = vrot.slane %v4140_v45, 4 }
 0x30e   : > { %v4070_v55 = vpop.f32.mrb[18].mxu0  ;;  %4167 = vst [vmem:[%s7540_s17 + $0x24] sm:$0xf] %v4141_v9 }
 0x30f   : > { %v5485_v57 = vpop.f32.mrb[19].mxu0  ;;  %v4728_v13 = vpack.c.bf16 %v5496_v27, %v5496_v27  ;;  %v4252_v21 = vsel %vm4242_vm4, %v5496_v27, 0.0  ;;  %v5497_v23 = vadd.f32 %v4070_v55, %v2334_v51 }
 0x310   : > { %v4261_v19 = vadd.f32 %v4260_v48, %v4252_v21  ;;  %v4277_v46 = vmul.f32 %v4252_v21, %v4252_v21 }
 0x311   : > { %v4143_v33 = vrot.slane %v4728_v13, 6  ;;  %v4729_v61 = vpack.c.bf16 %v5497_v23, %v5497_v23  ;;  %v4253_v4 = vsel %vm4243_vm7, %v5497_v23, 0.0 }
 0x312   : > { %v4286_v49 = vadd.f32 %v4285_v14, %v4277_v46  ;;  %v4262_v20 = vadd.f32 %v4261_v19, %v4253_v4  ;;  %v4278_v26 = vmul.f32 %v4253_v4, %v4253_v4 }
 0x313   : > { %v4144_v54 = vsel %vm7841_vm5, %v4142_v30, %v4143_v33  ;;  %v4145_v44 = vrot.slane %v4143_v33, 4  ;;  %v4146_v8 = vrot.slane %v4729_v61, 6 }
 0x314   : > { %4168 = vst [vmem:[%s7540_s17 + $0x28] sm:$0xf] %v4144_v54  ;;  %v4263_v12 = vrot.slane %v4262_v20, 4  ;;  %v4287_v43 = vadd.f32 %v4286_v49, %v4278_v26 }
 0x315   : > { %v4147_v35 = vsel %vm7841_vm5, %v4145_v44, %v4146_v8  ;;  %v4148_v18 = vrot.slane %v4146_v8, 4 }
 0x316   : > { %4169 = vst [vmem:[%s7540_s17 + $0x2c] sm:$0xf] %v4147_v35  ;;  %v4264_v1 = vadd.f32 %v4263_v12, %v4262_v20  ;;  %v4288_v47 = vrot.slane %v4287_v43, 4 }
 0x317   : > { %4170 = vst [vmem:[%s7540_s17 + $0x30] sm:$0x3] %v4148_v18 }
 0x318   : > { %v4265_v24 = vrot.slane %v4264_v1, 2  ;;  %v4289_v28 = vadd.f32 %v4288_v47, %v4287_v43 }
 0x31a   : > { %v4266_v62 = vadd.f32 %v4265_v24, %v4264_v1  ;;  %v4290_v17 = vrot.slane %v4289_v28, 2 }
 0x31c   : > { %v4267_v25 = vrot.slane %v4266_v62, 1  ;;  %v4291_v15 = vadd.f32 %v4290_v17, %v4289_v28 }
 0x31e   : > { %v4292_v58 = vrot.slane %v4291_v15, 1  ;;  %v4268_v31 = vadd.f32 %v4267_v25, %v4266_v62 }
 0x320   : > { %v4293_v42 = vadd.f32 %v4292_v58, %v4291_v15 }
 0x322   : > { %v4295_v29 = vsel %vm4294_vm12, %v4268_v31, %v4293_v42 }
 0x323   : > { %4296 = vst [vmem:[%s418_s12] sm:$0x3] %v4295_v29 }
 0x324 PF: > { %s17_s25 = sadd.s32 1, %s6100_s25   ;;  %s8033_s21 = smov %s6092_s23 }
 0x325   : > { %p14_p11 = scmp.ge.s32.totalorder %s17_s25, 18   ;;  %s8034_s22 = smov %s6096_s24 }
 0x326   : > { %s8035_s23 = smov %s8038_s26  ;;  %s8036_s24 = smov %s8042_s27 }
 0x327   :  { %16 = sbr.rel (!%p14_p11) target bundleno = 3 (0x3), region = 114 }

// kernel: double_block_forward.4
= control target key start
LH: loop header
LB: loop body
LE: loop exit
PB: predicated region body
PF: predicated region fallthrough
CT: control target
= control target key end

     0   :  { %s8997_s27 = smov 0   ;;  %s8999_s28 = smov 0   ;;  %s11506_s0 = inlined_call_operand.vmem [shape: f32[120,1], index: 0, kind: input, shape index: {}]   ;;  %s11507_s1 = inlined_call_operand.vmem [shape: bf16[3,9,128,128], index: 1, kind: input, shape index: {}]   ;;  %s11508_s2 = inlined_call_operand.vmem [shape: f32[1,128], index: 2, kind: input, shape index: {}]   ;;  %s11509_s3 = inlined_call_operand.vmem [shape: f32[1,128], index: 3, kind: input, shape index: {}]   ;;  %s11510_s4 = inlined_call_operand.vmem [shape: bf16[2,8,120,128], index: 4, kind: input, shape index: {}, may-alias: {4,5,6}]   ;;  %s11511_s5 = inlined_call_operand.vmem [shape: bf16[2,8,120,128], index: 5, kind: input, shape index: {}, may-alias: {4,5,6}]   ;;  %s11512_s6 = inlined_call_operand.vmem [shape: bf16[2,8,120,128], index: 6, kind: input, shape index: {}, may-alias: {4,5,6}]   ;;  %s11513_s7 = inlined_call_operand.vmem [shape: bf16[2,8,120,128], index: 7, kind: output, shape index: {0}]   ;;  %s11514_s8 = inlined_call_operand.vmem [shape: f32[2,8,2,128], index: 8, kind: output, shape index: {1}]  }
   0x1   :  { %s9001_s29 = smov 0   ;;  %s9003_s30 = smov 0  }
   0x2   :  { %s9005_s9 = smov 0  }
   0x3 LB: > { %s28_s10 = sadd.s32 1, %s8939_s29  ;;  %s31_s11 = sadd.s32 1, %s8943_s30  ;;  %s8947_s9 = sphi %s9005_s9, %s19_s9   ;;  %s8943_s30 = sphi %s9003_s30, %s11621_s30   ;;  %s8939_s29 = sphi %s9001_s29, %s11620_s29   ;;  %s8935_s28 = sphi %s8999_s28, %s11619_s28   ;;  %s8931_s27 = sphi %s8997_s27, %s11618_s27  }
   0x4   : > { %p29_p0 = scmp.ge.s32.totalorder %s28_s10, 8  ;;  %p6021_p1 = scmp.ge.s32.totalorder %s8947_s9, 1 }
   0x5   : > { %p343_p2 = scmp.lt.s32.totalorder %s8947_s9, 17 }
   0x6   : > { %s11623_s10 = smov (%p29_p0, %s28_s10), 0  ;;  %s11625_s11 = smov (!%p29_p0, %s31_s11), %s8943_s30 }
   0x7   : > { %p344_p3 = pnand %p6021_p1, %p343_p2  ;;  %p33_p4 = scmp.ge.s32.totalorder %s11625_s11, 2 }
   0x9   : > { %s11627_s11 = smov (%p33_p4, %s11625_s11), 0  ;;  %347 = sbr.rel (%p344_p3) target bundleno = 952 (0x3b8), region = 48 }
  0x10   : > { %v564_v0 = vld [vmem:[%s11506_s0 + $0x20] sm:$0xff]  ;;  %v562_v1 = vld [vmem:[%s11506_s0 + $0x10] sm:$0xff]  ;;  %v565_v2 = vld [vmem:[%s11506_s0 + $0x28] sm:$0xff]  ;;  %v8949_v3 = vmov 0   ;;  %v11520_v9 = vmov 0.0   ;;  %p420_p5 = scmp.lt.s32.totalorder %s8935_s28, 1 }
  0x11   : > { %8690 = vset.pattern.permute.xlu1 %v8949_v3  ;;  %8689 = vset.pattern.permute.xlu0 %v8949_v3  ;;  %vm578_vm0 = vcmp.gt.f32.partialorder %v564_v0, 0.5  ;;  %vm576_vm1 = vcmp.gt.f32.partialorder %v562_v1, 0.5  ;;  %vm579_vm2 = vcmp.gt.f32.partialorder %v565_v2, 0.5  ;;  %v563_v4 = vld [vmem:[%s11506_s0 + $0x18] sm:$0xff]  ;;  %v566_v8 = vld [vmem:[%s11506_s0 + $0x30] sm:$0xff]  ;;  %v561_v12 = vld [vmem:[%s11506_s0 + $0x8] sm:$0xff] }
  0x12   : > { %v592_v5 = vsel %vm578_vm0, 1, %v8949_v3  ;;  %v590_v6 = vsel %vm576_vm1, 1, %v8949_v3  ;;  %vm577_vm3 = vcmp.gt.f32.partialorder %v563_v4, 0.5  ;;  %v567_v7 = vld [vmem:[%s11506_s0 + $0x38] sm:$0xff]  ;;  %7616 = vmatprep.subr.bf16.mxu0 %v11520_v9  ;;  %7148 = vmatprep.subr.bf16.mxu1 %v11520_v9  ;;  %v593_v10 = vsel %vm579_vm2, 1, %v8949_v3  ;;  %v560_v13 = vld [vmem:[%s11506_s0] sm:$0xff] }
  0x13   : > { %615 = vperm.xlu1 %8690, %v592_v5   ;;  %609 = vperm.xlu0 %8689, %v590_v6   ;;  %v591_v11 = vsel %vm577_vm3, 1, %v8949_v3  ;;  %vm581_vm4 = vcmp.gt.f32.partialorder %v567_v7, 0.5  ;;  %vm580_vm5 = vcmp.gt.f32.partialorder %v566_v8, 0.5  ;;  %v569_v16 = vld [vmem:[%s11506_s0 + $0x48] sm:$0xff]  ;;  %v568_v17 = vld [vmem:[%s11506_s0 + $0x40] sm:$0xff]  ;;  %vm575_vm6 = vcmp.gt.f32.partialorder %v561_v12, 0.5 }
  0x14   : > { %v595_v14 = vsel %vm581_vm4, 1, %v8949_v3  ;;  %v594_v15 = vsel %vm580_vm5, 1, %v8949_v3  ;;  %vm574_vm7 = vcmp.gt.f32.partialorder %v560_v13, 0.5  ;;  %v571_v18 = vld [vmem:[%s11506_s0 + $0x58] sm:$0xff]  ;;  %vm583_vm8 = vcmp.gt.f32.partialorder %v569_v16, 0.5  ;;  %v570_v21 = vld [vmem:[%s11506_s0 + $0x50] sm:$0xff] }
  0x15   : > { %vm582_vm9 = vcmp.gt.f32.partialorder %v568_v17, 0.5  ;;  %v589_v19 = vsel %vm575_vm6, 1, %v8949_v3  ;;  %v588_v20 = vsel %vm574_vm7, 1, %v8949_v3  ;;  %vm585_vm10 = vcmp.gt.f32.partialorder %v571_v18, 0.5  ;;  %v8691_v22 = vld [vmem:[%s11507_s1 + $0x340] sm:$0xff]   ;;  %v573_v25 = vld [vmem:[%s11506_s0 + $0x68] sm:$0xff] }
  0x16   : > { %v597_v23 = vsel %vm583_vm8, 1, %v8949_v3  ;;  %v596_v24 = vsel %vm582_vm9, 1, %v8949_v3  ;;  %v572_v26 = vld [vmem:[%s11506_s0 + $0x60] sm:$0xff]  ;;  %v8692_v27 = vld [vmem:[%s11507_s1 + $0x348] sm:$0xff]   ;;  %vm584_vm11 = vcmp.gt.f32.partialorder %v570_v21, 0.5  ;;  %7617 = vmatpush3.bf16.msra.mxu0 %v8691_v22  ;;  %v599_v29 = vsel %vm585_vm10, 1, %v8949_v3 }
  0x17   : > { %618 = vperm.xlu1 %8690, %v593_v10   ;;  %612 = vperm.xlu0 %8689, %v591_v11   ;;  %v8694_v28 = vld [vmem:[%s11507_s1 + $0x40] sm:$0xff]   ;;  %v8696_v31 = vld [vmem:[%s11507_s1 + $0x48] sm:$0xff]   ;;  %s11629_s28 = smov (!%p420_p5, %s8935_s28), 1  ;;  %v598_v32 = vsel %vm584_vm11, 1, %v8949_v3  ;;  %vm587_vm12 = vcmp.gt.f32.partialorder %v573_v25, 0.5  ;;  %vm586_vm13 = vcmp.gt.f32.partialorder %v572_v26, 0.5 }
  0x18   : > { %v5709_v30 = vld [vmem:[%s11506_s0 + $0x1c] sm:$0xff]  ;;  %7618 = vmatprep.subr.bf16.mxu0 %v11520_v9  ;;  %7149 = vmatpush3.bf16.msra.mxu1 %v8694_v28  ;;  %v8693_v33 = vld [vmem:[%s11507_s1 + $0x350] sm:$0xff]   ;;  %p434_p6 = scmp.lt.s32.totalorder %s8931_s27, 7  ;;  %v601_v35 = vsel %vm587_vm12, 1, %v8949_v3  ;;  %s9123_s26 = smul.u32 120, %s11629_s28  ;;  %v600_v37 = vsel %vm586_vm13, 1, %v8949_v3 }
  0x19   : > { %7150 = vmatprep.subr.bf16.mxu1 %v11520_v9  ;;  %vm5719_vm14 = vcmp.gt.f32.partialorder %v5709_v30, 0.5  ;;  %v5708_v34 = vld [vmem:[%s11506_s0 + $0x14] sm:$0xff]  ;;  %s441_s12 = sadd.s32 1, %s8931_s27  ;;  %v5711_v38 = vld [vmem:[%s11506_s0 + $0x2c] sm:$0xff]  ;;  %v5710_v39 = vld [vmem:[%s11506_s0 + $0x24] sm:$0xff]  ;;  %vm8951_vm2 = vmmov 0  }
  0x1a   : > { %7619 = vmatpush3.bf16.msra.mxu0 %v8692_v27  ;;  %v8698_v36 = vld [vmem:[%s11507_s1 + $0x50] sm:$0xff]   ;;  %s9136_s17 = scalar_select %p434_p6, %s8931_s27, 7  ;;  %vm5718_vm15 = vcmp.gt.f32.partialorder %v5708_v34, 0.5  ;;  %v8695_v40 = vld [vmem:[%s11507_s1 + $0x358] sm:$0xff]   ;;  %v5729_v42 = vsel %vm5719_vm14, 1, %v8949_v3  ;;  %vm5721_vm0 = vcmp.gt.f32.partialorder %v5711_v38, 0.5  ;;  %7632 = vmatprep.mubr.msk.bf16.mxu0 %vm8951_vm2, %v11520_v9 }
  0x1b   : > { %624 = vperm.xlu1 %8690, %v595_v14   ;;  %621 = vperm.xlu0 %8689, %v594_v15   ;;  %v8700_v41 = vld [vmem:[%s11507_s1 + $0x58] sm:$0xff]   ;;  %p9149_p7 = scmp.lt.s32.totalorder %s441_s12, 7  ;;  %v5728_v43 = vsel %vm5718_vm15, 1, %v8949_v3  ;;  %vm5720_vm1 = vcmp.gt.f32.partialorder %v5710_v39, 0.5  ;;  %v8697_v46 = vld [vmem:[%s11507_s1 + $0x360] sm:$0xff]   ;;  %v5715_v48 = vld [vmem:[%s11506_s0 + $0x4c] sm:$0xff] }
  0x1c   : > { %7620 = vmatprep.subr.bf16.mxu0 %v11520_v9  ;;  %7151 = vmatpush3.bf16.msra.mxu1 %v8696_v31  ;;  %s8644_s20 = smul.u32 15, %s9136_s17  ;;  %v5713_v44 = vld [vmem:[%s11506_s0 + $0x3c] sm:$0xff]  ;;  %v5712_v45 = vld [vmem:[%s11506_s0 + $0x34] sm:$0xff]  ;;  %s9203_s16 = sadd.s32 4294967295, %s8931_s27  ;;  %v5731_v49 = vsel %vm5721_vm0, 1, %v8949_v3  ;;  %v5730_v50 = vsel %vm5720_vm1, 1, %v8949_v3 }
  0x1d   : > { %7152 = vmatprep.subr.bf16.mxu1 %v11520_v9  ;;  %s11631_s12 = smov (!%p9149_p7, %s441_s12), 7  ;;  %v8702_v47 = vld [vmem:[%s11507_s1 + $0x60] sm:$0xff]   ;;  %vm5723_vm3 = vcmp.gt.f32.partialorder %v5713_v44, 0.5  ;;  %vm5722_vm4 = vcmp.gt.f32.partialorder %v5712_v45, 0.5  ;;  %v8699_v52 = vld [vmem:[%s11507_s1 + $0x368] sm:$0xff]   ;;  %7164 = vmatprep.mubr.msk.bf16.mxu1 %vm8951_vm2, %v11520_v9  ;;  %v5716_v57 = vld [vmem:[%s11506_s0 + $0x54] sm:$0xff] }
  0x1e   : > { %7621 = vmatpush3.bf16.msra.mxu0 %v8693_v33  ;;  %s9163_s15 = sadd.s32 %s8644_s20, %s9123_s26  ;;  %v5714_v51 = vld [vmem:[%s11506_s0 + $0x44] sm:$0xff]  ;;  %s11633_s12 = smov (!%p9149_p7, %s11631_s12), 7  ;;  %v5717_v53 = vld [vmem:[%s11506_s0 + $0x5c] sm:$0xff]  ;;  %v5733_v54 = vsel %vm5723_vm3, 1, %v8949_v3  ;;  %v5732_v56 = vsel %vm5722_vm4, 1, %v8949_v3  ;;  %vm5725_vm5 = vcmp.gt.f32.partialorder %v5715_v48, 0.5 }
  0x1f   : > { %606 = vperm.xlu1 %8690, %v589_v19   ;;  %603 = vperm.xlu0 %8689, %v588_v20   ;;  %s11515_s19 = sshll.u32 %s9163_s15, 2  ;;  %s8645_s14 = smul.u32 15, %s11633_s12  ;;  %v8704_v55 = vld [vmem:[%s11507_s1 + $0x68] sm:$0xff]   ;;  %vm5724_vm6 = vcmp.gt.f32.partialorder %v5714_v51, 0.5  ;;  %vm5727_vm7 = vcmp.gt.f32.partialorder %v5717_v53, 0.5  ;;  %v8701_v58 = vld [vmem:[%s11507_s1 + $0x370] sm:$0xff]  }
  0x20   : > { %7622 = vmatprep.subr.bf16.mxu0 %v11520_v9  ;;  %7153 = vmatpush3.bf16.msra.mxu1 %v8698_v36  ;;  %s9176_s20 = scalar_lea.vmem %s11513_s7, %s11515_s19  ;;  %p418_p8 = scmp.gt.s32.totalorder %s9203_s16, 0  ;;  %v9241_v59 = vld [vmem:[%s11508_s2] ss:$0 sm:$0xff]  ;;  %v8706_v60 = vld [vmem:[%s11507_s1 + $0x70] sm:$0xff]   ;;  %v5735_v61 = vsel %vm5725_vm5, 1, %v8949_v3  ;;  %v5734_v62 = vsel %vm5724_vm6, 1, %v8949_v3 }
  0x21   : > { %7154 = vmatprep.subr.bf16.mxu1 %v11520_v9  ;;  %5618 = vst [vmem:[%s9176_s20] sm:$0xf] %v8949_v3  ;;  %5619 = vst [vmem:[%s9176_s20 + $0x4] sm:$0xf] %v8949_v3  ;;  %s450_s12 = sadd.s32 %s8645_s14, %s9123_s26  ;;  %vm5726_vm8 = vcmp.gt.f32.partialorder %v5716_v57, 0.5  ;;  %p6023_p9 = scmp.lt.s32.totalorder %s9203_s16, 7  ;;  %v8703_v6 = vld [vmem:[%s11507_s1 + $0x378] sm:$0xff]  }
  0x22   : > { %7623 = vmatpush3.bf16.msra.mxu0 %v8695_v40  ;;  %5620 = vst [vmem:[%s9176_s20 + $0x8] sm:$0x3] %v8949_v3  ;;  %5705 = vst [vmem:[%s9176_s20 + $0x30] sm:$0xc] %v8949_v3  ;;  %s6033_s13 = sshll.u32 %s450_s12, 2  ;;  %s11552_s19 = sshll.u32 %s9163_s15, 2 }
  0x23   : > { %630 = vperm.xlu1 %8690, %v597_v23   ;;  %627 = vperm.xlu0 %8689, %v596_v24   ;;  %5706 = vst [vmem:[%s9176_s20 + $0x34] sm:$0xf] %v8949_v3  ;;  %5707 = vst [vmem:[%s9176_s20 + $0x38] sm:$0xf] %v8949_v3  ;;  %s9250_s24 = scalar_lea.vmem %s11512_s6, %s6033_s13  ;;  %s9266_s18 = scalar_lea.vmem %s11511_s5, %s11552_s19  ;;  %v9275_v7 = vld [vmem:[%s11509_s3] ss:$0 sm:$0xff] }
  0x24   : > { %7624 = vmatprep.subr.bf16.mxu0 %v11520_v9  ;;  %7155 = vmatpush3.bf16.msra.mxu1 %v8700_v41  ;;  %s419_s12 = scalar_select %p418_p8, %s9203_s16, 0  ;;  %v6792_v63 = vld [vmem:[%s9250_s24 + $0x10] sm:$0xff]   ;;  %v6791_v0 = vld [vmem:[%s9250_s24 + $0x8] sm:$0xff]   ;;  %v6793_v1 = vld [vmem:[%s9250_s24 + $0x18] sm:$0xff]   ;;  %v5737_v16 = vsel %vm5727_vm7, 1, %v8949_v3  ;;  %v5736_v17 = vsel %vm5726_vm8, 1, %v8949_v3 }
  0x25   : > { %7156 = vmatprep.subr.bf16.mxu1 %v11520_v9  ;;  %v6761_v2 = vunpack.c.l.bf16 %v6792_v63  ;;  %v6757_v4 = vunpack.c.l.bf16 %v6791_v0  ;;  %v6762_v5 = vunpack.c.h.bf16 %v6792_v63  ;;  %v6758_v8 = vunpack.c.h.bf16 %v6791_v0  ;;  %v6724_v11 = vld [vmem:[%s9266_s18] sm:$0xff]   ;;  %v8708_v15 = vld [vmem:[%s11507_s1 + $0x78] sm:$0xff]   ;;  %v6796_v53 = vld [vmem:[%s9250_s24 + $0x30] sm:$0xff]   ;;  %p474_p10 = scmp.gt.s32.totalorder %s8931_s27, 0 }
  0x26   : > { %7625 = vmatpush3.bf16.msra.mxu0 %v8697_v46  ;;  %v6766_v10 = vunpack.c.h.bf16 %v6793_v1  ;;  %s11635_s12 = smov (!%p6023_p9, %s419_s12), 7  ;;  %v6726_v3 = vunpack.c.h.bf16 %v6724_v11  ;;  %v6752_v23 = vld [vmem:[%s9250_s24] sm:$0xff]   ;;  %v6765_v26 = vunpack.c.l.bf16 %v6793_v1  ;;  %v6778_v57 = vunpack.c.h.bf16 %v6796_v53 }
  0x27   : > { %636 = vperm.xlu1 %8690, %v599_v29   ;;  %633 = vperm.xlu0 %8689, %v598_v32   ;;  %v3966_v12 = vmul.f32 %v6761_v2, %v9241_v59  ;;  %v3964_v13 = vmul.f32 %v6757_v4, %v9241_v59  ;;  %v3967_v14 = vmul.f32 %v6762_v5, %v9241_v59  ;;  %s8642_s16 = smul.u32 15, %s11635_s12  ;;  %v6754_v29 = vunpack.c.h.bf16 %v6752_v23  ;;  %v6794_v30 = vld [vmem:[%s9250_s24 + $0x20] sm:$0xff]  }
  0x28   : > { %7626 = vmatprep.subr.bf16.mxu0 %v11520_v9  ;;  %7157 = vmatpush3.bf16.msra.mxu1 %v8702_v47  ;;  %v3965_v18 = vmul.f32 %v6758_v8, %v9241_v59  ;;  %v3969_v19 = vmul.f32 %v6766_v10, %v9241_v59  ;;  %v3968_v27 = vmul.f32 %v6765_v26, %v9241_v59  ;;  %v6725_v32 = vunpack.c.l.bf16 %v6724_v11  ;;  %s9393_s23 = scalar_select %p434_p6, 1, 0 }
  0x29   : > { %7158 = vmatprep.subr.bf16.mxu1 %v11520_v9  ;;  %v9296_v20 = vadd.f32 %v9275_v7, %v3966_v12  ;;  %v9299_v21 = vadd.f32 %v9275_v7, %v3964_v13  ;;  %v9302_v22 = vadd.f32 %v9275_v7, %v3967_v14  ;;  %v2289_v28 = vmul.f32 %v6726_v3, %v9241_v59  ;;  %s426_s12 = sadd.s32 %s9123_s26, %s8642_s16  ;;  %v6786_v14 = vld [vmem:[%s9266_s18 + $0x10] sm:$0xff]  }
  0x2a   : > { %7627 = vmatpush3.bf16.msra.mxu0 %v8699_v52  ;;  %v9307_v24 = vadd.f32 %v9275_v7, %v3965_v18  ;;  %v9310_v25 = vadd.f32 %v9275_v7, %v3969_v19  ;;  %v9319_v31 = vadd.f32 %v9275_v7, %v3968_v27  ;;  %v6753_v33 = vunpack.c.l.bf16 %v6752_v23  ;;  %s6028_s25 = sshll.u32 %s426_s12, 2 }
  0x2b   : > { %642 = vperm.xlu1 %8690, %v601_v35   ;;  %639 = vperm.xlu0 %8689, %v600_v37   ;;  %v9322_v34 = vadd.f32 %v9275_v7, %v2289_v28  ;;  %v3963_v35 = vmul.f32 %v6754_v29, %v9241_v59  ;;  %v2288_v36 = vmul.f32 %v6725_v32, %v9241_v59  ;;  %v6770_v39 = vunpack.c.h.bf16 %v6794_v30  ;;  %s9346_s21 = scalar_lea.vmem %s11510_s4, %s6028_s25 }
  0x2c   : > { %7628 = vmatprep.subr.bf16.mxu0 %v11520_v9  ;;  %7159 = vmatpush3.bf16.msra.mxu1 %v8704_v55  ;;  %v3962_v37 = vmul.f32 %v6753_v33, %v9241_v59  ;;  %v6769_v45 = vunpack.c.l.bf16 %v6794_v30  ;;  %v6779_v10 = vld [vmem:[%s9346_s21 + $0x8] sm:$0xff]   ;;  %v6781_v19 = vld [vmem:[%s9346_s21 + $0x18] sm:$0xff]   ;;  %v6734_v23 = vunpack.c.h.bf16 %v6786_v14  ;;  %v6733_v26 = vunpack.c.l.bf16 %v6786_v14 }
  0x2d   : > { %7160 = vmatprep.subr.bf16.mxu1 %v11520_v9  ;;  %v9328_v38 = vadd.f32 %v9275_v7, %v3963_v35  ;;  %v9332_v40 = vadd.f32 %v9275_v7, %v2288_v36  ;;  %v6701_v11 = vunpack.c.l.bf16 %v6779_v10  ;;  %v6702_v3 = vunpack.c.h.bf16 %v6779_v10  ;;  %v6787_v36 = vld [vmem:[%s9266_s18 + $0x18] sm:$0xff]  }
  0x2e   : > { %7629 = vmatpush3.bf16.msra.mxu0 %v8701_v58  ;;  %v9335_v41 = vadd.f32 %v9275_v7, %v3962_v37  ;;  %v3970_v47 = vmul.f32 %v6769_v45, %v9241_v59  ;;  %v6710_v35 = vunpack.c.h.bf16 %v6781_v19  ;;  %v2293_v37 = vmul.f32 %v6734_v23, %v9241_v59 }
  0x2f   : > { %5742 = vperm.xlu1 %8690, %v5729_v42   ;;  %5739 = vperm.xlu0 %8689, %v5728_v43   ;;  %v3971_v42 = vmul.f32 %v6770_v39, %v9241_v59  ;;  %v6795_v43 = vld [vmem:[%s9250_s24 + $0x28] sm:$0xff]   ;;  %s9384_s24 = scalar_select %p474_p10, 1, 0  ;;  %v514_v33 = vmul.f32 %v6702_v3, %v9241_v59  ;;  %v2292_v39 = vmul.f32 %v6733_v26, %v9241_v59  ;;  %v3993_v10 = vmax.f32 %v9307_v24, 0.0  ;;  %v9453_v26 = vld [vmem:[%s9346_s21 + $0x20] sm:$0xff]  }
  0x30   : > { %7630 = vmatprep.subr.bf16.mxu0 %v11520_v9  ;;  %7161 = vmatpush3.bf16.msra.mxu1 %v8706_v60  ;;  %v6774_v46 = vunpack.c.h.bf16 %v6795_v43  ;;  %v6773_v52 = vunpack.c.l.bf16 %v6795_v43  ;;  %v6737_v23 = vunpack.c.l.bf16 %v6787_v36  ;;  %vm1423_vm14 = vcmask 1045504  }
  0x31   : > { %7162 = vmatprep.subr.bf16.mxu1 %v11520_v9  ;;  %v9340_v44 = vadd.f32 %v9275_v7, %v3971_v42  ;;  %v3994_v42 = vmax.f32 %v9296_v20, 0.0  ;;  %v518_v20 = vmul.f32 %v6710_v35, %v9241_v59  ;;  %vm728_vm8 = vcmask 1042432  }
  0x32   : > { %7631 = vmatpush3.bf16.msra.mxu0 %v8703_v6  ;;  %v3973_v48 = vmul.f32 %v6774_v46, %v9241_v59  ;;  %v6780_v6 = vld [vmem:[%s9346_s21 + $0x10] sm:$0xff]  }
  0x33   : > { %5748 = vperm.xlu1 %8690, %v5731_v49   ;;  %5745 = vperm.xlu0 %8689, %v5730_v50   ;;  %v9350_v49 = vadd.f32 %v9275_v7, %v3970_v47  ;;  %v6784_v50 = vld [vmem:[%s9346_s21 + $0x30] sm:$0xff]   ;;  %v6705_v8 = vunpack.c.l.bf16 %v6780_v6  ;;  %v6706_v13 = vunpack.c.h.bf16 %v6780_v6  ;;  %v3992_v47 = vmax.f32 %v9299_v21, 0.0 }
  0x34   : > { %7652 = vmatprep.subr.bf16.mxu0 %v11520_v9  ;;  %7163 = vmatpush3.bf16.msra.mxu1 %v8708_v15  ;;  %v9354_v51 = vadd.f32 %v9275_v7, %v3973_v48  ;;  %v6722_v55 = vunpack.c.h.bf16 %v6784_v50  ;;  %v6721_v58 = vunpack.c.l.bf16 %v6784_v50  ;;  %v513_v15 = vmul.f32 %v6701_v11, %v9241_v59 }
  0x35   : > { %7184 = vmatprep.subr.bf16.mxu1 %v11520_v9  ;;  %v515_v12 = vmul.f32 %v6705_v8, %v9241_v59  ;;  %v516_v18 = vmul.f32 %v6706_v13, %v9241_v59  ;;  %v4026_v50 = vstv %s9393_s23  ;;  %v2307_v21 = vadd.f32 %v9275_v7, %v2293_v37  ;;  %v6788_v37 = vld [vmem:[%s9266_s18 + $0x20] sm:$0xff]  }
  0x36   : > { %v524_v60 = vmul.f32 %v6722_v55, %v9241_v59  ;;  %v523_v63 = vmul.f32 %v6721_v58, %v9241_v59  ;;  %v9396_v27 = vadd.f32 %v9275_v7, %v513_v15  ;;  %v9419_v55 = vadd.f32 %v9275_v7, %v514_v33 }
  0x37   : > { %5754 = vperm.xlu1 %8690, %v5733_v54   ;;  %5751 = vperm.xlu0 %8689, %v5732_v56   ;;  %v3972_v54 = vmul.f32 %v6773_v52, %v9241_v59  ;;  %v9400_v32 = vadd.f32 %v9275_v7, %v516_v18  ;;  %v6696_v52 = vld [vmem:[%s9346_s21] sm:$0xff]   ;;  %v6738_v58 = vunpack.c.h.bf16 %v6787_v36  ;;  %vm9428_vm11 = vcmp.eq.s32.totalorder %v4026_v50, 1 }
  0x38   : > { %v9365_v0 = vadd.f32 %v9275_v7, %v524_v60  ;;  %v9372_v4 = vadd.f32 %v9275_v7, %v523_v63  ;;  %v548_v43 = vmax.f32 %v9396_v27, 0.0  ;;  %v9444_v13 = vadd.f32 %v9275_v7, %v518_v20 }
  0x39   : > { %v9359_v56 = vadd.f32 %v9275_v7, %v3972_v54  ;;  %v551_v48 = vmax.f32 %v9400_v32, 0.0  ;;  %v6698_v14 = vunpack.c.h.bf16 %v6696_v52  ;;  %v6697_v15 = vunpack.c.l.bf16 %v6696_v52 }
  0x3a   : > { %v2321_v24 = vmax.f32 %v2307_v21, 0.0  ;;  %v549_v35 = vmax.f32 %v9419_v55, 0.0  ;;  %v3997_v20 = vmax.f32 %v9310_v25, 0.0  ;;  %v6742_v25 = vunpack.c.h.bf16 %v6788_v37 }
  0x3b   : > { %5760 = vperm.xlu1 %8690, %v5735_v61   ;;  %5757 = vperm.xlu0 %8689, %v5734_v62   ;;  %v6777_v61 = vunpack.c.l.bf16 %v6796_v53  ;;  %v3975_v62 = vmul.f32 %v6778_v57, %v9241_v59  ;;  %v6709_v57 = vunpack.c.l.bf16 %v6781_v19  ;;  %v511_v36 = vmul.f32 %v6697_v15, %v9241_v59 }
  0x3c   : > { %v2317_v15 = vmax.f32 %v9322_v34, 0.0  ;;  %v4001_v55 = vmax.f32 %v9354_v51, 0.0  ;;  %v6790_v51 = vld [vmem:[%s9266_s18 + $0x30] sm:$0xff]  }
  0x3d   : > { %v3974_v1 = vmul.f32 %v6777_v61, %v9241_v59  ;;  %v9369_v2 = vadd.f32 %v9275_v7, %v3975_v62  ;;  %v3995_v61 = vmax.f32 %v9302_v22, 0.0  ;;  %v517_v18 = vmul.f32 %v6709_v57, %v9241_v59 }
  0x3e   : > { %v532_v34 = vadd.f32 %v9275_v7, %v511_v36 }
  0x3f   : > { %5766 = vperm.xlu1 %8690, %v5737_v16   ;;  %5763 = vperm.xlu0 %8689, %v5736_v17   ;;  %v9375_v5 = vadd.f32 %v9275_v7, %v3974_v1  ;;  %v6785_v16 = vld [vmem:[%s9266_s18 + $0x8] sm:$0xff]   ;;  %v9387_v17 = vadd.f32 %v9275_v7, %v515_v12  ;;  %v2306_v1 = vadd.f32 %v9275_v7, %v2292_v39  ;;  %v680_v12 = vstv %s9384_s24  ;;  %s6035_s24 = sshll.u32 %s11629_s28, 3 }
  0x40   : > { %v6730_v28 = vunpack.c.h.bf16 %v6785_v16  ;;  %v6729_v30 = vunpack.c.l.bf16 %v6785_v16  ;;  %v2295_v16 = vmul.f32 %v6738_v58, %v9241_v59  ;;  %v9475_v57 = vadd.f32 %v9275_v7, %v517_v18  ;;  %s470_s23 = sadd.s32 %s6035_s24, %s9136_s17 }
  0x41   : > { %v550_v29 = vmax.f32 %v9387_v17, 0.0  ;;  %vm9541_vm4 = vcmp.eq.s32.totalorder %v680_v12, 1  ;;  %s6036_s27 = sshll.u32 %s470_s23, 1 }
  0x42   : > { %v2291_v45 = vmul.f32 %v6730_v28, %v9241_v59  ;;  %v2290_v46 = vmul.f32 %v6729_v30, %v9241_v59  ;;  %v2320_v28 = vmax.f32 %v2306_v1, 0.0  ;;  %v9471_v52 = vadd.f32 %v9275_v7, %v2295_v16  ;;  %s472_s14 = scalar_lea.vmem %s11514_s8, %s6036_s27 }
  0x43   : > { %v3996_v1 = vmax.f32 %v9319_v31, 0.0  ;;  %v3991_v16 = vmax.f32 %v9328_v38, 0.0 }
  0x44   : > { %v2305_v63 = vadd.f32 %v9275_v7, %v2291_v45  ;;  %v2304_v6 = vadd.f32 %v9275_v7, %v2290_v46  ;;  %v553_v45 = vmax.f32 %v9444_v13, 0.0  ;;  %v8713_v13 = vld [vmem:[%s11507_s1 + $0x8] sm:$0xff]  }
  0x46   : > { %v2319_v3 = vmax.f32 %v2305_v63, 0.0  ;;  %v2318_v30 = vmax.f32 %v2304_v6, 0.0 }
  0x92   : > { %v9414_v53 = vpop.permute.xlu1 %615  ;;  %v9416_v54 = vpop.permute.xlu0 %609 }
  0x93   : > { %vm648_vm9 = vcmp.eq.s32.totalorder %v9414_v53, 1  ;;  %vm646_vm10 = vcmp.eq.s32.totalorder %v9416_v54, 1 }
  0x94   : > { %v4008_v60 = vsel %vm648_vm9, %v3994_v42, 0.0  ;;  %v4006_v8 = vsel %vm646_vm10, %v3992_v47, 0.0  ;;  %v512_v47 = vmul.f32 %v6698_v14, %v9241_v59  ;;  %v2334_v6 = vsel %vm648_vm9, %v2320_v28, 0.0 }
  0x95   : > { %v662_v32 = vsel %vm648_vm9, %v550_v29, 0.0 }
  0x96   : > { %v9438_v11 = vpop.permute.xlu1 %618  ;;  %v9441_v22 = vpop.permute.xlu0 %612 }
  0x97   : > { %vm649_vm12 = vcmp.eq.s32.totalorder %v9438_v11, 1  ;;  %vm647_vm13 = vcmp.eq.s32.totalorder %v9441_v22, 1 }
  0x98   : > { %v4009_v19 = vsel %vm649_vm12, %v3995_v61, 0.0  ;;  %v4007_v39 = vsel %vm647_vm13, %v3993_v10, 0.0  ;;  %v2335_v21 = vsel %vm649_vm12, %v2321_v24, 0.0  ;;  %v2333_v58 = vsel %vm647_vm13, %v2319_v3, 0.0 }
  0x99   : > { %v4020_v33 = vpack.c.bf16 %v4009_v19, %v4008_v60  ;;  %v2294_v60 = vmul.f32 %v6737_v23, %v9241_v59  ;;  %v6714_v61 = vunpack.c.h.bf16 %v9453_v26  ;;  %v4019_v63 = vpack.c.bf16 %v4007_v39, %v4006_v8 }
  0x9a   : > { %v9459_v42 = vpop.permute.xlu1 %624  ;;  %v9462_v46 = vpop.permute.xlu0 %621  ;;  %v2332_v10 = vsel %vm646_vm10, %v2318_v30, 0.0  ;;  %v9491_v18 = vpack.c.bf16 %v2335_v21, %v2334_v6  ;;  %v533_v19 = vadd.f32 %v9275_v7, %v512_v47  ;;  %v2316_v23 = vmax.f32 %v9332_v40, 0.0 }
  0x9b   : > { %v9468_v50 = vsel %vm9428_vm11, %v4020_v33, 0  ;;  %vm651_vm15 = vcmp.eq.s32.totalorder %v9459_v42, 1  ;;  %v9493_v24 = vpack.c.bf16 %v2333_v58, %v2332_v10  ;;  %v9497_v8 = vsel %vm9428_vm11, %v4019_v63, 0  ;;  %v8705_v63 = vld [vmem:[%s11507_s1 + $0x380] sm:$0xff]   ;;  %v8714_v42 = vld [vmem:[%s11507_s1 + $0x3a8] sm:$0xff]  }
  0x9c   : > { %11555 = vst [vmem:[#allocation2_spill] sm:$0xff] %v9468_v50  ;;  %11556 = vst [vmem:[#allocation3_spill] sm:$0xff] %v9497_v8  ;;  %v4011_v31 = vsel %vm651_vm15, %v3997_v20, 0.0  ;;  %vm650_vm0 = vcmp.eq.s32.totalorder %v9462_v46, 1  ;;  %v520_v28 = vmul.f32 %v6714_v61, %v9241_v59  ;;  %v2297_v30 = vmul.f32 %v6742_v25, %v9241_v59  ;;  %v6789_v25 = vld [vmem:[%s9266_s18 + $0x28] sm:$0xff]  }
  0x9d   : > { %v4010_v38 = vsel %vm650_vm0, %v3996_v1, 0.0  ;;  %v3990_v20 = vmax.f32 %v9335_v41, 0.0  ;;  %v6741_v47 = vunpack.c.l.bf16 %v6788_v37  ;;  %v3102_v36 = vrot.slane %v9493_v24, 2 }
  0x9e   : > { %v607_v14 = vpop.permute.xlu1 %606  ;;  %v604_v3 = vpop.permute.xlu0 %603  ;;  %v4021_v33 = vpack.c.bf16 %v4011_v31, %v4010_v38  ;;  %v3103_v58 = vrot.slane %v9491_v18, 2  ;;  %v2308_v40 = vadd.f32 %v9275_v7, %v2294_v60  ;;  %v3999_v37 = vmax.f32 %v9340_v44, 0.0 }
  0x9f   : > { %vm645_vm1 = vcmp.eq.s32.totalorder %v607_v14, 1  ;;  %vm644_vm3 = vcmp.eq.s32.totalorder %v604_v3, 1  ;;  %v6713_v1 = vunpack.c.l.bf16 %v9453_v26  ;;  %v547_v6 = vmax.f32 %v533_v19, 0.0 }
  0xa0   : > { %v2331_v39 = vsel %vm645_vm1, %v2317_v15, 0.0  ;;  %v4005_v21 = vsel %vm645_vm1, %v3991_v16, 0.0  ;;  %v9517_v61 = vsel %vm9428_vm11, %v4021_v33, 0  ;;  %v546_v10 = vmax.f32 %v532_v34, 0.0 }
  0xa1   : > { %11557 = vst [vmem:[#allocation4_spill] sm:$0xff] %v9517_v61  ;;  %v9528_v15 = vadd.f32 %v9275_v7, %v520_v28  ;;  %v9531_v60 = vadd.f32 %v9275_v7, %v2297_v30  ;;  %v2330_v16 = vsel %vm644_vm3, %v2316_v23, 0.0  ;;  %v4004_v31 = vsel %vm644_vm3, %v3990_v20, 0.0 }
  0xa2   : > { %v9522_v41 = vpop.permute.xlu1 %630  ;;  %v3104_v38 = vsel %vm1423_vm14, %v3102_v36, %v3103_v58  ;;  %v2296_v44 = vmul.f32 %v6741_v47, %v9241_v59  ;;  %v9545_v19 = vpack.c.bf16 %v2331_v39, %v2330_v16  ;;  %v4018_v34 = vpack.c.bf16 %v4005_v21, %v4004_v31  ;;  %v9552_v12 = vpop.permute.xlu0 %627  ;;  %v8707_v39 = vld [vmem:[%s11507_s1 + $0x388] sm:$0xff]  }
  0xa3   : > { %7633 = vmatmul.mubr.bf16.vlgmr.msra.gmra.mrb[0].mxu0 %v3104_v38  ;;  %vm653_vm5 = vcmp.eq.s32.totalorder %v9522_v41, 1  ;;  %v6746_v23 = vunpack.c.h.bf16 %v6789_v25  ;;  %v2323_v28 = vmax.f32 %v9471_v52, 0.0  ;;  %v552_v30 = vmax.f32 %v9475_v57, 0.0  ;;  %v9564_v36 = vld [vmem:[%s9346_s21 + $0x28] sm:$0xff]   ;;  %v8719_v41 = vld [vmem:[%s11507_s1 + $0x3b8] sm:$0xff]  }
  0xa4   : > { %7653 = vmatpush3.bf16.msra.mxu0 %v8705_v63  ;;  %v4013_v33 = vsel %vm653_vm5, %v3999_v37, 0.0  ;;  %v519_v20 = vmul.f32 %v6713_v1, %v9241_v59  ;;  %7636 = vmatprep.mubr.msk.bf16.mxu0 %vm8951_vm2, %v11520_v9  ;;  %v2322_v47 = vmax.f32 %v2308_v40, 0.0  ;;  %v555_v52 = vmax.f32 %v9528_v15, 0.0 }
  0xa5   : > { %v2325_v21 = vmax.f32 %v9531_v60, 0.0  ;;  %7654 = vmatprep.subr.bf16.mxu0 %v11520_v9  ;;  %v6745_v63 = vunpack.c.l.bf16 %v6789_v25  ;;  %v659_v37 = vsel %vm645_vm1, %v547_v6, 0.0  ;;  %v658_v1 = vsel %vm644_vm3, %v546_v10, 0.0 }
  0xa6   : > { %v9570_v16 = vsel %vm9428_vm11, %v4018_v34, 0  ;;  %v3998_v31 = vmax.f32 %v9350_v49, 0.0  ;;  %v661_v40 = vsel %vm647_vm13, %v549_v35, 0.0  ;;  %vm652_vm6 = vcmp.eq.s32.totalorder %v9552_v12, 1  ;;  %v9579_v14 = vpop.permute.xlu1 %636  ;;  %v8709_v35 = vld [vmem:[%s11507_s1 + $0x390] sm:$0xff]   ;;  %v9604_v27 = vpop.permute.xlu0 %633 }
  0xa7   : > { %11560 = vst [vmem:[#allocation5_spill] sm:$0xff] %v9570_v16  ;;  %v2310_v25 = vadd.f32 %v9275_v7, %v2296_v44  ;;  %v2299_v3 = vmul.f32 %v6746_v23, %v9241_v59  ;;  %v9583_v6 = vadd.f32 %v9275_v7, %v519_v20  ;;  %v6718_v49 = vunpack.c.h.bf16 %v9564_v36 }
  0xa8   : > { %7655 = vmatpush3.bf16.msra.mxu0 %v8707_v39  ;;  %v6717_v22 = vunpack.c.l.bf16 %v9564_v36  ;;  %v660_v10 = vsel %vm646_vm10, %v548_v43, 0.0  ;;  %v2337_v59 = vsel %vm651_vm15, %v2323_v28, 0.0  ;;  %v2336_v60 = vsel %vm650_vm0, %v2322_v47, 0.0  ;;  %v9609_v43 = vld [vmem:[%s11508_s2] ss:$0 sm:$0xff]  ;;  %v8717_v36 = vld [vmem:[%s11507_s1 + $0x3b0] sm:$0xff]  }
  0xa9   : > { %v672_v38 = vpack.c.bf16 %v659_v37, %v658_v1  ;;  %7656 = vmatprep.subr.bf16.mxu0 %v11520_v9  ;;  %v673_v44 = vpack.c.bf16 %v661_v40, %v660_v10  ;;  %v4012_v34 = vsel %vm652_vm6, %v3998_v31, 0.0  ;;  %vm655_vm7 = vcmp.eq.s32.totalorder %v9579_v14, 1 }
  0xaa   : > { %v2298_v54 = vmul.f32 %v9609_v43, %v6745_v63  ;;  %v663_v23 = vsel %vm649_vm12, %v551_v48, 0.0  ;;  %v2324_v28 = vmax.f32 %v2310_v25, 0.0  ;;  %v9617_v20 = vadd.f32 %v9275_v7, %v2299_v3  ;;  %v8710_v63 = vld [vmem:[%s11507_s1 + $0x398] sm:$0xff]   ;;  %v9646_v53 = vpop.permute.xlu1 %642 }
  0xab   : > { %v9619_v39 = vpack.c.bf16 %v2337_v59, %v2336_v60  ;;  %v4022_v47 = vpack.c.bf16 %v4013_v33, %v4012_v34  ;;  %v4000_v37 = vmax.f32 %v9359_v56, 0.0  ;;  %v6750_v1 = vunpack.c.h.bf16 %v6790_v51 }
  0xac   : > { %7657 = vmatpush3.bf16.msra.mxu0 %v8709_v35  ;;  %v9631_v48 = vsel %vm9541_vm4, %v672_v38, 0  ;;  %v4015_v11 = vsel %vm655_vm7, %v4001_v55, 0.0  ;;  %vm654_vm10 = vcmp.eq.s32.totalorder %v9604_v27, 1  ;;  %v674_v56 = vpack.c.bf16 %v663_v23, %v662_v32 }
  0xad   : > { %7658 = vmatprep.subr.bf16.mxu0 %v11520_v9  ;;  %v9639_v33 = vsel %vm9541_vm4, %v673_v44, 0  ;;  %v9643_v17 = vsel %vm9428_vm11, %v4022_v47, 0  ;;  %v2312_v29 = vadd.f32 %v9275_v7, %v2298_v54  ;;  %v2339_v31 = vsel %vm653_vm5, %v2325_v21, 0.0  ;;  %v8712_v54 = vld [vmem:[%s11507_s1 + $0x3a0] sm:$0xff]  }
  0xae   : > { %11561 = vst [vmem:[#allocation6_spill] sm:$0xff] %v9639_v33  ;;  %11562 = vst [vmem:[#allocation7_spill] sm:$0xff] %v9643_v17  ;;  %v2338_v40 = vsel %vm652_vm6, %v2324_v28, 0.0  ;;  %v559_v25 = vmax.f32 %v9365_v0, 0.0  ;;  %v6749_v3 = vunpack.c.l.bf16 %v6790_v51  ;;  %v4014_v55 = vsel %vm654_vm10, %v4000_v37, 0.0  ;;  %v8711_v0 = vld [vmem:[%s11507_s1] sm:$0xff]  }
  0xaf   : > { %v3105_v35 = vrot.slane %v9619_v39, 2  ;;  %v729_v10 = vrot.slane %v9631_v48, 5  ;;  %v4003_v7 = vmax.f32 %v9369_v2, 0.0  ;;  %v4023_v59 = vpack.c.bf16 %v4015_v11, %v4014_v55  ;;  %v9671_v2 = vpop.permute.xlu0 %639 }
  0xb0   : > { %7659 = vmatpush3.bf16.msra.mxu0 %v8710_v63  ;;  %v730_v60 = vrot.slane %v9639_v33, 5  ;;  %vm657_vm9 = vcmp.eq.s32.totalorder %v9646_v53, 1  ;;  %v2301_v21 = vmul.f32 %v9609_v43, %v6750_v1  ;;  %v9667_v38 = vsel %vm9541_vm4, %v674_v56, 0 }
  0xb1   : > { %7660 = vmatprep.subr.bf16.mxu0 %v11520_v9  ;;  %11563 = vst [vmem:[#allocation8_spill] sm:$0xff] %v9667_v38  ;;  %v9669_v51 = vpack.c.bf16 %v2339_v31, %v2338_v40  ;;  %v558_v44 = vmax.f32 %v9372_v4, 0.0  ;;  %v4002_v34 = vmax.f32 %v9375_v5, 0.0  ;;  %v9680_v23 = vsel %vm9428_vm11, %v4023_v59, 0 }
  0xb2   : > { %11564 = vst [vmem:[#allocation9_spill] sm:$0xff] %v9680_v23  ;;  %v3106_v28 = vsel %vm1423_vm14, %v3103_v58, %v3105_v35  ;;  %v731_v47 = vsel %vm728_vm8, %v729_v10, %v730_v60  ;;  %v671_v37 = vsel %vm657_vm9, %v559_v25, 0.0  ;;  %v2327_v4 = vmax.f32 %v9617_v20, 0.0 }
  0xb3   : > { %v2326_v5 = vmax.f32 %v2312_v29, 0.0  ;;  %7637 = vmatmul.mubr.bf16.gmra.mrb[4].mxu0 %v3106_v28  ;;  %7165 = vmatmul.mubr.bf16.vlgmr.msra.gmra.mrb[0].mxu1 %v731_v47  ;;  %v4017_v1 = vsel %vm657_vm9, %v4003_v7, 0.0  ;;  %v2300_v63 = vmul.f32 %v9609_v43, %v6749_v3  ;;  %v665_v58 = vsel %vm651_vm15, %v553_v45, 0.0  ;;  %v8716_v28 = vld [vmem:[%s11507_s1 + $0x18] sm:$0xff]  }
  0xb4   : > { %v664_v32 = vsel %vm650_vm0, %v552_v30, 0.0  ;;  %v554_v20 = vmax.f32 %v9583_v6, 0.0  ;;  %vm656_vm12 = vcmp.eq.s32.totalorder %v9671_v2, 1  ;;  %7640 = vmatprep.mubr.msk.bf16.mxu0 %vm8951_vm2, %v11520_v9  ;;  %7168 = vmatprep.mubr.msk.bf16.mxu1 %vm8951_vm2, %v11520_v9  ;;  %v3107_v57 = vrot.slane %v9669_v51, 2  ;;  %v8908_v6 = vld [vmem:[%s11509_s3] ss:$0 sm:$0xff] }
  0xb5   : > { %v670_v45 = vsel %vm656_vm12, %v558_v44, 0.0  ;;  %v4016_v46 = vsel %vm656_vm12, %v4002_v34, 0.0  ;;  %7185 = vmatpush3.bf16.msra.mxu1 %v8711_v0  ;;  %v732_v30 = vrot.slane %v9667_v38, 5  ;;  %7661 = vmatpush3.bf16.msra.mxu0 %v8712_v54  ;;  %v2315_v11 = vadd.f32 %v8908_v6, %v2301_v21  ;;  %v8715_v21 = vld [vmem:[%s11507_s1 + $0x10] sm:$0xff]  }
  0xb6   : > { %v678_v56 = vpack.c.bf16 %v671_v37, %v670_v45  ;;  %v4024_v29 = vpack.c.bf16 %v4017_v1, %v4016_v46  ;;  %7186 = vmatprep.subr.bf16.mxu1 %v11520_v9  ;;  %v675_v31 = vpack.c.bf16 %v665_v58, %v664_v32  ;;  %v2341_v40 = vsel %vm655_vm7, %v2327_v4, 0.0  ;;  %7662 = vmatprep.subr.bf16.mxu0 %v11520_v9  ;;  %v8718_v1 = vld [vmem:[%s11507_s1 + $0x20] sm:$0xff]  }
  0xb7   : > { %v2340_v25 = vsel %vm654_vm10, %v2326_v5, 0.0  ;;  %v2314_v3 = vadd.f32 %v8908_v6, %v2300_v63  ;;  %v522_v55 = vmul.f32 %v9609_v43, %v6718_v49  ;;  %v521_v10 = vmul.f32 %v9609_v43, %v6717_v22 }
  0xb8   : > { %v9735_v7 = vsel %vm9541_vm4, %v678_v56, 0  ;;  %v9739_v59 = vsel %vm9428_vm11, %v4024_v29, 0  ;;  %v9747_v49 = vpack.c.bf16 %v2341_v40, %v2340_v25  ;;  %v3108_v22 = vsel %vm1423_vm14, %v3105_v35, %v3107_v57 }
  0xb9   : > { %11565 = vst [vmem:[#allocation10_spill] sm:$0xff] %v9735_v7  ;;  %7187 = vmatpush3.bf16.msra.mxu1 %v8713_v13  ;;  %7663 = vmatpush3.bf16.msra.mxu0 %v8714_v42  ;;  %v733_v43 = vsel %vm728_vm8, %v730_v60, %v732_v30  ;;  %v9755_v62 = vsel %vm9541_vm4, %v675_v31, 0  ;;  %v2329_v0 = vmax.f32 %v2315_v11, 0.0  ;;  %v2328_v44 = vmax.f32 %v2314_v3, 0.0  ;;  %v8720_v13 = vld [vmem:[%s11507_s1 + $0x28] sm:$0xff]   ;;  %v8722_v11 = vld [vmem:[%s11507_s1 + $0x30] sm:$0xff]  }
  0xba   : > { %7188 = vmatprep.subr.bf16.mxu1 %v11520_v9  ;;  %7664 = vmatprep.subr.bf16.mxu0 %v11520_v9  ;;  %11566 = vst [vmem:[#allocation11_spill] sm:$0xff] %v9755_v62  ;;  %v667_v34 = vsel %vm653_vm5, %v555_v52, 0.0  ;;  %v666_v35 = vsel %vm652_vm6, %v554_v20, 0.0  ;;  %v543_v60 = vadd.f32 %v8908_v6, %v522_v55  ;;  %v542_v54 = vadd.f32 %v8908_v6, %v521_v10 }
  0xbb   : > { %7641 = vmatmul.mubr.bf16.gmra.mrb[8].mxu0 %v3108_v22  ;;  %7169 = vmatmul.mubr.bf16.gmra.mrb[4].mxu1 %v733_v43  ;;  %v3109_v15 = vrot.slane %v9747_v49, 2  ;;  %v734_v12 = vrot.slane %v9755_v62, 5  ;;  %v676_v52 = vpack.c.bf16 %v667_v34, %v666_v35  ;;  %v2343_v47 = vsel %vm657_vm9, %v2329_v0, 0.0 }
  0xbc   : > { %7644 = vmatprep.mubr.msk.bf16.mxu0 %vm8951_vm2, %v11520_v9  ;;  %7172 = vmatprep.mubr.msk.bf16.mxu1 %vm8951_vm2, %v11520_v9  ;;  %v2342_v37 = vsel %vm656_vm12, %v2328_v44, 0.0  ;;  %v557_v4 = vmax.f32 %v543_v60, 0.0  ;;  %v556_v5 = vmax.f32 %v542_v54, 0.0  ;;  %v9791_v53 = vshrl.u32 %v9491_v18, 16 }
  0xbd   : > { %7189 = vmatpush3.bf16.msra.mxu1 %v8715_v21  ;;  %7665 = vmatpush3.bf16.msra.mxu0 %v8717_v36  ;;  %v9784_v63 = vpack.c.bf16 %v2343_v47, %v2342_v37  ;;  %v3110_v58 = vsel %vm1423_vm14, %v3107_v57, %v3109_v15  ;;  %v735_v32 = vsel %vm728_vm8, %v732_v30, %v734_v12  ;;  %v9794_v2 = vshll.u32 %v9491_v18, 16  ;;  %v8724_v21 = vld [vmem:[%s11507_s1 + $0x38] sm:$0xff]  }
  0xbe   : > { %7190 = vmatprep.subr.bf16.mxu1 %v11520_v9  ;;  %7666 = vmatprep.subr.bf16.mxu0 %v11520_v9  ;;  %v9798_v20 = vsel %vm9541_vm4, %v676_v52, 0  ;;  %v669_v42 = vsel %vm655_vm7, %v557_v4, 0.0  ;;  %v668_v45 = vsel %vm654_vm10, %v556_v5, 0.0  ;;  %v9812_v46 = vshrl.u32 %v9493_v24, 16 }
  0xbf   : > { %11567 = vst [vmem:[#allocation12_spill] sm:$0xff] %v9798_v20  ;;  %v9815_v57 = vshll.u32 %v9493_v24, 16  ;;  %v3111_v30 = vrot.slane %v9784_v63, 2  ;;  %v736_v14 = vrot.slane %v9798_v20, 5  ;;  %v677_v27 = vpack.c.bf16 %v669_v42, %v668_v45 }
  0xc0   : > { %11568 = vst [vmem:[#allocation13_spill] sm:$0xff] %v9812_v46  ;;  %vm1588_vm11 = vsmask.f32 5376  ;;  %v11517_v6 = vshrl.u32 %v9631_v48, 16  ;;  %v3266_v56 = vrot.slane %v9812_v46, 2  ;;  %v3269_v25 = vrot.slane %v9791_v53, 2 }
  0xc1   : > { %7191 = vmatpush3.bf16.msra.mxu1 %v8716_v28  ;;  %7667 = vmatpush3.bf16.msra.mxu0 %v8719_v41  ;;  %11569 = vst [vmem:[#allocation14_spill] sm:$0xff] %v9815_v57  ;;  %v3267_v29 = vrot.slane %v9815_v57, 3  ;;  %v3112_v31 = vsel %vm1423_vm14, %v3109_v15, %v3111_v30  ;;  %v737_v40 = vsel %vm728_vm8, %v734_v12, %v736_v14  ;;  %v3270_v3 = vrot.slane %v9794_v2, 3  ;;  %v8721_v41 = vld [vmem:[%s11507_s1 + $0x3c0] sm:$0xff]  }
  0xc2   : > { %7192 = vmatprep.subr.bf16.mxu1 %v11520_v9  ;;  %7688 = vmatprep.subr.bf16.mxu0 %v11520_v9  ;;  %v11516_v55 = vshll.u32 %v9631_v48, 16  ;;  %v9834_v10 = vsel %vm9541_vm4, %v677_v27, 0  ;;  %v9840_v36 = vshrl.u32 %v9667_v38, 16  ;;  %v9843_v22 = vshll.u32 %v9667_v38, 16 }
  0xc3   : > { %7645 = vmatmul.mubr.bf16.gmra.mrb[12].mxu0 %v3110_v58  ;;  %7173 = vmatmul.mubr.bf16.gmra.mrb[8].mxu1 %v735_v32  ;;  %11570 = vst [vmem:[#allocation15_spill] sm:$0xff] %v9834_v10  ;;  %v9846_v43 = vshrl.u32 %v9639_v33, 16  ;;  %v9849_v0 = vshll.u32 %v9639_v33, 16  ;;  %v9856_v26 = vshrl.u32 %v9755_v62, 16  ;;  %v9859_v44 = vshll.u32 %v9755_v62, 16  ;;  %v8723_v32 = vld [vmem:[%s11507_s1 + $0x3c8] sm:$0xff]  }
  0xc4   : > { %7648 = vmatprep.mubr.msk.bf16.mxu0 %vm8951_vm2, %v11520_v9  ;;  %7176 = vmatprep.mubr.msk.bf16.mxu1 %vm8951_vm2, %v11520_v9  ;;  %v9862_v34 = vshrl.u32 %v9619_v39, 16  ;;  %v9865_v35 = vshll.u32 %v9619_v39, 16  ;;  %v870_v60 = vrot.slane %v11517_v6, 4  ;;  %v3268_v54 = vor.u32 %v3267_v29, %v3266_v56 }
  0xc5   : > { %7193 = vmatpush3.bf16.msra.mxu1 %v8718_v1  ;;  %v3271_v28 = vor.u32 %v3270_v3, %v3269_v25  ;;  %v738_v15 = vrot.slane %v9834_v10, 5  ;;  %vm1240_vm13 = vsmask.f32 6400  ;;  %v873_v12 = vrot.slane %v11516_v55, 5 }
  0xc6   : > { %7194 = vmatprep.subr.bf16.mxu1 %v11520_v9  ;;  %v9877_v52 = vshrl.u32 %v9798_v20, 16  ;;  %v9880_v47 = vshll.u32 %v9798_v20, 16  ;;  %v9883_v37 = vshrl.u32 %v9669_v51, 16  ;;  %v9886_v4 = vshll.u32 %v9669_v51, 16 }
  0xc7   : > { %v9889_v5 = vshrl.u32 %v9834_v10, 16  ;;  %vm866_vm15 = vsmask.f32 3328  ;;  %v3272_v1 = vsel %vm1588_vm11, %v3268_v54, %v3271_v28  ;;  %v739_v58 = vsel %vm728_vm8, %v736_v14, %v738_v15 }
  0xc8   : > { %v3274_v42 = vrot.slane %v9865_v35, 3  ;;  %v9900_v45 = vshll.u32 %v9834_v10, 16  ;;  %v878_v30 = vrot.slane %v9846_v43, 4  ;;  %v881_v27 = vrot.slane %v9849_v0, 5  ;;  %v8733_v10 = vld [vmem:[%s11507_s1 + $0x3f0] sm:$0xff]  }
  0xc9   : > { %7195 = vmatpush3.bf16.msra.mxu1 %v8720_v13  ;;  %v3273_v13 = vrot.slane %v9862_v34, 2  ;;  %v1241_v14 = vrot.slane %v9846_v43, 1  ;;  %v1244_v56 = vrot.slane %v9840_v36, 1  ;;  %v874_v29 = vor.u32 %v873_v12, %v870_v60  ;;  %v8725_v60 = vld [vmem:[%s11507_s1 + $0x3d0] sm:$0xff]  }
  0xca   : > { %7196 = vmatprep.subr.bf16.mxu1 %v11520_v9  ;;  %v1245_v25 = vrot.slane %v9843_v22, 2  ;;  %v1248_v54 = vrot.slane %v9856_v26, 1  ;;  %v887_v15 = vrot.slane %v9840_v36, 4  ;;  %v882_v55 = vor.u32 %v881_v27, %v878_v30  ;;  %v8727_v27 = vld [vmem:[%s11507_s1 + $0x80] sm:$0xff]  }
  0xcb   : > { %7649 = vmatmul.mubr.bf16.gmra.mrb[16].mxu0 %v3112_v31  ;;  %7177 = vmatmul.mubr.bf16.gmra.mrb[12].mxu1 %v737_v40  ;;  %v3277_v31 = vrot.slane %v9883_v37, 2  ;;  %v3278_v40 = vrot.slane %v9886_v4, 3  ;;  %v3275_v3 = vor.u32 %v3274_v42, %v3273_v13  ;;  %v1253_v6 = vrot.slane %v9880_v47, 2 }
  0xcc   : > { %7668 = vmatprep.mubr.msk.bf16.mxu0 %vm8951_vm2, %v11520_v9  ;;  %7180 = vmatprep.mubr.msk.bf16.mxu1 %vm8951_vm2, %v11520_v9  ;;  %v1256_v13 = vrot.slane %v9889_v5, 1  ;;  %v890_v42 = vrot.slane %v9843_v22, 5  ;;  %v883_v30 = vsel %vm866_vm15, %v874_v29, %v882_v55  ;;  %v1590_v23 = vrot.slane %v9849_v0, 3 }
  0xcd   : > { %7197 = vmatpush3.bf16.msra.mxu1 %v8722_v11  ;;  %v1242_v11 = vrot.slane %v9849_v0, 2  ;;  %v1593_v17 = vrot.slane %v9843_v22, 3  ;;  %v10018_v61 = vshll.u32 %v9735_v7, 16  ;;  %v1596_v38 = vrot.slane %v9856_v26, 2 }
  0xce   : > { %7198 = vmatprep.subr.bf16.mxu1 %v11520_v9  ;;  %vm1765_vm0 = vsmask.f32 1280  ;;  %v3442_v33 = vrot.slane %v9812_v46, 6  ;;  %v1769_v46 = vrot.slane %v9840_v36, 6  ;;  %vm1063_vm1 = vsmask.f32 2304 }
  0xcf   : > { %vm2107_vm3 = vsmask.f32 256  ;;  %vm1942_vm4 = vcmask 1040384   ;;  %vm5652_vm5 = vcmask 1045508  }
  0xd1   : > { %7199 = vmatpush3.bf16.msra.mxu1 %v8724_v21  ;;  %v1243_v21 = vor.u32 %v1242_v11, %v1241_v14  ;;  %v1257_v11 = vrot.slane %v9900_v45, 2 }
  0xd2   : > { %7220 = vmatprep.subr.bf16.mxu1 %v11520_v9 }
  0xd3   : > { %7669 = vmatmul.mubr.bf16.vlgmr.msra.gmra.mrb[0].mxu0 %v3272_v1  ;;  %7181 = vmatmul.mubr.bf16.gmra.mrb[16].mxu1 %v739_v58  ;;  %v1246_v1 = vor.u32 %v1245_v25, %v1244_v56  ;;  %v1252_v58 = vrot.slane %v9877_v52, 1 }
  0xd4   : > { %7689 = vmatpush3.bf16.msra.mxu0 %v8721_v41  ;;  %7672 = vmatprep.mubr.msk.bf16.mxu0 %vm8951_vm2, %v11520_v9  ;;  %v1249_v41 = vrot.slane %v9859_v44, 2 }
  0xd5   : > { %7690 = vmatprep.subr.bf16.mxu0 %v11520_v9  ;;  %7200 = vmatprep.mubr.msk.bf16.mxu1 %vm8951_vm2, %v11520_v9  ;;  %v9927_v14 = vsel %vm1240_vm13, %v1243_v21, %v1246_v1  ;;  %v1254_v25 = vor.u32 %v1253_v6, %v1252_v58  ;;  %v9940_v21 = vor.u32 %v1257_v11, %v1256_v13  ;;  %v9951_v6 = vshrl.u32 %v9747_v49, 16 }
  0xd6   : > { %v1250_v12 = vor.u32 %v1249_v41, %v1248_v54  ;;  %v11519_v54 = vshrl.u32 %v9570_v16, 16  ;;  %v11518_v41 = vshll.u32 %v9570_v16, 16  ;;  %v891_v13 = vor.u32 %v890_v42, %v887_v15  ;;  %v8732_v16 = vld [vmem:[%s11507_s1 + $0x98] sm:$0xff]  }
  0xd7   : > { %11571 = vst [vmem:[#allocation16_spill] sm:$0xff] %v9940_v21  ;;  %v9961_v58 = vsel %vm1240_vm13, %v1254_v25, %v9940_v21  ;;  %v1604_v21 = vrot.slane %v9889_v5, 2 }
  0xd8   : > { %7691 = vmatpush3.bf16.msra.mxu0 %v8723_v32  ;;  %v3276_v32 = vsel %vm1588_vm11, %v3271_v28, %v3275_v3  ;;  %v9936_v56 = vsel %vm1240_vm13, %v1246_v1, %v1250_v12  ;;  %v8726_v28 = vld [vmem:[%s11507_s1 + $0x3d8] sm:$0xff]   ;;  %v9948_v29 = vsel %vm1240_vm13, %v1250_v12, %v1254_v25  ;;  %v9954_v1 = vshll.u32 %v9747_v49, 16  ;;  %11572 = vst [vmem:[#allocation17_spill] sm:$0xff] %v9961_v58  ;;  %v8729_v12 = vld [vmem:[%s11507_s1 + $0x88] sm:$0xff]   ;;  %v8734_v58 = vld [vmem:[%s11507_s1 + $0xa0] sm:$0xff]  }
  0xd9   : > { %7692 = vmatprep.subr.bf16.mxu0 %v11520_v9  ;;  %v9968_v11 = vrot.slane %v11519_v54, 5  ;;  %v899_v25 = vrot.slane %v9859_v44, 5  ;;  %v9992_v54 = vshrl.u32 %v9784_v63, 16 }
  0xda   : > { %v3282_v15 = vrot.slane %v9954_v1, 3 }
  0xdb   : > { %7673 = vmatmul.mubr.bf16.gmra.mrb[4].mxu0 %v3276_v32  ;;  %7201 = vmatmul.mubr.bf16.vlgmr.msra.gmra.mrb[0].mxu1 %v883_v30  ;;  %v9972_v32 = vrot.slane %v11518_v41, 6  ;;  %v892_v30 = vsel %vm866_vm15, %v882_v55, %v891_v13  ;;  %v9989_v41 = vshll.u32 %v9497_v8, 16  ;;  %11573 = vst [vmem:[#allocation18_spill] sm:$0xff] %v9992_v54  ;;  %v8730_v55 = vld [vmem:[%s11507_s1 + $0x3e8] sm:$0xff]  }
  0xdc   : > { %7693 = vmatpush3.bf16.msra.mxu0 %v8725_v60  ;;  %7676 = vmatprep.mubr.msk.bf16.mxu0 %vm8951_vm2, %v11520_v9  ;;  %v3279_v60 = vor.u32 %v3278_v40, %v3277_v31  ;;  %v8728_v31 = vld [vmem:[%s11507_s1 + $0x3e0] sm:$0xff]   ;;  %v3281_v40 = vrot.slane %v9951_v6, 2 }
  0xdd   : > { %7694 = vmatprep.subr.bf16.mxu0 %v11520_v9  ;;  %7204 = vmatprep.mubr.msk.bf16.mxu1 %vm8951_vm2, %v11520_v9 }
  0xde   : > { %7221 = vmatpush3.bf16.msra.mxu1 %v8727_v27  ;;  %v3280_v42 = vsel %vm1588_vm11, %v3275_v3, %v3279_v60  ;;  %v896_v27 = vrot.slane %v9856_v26, 4  ;;  %v8731_v3 = vld [vmem:[%s11507_s1 + $0x90] sm:$0xff]  }
  0xdf   : > { %7222 = vmatprep.subr.bf16.mxu1 %v11520_v9 }
  0xe0   : > { %7695 = vmatpush3.bf16.msra.mxu0 %v8726_v28  ;;  %v9986_v28 = vshrl.u32 %v9497_v8, 16  ;;  %v10006_v8 = vshll.u32 %v9784_v63, 16  ;;  %v10020_v50 = vor.u32 %v899_v25, %v896_v27  ;;  %v905_v27 = vrot.slane %v9877_v52, 4 }
  0xe1   : > { %7696 = vmatprep.subr.bf16.mxu0 %v11520_v9  ;;  %v10003_v9 = vshrl.u32 %v9735_v7, 16  ;;  %v1597_v7 = vrot.slane %v9859_v44, 3  ;;  %v1600_v25 = vrot.slane %v9877_v52, 2 }
  0xe2   : > { %7223 = vmatpush3.bf16.msra.mxu1 %v8729_v12  ;;  %11574 = vst [vmem:[#allocation19_spill] sm:$0xff] %v10006_v8  ;;  %v1592_v12 = vrot.slane %v9840_v36, 2 }
  0xe3   : > { %7677 = vmatmul.mubr.bf16.gmra.mrb[8].mxu0 %v3280_v42  ;;  %7205 = vmatmul.mubr.bf16.gmra.mrb[4].mxu1 %v892_v30  ;;  %v11575_v42 = vmov 0.0   ;;  %v1589_v30 = vrot.slane %v9846_v43, 2 }
  0xe4   : > { %7697 = vmatpush3.bf16.msra.mxu0 %v8728_v31  ;;  %7680 = vmatprep.mubr.msk.bf16.mxu0 %vm8951_vm2, %v11575_v42  ;;  %v3283_v31 = vor.u32 %v3282_v15, %v3281_v40  ;;  %v1594_v62 = vor.u32 %v1593_v17, %v1592_v12  ;;  %v3285_v40 = vrot.slane %v9992_v54, 2  ;;  %v3286_v15 = vrot.slane %v10006_v8, 3 }
  0xe5   : > { %7208 = vmatprep.mubr.msk.bf16.mxu1 %vm8951_vm2, %v11575_v42  ;;  %7698 = vmatprep.subr.bf16.mxu0 %v11575_v42  ;;  %v1591_v20 = vor.u32 %v1590_v23, %v1589_v30  ;;  %v908_v17 = vrot.slane %v9880_v47, 5  ;;  %v901_v30 = vsel %vm866_vm15, %v891_v13, %v10020_v50  ;;  %v1605_v13 = vrot.slane %v9900_v45, 3 }
  0xe6   : > { %7224 = vmatprep.subr.bf16.mxu1 %v11575_v42  ;;  %v3284_v12 = vsel %vm1588_vm11, %v3279_v60, %v3283_v31 }
  0xe7   : > { %7225 = vmatpush3.bf16.msra.mxu1 %v8731_v3  ;;  %v10039_v23 = vsel %vm1588_vm11, %v1591_v20, %v1594_v62  ;;  %v1598_v3 = vor.u32 %v1597_v7, %v1596_v38  ;;  %v8735_v38 = vld [vmem:[%s11507_s1 + $0x3f8] sm:$0xff]   ;;  %v3443_v7 = vrot.slane %v9815_v57, 7  ;;  %v3445_v57 = vrot.slane %v9791_v53, 6 }
  0xe8   : > { %7699 = vmatpush3.bf16.msra.mxu0 %v8730_v55  ;;  %7226 = vmatprep.subr.bf16.mxu1 %v11575_v42  ;;  %11576 = vst [vmem:[#allocation20_spill] sm:$0xff] %v10039_v23  ;;  %v1601_v55 = vrot.slane %v9880_v47, 3  ;;  %v1609_v23 = vrot.slane %v10018_v61, 3 }
  0xe9   : > { %7700 = vmatprep.subr.bf16.mxu0 %v11575_v42  ;;  %v10055_v20 = vsel %vm1588_vm11, %v1594_v62, %v1598_v3  ;;  %v3446_v62 = vrot.slane %v9794_v2, 7 }
  0xea   : > { %11577 = vst [vmem:[#allocation21_spill] sm:$0xff] %v10055_v20  ;;  %v1602_v60 = vor.u32 %v1601_v55, %v1600_v25  ;;  %v1767_v55 = vrot.slane %v9849_v0, 7 }
  0xeb   : > { %7681 = vmatmul.mubr.bf16.gmra.mrb[12].mxu0 %v3284_v12  ;;  %7209 = vmatmul.mubr.bf16.gmra.mrb[8].mxu1 %v901_v30  ;;  %v3287_v12 = vor.u32 %v3286_v15, %v3285_v40  ;;  %v1608_v30 = vrot.slane %v10003_v9, 2  ;;  %v1766_v15 = vrot.slane %v9846_v43, 6 }
  0xec   : > { %7227 = vmatpush3.bf16.msra.mxu1 %v8732_v16  ;;  %7701 = vmatpush3.bf16.msra.mxu0 %v8733_v10  ;;  %v10067_v25 = vsel %vm1588_vm11, %v1598_v3, %v1602_v60  ;;  %v1606_v16 = vor.u32 %v1605_v13, %v1604_v21  ;;  %v10069_v10 = vor.u32 %v908_v17, %v905_v27  ;;  %v1770_v3 = vrot.slane %v9843_v22, 7  ;;  %v8736_v27 = vld [vmem:[%s11507_s1 + $0xa8] sm:$0xff]  }
  0xed   : > { %7684 = vmatprep.mubr.msk.bf16.mxu0 %vm8951_vm2, %v11575_v42  ;;  %7212 = vmatprep.mubr.msk.bf16.mxu1 %vm8951_vm2, %v11575_v42  ;;  %v1610_v40 = vor.u32 %v1609_v23, %v1608_v30  ;;  %v3288_v21 = vsel %vm1588_vm11, %v3283_v31, %v3287_v12  ;;  %v1768_v23 = vor.u32 %v1767_v55, %v1766_v15  ;;  %v1773_v13 = vrot.slane %v9856_v26, 6 }
  0xee   : > { %7228 = vmatprep.subr.bf16.mxu1 %v11575_v42  ;;  %7702 = vmatprep.subr.bf16.mxu0 %v11575_v42  ;;  %v10076_v20 = vsel %vm1588_vm11, %v1602_v60, %v1606_v16  ;;  %v914_v60 = vrot.slane %v9889_v5, 4  ;;  %v1771_v30 = vor.u32 %v1770_v3, %v1769_v46  ;;  %v1777_v31 = vrot.slane %v9877_v52, 6 }
  0xef   : > { %11578 = vst [vmem:[#allocation22_spill] sm:$0xff] %v10076_v20  ;;  %v10085_v17 = vsel %vm1588_vm11, %v1606_v16, %v1610_v40  ;;  %v917_v12 = vrot.slane %v9900_v45, 5  ;;  %v1778_v16 = vrot.slane %v9880_v47, 7  ;;  %v1781_v40 = vrot.slane %v9889_v5, 6 }
  0xf0   : > { %7229 = vmatpush3.bf16.msra.mxu1 %v8734_v58  ;;  %7703 = vmatpush3.bf16.msra.mxu0 %v8735_v38  ;;  %11579 = vst [vmem:[#allocation23_spill] sm:$0xff] %v10085_v17  ;;  %v1774_v58 = vrot.slane %v9859_v44, 7  ;;  %v910_v38 = vsel %vm866_vm15, %v10020_v50, %v10069_v10  ;;  %v10100_v15 = vsel %vm1765_vm0, %v1768_v23, %v1771_v30  ;;  %v1782_v55 = vrot.slane %v9900_v45, 7  ;;  %v8738_v50 = vld [vmem:[%s11507_s1 + $0xb0] sm:$0xff]  }
  0xf1   : > { %7230 = vmatprep.subr.bf16.mxu1 %v11575_v42  ;;  %7724 = vmatprep.subr.bf16.mxu0 %v11575_v42  ;;  %11580 = vst [vmem:[#allocation24_spill] sm:$0xff] %v10100_v15  ;;  %v3444_v3 = vor.u32 %v3443_v7, %v3442_v33  ;;  %v1779_v17 = vor.u32 %v1778_v16, %v1777_v31  ;;  %v4431_v20 = vrot.slane %v9986_v28, 5  ;;  %v1785_v33 = vrot.slane %v10003_v9, 6 }
  0xf2   : > { %v1775_v46 = vor.u32 %v1774_v58, %v1773_v13  ;;  %v1783_v23 = vor.u32 %v1782_v55, %v1781_v40  ;;  %v1786_v7 = vrot.slane %v10018_v61, 7  ;;  %v3447_v13 = vor.u32 %v3446_v62, %v3445_v57  ;;  %v8740_v57 = vld [vmem:[%s11507_s1 + $0xb8] sm:$0xff]  }
  0xf3   : > { %7685 = vmatmul.mubr.bf16.gmra.mrb[16].mxu0 %v3288_v21  ;;  %7213 = vmatmul.mubr.bf16.gmra.mrb[12].mxu1 %v910_v38  ;;  %v4432_v21 = vrot.slane %v9989_v41, 6  ;;  %v918_v58 = vor.u32 %v917_v12, %v914_v60  ;;  %v11581_v62 = vor.u32 %v9972_v32, %v9968_v11  ;;  %v3450_v60 = vrot.slane %v9865_v35, 7 }
  0xf4   : > { %7231 = vmatpush3.bf16.msra.mxu1 %v8736_v27  ;;  %7704 = vmatprep.mubr.msk.bf16.mxu0 %vm8951_vm2, %v11575_v42  ;;  %v10114_v27 = vsel %vm1765_vm0, %v1771_v30, %v1775_v46  ;;  %v10119_v31 = vsel %vm1765_vm0, %v1775_v46, %v1779_v17  ;;  %v10124_v16 = vsel %vm1765_vm0, %v1779_v17, %v1783_v23  ;;  %v8737_v30 = vld [vmem:[%s11507_s1 + $0x400] sm:$0xff]   ;;  %v3449_v17 = vrot.slane %v9862_v34, 6 }
  0xf5   : > { %7216 = vmatprep.mubr.msk.bf16.mxu1 %vm8951_vm2, %v11575_v42  ;;  %7232 = vmatprep.subr.bf16.mxu1 %v11575_v42  ;;  %v10121_v38 = vor.u32 %v4432_v21, %v4431_v20  ;;  %v1787_v15 = vor.u32 %v1786_v7, %v1785_v33  ;;  %v11582_v40 = vshrl.u32 %v9631_v48, 16  ;;  %v11583_v55 = vshll.u32 %v9631_v48, 16  ;;  %v8739_v21 = vld [vmem:[%s11507_s1 + $0x408] sm:$0xff]   ;;  %v8741_v33 = vld [vmem:[%s11507_s1 + $0x410] sm:$0xff]  }
  0xf6   : > { %v3448_v11 = vsel %vm1765_vm0, %v3444_v3, %v3447_v13  ;;  %v919_v32 = vsel %vm866_vm15, %v10069_v10, %v918_v58  ;;  %v3451_v48 = vor.u32 %v3450_v60, %v3449_v17  ;;  %v3454_v7 = vrot.slane %v9886_v4, 7 }
  0xf7   : > { %v10137_v20 = vsel %vm1063_vm1, %v11581_v62, %v10121_v38  ;;  %v10143_v12 = vsel %vm1765_vm0, %v1783_v23, %v1787_v15  ;;  %v1064_v46 = vrot.slane %v11582_v40, 5  ;;  %v1067_v15 = vrot.slane %v9846_v43, 5 }
  0xf8   : > { %7233 = vmatpush3.bf16.msra.mxu1 %v8738_v50  ;;  %v1065_v50 = vrot.slane %v11583_v55, 6  ;;  %v1068_v23 = vrot.slane %v9849_v0, 6  ;;  %v3453_v0 = vrot.slane %v9883_v37, 6  ;;  %v2109_v58 = vrot.slane %v9840_v36, 7 }
  0xf9   : > { %7234 = vmatprep.subr.bf16.mxu1 %v11575_v42  ;;  %v1071_v62 = vrot.slane %v9840_v36, 5  ;;  %v1072_v17 = vrot.slane %v9843_v22, 6  ;;  %v2112_v60 = vrot.slane %v9856_v26, 7  ;;  %v8742_v36 = vld [vmem:[%s11507_s1 + $0x418] sm:$0xff]  }
  0xfa   : > { %v1066_v10 = vor.u32 %v1065_v50, %v1064_v46  ;;  %v1069_v3 = vor.u32 %v1068_v23, %v1067_v15  ;;  %v2108_v46 = vrot.slane %v9846_v43, 7  ;;  %v2110_v55 = vor.u32 %v2109_v58, %v9843_v22  ;;  %v8745_v23 = vld [vmem:[%s11507_s1 + $0xc8] sm:$0xff]  }
  0xfb   : > { %7705 = vmatmul.mubr.bf16.vlgmr.msra.gmra.mrb[0].mxu0 %v3448_v11  ;;  %7217 = vmatmul.mubr.bf16.gmra.mrb[16].mxu1 %v919_v32  ;;  %v2113_v50 = vor.u32 %v2112_v60, %v9859_v44  ;;  %v2118_v32 = vrot.slane %v9889_v5, 7  ;;  %v1073_v15 = vor.u32 %v1072_v17, %v1071_v62 }
  0xfc   : > { %7725 = vmatpush3.bf16.msra.mxu0 %v8737_v30  ;;  %7235 = vmatpush3.bf16.msra.mxu1 %v8740_v57  ;;  %v3452_v30 = vsel %vm1765_vm0, %v3447_v13, %v3451_v48  ;;  %v8743_v57 = vld [vmem:[%s11507_s1 + $0xc0] sm:$0xff]   ;;  %v1070_v40 = vsel %vm1063_vm1, %v1066_v10, %v1069_v3  ;;  %v2115_v13 = vrot.slane %v9877_v52, 7  ;;  %v10188_v11 = vsel %vm2107_vm3, %v2108_v46, %v2110_v55  ;;  %v8747_v55 = vld [vmem:[%s11507_s1 + $0xd0] sm:$0xff]  }
  0xfd   : > { %7726 = vmatprep.subr.bf16.mxu0 %v11575_v42  ;;  %7708 = vmatprep.mubr.msk.bf16.mxu0 %vm8951_vm2, %v11575_v42  ;;  %v10195_v22 = vsel %vm2107_vm3, %v2109_v58, %v2113_v50  ;;  %v8744_v58 = vld [vmem:[%s11507_s1 + $0x420] sm:$0xff]   ;;  %v1076_v46 = vrot.slane %v9859_v44, 6  ;;  %v8749_v50 = vld [vmem:[%s11507_s1 + $0x430] sm:$0xff]  }
  0xfe   : > { %7236 = vmatprep.mubr.msk.bf16.mxu1 %vm8951_vm2, %v11575_v42  ;;  %7256 = vmatprep.subr.bf16.mxu1 %v11575_v42  ;;  %v2116_v43 = vor.u32 %v2115_v13, %v9880_v47 }
 0x100   : > { %7727 = vmatpush3.bf16.msra.mxu0 %v8739_v21  ;;  %v3455_v21 = vor.u32 %v3454_v7, %v3453_v0  ;;  %v10202_v10 = vsel %vm2107_vm3, %v2112_v60, %v2116_v43  ;;  %v3457_v0 = vrot.slane %v9951_v6, 6  ;;  %v3458_v7 = vrot.slane %v9954_v1, 7 }
 0x101   : > { %7728 = vmatprep.subr.bf16.mxu0 %v11575_v42  ;;  %v1074_v60 = vsel %vm1063_vm1, %v1069_v3, %v1073_v15  ;;  %v8748_v3 = vld [vmem:[%s11507_s1 + $0xd8] sm:$0xff]   ;;  %v11547_v43 = vshll.u32 %v9545_v19, 16 }
 0x102   : > { %v3456_v17 = vsel %vm1765_vm0, %v3451_v48, %v3455_v21  ;;  %v8746_v48 = vld [vmem:[%s11507_s1 + $0x428] sm:$0xff]  }
 0x103   : > { %7709 = vmatmul.mubr.bf16.gmra.mrb[4].mxu0 %v3452_v30  ;;  %7237 = vmatmul.mubr.bf16.vlgmr.msra.gmra.mrb[0].mxu1 %v1070_v40  ;;  %v2121_v30 = vrot.slane %v10003_v9, 7  ;;  %v1075_v40 = vrot.slane %v9856_v26, 5  ;;  %v3459_v26 = vor.u32 %v3458_v7, %v3457_v0  ;;  %v1079_v7 = vrot.slane %v9877_v52, 5 }
 0x104   : > { %7729 = vmatpush3.bf16.msra.mxu0 %v8741_v33  ;;  %7712 = vmatprep.mubr.msk.bf16.mxu0 %vm8951_vm2, %v11575_v42  ;;  %v2119_v33 = vor.u32 %v2118_v32, %v9900_v45  ;;  %v10270_v52 = vrot.slane %v11547_v43, 6 }
 0x105   : > { %7730 = vmatprep.subr.bf16.mxu0 %v11575_v42  ;;  %7240 = vmatprep.mubr.msk.bf16.mxu1 %vm8951_vm2, %v11575_v42  ;;  %v2122_v62 = vor.u32 %v2121_v30, %v10018_v61  ;;  %v1077_v44 = vor.u32 %v1076_v46, %v1075_v40  ;;  %v3462_v30 = vrot.slane %v10006_v8, 7 }
 0x106   : > { %7257 = vmatpush3.bf16.msra.mxu1 %v8743_v57  ;;  %v10214_v57 = vsel %vm2107_vm3, %v2115_v13, %v2119_v33  ;;  %v3461_v33 = vrot.slane %v9992_v54, 6 }
 0x107   : > { %7258 = vmatprep.subr.bf16.mxu1 %v11575_v42  ;;  %v10225_v13 = vsel %vm2107_vm3, %v2118_v32, %v2122_v62  ;;  %v10245_v32 = vshrl.u32 %v9739_v59, 16  ;;  %v1078_v0 = vsel %vm1063_vm1, %v1073_v15, %v1077_v44  ;;  %v1080_v62 = vrot.slane %v9880_v47, 6 }
 0x108   : > { %7731 = vmatpush3.bf16.msra.mxu0 %v8742_v36  ;;  %v11548_v36 = vshrl.u32 %v9545_v19, 16  ;;  %v3463_v40 = vor.u32 %v3462_v30, %v3461_v33  ;;  %v1083_v30 = vrot.slane %v9889_v5, 5  ;;  %v3619_v5 = vrot.slane %v9491_v18, 7 }
 0x109   : > { %7732 = vmatprep.subr.bf16.mxu0 %v11575_v42  ;;  %v4969_v47 = vrot.slane %v10245_v32, 2  ;;  %v1081_v46 = vor.u32 %v1080_v62, %v1079_v7  ;;  %v8753_v62 = vld [vmem:[%s11507_s1 + $0x440] sm:$0xff]  }
 0x10a   : > { %7259 = vmatpush3.bf16.msra.mxu1 %v8745_v23  ;;  %v10248_v23 = vshll.u32 %v9739_v59, 16 }
 0x10b   : > { %7713 = vmatmul.mubr.bf16.gmra.mrb[8].mxu0 %v3456_v17  ;;  %7241 = vmatmul.mubr.bf16.gmra.mrb[4].mxu1 %v1074_v60  ;;  %v8750_v17 = vld [vmem:[%s11507_s1 + $0xe0] sm:$0xff]   ;;  %v8751_v60 = vld [vmem:[%s11507_s1 + $0x438] sm:$0xff]   ;;  %v1082_v33 = vsel %vm1063_vm1, %v1077_v44, %v1081_v46  ;;  %v5145_v44 = vrot.slane %v10245_v32, 6 }
 0x10c   : > { %7733 = vmatpush3.bf16.msra.mxu0 %v8744_v58  ;;  %7716 = vmatprep.mubr.msk.bf16.mxu0 %vm8951_vm2, %v11575_v42  ;;  %v3460_v58 = vsel %vm1765_vm0, %v3455_v21, %v3459_v26  ;;  %v10266_v21 = vrot.slane %v11548_v36, 5  ;;  %v4970_v15 = vrot.slane %v10248_v23, 3  ;;  %v5146_v7 = vrot.slane %v10248_v23, 7  ;;  %v8792_v36 = vld [vmem:[%s11507_s1 + $0x4e0] sm:$0xff]  }
 0x10d   : > { %7244 = vmatprep.mubr.msk.bf16.mxu1 %vm8951_vm2, %v11575_v42  ;;  %7734 = vmatprep.subr.bf16.mxu0 %v11575_v42 }
 0x10e   : > { %7260 = vmatprep.subr.bf16.mxu1 %v11575_v42 }
 0x10f   : > { %7261 = vmatpush3.bf16.msra.mxu1 %v8747_v55  ;;  %v10280_v55 = vor.u32 %v4970_v15, %v4969_v47 }
 0x110   : > { %7735 = vmatpush3.bf16.msra.mxu0 %v8746_v48  ;;  %7262 = vmatprep.subr.bf16.mxu1 %v11575_v42  ;;  %v8752_v48 = vld [vmem:[%s11507_s1 + $0xe8] sm:$0xff]  }
 0x111   : > { %7736 = vmatprep.subr.bf16.mxu0 %v11575_v42 }
 0x113   : > { %7717 = vmatmul.mubr.bf16.gmra.mrb[12].mxu0 %v3460_v58  ;;  %7245 = vmatmul.mubr.bf16.gmra.mrb[8].mxu1 %v1078_v0  ;;  %v1084_v58 = vrot.slane %v9900_v45, 6  ;;  %v8754_v0 = vld [vmem:[%s11507_s1 + $0xf0] sm:$0xff]  }
 0x114   : > { %7263 = vmatpush3.bf16.msra.mxu1 %v8748_v3  ;;  %7737 = vmatpush3.bf16.msra.mxu0 %v8749_v50  ;;  %v3464_v50 = vsel %vm1765_vm0, %v3459_v26, %v3463_v40  ;;  %v3618_v26 = vrot.slane %v9493_v24, 7  ;;  %v8755_v40 = vld [vmem:[%s11507_s1 + $0x448] sm:$0xff]  }
 0x115   : > { %7720 = vmatprep.mubr.msk.bf16.mxu0 %vm8951_vm2, %v11575_v42  ;;  %7248 = vmatprep.mubr.msk.bf16.mxu1 %vm8951_vm2, %v11575_v42  ;;  %v1085_v45 = vor.u32 %v1084_v58, %v1083_v30  ;;  %v8758_v30 = vld [vmem:[%s11507_s1 + $0x458] sm:$0xff]   ;;  %v5479_v58 = vrot.slane %v10245_v32, 7 }
 0x116   : > { %7264 = vmatprep.subr.bf16.mxu1 %v11575_v42  ;;  %7738 = vmatprep.subr.bf16.mxu0 %v11575_v42  ;;  %v3620_v47 = vsel %vm1942_vm4, %v3618_v26, %v3619_v5 }
 0x117   : > { %v1086_v15 = vsel %vm1063_vm1, %v1081_v46, %v1085_v45  ;;  %v8757_v46 = vld [vmem:[%s11507_s1 + $0x450] sm:$0xff]   ;;  %v10349_v26 = vor.u32 %v5479_v58, %v10248_v23 }
 0x118   : > { %7265 = vmatpush3.bf16.msra.mxu1 %v8750_v17  ;;  %7739 = vmatpush3.bf16.msra.mxu0 %v8751_v60  ;;  %v8756_v17 = vld [vmem:[%s11507_s1 + $0xf8] sm:$0xff]   ;;  %v10312_v60 = vor.u32 %v5146_v7, %v5145_v44  ;;  %v8763_v44 = vld [vmem:[%s11507_s1 + $0x110] sm:$0xff]   ;;  %v8762_v7 = vld [vmem:[%s11507_s1 + $0x468] sm:$0xff]  }
 0x119   : > { %7266 = vmatprep.subr.bf16.mxu1 %v11575_v42  ;;  %7760 = vmatprep.subr.bf16.mxu0 %v11575_v42  ;;  %11585 = vst [vmem:[#allocation26_spill] sm:$0xff] %v10349_v26  ;;  %v8770_v58 = vld [vmem:[%s11507_s1 + $0x130] sm:$0xff]  }
 0x11a   : > { %11584 = vst [vmem:[#allocation25_spill] sm:$0xff] %v10312_v60 }
 0x11b   : > { %7721 = vmatmul.mubr.bf16.gmra.mrb[16].mxu0 %v3464_v50  ;;  %7249 = vmatmul.mubr.bf16.gmra.mrb[12].mxu1 %v1082_v33  ;;  %v8759_v33 = vld [vmem:[%s11507_s1 + $0x100] sm:$0xff]  }
 0x11c   : > { %7267 = vmatpush3.bf16.msra.mxu1 %v8752_v48  ;;  %7740 = vmatprep.mubr.msk.bf16.mxu0 %vm8951_vm2, %v11575_v42  ;;  %v3621_v48 = vrot.slane %v9619_v39, 7 }
 0x11d   : > { %7252 = vmatprep.mubr.msk.bf16.mxu1 %vm8951_vm2, %v11575_v42  ;;  %7268 = vmatprep.subr.bf16.mxu1 %v11575_v42 }
 0x11e   : > { %v3622_v50 = vsel %vm1942_vm4, %v3619_v5, %v3621_v48  ;;  %v8760_v5 = vld [vmem:[%s11507_s1 + $0x460] sm:$0xff]  }
 0x120   : > { %7269 = vmatpush3.bf16.msra.mxu1 %v8754_v0  ;;  %v3623_v0 = vrot.slane %v9669_v51, 7 }
 0x121   : > { %7270 = vmatprep.subr.bf16.mxu1 %v11575_v42 }
 0x122   : > { %v3624_v45 = vsel %vm1942_vm4, %v3621_v48, %v3623_v0  ;;  %v3627_v48 = vrot.slane %v9784_v63, 7  ;;  %v1263_v63 = vrot.slane %v10003_v9, 1 }
 0x123   : > { %7741 = vmatmul.mubr.bf16.vlgmr.msra.gmra.mrb[0].mxu0 %v3620_v47  ;;  %7253 = vmatmul.mubr.bf16.gmra.mrb[16].mxu1 %v1086_v15  ;;  %v8766_v15 = vld [vmem:[%s11507_s1 + $0x120] sm:$0xff]  }
 0x124   : > { %7761 = vmatpush3.bf16.msra.mxu0 %v8753_v62  ;;  %7271 = vmatpush3.bf16.msra.mxu1 %v8756_v17  ;;  %v3625_v62 = vrot.slane %v9747_v49, 7  ;;  %v8765_v17 = vld [vmem:[%s11507_s1 + $0x470] sm:$0xff]  }
 0x125   : > { %7762 = vmatprep.subr.bf16.mxu0 %v11575_v42  ;;  %7744 = vmatprep.mubr.msk.bf16.mxu0 %vm8951_vm2, %v11575_v42 }
 0x126   : > { %7272 = vmatprep.mubr.msk.bf16.mxu1 %vm8951_vm2, %v11575_v42  ;;  %7292 = vmatprep.subr.bf16.mxu1 %v11575_v42  ;;  %v3626_v47 = vsel %vm1942_vm4, %v3623_v0, %v3625_v62 }
 0x128   : > { %7763 = vmatpush3.bf16.msra.mxu0 %v8755_v40  ;;  %v8767_v40 = vld [vmem:[%s11507_s1 + $0x478] sm:$0xff]  }
 0x129   : > { %7764 = vmatprep.subr.bf16.mxu0 %v11575_v42 }
 0x12b   : > { %7745 = vmatmul.mubr.bf16.gmra.mrb[4].mxu0 %v3622_v50  ;;  %7273 = vmatmul.mubr.bf16.vlgmr.msra.gmra.mrb[0].mxu1 %v9927_v14  ;;  %v8761_v14 = vld [vmem:[%s11507_s1 + $0x108] sm:$0xff]   ;;  %v3783_v50 = vrot.slane %v9791_v53, 7 }
 0x12c   : > { %7765 = vmatpush3.bf16.msra.mxu0 %v8757_v46  ;;  %7748 = vmatprep.mubr.msk.bf16.mxu0 %vm8951_vm2, %v11575_v42  ;;  %v3628_v46 = vsel %vm1942_vm4, %v3625_v62, %v3627_v48  ;;  %v11590_v48 = vld [vmem:[#allocation8_spill] sm:$0xff] }
 0x12d   : > { %7766 = vmatprep.subr.bf16.mxu0 %v11575_v42  ;;  %7276 = vmatprep.mubr.msk.bf16.mxu1 %vm8951_vm2, %v11575_v42  ;;  %v3784_v9 = vor.u32 %v3783_v50, %v9794_v2 }
 0x12e   : > { %7293 = vmatpush3.bf16.msra.mxu1 %v8759_v33  ;;  %v1266_v33 = vrot.slane %v10018_v61, 2  ;;  %v11587_v61 = vld [vmem:[#allocation13_spill] sm:$0xff] }
 0x12f   : > { %7294 = vmatprep.subr.bf16.mxu1 %v11575_v42 }
 0x130   : > { %7767 = vmatpush3.bf16.msra.mxu0 %v8758_v30  ;;  %v11586_v30 = vld [vmem:[#allocation17_spill] sm:$0xff]  ;;  %v1267_v0 = vor.u32 %v1266_v33, %v1263_v63 }
 0x131   : > { %7768 = vmatprep.subr.bf16.mxu0 %v11575_v42 }
 0x132   : > { %7295 = vmatpush3.bf16.msra.mxu1 %v8761_v14  ;;  %v3782_v14 = vrot.slane %v11587_v61, 7 }
 0x133   : > { %7749 = vmatmul.mubr.bf16.gmra.mrb[8].mxu0 %v3624_v45  ;;  %7277 = vmatmul.mubr.bf16.gmra.mrb[4].mxu1 %v9936_v56  ;;  %v8764_v56 = vld [vmem:[%s11507_s1 + $0x118] sm:$0xff]  }
 0x134   : > { %7769 = vmatpush3.bf16.msra.mxu0 %v8760_v5  ;;  %7752 = vmatprep.mubr.msk.bf16.mxu0 %vm8951_vm2, %v11575_v42  ;;  %v8769_v5 = vld [vmem:[%s11507_s1 + $0x480] sm:$0xff]   ;;  %v8772_v45 = vld [vmem:[%s11507_s1 + $0x138] sm:$0xff]  }
 0x135   : > { %7280 = vmatprep.mubr.msk.bf16.mxu1 %vm8951_vm2, %v11575_v42  ;;  %7770 = vmatprep.subr.bf16.mxu0 %v11575_v42 }
 0x136   : > { %7296 = vmatprep.subr.bf16.mxu1 %v11575_v42 }
 0x137   : > { %7297 = vmatpush3.bf16.msra.mxu1 %v8763_v44  ;;  %v3785_v44 = vsel %vm2107_vm3, %v3782_v14, %v3784_v9  ;;  %v8774_v9 = vld [vmem:[%s11507_s1 + $0x498] sm:$0xff]  }
 0x138   : > { %7771 = vmatpush3.bf16.msra.mxu0 %v8762_v7  ;;  %7298 = vmatprep.subr.bf16.mxu1 %v11575_v42  ;;  %v11588_v7 = vld [vmem:[#allocation16_spill] sm:$0xff] }
 0x139   : > { %7772 = vmatprep.subr.bf16.mxu0 %v11575_v42  ;;  %v1268_v62 = vsel %vm1240_vm13, %v11588_v7, %v1267_v0  ;;  %v11591_v0 = vld [vmem:[#allocation11_spill] sm:$0xff] }
 0x13a   : > { %v1427_v14 = vrot.slane %v11591_v0, 2 }
 0x13b   : > { %7753 = vmatmul.mubr.bf16.gmra.mrb[12].mxu0 %v3626_v47  ;;  %7281 = vmatmul.mubr.bf16.gmra.mrb[8].mxu1 %v9948_v29  ;;  %v8768_v29 = vld [vmem:[%s11507_s1 + $0x128] sm:$0xff]  }
 0x13c   : > { %7299 = vmatpush3.bf16.msra.mxu1 %v8764_v56  ;;  %7773 = vmatpush3.bf16.msra.mxu0 %v8765_v17  ;;  %v3786_v56 = vrot.slane %v9862_v34, 7  ;;  %v8771_v17 = vld [vmem:[%s11507_s1 + $0x488] sm:$0xff]  }
 0x13d   : > { %7756 = vmatprep.mubr.msk.bf16.mxu0 %vm8951_vm2, %v11575_v42  ;;  %7284 = vmatprep.mubr.msk.bf16.mxu1 %vm8951_vm2, %v11575_v42 }
 0x13e   : > { %7300 = vmatprep.subr.bf16.mxu1 %v11575_v42  ;;  %7774 = vmatprep.subr.bf16.mxu0 %v11575_v42  ;;  %v3787_v47 = vor.u32 %v3786_v56, %v9865_v35 }
 0x140   : > { %7301 = vmatpush3.bf16.msra.mxu1 %v8766_v15  ;;  %7775 = vmatpush3.bf16.msra.mxu0 %v8767_v40  ;;  %v11589_v15 = vld [vmem:[#allocation6_spill] sm:$0xff]  ;;  %v3788_v63 = vsel %vm2107_vm3, %v3783_v50, %v3787_v47  ;;  %v8778_v47 = vld [vmem:[%s11507_s1 + $0x4a8] sm:$0xff]  }
 0x141   : > { %7302 = vmatprep.subr.bf16.mxu1 %v11575_v42  ;;  %7796 = vmatprep.subr.bf16.mxu0 %v11575_v42  ;;  %v1424_v40 = vrot.slane %v11589_v15, 2 }
 0x143   : > { %7757 = vmatmul.mubr.bf16.gmra.mrb[16].mxu0 %v3628_v46  ;;  %7285 = vmatmul.mubr.bf16.gmra.mrb[12].mxu1 %v11586_v30  ;;  %v8773_v46 = vld [vmem:[%s11507_s1 + $0x490] sm:$0xff]   ;;  %v8775_v30 = vld [vmem:[%s11507_s1 + $0x140] sm:$0xff]  }
 0x144   : > { %7303 = vmatpush3.bf16.msra.mxu1 %v8768_v29  ;;  %7776 = vmatprep.mubr.msk.bf16.mxu0 %vm8951_vm2, %v11575_v42  ;;  %v1425_v29 = vrot.slane %v11590_v48, 2 }
 0x145   : > { %7288 = vmatprep.mubr.msk.bf16.mxu1 %vm8951_vm2, %v11575_v42  ;;  %7304 = vmatprep.subr.bf16.mxu1 %v11575_v42 }
 0x146   : > { %v1426_v33 = vsel %vm1423_vm14, %v1424_v40, %v1425_v29  ;;  %v1428_v7 = vsel %vm1423_vm14, %v1425_v29, %v1427_v14  ;;  %v11592_v40 = vld [vmem:[#allocation12_spill] sm:$0xff] }
 0x147   : > { %v1429_v29 = vrot.slane %v11592_v40, 2 }
 0x148   : > { %7305 = vmatpush3.bf16.msra.mxu1 %v8770_v58  ;;  %v3789_v58 = vrot.slane %v9883_v37, 7 }
 0x149   : > { %7306 = vmatprep.subr.bf16.mxu1 %v11575_v42 }
 0x14a   : > { %v3790_v50 = vor.u32 %v3789_v58, %v9886_v4 }
 0x14b   : > { %7777 = vmatmul.mubr.bf16.vlgmr.msra.gmra.mrb[0].mxu0 %v3785_v44  ;;  %7289 = vmatmul.mubr.bf16.gmra.mrb[16].mxu1 %v1268_v62  ;;  %v3792_v62 = vrot.slane %v9951_v6, 7 }
 0x14c   : > { %7797 = vmatpush3.bf16.msra.mxu0 %v8769_v5  ;;  %7307 = vmatpush3.bf16.msra.mxu1 %v8772_v45  ;;  %v8777_v5 = vld [vmem:[%s11507_s1 + $0x148] sm:$0xff]   ;;  %v8776_v45 = vld [vmem:[%s11507_s1 + $0x4a0] sm:$0xff]   ;;  %v3791_v44 = vsel %vm2107_vm3, %v3786_v56, %v3790_v50 }
 0x14d   : > { %7798 = vmatprep.subr.bf16.mxu0 %v11575_v42  ;;  %7780 = vmatprep.mubr.msk.bf16.mxu0 %vm8951_vm2, %v11575_v42  ;;  %v3793_v56 = vor.u32 %v3792_v62, %v9954_v1  ;;  %v8782_v50 = vld [vmem:[%s11507_s1 + $0x160] sm:$0xff]  }
 0x14e   : > { %7308 = vmatprep.mubr.msk.bf16.mxu1 %vm8951_vm2, %v11575_v42  ;;  %7328 = vmatprep.subr.bf16.mxu1 %v11575_v42 }
 0x150   : > { %7799 = vmatpush3.bf16.msra.mxu0 %v8771_v17  ;;  %v8779_v17 = vld [vmem:[%s11507_s1 + $0x150] sm:$0xff]  }
 0x151   : > { %7800 = vmatprep.subr.bf16.mxu0 %v11575_v42 }
 0x153   : > { %7781 = vmatmul.mubr.bf16.gmra.mrb[4].mxu0 %v3788_v63  ;;  %7309 = vmatmul.mubr.bf16.vlgmr.msra.gmra.mrb[0].mxu1 %v1426_v33  ;;  %v8781_v63 = vld [vmem:[%s11507_s1 + $0x4b0] sm:$0xff]   ;;  %v3794_v33 = vsel %vm2107_vm3, %v3789_v58, %v3793_v56 }
 0x154   : > { %7801 = vmatpush3.bf16.msra.mxu0 %v8773_v46  ;;  %7784 = vmatprep.mubr.msk.bf16.mxu0 %vm8951_vm2, %v11575_v42  ;;  %v8780_v46 = vld [vmem:[%s11507_s1 + $0x158] sm:$0xff]  }
 0x155   : > { %7802 = vmatprep.subr.bf16.mxu0 %v11575_v42  ;;  %7312 = vmatprep.mubr.msk.bf16.mxu1 %vm8951_vm2, %v11575_v42 }
 0x156   : > { %7329 = vmatpush3.bf16.msra.mxu1 %v8775_v30  ;;  %v1430_v30 = vsel %vm1423_vm14, %v1427_v14, %v1429_v29  ;;  %v11593_v14 = vld [vmem:[#allocation15_spill] sm:$0xff] }
 0x157   : > { %7330 = vmatprep.subr.bf16.mxu1 %v11575_v42 }
 0x158   : > { %7803 = vmatpush3.bf16.msra.mxu0 %v8774_v9  ;;  %v3795_v9 = vrot.slane %v9992_v54, 7  ;;  %v8797_v54 = vld [vmem:[%s11507_s1 + $0x4f0] sm:$0xff]  }
 0x159   : > { %7804 = vmatprep.subr.bf16.mxu0 %v11575_v42 }
 0x15a   : > { %7331 = vmatpush3.bf16.msra.mxu1 %v8777_v5  ;;  %v8783_v5 = vld [vmem:[%s11507_s1 + $0x4b8] sm:$0xff]   ;;  %v3796_v58 = vor.u32 %v3795_v9, %v10006_v8  ;;  %v4066_v9 = vrot.slane %v9989_v41, 5 }
 0x15b   : > { %7785 = vmatmul.mubr.bf16.gmra.mrb[8].mxu0 %v3791_v44  ;;  %7313 = vmatmul.mubr.bf16.gmra.mrb[4].mxu1 %v1428_v7  ;;  %v8784_v44 = vld [vmem:[%s11507_s1 + $0x168] sm:$0xff]   ;;  %v11594_v7 = vld [vmem:[#allocation5_spill] sm:$0xff] }
 0x15c   : > { %7805 = vmatpush3.bf16.msra.mxu0 %v8776_v45  ;;  %7788 = vmatprep.mubr.msk.bf16.mxu0 %vm8951_vm2, %v11575_v42  ;;  %v1431_v45 = vrot.slane %v11593_v14, 2  ;;  %v11596_v56 = vshll.u32 %v11594_v7, 16 }
 0x15d   : > { %7316 = vmatprep.mubr.msk.bf16.mxu1 %vm8951_vm2, %v11575_v42  ;;  %7806 = vmatprep.subr.bf16.mxu0 %v11575_v42 }
 0x15e   : > { %7332 = vmatprep.subr.bf16.mxu1 %v11575_v42 }
 0x15f   : > { %7333 = vmatpush3.bf16.msra.mxu1 %v8779_v17  ;;  %v11595_v17 = vshrl.u32 %v11594_v7, 16 }
 0x160   : > { %7807 = vmatpush3.bf16.msra.mxu0 %v8778_v47  ;;  %7334 = vmatprep.subr.bf16.mxu1 %v11575_v42 }
 0x161   : > { %7808 = vmatprep.subr.bf16.mxu0 %v11575_v42  ;;  %v4055_v47 = vrot.slane %v11595_v17, 4 }
 0x163   : > { %7789 = vmatmul.mubr.bf16.gmra.mrb[12].mxu0 %v3794_v33  ;;  %7317 = vmatmul.mubr.bf16.gmra.mrb[8].mxu1 %v1430_v30  ;;  %v1432_v33 = vsel %vm1423_vm14, %v1429_v29, %v1431_v45  ;;  %v4063_v30 = vrot.slane %v9986_v28, 4 }
 0x164   : > { %7335 = vmatpush3.bf16.msra.mxu1 %v8780_v46  ;;  %7809 = vmatpush3.bf16.msra.mxu0 %v8781_v63  ;;  %v4058_v46 = vrot.slane %v11596_v56, 5  ;;  %v3797_v63 = vsel %vm2107_vm3, %v3792_v62, %v3796_v58  ;;  %v11597_v62 = vld [vmem:[#allocation2_spill] sm:$0xff] }
 0x165   : > { %7792 = vmatprep.mubr.msk.bf16.mxu0 %vm8951_vm2, %v11575_v42  ;;  %7320 = vmatprep.mubr.msk.bf16.mxu1 %vm8951_vm2, %v11575_v42  ;;  %v10529_v29 = vshrl.u32 %v11597_v62, 16  ;;  %v4067_v56 = vor.u32 %v4066_v9, %v4063_v30  ;;  %v8787_v30 = vld [vmem:[%s11507_s1 + $0x4c8] sm:$0xff]   ;;  %v11599_v9 = vld [vmem:[#allocation4_spill] sm:$0xff] }
 0x166   : > { %7336 = vmatprep.subr.bf16.mxu1 %v11575_v42  ;;  %7810 = vmatprep.subr.bf16.mxu0 %v11575_v42  ;;  %v4059_v58 = vor.u32 %v4058_v46, %v4055_v47 }
 0x167   : > { %v4072_v47 = vrot.slane %v10529_v29, 4 }
 0x168   : > { %7337 = vmatpush3.bf16.msra.mxu1 %v8782_v50  ;;  %7811 = vmatpush3.bf16.msra.mxu0 %v8783_v5  ;;  %v8786_v50 = vld [vmem:[%s11507_s1 + $0x170] sm:$0xff]   ;;  %v10532_v5 = vshll.u32 %v11597_v62, 16  ;;  %v4068_v3 = vsel %vm866_vm15, %v4059_v58, %v4067_v56 }
 0x169   : > { %7338 = vmatprep.subr.bf16.mxu1 %v11575_v42  ;;  %7832 = vmatprep.subr.bf16.mxu0 %v11575_v42 }
 0x16a   : > { %v4075_v46 = vrot.slane %v10532_v5, 5 }
 0x16b   : > { %7793 = vmatmul.mubr.bf16.gmra.mrb[16].mxu0 %v3797_v63  ;;  %7321 = vmatmul.mubr.bf16.gmra.mrb[12].mxu1 %v1432_v33  ;;  %v8785_v63 = vld [vmem:[%s11507_s1 + $0x4c0] sm:$0xff]   ;;  %v8788_v33 = vld [vmem:[%s11507_s1 + $0x178] sm:$0xff]  }
 0x16c   : > { %7339 = vmatpush3.bf16.msra.mxu1 %v8784_v44  ;;  %7812 = vmatprep.mubr.msk.bf16.mxu0 %vm8951_vm2, %v11575_v42  ;;  %v11598_v44 = vld [vmem:[#allocation10_spill] sm:$0xff] }
 0x16d   : > { %7324 = vmatprep.mubr.msk.bf16.mxu1 %vm8951_vm2, %v11575_v42  ;;  %7340 = vmatprep.subr.bf16.mxu1 %v11575_v42  ;;  %v1433_v17 = vrot.slane %v11598_v44, 2 }
 0x16f   : > { %v1434_v43 = vsel %vm1423_vm14, %v1431_v45, %v1433_v17  ;;  %v10556_v45 = vshll.u32 %v11599_v9, 16  ;;  %v8791_v17 = vld [vmem:[%s11507_s1 + $0x180] sm:$0xff]  }
 0x170   : > { %7341 = vmatpush3.bf16.msra.mxu1 %v8786_v50  ;;  %v10553_v50 = vshrl.u32 %v11599_v9, 16 }
 0x171   : > { %7342 = vmatprep.subr.bf16.mxu1 %v11575_v42 }
 0x173   : > { %7813 = vmatmul.mubr.bf16.vlgmr.msra.gmra.mrb[0].mxu0 %v4068_v3  ;;  %7325 = vmatmul.mubr.bf16.gmra.mrb[16].mxu1 %v1434_v43  ;;  %v4076_v43 = vor.u32 %v4075_v46, %v4072_v47  ;;  %v8789_v3 = vld [vmem:[%s11507_s1 + $0x4d0] sm:$0xff]   ;;  %v8790_v46 = vld [vmem:[%s11507_s1 + $0x4d8] sm:$0xff]  }
 0x174   : > { %7833 = vmatpush3.bf16.msra.mxu0 %v8785_v63  ;;  %7343 = vmatpush3.bf16.msra.mxu1 %v8788_v33  ;;  %v4081_v63 = vrot.slane %v10553_v50, 4  ;;  %v4084_v33 = vrot.slane %v10556_v45, 5  ;;  %v11600_v47 = vld [vmem:[#allocation20_spill] sm:$0xff] }
 0x175   : > { %7834 = vmatprep.subr.bf16.mxu0 %v11575_v42  ;;  %7816 = vmatprep.mubr.msk.bf16.mxu0 %vm8951_vm2, %v11575_v42  ;;  %v4077_v58 = vsel %vm866_vm15, %v4067_v56, %v4076_v43  ;;  %v11601_v56 = vld [vmem:[#allocation7_spill] sm:$0xff] }
 0x176   : > { %7344 = vmatprep.mubr.msk.bf16.mxu1 %vm8951_vm2, %v11575_v42  ;;  %7364 = vmatprep.subr.bf16.mxu1 %v11575_v42 }
 0x178   : > { %7835 = vmatpush3.bf16.msra.mxu0 %v8787_v30  ;;  %v10581_v30 = vshrl.u32 %v11601_v56, 16 }
 0x179   : > { %7836 = vmatprep.subr.bf16.mxu0 %v11575_v42 }
 0x17a   : > { %v4090_v8 = vrot.slane %v10581_v30, 4 }
 0x17b   : > { %7817 = vmatmul.mubr.bf16.gmra.mrb[4].mxu0 %v4077_v58  ;;  %7345 = vmatmul.mubr.bf16.vlgmr.msra.gmra.mrb[0].mxu1 %v11600_v47  ;;  %v10584_v58 = vshll.u32 %v11601_v56, 16  ;;  %v8793_v47 = vld [vmem:[%s11507_s1 + $0x188] sm:$0xff]  }
 0x17c   : > { %7837 = vmatpush3.bf16.msra.mxu0 %v8789_v3  ;;  %7820 = vmatprep.mubr.msk.bf16.mxu0 %vm8951_vm2, %v11575_v42  ;;  %v4085_v3 = vor.u32 %v4084_v33, %v4081_v63  ;;  %v11602_v63 = vld [vmem:[#allocation21_spill] sm:$0xff]  ;;  %v8795_v33 = vld [vmem:[%s11507_s1 + $0x190] sm:$0xff]  }
 0x17d   : > { %7838 = vmatprep.subr.bf16.mxu0 %v11575_v42  ;;  %7348 = vmatprep.mubr.msk.bf16.mxu1 %vm8951_vm2, %v11575_v42 }
 0x17e   : > { %7365 = vmatpush3.bf16.msra.mxu1 %v8791_v17  ;;  %v4086_v26 = vsel %vm866_vm15, %v4076_v43, %v4085_v3  ;;  %v4093_v17 = vrot.slane %v10584_v58, 5  ;;  %v8794_v43 = vld [vmem:[%s11507_s1 + $0x4e8] sm:$0xff]  }
 0x17f   : > { %7366 = vmatprep.subr.bf16.mxu1 %v11575_v42 }
 0x180   : > { %7839 = vmatpush3.bf16.msra.mxu0 %v8790_v46 }
 0x181   : > { %7840 = vmatprep.subr.bf16.mxu0 %v11575_v42 }
 0x182   : > { %7367 = vmatpush3.bf16.msra.mxu1 %v8793_v47 }
 0x183   : > { %7821 = vmatmul.mubr.bf16.gmra.mrb[8].mxu0 %v4086_v26  ;;  %7349 = vmatmul.mubr.bf16.gmra.mrb[4].mxu1 %v11602_v63  ;;  %v11603_v26 = vld [vmem:[#allocation9_spill] sm:$0xff]  ;;  %v4094_v63 = vor.u32 %v4093_v17, %v4090_v8 }
 0x184   : > { %7841 = vmatpush3.bf16.msra.mxu0 %v8792_v36  ;;  %7824 = vmatprep.mubr.msk.bf16.mxu0 %vm8951_vm2, %v11575_v42  ;;  %v10610_v46 = vshrl.u32 %v11603_v26, 16  ;;  %v10613_v47 = vshll.u32 %v11603_v26, 16  ;;  %v8796_v36 = vld [vmem:[%s11507_s1 + $0x198] sm:$0xff]  }
 0x185   : > { %7352 = vmatprep.mubr.msk.bf16.mxu1 %vm8951_vm2, %v11575_v42  ;;  %7842 = vmatprep.subr.bf16.mxu0 %v11575_v42  ;;  %v4095_v60 = vsel %vm866_vm15, %v4085_v3, %v4094_v63 }
 0x186   : > { %7368 = vmatprep.subr.bf16.mxu1 %v11575_v42  ;;  %v4099_v8 = vrot.slane %v10610_v46, 4  ;;  %v4102_v17 = vrot.slane %v10613_v47, 5 }
 0x187   : > { %7369 = vmatpush3.bf16.msra.mxu1 %v8795_v33  ;;  %v8798_v33 = vld [vmem:[%s11507_s1 + $0x1a0] sm:$0xff]  }
 0x188   : > { %7843 = vmatpush3.bf16.msra.mxu0 %v8794_v43  ;;  %7370 = vmatprep.subr.bf16.mxu1 %v11575_v42  ;;  %v8799_v43 = vld [vmem:[%s11507_s1 + $0x4f8] sm:$0xff]   ;;  %v4103_v3 = vor.u32 %v4102_v17, %v4099_v8  ;;  %v4264_v8 = vrot.slane %v11594_v7, 5  ;;  %v11605_v17 = vld [vmem:[#allocation3_spill] sm:$0xff] }
 0x189   : > { %7844 = vmatprep.subr.bf16.mxu0 %v11575_v42  ;;  %v8803_v7 = vld [vmem:[%s11507_s1 + $0x508] sm:$0xff]  }
 0x18b   : > { %7825 = vmatmul.mubr.bf16.gmra.mrb[12].mxu0 %v4095_v60  ;;  %7353 = vmatmul.mubr.bf16.gmra.mrb[8].mxu1 %v10067_v25  ;;  %v4104_v25 = vsel %vm866_vm15, %v4094_v63, %v4103_v3  ;;  %v11604_v60 = vld [vmem:[#allocation22_spill] sm:$0xff]  ;;  %v4265_v63 = vrot.slane %v11605_v17, 5 }
 0x18c   : > { %7371 = vmatpush3.bf16.msra.mxu1 %v8796_v36  ;;  %7845 = vmatpush3.bf16.msra.mxu0 %v8797_v54  ;;  %v8800_v54 = vld [vmem:[%s11507_s1 + $0x1a8] sm:$0xff]   ;;  %v8802_v36 = vld [vmem:[%s11507_s1 + $0x1b0] sm:$0xff]  }
 0x18d   : > { %7828 = vmatprep.mubr.msk.bf16.mxu0 %vm8951_vm2, %v11575_v42  ;;  %7356 = vmatprep.mubr.msk.bf16.mxu1 %vm8951_vm2, %v11575_v42  ;;  %v4266_v3 = vsel %vm728_vm8, %v4264_v8, %v4265_v63  ;;  %v8807_v8 = vld [vmem:[%s11507_s1 + $0x1c0] sm:$0xff]  }
 0x18e   : > { %7372 = vmatprep.subr.bf16.mxu1 %v11575_v42  ;;  %7846 = vmatprep.subr.bf16.mxu0 %v11575_v42 }
 0x190   : > { %7373 = vmatpush3.bf16.msra.mxu1 %v8798_v33  ;;  %7847 = vmatpush3.bf16.msra.mxu0 %v8799_v43  ;;  %v8801_v33 = vld [vmem:[%s11507_s1 + $0x500] sm:$0xff]   ;;  %v8804_v43 = vld [vmem:[%s11507_s1 + $0x1b8] sm:$0xff]  }
 0x191   : > { %7374 = vmatprep.subr.bf16.mxu1 %v11575_v42  ;;  %7868 = vmatprep.subr.bf16.mxu0 %v11575_v42 }
 0x193   : > { %7829 = vmatmul.mubr.bf16.gmra.mrb[16].mxu0 %v4104_v25  ;;  %7357 = vmatmul.mubr.bf16.gmra.mrb[12].mxu1 %v11604_v60  ;;  %v4267_v25 = vrot.slane %v11597_v62, 5  ;;  %v8805_v60 = vld [vmem:[%s11507_s1 + $0x510] sm:$0xff]  }
 0x194   : > { %7375 = vmatpush3.bf16.msra.mxu1 %v8800_v54  ;;  %7848 = vmatprep.mubr.msk.bf16.mxu0 %vm8951_vm2, %v11575_v42  ;;  %v11606_v54 = vld [vmem:[#allocation23_spill] sm:$0xff] }
 0x195   : > { %7360 = vmatprep.mubr.msk.bf16.mxu1 %vm8951_vm2, %v11575_v42  ;;  %7376 = vmatprep.subr.bf16.mxu1 %v11575_v42 }
 0x198   : > { %7377 = vmatpush3.bf16.msra.mxu1 %v8802_v36  ;;  %v4268_v36 = vsel %vm728_vm8, %v4265_v63, %v4267_v25  ;;  %v4269_v63 = vrot.slane %v11599_v9, 5 }
 0x199   : > { %7378 = vmatprep.subr.bf16.mxu1 %v11575_v42 }
 0x19b   : > { %7849 = vmatmul.mubr.bf16.vlgmr.msra.gmra.mrb[0].mxu0 %v4266_v3  ;;  %7361 = vmatmul.mubr.bf16.gmra.mrb[16].mxu1 %v11606_v54  ;;  %v8809_v3 = vld [vmem:[%s11507_s1 + $0x1c8] sm:$0xff]   ;;  %v8808_v54 = vld [vmem:[%s11507_s1 + $0x520] sm:$0xff]  }
 0x19c   : > { %7869 = vmatpush3.bf16.msra.mxu0 %v8801_v33  ;;  %7379 = vmatpush3.bf16.msra.mxu1 %v8804_v43  ;;  %v11607_v33 = vld [vmem:[#allocation24_spill] sm:$0xff]  ;;  %v8806_v43 = vld [vmem:[%s11507_s1 + $0x518] sm:$0xff]  }
 0x19d   : > { %7870 = vmatprep.subr.bf16.mxu0 %v11575_v42  ;;  %7852 = vmatprep.mubr.msk.bf16.mxu0 %vm8951_vm2, %v11575_v42 }
 0x19e   : > { %7380 = vmatprep.mubr.msk.bf16.mxu1 %vm8951_vm2, %v11575_v42  ;;  %7400 = vmatprep.subr.bf16.mxu1 %v11575_v42 }
 0x1a0   : > { %7871 = vmatpush3.bf16.msra.mxu0 %v8803_v7  ;;  %v4270_v7 = vsel %vm728_vm8, %v4267_v25, %v4269_v63  ;;  %v4271_v25 = vrot.slane %v11601_v56, 5 }
 0x1a1   : > { %7872 = vmatprep.subr.bf16.mxu0 %v11575_v42 }
 0x1a3   : > { %7853 = vmatmul.mubr.bf16.gmra.mrb[4].mxu0 %v4268_v36  ;;  %7381 = vmatmul.mubr.bf16.vlgmr.msra.gmra.mrb[0].mxu1 %v11607_v33  ;;  %v8810_v36 = vld [vmem:[%s11507_s1 + $0x528] sm:$0xff]   ;;  %v4272_v33 = vsel %vm728_vm8, %v4269_v63, %v4271_v25  ;;  %v4273_v63 = vrot.slane %v11603_v26, 5 }
 0x1a4   : > { %7873 = vmatpush3.bf16.msra.mxu0 %v8805_v60  ;;  %7856 = vmatprep.mubr.msk.bf16.mxu0 %vm8951_vm2, %v11575_v42  ;;  %v8811_v60 = vld [vmem:[%s11507_s1 + $0x1d0] sm:$0xff]  }
 0x1a5   : > { %7874 = vmatprep.subr.bf16.mxu0 %v11575_v42  ;;  %7384 = vmatprep.mubr.msk.bf16.mxu1 %vm8951_vm2, %v11575_v42 }
 0x1a6   : > { %7401 = vmatpush3.bf16.msra.mxu1 %v8807_v8  ;;  %v8813_v8 = vld [vmem:[%s11507_s1 + $0x530] sm:$0xff]  }
 0x1a7   : > { %7402 = vmatprep.subr.bf16.mxu1 %v11575_v42 }
 0x1a8   : > { %7875 = vmatpush3.bf16.msra.mxu0 %v8806_v43  ;;  %v8814_v43 = vld [vmem:[%s11507_s1 + $0x1e0] sm:$0xff]  }
 0x1a9   : > { %7876 = vmatprep.subr.bf16.mxu0 %v11575_v42 }
 0x1aa   : > { %7403 = vmatpush3.bf16.msra.mxu1 %v8809_v3  ;;  %v8815_v3 = vld [vmem:[%s11507_s1 + $0x538] sm:$0xff]  }
 0x1ab   : > { %7857 = vmatmul.mubr.bf16.gmra.mrb[8].mxu0 %v4270_v7  ;;  %7385 = vmatmul.mubr.bf16.gmra.mrb[4].mxu1 %v10114_v27  ;;  %v8812_v27 = vld [vmem:[%s11507_s1 + $0x1d8] sm:$0xff]   ;;  %v8818_v7 = vld [vmem:[%s11507_s1 + $0x1f0] sm:$0xff]  }
 0x1ac   : > { %7877 = vmatpush3.bf16.msra.mxu0 %v8808_v54  ;;  %7860 = vmatprep.mubr.msk.bf16.mxu0 %vm8951_vm2, %v11575_v42  ;;  %v4274_v54 = vsel %vm728_vm8, %v4271_v25, %v4273_v63  ;;  %v4436_v25 = vrot.slane %v10532_v5, 6  ;;  %v4440_v63 = vrot.slane %v10556_v45, 6 }
 0x1ad   : > { %7388 = vmatprep.mubr.msk.bf16.mxu1 %vm8951_vm2, %v11575_v42  ;;  %7878 = vmatprep.subr.bf16.mxu0 %v11575_v42 }
 0x1ae   : > { %7404 = vmatprep.subr.bf16.mxu1 %v11575_v42 }
 0x1af   : > { %7405 = vmatpush3.bf16.msra.mxu1 %v8811_v60  ;;  %v8817_v60 = vld [vmem:[%s11507_s1 + $0x540] sm:$0xff]  }
 0x1b0   : > { %7879 = vmatpush3.bf16.msra.mxu0 %v8810_v36  ;;  %7406 = vmatprep.subr.bf16.mxu1 %v11575_v42  ;;  %v4435_v36 = vrot.slane %v10529_v29, 5 }
 0x1b1   : > { %7880 = vmatprep.subr.bf16.mxu0 %v11575_v42 }
 0x1b3   : > { %7861 = vmatmul.mubr.bf16.gmra.mrb[12].mxu0 %v4272_v33  ;;  %7389 = vmatmul.mubr.bf16.gmra.mrb[8].mxu1 %v10119_v31  ;;  %v8816_v31 = vld [vmem:[%s11507_s1 + $0x1e8] sm:$0xff]   ;;  %v1943_v33 = vrot.slane %v11589_v15, 7  ;;  %v8823_v15 = vld [vmem:[%s11507_s1 + $0x200] sm:$0xff]  }
 0x1b4   : > { %7407 = vmatpush3.bf16.msra.mxu1 %v8812_v27  ;;  %7881 = vmatpush3.bf16.msra.mxu0 %v8813_v8  ;;  %v8819_v27 = vld [vmem:[%s11507_s1 + $0x548] sm:$0xff]   ;;  %v4437_v8 = vor.u32 %v4436_v25, %v4435_v36  ;;  %v4444_v25 = vrot.slane %v10584_v58, 6 }
 0x1b5   : > { %7864 = vmatprep.mubr.msk.bf16.mxu0 %vm8951_vm2, %v11575_v42  ;;  %7392 = vmatprep.mubr.msk.bf16.mxu1 %vm8951_vm2, %v11575_v42 }
 0x1b6   : > { %7408 = vmatprep.subr.bf16.mxu1 %v11575_v42  ;;  %7882 = vmatprep.subr.bf16.mxu0 %v11575_v42 }
 0x1b8   : > { %7409 = vmatpush3.bf16.msra.mxu1 %v8814_v43  ;;  %7883 = vmatpush3.bf16.msra.mxu0 %v8815_v3  ;;  %v4438_v43 = vsel %vm1063_vm1, %v10121_v38, %v4437_v8  ;;  %v8822_v38 = vld [vmem:[%s11507_s1 + $0x558] sm:$0xff]  }
 0x1b9   : > { %7410 = vmatprep.subr.bf16.mxu1 %v11575_v42  ;;  %7904 = vmatprep.subr.bf16.mxu0 %v11575_v42 }
 0x1bb   : > { %7865 = vmatmul.mubr.bf16.gmra.mrb[16].mxu0 %v4274_v54  ;;  %7393 = vmatmul.mubr.bf16.gmra.mrb[12].mxu1 %v10124_v16  ;;  %v8820_v16 = vld [vmem:[%s11507_s1 + $0x1f8] sm:$0xff]   ;;  %v1946_v54 = vrot.slane %v11591_v0, 7  ;;  %v4443_v0 = vrot.slane %v10581_v30, 5 }
 0x1bc   : > { %7411 = vmatpush3.bf16.msra.mxu1 %v8816_v31  ;;  %7884 = vmatprep.mubr.msk.bf16.mxu0 %vm8951_vm2, %v11575_v42 }
 0x1bd   : > { %7396 = vmatprep.mubr.msk.bf16.mxu1 %vm8951_vm2, %v11575_v42  ;;  %7412 = vmatprep.subr.bf16.mxu1 %v11575_v42 }
 0x1c0   : > { %7413 = vmatpush3.bf16.msra.mxu1 %v8818_v7  ;;  %v8825_v7 = vld [vmem:[%s11507_s1 + $0x208] sm:$0xff]  }
 0x1c1   : > { %7414 = vmatprep.subr.bf16.mxu1 %v11575_v42 }
 0x1c3   : > { %7885 = vmatmul.mubr.bf16.vlgmr.msra.gmra.mrb[0].mxu0 %v10137_v20  ;;  %7397 = vmatmul.mubr.bf16.gmra.mrb[16].mxu1 %v10143_v12  ;;  %v1944_v20 = vrot.slane %v11590_v48, 7  ;;  %v8821_v12 = vld [vmem:[%s11507_s1 + $0x550] sm:$0xff]   ;;  %v4439_v48 = vrot.slane %v10553_v50, 5 }
 0x1c4   : > { %7905 = vmatpush3.bf16.msra.mxu0 %v8817_v60  ;;  %7415 = vmatpush3.bf16.msra.mxu1 %v8820_v16  ;;  %v8824_v60 = vld [vmem:[%s11507_s1 + $0x560] sm:$0xff]  }
 0x1c5   : > { %7906 = vmatprep.subr.bf16.mxu0 %v11575_v42  ;;  %7888 = vmatprep.mubr.msk.bf16.mxu0 %vm8951_vm2, %v11575_v42  ;;  %v1945_v3 = vsel %vm1942_vm4, %v1943_v33, %v1944_v20  ;;  %v4441_v31 = vor.u32 %v4440_v63, %v4439_v48  ;;  %v1947_v36 = vsel %vm1942_vm4, %v1944_v20, %v1946_v54  ;;  %v1948_v20 = vrot.slane %v11592_v40, 7  ;;  %v8830_v63 = vld [vmem:[%s11507_s1 + $0x220] sm:$0xff]  }
 0x1c6   : > { %7416 = vmatprep.mubr.msk.bf16.mxu1 %vm8951_vm2, %v11575_v42  ;;  %7436 = vmatprep.subr.bf16.mxu1 %v11575_v42  ;;  %v4445_v33 = vor.u32 %v4444_v25, %v4443_v0  ;;  %v4448_v48 = vrot.slane %v10613_v47, 6  ;;  %v4607_v0 = vrot.slane %v10529_v29, 1  ;;  %v4608_v25 = vrot.slane %v10532_v5, 2 }
 0x1c7   : > { %v4442_v16 = vsel %vm1063_vm1, %v4437_v8, %v4441_v31  ;;  %v8826_v8 = vld [vmem:[%s11507_s1 + $0x568] sm:$0xff]   ;;  %v1949_v40 = vsel %vm1942_vm4, %v1946_v54, %v1948_v20 }
 0x1c8   : > { %7907 = vmatpush3.bf16.msra.mxu0 %v8819_v27  ;;  %v8827_v27 = vld [vmem:[%s11507_s1 + $0x210] sm:$0xff]  }
 0x1c9   : > { %7908 = vmatprep.subr.bf16.mxu0 %v11575_v42 }
 0x1cb   : > { %7889 = vmatmul.mubr.bf16.gmra.mrb[4].mxu0 %v4438_v43  ;;  %7417 = vmatmul.mubr.bf16.vlgmr.msra.gmra.mrb[0].mxu1 %v1945_v3  ;;  %v8829_v43 = vld [vmem:[%s11507_s1 + $0x570] sm:$0xff]   ;;  %v4446_v3 = vsel %vm1063_vm1, %v4441_v31, %v4445_v33  ;;  %v1950_v31 = vrot.slane %v11593_v14, 7 }
 0x1cc   : > { %7909 = vmatpush3.bf16.msra.mxu0 %v8821_v12  ;;  %7892 = vmatprep.mubr.msk.bf16.mxu0 %vm8951_vm2, %v11575_v42  ;;  %v8828_v12 = vld [vmem:[%s11507_s1 + $0x218] sm:$0xff]  }
 0x1cd   : > { %7910 = vmatprep.subr.bf16.mxu0 %v11575_v42  ;;  %7420 = vmatprep.mubr.msk.bf16.mxu1 %vm8951_vm2, %v11575_v42 }
 0x1ce   : > { %7437 = vmatpush3.bf16.msra.mxu1 %v8823_v15  ;;  %v4447_v15 = vrot.slane %v10610_v46, 5 }
 0x1cf   : > { %7438 = vmatprep.subr.bf16.mxu1 %v11575_v42 }
 0x1d0   : > { %7911 = vmatpush3.bf16.msra.mxu0 %v8822_v38  ;;  %v8831_v38 = vld [vmem:[%s11507_s1 + $0x578] sm:$0xff]   ;;  %v4449_v54 = vor.u32 %v4448_v48, %v4447_v15  ;;  %v4611_v15 = vrot.slane %v10553_v50, 1  ;;  %v4612_v48 = vrot.slane %v10556_v45, 2 }
 0x1d1   : > { %7912 = vmatprep.subr.bf16.mxu0 %v11575_v42 }
 0x1d2   : > { %7439 = vmatpush3.bf16.msra.mxu1 %v8825_v7  ;;  %v8832_v7 = vld [vmem:[%s11507_s1 + $0x228] sm:$0xff]   ;;  %v4450_v14 = vsel %vm1063_vm1, %v4445_v33, %v4449_v54  ;;  %v4609_v33 = vor.u32 %v4608_v25, %v4607_v0  ;;  %v8839_v54 = vld [vmem:[%s11507_s1 + $0x240] sm:$0xff]   ;;  %v4619_v25 = vrot.slane %v10610_v46, 1 }
 0x1d3   : > { %7893 = vmatmul.mubr.bf16.gmra.mrb[8].mxu0 %v4442_v16  ;;  %7421 = vmatmul.mubr.bf16.gmra.mrb[4].mxu1 %v1947_v36  ;;  %v4604_v16 = vrot.slane %v9986_v28, 1  ;;  %v4605_v36 = vrot.slane %v9989_v41, 2 }
 0x1d4   : > { %7913 = vmatpush3.bf16.msra.mxu0 %v8824_v60  ;;  %7896 = vmatprep.mubr.msk.bf16.mxu0 %vm8951_vm2, %v11575_v42  ;;  %v1951_v60 = vsel %vm1942_vm4, %v1948_v20, %v1950_v31  ;;  %v1952_v20 = vrot.slane %v11598_v44, 7  ;;  %v8835_v44 = vld [vmem:[%s11507_s1 + $0x588] sm:$0xff]  }
 0x1d5   : > { %7424 = vmatprep.mubr.msk.bf16.mxu1 %vm8951_vm2, %v11575_v42  ;;  %7914 = vmatprep.subr.bf16.mxu0 %v11575_v42 }
 0x1d6   : > { %7440 = vmatprep.subr.bf16.mxu1 %v11575_v42 }
 0x1d7   : > { %7441 = vmatpush3.bf16.msra.mxu1 %v8827_v27  ;;  %v8834_v27 = vld [vmem:[%s11507_s1 + $0x230] sm:$0xff]  }
 0x1d8   : > { %7915 = vmatpush3.bf16.msra.mxu0 %v8826_v8  ;;  %7442 = vmatprep.subr.bf16.mxu1 %v11575_v42  ;;  %v4606_v8 = vor.u32 %v4605_v36, %v4604_v16  ;;  %v8838_v16 = vld [vmem:[%s11507_s1 + $0x598] sm:$0xff]   ;;  %v8841_v36 = vld [vmem:[%s11507_s1 + $0x248] sm:$0xff]  }
 0x1d9   : > { %7916 = vmatprep.subr.bf16.mxu0 %v11575_v42 }
 0x1db   : > { %7897 = vmatmul.mubr.bf16.gmra.mrb[12].mxu0 %v4446_v3  ;;  %7425 = vmatmul.mubr.bf16.gmra.mrb[8].mxu1 %v1949_v40  ;;  %v4610_v3 = vsel %vm1240_vm13, %v4606_v8, %v4609_v33  ;;  %v1953_v40 = vsel %vm1942_vm4, %v1950_v31, %v1952_v20  ;;  %v8843_v8 = vld [vmem:[%s11507_s1 + $0x250] sm:$0xff]  }
 0x1dc   : > { %7443 = vmatpush3.bf16.msra.mxu1 %v8828_v12  ;;  %7917 = vmatpush3.bf16.msra.mxu0 %v8829_v43  ;;  %v8833_v12 = vld [vmem:[%s11507_s1 + $0x580] sm:$0xff]   ;;  %v8836_v43 = vld [vmem:[%s11507_s1 + $0x238] sm:$0xff]  }
 0x1dd   : > { %7900 = vmatprep.mubr.msk.bf16.mxu0 %vm8951_vm2, %v11575_v42  ;;  %7428 = vmatprep.mubr.msk.bf16.mxu1 %vm8951_vm2, %v11575_v42 }
 0x1de   : > { %7444 = vmatprep.subr.bf16.mxu1 %v11575_v42  ;;  %7918 = vmatprep.subr.bf16.mxu0 %v11575_v42 }
 0x1e0   : > { %7445 = vmatpush3.bf16.msra.mxu1 %v8830_v63  ;;  %7919 = vmatpush3.bf16.msra.mxu0 %v8831_v38  ;;  %v4613_v63 = vor.u32 %v4612_v48, %v4611_v15  ;;  %v8837_v38 = vld [vmem:[%s11507_s1 + $0x590] sm:$0xff]   ;;  %v8846_v15 = vld [vmem:[%s11507_s1 + $0x260] sm:$0xff]   ;;  %v8847_v48 = vld [vmem:[%s11507_s1 + $0x5b8] sm:$0xff]  }
 0x1e1   : > { %7446 = vmatprep.subr.bf16.mxu1 %v11575_v42  ;;  %7940 = vmatprep.subr.bf16.mxu0 %v11575_v42 }
 0x1e2   : > { %v4614_v31 = vsel %vm1240_vm13, %v4609_v33, %v4613_v63  ;;  %v8842_v33 = vld [vmem:[%s11507_s1 + $0x5a8] sm:$0xff]  }
 0x1e3   : > { %7901 = vmatmul.mubr.bf16.gmra.mrb[16].mxu0 %v4450_v14  ;;  %7429 = vmatmul.mubr.bf16.gmra.mrb[12].mxu1 %v1951_v60  ;;  %v4616_v60 = vrot.slane %v10584_v58, 2 }
 0x1e4   : > { %7447 = vmatpush3.bf16.msra.mxu1 %v8832_v7  ;;  %7920 = vmatprep.mubr.msk.bf16.mxu0 %vm8951_vm2, %v11575_v42  ;;  %v4615_v7 = vrot.slane %v10581_v30, 1 }
 0x1e5   : > { %7432 = vmatprep.mubr.msk.bf16.mxu1 %vm8951_vm2, %v11575_v42  ;;  %7448 = vmatprep.subr.bf16.mxu1 %v11575_v42 }
 0x1e6   : > { %v4617_v14 = vor.u32 %v4616_v60, %v4615_v7  ;;  %v11609_v60 = vshll.u32 %v9545_v19, 16 }
 0x1e8   : > { %7449 = vmatpush3.bf16.msra.mxu1 %v8834_v27  ;;  %v4618_v0 = vsel %vm1240_vm13, %v4613_v63, %v4617_v14  ;;  %v4620_v27 = vrot.slane %v10613_v47, 2  ;;  %v4786_v63 = vrot.slane %v11605_v17, 2 }
 0x1e9   : > { %7450 = vmatprep.subr.bf16.mxu1 %v11575_v42 }
 0x1ea   : > { %v4621_v20 = vor.u32 %v4620_v27, %v4619_v25 }
 0x1eb   : > { %7921 = vmatmul.mubr.bf16.vlgmr.msra.gmra.mrb[0].mxu0 %v4610_v3  ;;  %7433 = vmatmul.mubr.bf16.gmra.mrb[16].mxu1 %v1953_v40  ;;  %v4626_v3 = vrot.slane %v10245_v32, 1  ;;  %v4629_v40 = vrot.slane %v10248_v23, 2 }
 0x1ec   : > { %7941 = vmatpush3.bf16.msra.mxu0 %v8833_v12  ;;  %7451 = vmatpush3.bf16.msra.mxu1 %v8836_v43  ;;  %v8845_v12 = vld [vmem:[%s11507_s1 + $0x5b0] sm:$0xff]   ;;  %v4622_v43 = vsel %vm1240_vm13, %v4617_v14, %v4621_v20 }
 0x1ed   : > { %7942 = vmatprep.subr.bf16.mxu0 %v11575_v42  ;;  %7924 = vmatprep.mubr.msk.bf16.mxu0 %vm8951_vm2, %v11575_v42  ;;  %v4630_v32 = vor.u32 %v4629_v40, %v4626_v3  ;;  %v2391_v3 = vrot.slane %v9794_v2, 5  ;;  %v8854_v40 = vld [vmem:[%s11507_s1 + $0x5d8] sm:$0xff]  }
 0x1ee   : > { %7452 = vmatprep.mubr.msk.bf16.mxu1 %vm8951_vm2, %v11575_v42  ;;  %7472 = vmatprep.subr.bf16.mxu1 %v11575_v42 }
 0x1ef   : > { %v4631_v23 = vsel %vm1240_vm13, %v4621_v20, %v4630_v32  ;;  %v8857_v32 = vld [vmem:[%s11507_s1 + $0x288] sm:$0xff]  }
 0x1f0   : > { %7943 = vmatpush3.bf16.msra.mxu0 %v8835_v44  ;;  %v8850_v44 = vld [vmem:[%s11507_s1 + $0x270] sm:$0xff]  }
 0x1f1   : > { %7944 = vmatprep.subr.bf16.mxu0 %v11575_v42 }
 0x1f3   : > { %7925 = vmatmul.mubr.bf16.gmra.mrb[4].mxu0 %v4614_v31  ;;  %7453 = vmatmul.mubr.bf16.vlgmr.msra.gmra.mrb[0].mxu1 %v10188_v11  ;;  %v8840_v11 = vld [vmem:[%s11507_s1 + $0x5a0] sm:$0xff]   ;;  %v8852_v31 = vld [vmem:[%s11507_s1 + $0x278] sm:$0xff]  }
 0x1f4   : > { %7945 = vmatpush3.bf16.msra.mxu0 %v8837_v38  ;;  %7928 = vmatprep.mubr.msk.bf16.mxu0 %vm8951_vm2, %v11575_v42  ;;  %v4787_v38 = vrot.slane %v11597_v62, 2 }
 0x1f5   : > { %7946 = vmatprep.subr.bf16.mxu0 %v11575_v42  ;;  %7456 = vmatprep.mubr.msk.bf16.mxu1 %vm8951_vm2, %v11575_v42 }
 0x1f6   : > { %7473 = vmatpush3.bf16.msra.mxu1 %v8839_v54  ;;  %v11608_v54 = vshrl.u32 %v9545_v19, 16  ;;  %v4788_v14 = vsel %vm1423_vm14, %v4786_v63, %v4787_v38  ;;  %v2397_v63 = vrot.slane %v9862_v34, 4 }
 0x1f7   : > { %7474 = vmatprep.subr.bf16.mxu1 %v11575_v42 }
 0x1f8   : > { %7947 = vmatpush3.bf16.msra.mxu0 %v8838_v16  ;;  %v2371_v7 = vrot.slane %v11608_v54, 4  ;;  %v2374_v16 = vrot.slane %v11609_v60, 5  ;;  %v4793_v54 = vrot.slane %v11603_v26, 2  ;;  %v8860_v60 = vld [vmem:[%s11507_s1 + $0x298] sm:$0xff]  }
 0x1f9   : > { %7948 = vmatprep.subr.bf16.mxu0 %v11575_v42 }
 0x1fa   : > { %7475 = vmatpush3.bf16.msra.mxu1 %v8841_v36  ;;  %v8851_v36 = vld [vmem:[%s11507_s1 + $0x5c8] sm:$0xff]   ;;  %v2375_v27 = vor.u32 %v2374_v16, %v2371_v7  ;;  %v8861_v16 = vld [vmem:[%s11507_s1 + $0x5f0] sm:$0xff]  }
 0x1fb   : > { %7929 = vmatmul.mubr.bf16.gmra.mrb[8].mxu0 %v4618_v0  ;;  %7457 = vmatmul.mubr.bf16.gmra.mrb[4].mxu1 %v10195_v22  ;;  %v8844_v22 = vld [vmem:[%s11507_s1 + $0x258] sm:$0xff]   ;;  %v11610_v0 = vld [vmem:[#allocation14_spill] sm:$0xff] }
 0x1fc   : > { %7949 = vmatpush3.bf16.msra.mxu0 %v8840_v11  ;;  %7932 = vmatprep.mubr.msk.bf16.mxu0 %vm8951_vm2, %v11575_v42  ;;  %v2379_v11 = vrot.slane %v11587_v61, 4  ;;  %v2382_v25 = vrot.slane %v11610_v0, 5 }
 0x1fd   : > { %7460 = vmatprep.mubr.msk.bf16.mxu1 %vm8951_vm2, %v11575_v42  ;;  %7950 = vmatprep.subr.bf16.mxu0 %v11575_v42 }
 0x1fe   : > { %7476 = vmatprep.subr.bf16.mxu1 %v11575_v42 }
 0x1ff   : > { %7477 = vmatpush3.bf16.msra.mxu1 %v8843_v8  ;;  %v2383_v8 = vor.u32 %v2382_v25, %v2379_v11  ;;  %v2406_v11 = vrot.slane %v9883_v37, 4  ;;  %v2409_v25 = vrot.slane %v9886_v4, 5 }
 0x200   : > { %7951 = vmatpush3.bf16.msra.mxu0 %v8842_v33  ;;  %7478 = vmatprep.subr.bf16.mxu1 %v11575_v42  ;;  %v8853_v33 = vld [vmem:[%s11507_s1 + $0x5d0] sm:$0xff]  }
 0x201   : > { %7952 = vmatprep.subr.bf16.mxu0 %v11575_v42 }
 0x203   : > { %7933 = vmatmul.mubr.bf16.gmra.mrb[12].mxu0 %v4622_v43  ;;  %7461 = vmatmul.mubr.bf16.gmra.mrb[8].mxu1 %v10202_v10  ;;  %v8848_v10 = vld [vmem:[%s11507_s1 + $0x268] sm:$0xff]   ;;  %v2388_v43 = vrot.slane %v9791_v53, 4 }
 0x204   : > { %7479 = vmatpush3.bf16.msra.mxu1 %v8844_v22  ;;  %7953 = vmatpush3.bf16.msra.mxu0 %v8845_v12  ;;  %v2384_v22 = vsel %vm866_vm15, %v2375_v27, %v2383_v8  ;;  %v8855_v12 = vld [vmem:[%s11507_s1 + $0x280] sm:$0xff]   ;;  %v8863_v27 = vld [vmem:[%s11507_s1 + $0x5f8] sm:$0xff]  }
 0x205   : > { %7936 = vmatprep.mubr.msk.bf16.mxu0 %vm8951_vm2, %v11575_v42  ;;  %7464 = vmatprep.mubr.msk.bf16.mxu1 %vm8951_vm2, %v11575_v42 }
 0x206   : > { %7480 = vmatprep.subr.bf16.mxu1 %v11575_v42  ;;  %7954 = vmatprep.subr.bf16.mxu0 %v11575_v42 }
 0x208   : > { %7481 = vmatpush3.bf16.msra.mxu1 %v8846_v15  ;;  %7955 = vmatpush3.bf16.msra.mxu0 %v8847_v48  ;;  %v4791_v15 = vrot.slane %v11601_v56, 2  ;;  %v2392_v48 = vor.u32 %v2391_v3, %v2388_v43  ;;  %v4951_v43 = vrot.slane %v9989_v41, 3  ;;  %v4953_v3 = vrot.slane %v10529_v29, 2 }
 0x209   : > { %7482 = vmatprep.subr.bf16.mxu1 %v11575_v42  ;;  %7976 = vmatprep.subr.bf16.mxu0 %v11575_v42 }
 0x20b   : > { %7937 = vmatmul.mubr.bf16.gmra.mrb[16].mxu0 %v4631_v23  ;;  %7465 = vmatmul.mubr.bf16.gmra.mrb[12].mxu1 %v10214_v57  ;;  %v8849_v57 = vld [vmem:[%s11507_s1 + $0x5c0] sm:$0xff]  }
 0x20c   : > { %7483 = vmatpush3.bf16.msra.mxu1 %v8848_v10  ;;  %7956 = vmatprep.mubr.msk.bf16.mxu0 %vm8951_vm2, %v11575_v42  ;;  %v8856_v10 = vld [vmem:[%s11507_s1 + $0x5e0] sm:$0xff]  }
 0x20d   : > { %7468 = vmatprep.mubr.msk.bf16.mxu1 %vm8951_vm2, %v11575_v42  ;;  %7484 = vmatprep.subr.bf16.mxu1 %v11575_v42 }
 0x210   : > { %7485 = vmatpush3.bf16.msra.mxu1 %v8850_v44  ;;  %v2393_v44 = vsel %vm866_vm15, %v2383_v8, %v2392_v48  ;;  %v4795_v8 = vrot.slane %v9739_v59, 2 }
 0x211   : > { %7486 = vmatprep.subr.bf16.mxu1 %v11575_v42 }
 0x213   : > { %7957 = vmatmul.mubr.bf16.vlgmr.msra.gmra.mrb[0].mxu0 %v4788_v14  ;;  %7469 = vmatmul.mubr.bf16.gmra.mrb[16].mxu1 %v10225_v13  ;;  %v4789_v13 = vrot.slane %v11599_v9, 2  ;;  %v4794_v14 = vsel %vm1423_vm14, %v4791_v15, %v4793_v54 }
 0x214   : > { %7977 = vmatpush3.bf16.msra.mxu0 %v8849_v57  ;;  %7487 = vmatpush3.bf16.msra.mxu1 %v8852_v31  ;;  %v8859_v57 = vld [vmem:[%s11507_s1 + $0x290] sm:$0xff]   ;;  %v8858_v31 = vld [vmem:[%s11507_s1 + $0x5e8] sm:$0xff]  }
 0x215   : > { %7978 = vmatprep.subr.bf16.mxu0 %v11575_v42  ;;  %7960 = vmatprep.mubr.msk.bf16.mxu0 %vm8951_vm2, %v11575_v42  ;;  %v4790_v20 = vsel %vm1423_vm14, %v4787_v38, %v4789_v13  ;;  %v4792_v23 = vsel %vm1423_vm14, %v4789_v13, %v4791_v15  ;;  %v2400_v38 = vrot.slane %v9865_v35, 5  ;;  %v8862_v13 = vld [vmem:[%s11507_s1 + $0x2a0] sm:$0xff]   ;;  %v4954_v15 = vrot.slane %v10532_v5, 3 }
 0x216   : > { %7488 = vmatprep.mubr.msk.bf16.mxu1 %vm8951_vm2, %v11575_v42  ;;  %7508 = vmatprep.subr.bf16.mxu1 %v11575_v42 }
 0x217   : > { %v2401_v7 = vor.u32 %v2400_v38, %v2397_v63  ;;  %v8865_v38 = vld [vmem:[%s11507_s1 + $0x600] sm:$0xff]  }
 0x218   : > { %7979 = vmatpush3.bf16.msra.mxu0 %v8851_v36 }
 0x219   : > { %7980 = vmatprep.subr.bf16.mxu0 %v11575_v42  ;;  %v2402_v36 = vsel %vm866_vm15, %v2392_v48, %v2401_v7  ;;  %v2415_v48 = vrot.slane %v9951_v6, 4 }
 0x21b   : > { %7961 = vmatmul.mubr.bf16.gmra.mrb[4].mxu0 %v4790_v20  ;;  %7489 = vmatmul.mubr.bf16.vlgmr.msra.gmra.mrb[0].mxu1 %v2384_v22  ;;  %v8864_v20 = vld [vmem:[%s11507_s1 + $0x2a8] sm:$0xff]   ;;  %v4796_v22 = vsel %vm1423_vm14, %v4793_v54, %v4795_v8  ;;  %v4961_v8 = vrot.slane %v10581_v30, 2  ;;  %vm5651_vm14 = vcmask 1041408  }
 0x21c   : > { %7981 = vmatpush3.bf16.msra.mxu0 %v8853_v33  ;;  %7964 = vmatprep.mubr.msk.bf16.mxu0 %vm8951_vm2, %v11575_v42  ;;  %v2410_v33 = vor.u32 %v2409_v25, %v2406_v11  ;;  %v2581_v11 = vrot.slane %v9493_v24, 5  ;;  %v8869_v25 = vld [vmem:[%s11507_s1 + $0x610] sm:$0xff]   ;;  %v8870_v24 = vld [vmem:[%s11507_s1 + $0x618] sm:$0xff]   ;;  %vm11438_vm7 = vmor %vm5651_vm14, %vm5652_vm5 }
 0x21d   : > { %7982 = vmatprep.subr.bf16.mxu0 %v11575_v42  ;;  %7492 = vmatprep.mubr.msk.bf16.mxu1 %vm8951_vm2, %v11575_v42 }
 0x21e   : > { %7509 = vmatpush3.bf16.msra.mxu1 %v8855_v12  ;;  %v4950_v12 = vrot.slane %v9986_v28, 2 }
 0x21f   : > { %7510 = vmatprep.subr.bf16.mxu1 %v11575_v42 }
 0x220   : > { %7983 = vmatpush3.bf16.msra.mxu0 %v8854_v40  ;;  %v2411_v40 = vsel %vm866_vm15, %v2401_v7, %v2410_v33  ;;  %v4957_v7 = vrot.slane %v10553_v50, 2 }
 0x221   : > { %7984 = vmatprep.subr.bf16.mxu0 %v11575_v42 }
 0x222   : > { %7511 = vmatpush3.bf16.msra.mxu1 %v8857_v32  ;;  %v2418_v32 = vrot.slane %v9954_v1, 5 }
 0x223   : > { %7965 = vmatmul.mubr.bf16.gmra.mrb[8].mxu0 %v4792_v23  ;;  %7493 = vmatmul.mubr.bf16.gmra.mrb[4].mxu1 %v2393_v44  ;;  %v4952_v23 = vor.u32 %v4951_v43, %v4950_v12  ;;  %v4955_v44 = vor.u32 %v4954_v15, %v4953_v3  ;;  %v8873_v12 = vld [vmem:[%s11507_s1 + $0x2c8] sm:$0xff]   ;;  %v8872_v43 = vld [vmem:[%s11507_s1 + $0x620] sm:$0xff]   ;;  %v4966_v15 = vrot.slane %v10613_v47, 3 }
 0x224   : > { %7985 = vmatpush3.bf16.msra.mxu0 %v8856_v10  ;;  %7968 = vmatprep.mubr.msk.bf16.mxu0 %vm8951_vm2, %v11575_v42  ;;  %v8866_v10 = vld [vmem:[%s11507_s1 + $0x2b0] sm:$0xff]   ;;  %v2419_v63 = vor.u32 %v2418_v32, %v2415_v48  ;;  %v8874_v32 = vld [vmem:[%s11507_s1 + $0x628] sm:$0xff]  }
 0x225   : > { %7496 = vmatprep.mubr.msk.bf16.mxu1 %vm8951_vm2, %v11575_v42  ;;  %7986 = vmatprep.subr.bf16.mxu0 %v11575_v42  ;;  %v8875_v48 = vld [vmem:[%s11507_s1 + $0x2d0] sm:$0xff]  }
 0x226   : > { %7512 = vmatprep.subr.bf16.mxu1 %v11575_v42  ;;  %v2420_v54 = vsel %vm866_vm15, %v2410_v33, %v2419_v63  ;;  %v4962_v33 = vrot.slane %v10584_v58, 3  ;;  %v8877_v63 = vld [vmem:[%s11507_s1 + $0x630] sm:$0xff]  }
 0x227   : > { %7513 = vmatpush3.bf16.msra.mxu1 %v8859_v57  ;;  %v8868_v57 = vld [vmem:[%s11507_s1 + $0x2b8] sm:$0xff]  }
 0x228   : > { %7987 = vmatpush3.bf16.msra.mxu0 %v8858_v31  ;;  %7514 = vmatprep.subr.bf16.mxu1 %v11575_v42  ;;  %v4956_v31 = vsel %vm1588_vm11, %v4952_v23, %v4955_v44  ;;  %v2585_v23 = vrot.slane %v9619_v39, 5 }
 0x229   : > { %7988 = vmatprep.subr.bf16.mxu0 %v11575_v42 }
 0x22b   : > { %7969 = vmatmul.mubr.bf16.gmra.mrb[12].mxu0 %v4794_v14  ;;  %7497 = vmatmul.mubr.bf16.gmra.mrb[8].mxu1 %v2402_v36  ;;  %v2580_v14 = vrot.slane %v9545_v19, 5  ;;  %v8871_v19 = vld [vmem:[%s11507_s1 + $0x2c0] sm:$0xff]  }
 0x22c   : > { %7515 = vmatpush3.bf16.msra.mxu1 %v8860_v60  ;;  %7989 = vmatpush3.bf16.msra.mxu0 %v8861_v16  ;;  %v4958_v60 = vrot.slane %v10556_v45, 3  ;;  %v8867_v16 = vld [vmem:[%s11507_s1 + $0x608] sm:$0xff]  }
 0x22d   : > { %7972 = vmatprep.mubr.msk.bf16.mxu0 %vm8951_vm2, %v11575_v42  ;;  %7500 = vmatprep.mubr.msk.bf16.mxu1 %vm8951_vm2, %v11575_v42 }
 0x22e   : > { %7516 = vmatprep.subr.bf16.mxu1 %v11575_v42  ;;  %7990 = vmatprep.subr.bf16.mxu0 %v11575_v42  ;;  %v4959_v36 = vor.u32 %v4958_v60, %v4957_v7  ;;  %v8880_v7 = vld [vmem:[%s11507_s1 + $0x2e8] sm:$0xff]   ;;  %v5126_v60 = vrot.slane %v9986_v28, 6 }
 0x230   : > { %7517 = vmatpush3.bf16.msra.mxu1 %v8862_v13  ;;  %7991 = vmatpush3.bf16.msra.mxu0 %v8863_v27  ;;  %v4960_v13 = vsel %vm1588_vm11, %v4955_v44, %v4959_v36  ;;  %v2582_v27 = vsel %vm728_vm8, %v2580_v14, %v2581_v11  ;;  %v8876_v44 = vld [vmem:[%s11507_s1 + $0x2d8] sm:$0xff]  }
 0x231   : > { %7518 = vmatprep.subr.bf16.mxu1 %v11575_v42  ;;  %8012 = vmatprep.subr.bf16.mxu0 %v11575_v42 }
 0x233   : > { %7973 = vmatmul.mubr.bf16.gmra.mrb[16].mxu0 %v4796_v22  ;;  %7501 = vmatmul.mubr.bf16.gmra.mrb[12].mxu1 %v2411_v40  ;;  %v2583_v22 = vrot.slane %v9491_v18, 5  ;;  %v4965_v18 = vrot.slane %v10610_v46, 2 }
 0x234   : > { %7519 = vmatpush3.bf16.msra.mxu1 %v8864_v20  ;;  %7992 = vmatprep.mubr.msk.bf16.mxu0 %vm8951_vm2, %v11575_v42  ;;  %v4963_v20 = vor.u32 %v4962_v33, %v4961_v8 }
 0x235   : > { %7504 = vmatprep.mubr.msk.bf16.mxu1 %vm8951_vm2, %v11575_v42  ;;  %7520 = vmatprep.subr.bf16.mxu1 %v11575_v42  ;;  %v2584_v40 = vsel %vm728_vm8, %v2581_v11, %v2583_v22  ;;  %v2586_v39 = vsel %vm728_vm8, %v2583_v22, %v2585_v23  ;;  %v5130_v11 = vrot.slane %v10532_v5, 7  ;;  %v2747_v22 = vrot.slane %v11587_v61, 5 }
 0x236   : > { %v4964_v3 = vsel %vm1588_vm11, %v4959_v36, %v4963_v20  ;;  %v5129_v36 = vrot.slane %v10529_v29, 6 }
 0x238   : > { %7521 = vmatpush3.bf16.msra.mxu1 %v8866_v10  ;;  %v4967_v10 = vor.u32 %v4966_v15, %v4965_v18  ;;  %v5137_v18 = vrot.slane %v10581_v30, 6  ;;  %v5138_v15 = vrot.slane %v10584_v58, 7 }
 0x239   : > { %7522 = vmatprep.subr.bf16.mxu1 %v11575_v42 }
 0x23b   : > { %7993 = vmatmul.mubr.bf16.vlgmr.msra.gmra.mrb[0].mxu0 %v4956_v31  ;;  %7505 = vmatmul.mubr.bf16.gmra.mrb[16].mxu1 %v2420_v54  ;;  %v8879_v31 = vld [vmem:[%s11507_s1 + $0x638] sm:$0xff]   ;;  %v2587_v54 = vrot.slane %v9669_v51, 5  ;;  %v4972_v51 = vsel %vm1588_vm11, %v4967_v10, %v10280_v55  ;;  %v5131_v55 = vor.u32 %v5130_v11, %v5129_v36  ;;  %v8890_v36 = vld [vmem:[%s11507_s1 + $0x668] sm:$0xff]  }
 0x23c   : > { %8013 = vmatpush3.bf16.msra.mxu0 %v8865_v38  ;;  %7523 = vmatpush3.bf16.msra.mxu1 %v8868_v57  ;;  %v4968_v38 = vsel %vm1588_vm11, %v4963_v20, %v4967_v10  ;;  %v8878_v57 = vld [vmem:[%s11507_s1 + $0x2e0] sm:$0xff]   ;;  %v5134_v20 = vrot.slane %v10556_v45, 7 }
 0x23d   : > { %8014 = vmatprep.subr.bf16.mxu0 %v11575_v42  ;;  %7996 = vmatprep.mubr.msk.bf16.mxu0 %vm8951_vm2, %v11575_v42  ;;  %v2588_v14 = vsel %vm728_vm8, %v2585_v23, %v2587_v54  ;;  %v8887_v23 = vld [vmem:[%s11507_s1 + $0x300] sm:$0xff]  }
 0x23e   : > { %7524 = vmatprep.mubr.msk.bf16.mxu1 %vm8951_vm2, %v11575_v42  ;;  %7544 = vmatprep.subr.bf16.mxu1 %v11575_v42 }
 0x240   : > { %8015 = vmatpush3.bf16.msra.mxu0 %v8867_v16  ;;  %v5127_v16 = vrot.slane %v9989_v41, 7 }
 0x241   : > { %8016 = vmatprep.subr.bf16.mxu0 %v11575_v42 }
 0x242   : > { %v5128_v41 = vor.u32 %v5127_v16, %v5126_v60  ;;  %v2755_v16 = vrot.slane %v9862_v34, 5 }
 0x243   : > { %7997 = vmatmul.mubr.bf16.gmra.mrb[4].mxu0 %v4960_v13  ;;  %7525 = vmatmul.mubr.bf16.vlgmr.msra.gmra.mrb[0].mxu1 %v2582_v27  ;;  %v2589_v13 = vrot.slane %v9747_v49, 5  ;;  %v8881_v27 = vld [vmem:[%s11507_s1 + $0x640] sm:$0xff]   ;;  %v8883_v49 = vld [vmem:[%s11507_s1 + $0x648] sm:$0xff]  }
 0x244   : > { %8017 = vmatpush3.bf16.msra.mxu0 %v8869_v25  ;;  %8000 = vmatprep.mubr.msk.bf16.mxu0 %vm8951_vm2, %v11575_v42  ;;  %v8882_v25 = vld [vmem:[%s11507_s1 + $0x2f0] sm:$0xff]   ;;  %v5132_v8 = vsel %vm1765_vm0, %v5128_v41, %v5131_v55  ;;  %v8892_v41 = vld [vmem:[%s11507_s1 + $0x318] sm:$0xff]  }
 0x245   : > { %8018 = vmatprep.subr.bf16.mxu0 %v11575_v42  ;;  %7528 = vmatprep.mubr.msk.bf16.mxu1 %vm8951_vm2, %v11575_v42  ;;  %v2590_v33 = vsel %vm728_vm8, %v2587_v54, %v2589_v13  ;;  %v5142_v54 = vrot.slane %v10613_v47, 7 }
 0x246   : > { %7545 = vmatpush3.bf16.msra.mxu1 %v8871_v19  ;;  %v8884_v19 = vld [vmem:[%s11507_s1 + $0x2f8] sm:$0xff]  }
 0x247   : > { %7546 = vmatprep.subr.bf16.mxu1 %v11575_v42 }
 0x248   : > { %8019 = vmatpush3.bf16.msra.mxu0 %v8870_v24  ;;  %v5133_v24 = vrot.slane %v10553_v50, 6 }
 0x249   : > { %8020 = vmatprep.subr.bf16.mxu0 %v11575_v42 }
 0x24a   : > { %7547 = vmatpush3.bf16.msra.mxu1 %v8873_v12  ;;  %v2748_v12 = vrot.slane %v11610_v0, 6 }
 0x24b   : > { %8001 = vmatmul.mubr.bf16.gmra.mrb[8].mxu0 %v4964_v3  ;;  %7529 = vmatmul.mubr.bf16.gmra.mrb[4].mxu1 %v2584_v40  ;;  %v8885_v40 = vld [vmem:[%s11507_s1 + $0x650] sm:$0xff]  }
 0x24c   : > { %8021 = vmatpush3.bf16.msra.mxu0 %v8872_v43  ;;  %8004 = vmatprep.mubr.msk.bf16.mxu0 %vm8951_vm2, %v11575_v42  ;;  %v5135_v43 = vor.u32 %v5134_v20, %v5133_v24  ;;  %v2749_v3 = vor.u32 %v2748_v12, %v2747_v22  ;;  %v8895_v24 = vld [vmem:[%s11507_s1 + $0x678] sm:$0xff]  }
 0x24d   : > { %7532 = vmatprep.mubr.msk.bf16.mxu1 %vm8951_vm2, %v11575_v42  ;;  %8022 = vmatprep.subr.bf16.mxu0 %v11575_v42  ;;  %v11612_v22 = vld [vmem:[#allocation25_spill] sm:$0xff] }
 0x24e   : > { %7548 = vmatprep.subr.bf16.mxu1 %v11575_v42 }
 0x24f   : > { %7549 = vmatpush3.bf16.msra.mxu1 %v8875_v48  ;;  %v5136_v48 = vsel %vm1765_vm0, %v5131_v55, %v5135_v43  ;;  %v8893_v55 = vld [vmem:[%s11507_s1 + $0x670] sm:$0xff]  }
 0x250   : > { %8023 = vmatpush3.bf16.msra.mxu0 %v8874_v32  ;;  %7550 = vmatprep.subr.bf16.mxu1 %v11575_v42  ;;  %v11611_v32 = vor.u32 %v10270_v52, %v10266_v21  ;;  %v8886_v21 = vld [vmem:[%s11507_s1 + $0x658] sm:$0xff]   ;;  %v5139_v52 = vor.u32 %v5138_v15, %v5137_v18  ;;  %v8898_v18 = vld [vmem:[%s11507_s1 + $0x330] sm:$0xff]   ;;  %v5302_v15 = vrot.slane %v11605_v17, 7  ;;  %v2920_v17 = vrot.slane %v11587_v61, 1 }
 0x251   : > { %8024 = vmatprep.subr.bf16.mxu0 %v11575_v42 }
 0x252   : > { %v2750_v10 = vsel %vm1063_vm1, %v11611_v32, %v2749_v3 }
 0x253   : > { %8005 = vmatmul.mubr.bf16.gmra.mrb[12].mxu0 %v4968_v38  ;;  %7533 = vmatmul.mubr.bf16.gmra.mrb[8].mxu1 %v2586_v39  ;;  %v8889_v39 = vld [vmem:[%s11507_s1 + $0x308] sm:$0xff]  }
 0x254   : > { %7551 = vmatpush3.bf16.msra.mxu1 %v8876_v44  ;;  %8025 = vmatpush3.bf16.msra.mxu0 %v8877_v63  ;;  %v2751_v44 = vrot.slane %v9791_v53, 5  ;;  %v2752_v63 = vrot.slane %v9794_v2, 6 }
 0x255   : > { %8008 = vmatprep.mubr.msk.bf16.mxu0 %vm8951_vm2, %v11575_v42  ;;  %7536 = vmatprep.mubr.msk.bf16.mxu1 %vm8951_vm2, %v11575_v42 }
 0x256   : > { %7552 = vmatprep.subr.bf16.mxu1 %v11575_v42  ;;  %8026 = vmatprep.subr.bf16.mxu0 %v11575_v42  ;;  %v2753_v38 = vor.u32 %v2752_v63, %v2751_v44  ;;  %v2921_v63 = vrot.slane %v11610_v0, 2  ;;  %v8901_v0 = vld [vmem:[%s11507_s1 + $0x690] sm:$0xff]  }
 0x258   : > { %7553 = vmatpush3.bf16.msra.mxu1 %v8878_v57  ;;  %8027 = vmatpush3.bf16.msra.mxu0 %v8879_v31  ;;  %v8888_v57 = vld [vmem:[%s11507_s1 + $0x660] sm:$0xff]   ;;  %v5141_v31 = vrot.slane %v10610_v46, 6  ;;  %v2754_v60 = vsel %vm1063_vm1, %v2749_v3, %v2753_v38  ;;  %v2763_v3 = vrot.slane %v9951_v6, 5  ;;  %v2922_v61 = vor.u32 %v2921_v63, %v2920_v17 }
 0x259   : > { %7554 = vmatprep.subr.bf16.mxu1 %v11575_v42  ;;  %8048 = vmatprep.subr.bf16.mxu0 %v11575_v42 }
 0x25a   : > { %v5143_v11 = vor.u32 %v5142_v54, %v5141_v31  ;;  %v2927_v31 = vrot.slane %v9862_v34, 1  ;;  %v2928_v54 = vrot.slane %v9865_v35, 2 }
 0x25b   : > { %8009 = vmatmul.mubr.bf16.gmra.mrb[16].mxu0 %v4972_v51  ;;  %7537 = vmatmul.mubr.bf16.gmra.mrb[12].mxu1 %v2588_v14  ;;  %v2756_v51 = vrot.slane %v9865_v35, 6  ;;  %v8891_v14 = vld [vmem:[%s11507_s1 + $0x310] sm:$0xff]   ;;  %v8903_v35 = vld [vmem:[%s11507_s1 + $0x6a0] sm:$0xff]  }
 0x25c   : > { %7555 = vmatpush3.bf16.msra.mxu1 %v8880_v7  ;;  %8028 = vmatprep.mubr.msk.bf16.mxu0 %vm8951_vm2, %v11575_v42  ;;  %v5140_v7 = vsel %vm1765_vm0, %v5135_v43, %v5139_v52  ;;  %v5144_v13 = vsel %vm1765_vm0, %v5139_v52, %v5143_v11  ;;  %v5148_v12 = vsel %vm1765_vm0, %v5143_v11, %v11612_v22  ;;  %v2924_v52 = vrot.slane %v9794_v2, 2 }
 0x25d   : > { %7540 = vmatprep.mubr.msk.bf16.mxu1 %vm8951_vm2, %v11575_v42  ;;  %7556 = vmatprep.subr.bf16.mxu1 %v11575_v42  ;;  %v2929_v34 = vor.u32 %v2928_v54, %v2927_v31 }
 0x260   : > { %7557 = vmatpush3.bf16.msra.mxu1 %v8882_v25  ;;  %v2757_v25 = vor.u32 %v2756_v51, %v2755_v16  ;;  %v2931_v51 = vrot.slane %v9883_v37, 1 }
 0x261   : > { %7558 = vmatprep.subr.bf16.mxu1 %v11575_v42 }
 0x263   : > { %8029 = vmatmul.mubr.bf16.vlgmr.msra.gmra.mrb[0].mxu0 %v5132_v8  ;;  %7541 = vmatmul.mubr.bf16.gmra.mrb[16].mxu1 %v2590_v33  ;;  %v2760_v8 = vrot.slane %v9886_v4, 6  ;;  %v8894_v33 = vld [vmem:[%s11507_s1 + $0x320] sm:$0xff]  }
 0x264   : > { %8049 = vmatpush3.bf16.msra.mxu0 %v8881_v27  ;;  %7559 = vmatpush3.bf16.msra.mxu1 %v8884_v19  ;;  %v2758_v27 = vsel %vm1063_vm1, %v2753_v38, %v2757_v25  ;;  %v2759_v19 = vrot.slane %v9883_v37, 5  ;;  %v8899_v38 = vld [vmem:[%s11507_s1 + $0x688] sm:$0xff]  }
 0x265   : > { %8050 = vmatprep.subr.bf16.mxu0 %v11575_v42  ;;  %8032 = vmatprep.mubr.msk.bf16.mxu0 %vm8951_vm2, %v11575_v42 }
 0x266   : > { %7560 = vmatprep.mubr.msk.bf16.mxu1 %vm8951_vm2, %v11575_v42  ;;  %7580 = vmatprep.subr.bf16.mxu1 %v11575_v42  ;;  %v2761_v20 = vor.u32 %v2760_v8, %v2759_v19  ;;  %v5467_v19 = vrot.slane %v10529_v29, 7  ;;  %v11613_v8 = vld [vmem:[#allocation18_spill] sm:$0xff]  ;;  %v5466_v29 = vrot.slane %v9986_v28, 7 }
 0x268   : > { %8051 = vmatpush3.bf16.msra.mxu0 %v8883_v49  ;;  %v8896_v49 = vld [vmem:[%s11507_s1 + $0x328] sm:$0xff]   ;;  %v2762_v43 = vsel %vm1063_vm1, %v2757_v25, %v2761_v20 }
 0x269   : > { %8052 = vmatprep.subr.bf16.mxu0 %v11575_v42 }
 0x26b   : > { %8033 = vmatmul.mubr.bf16.gmra.mrb[4].mxu0 %v5136_v48  ;;  %7561 = vmatmul.mubr.bf16.vlgmr.msra.gmra.mrb[0].mxu1 %v2750_v10  ;;  %v5303_v48 = vrot.slane %v11597_v62, 7  ;;  %v8897_v10 = vld [vmem:[%s11507_s1 + $0x680] sm:$0xff]  }
 0x26c   : > { %8053 = vmatpush3.bf16.msra.mxu0 %v8885_v40  ;;  %8036 = vmatprep.mubr.msk.bf16.mxu0 %vm8951_vm2, %v11575_v42  ;;  %v2764_v40 = vrot.slane %v9954_v1, 6 }
 0x26d   : > { %8054 = vmatprep.subr.bf16.mxu0 %v11575_v42  ;;  %7564 = vmatprep.mubr.msk.bf16.mxu1 %vm8951_vm2, %v11575_v42  ;;  %v5304_v44 = vsel %vm1942_vm4, %v5302_v15, %v5303_v48  ;;  %v11615_v15 = vld [vmem:[#allocation26_spill] sm:$0xff] }
 0x26e   : > { %7581 = vmatpush3.bf16.msra.mxu1 %v8887_v23  ;;  %v2765_v32 = vor.u32 %v2764_v40, %v2763_v3  ;;  %v8900_v23 = vld [vmem:[%s11507_s1 + $0x338] sm:$0xff]   ;;  %v5476_v3 = vrot.slane %v10610_v46, 7  ;;  %v5473_v40 = vrot.slane %v10581_v30, 7 }
 0x26f   : > { %7582 = vmatprep.subr.bf16.mxu1 %v11575_v42 }
 0x270   : > { %8055 = vmatpush3.bf16.msra.mxu0 %v8886_v21  ;;  %v2766_v62 = vsel %vm1063_vm1, %v2761_v20, %v2765_v32  ;;  %v2923_v21 = vrot.slane %v9791_v53, 1  ;;  %v5305_v53 = vrot.slane %v11599_v9, 7  ;;  %v8902_v9 = vld [vmem:[%s11507_s1 + $0x698] sm:$0xff]   ;;  %v5474_v46 = vor.u32 %v5473_v40, %v10584_v58 }
 0x271   : > { %8056 = vmatprep.subr.bf16.mxu0 %v11575_v42 }
 0x272   : > { %7583 = vmatpush3.bf16.msra.mxu1 %v8889_v39  ;;  %v2925_v2 = vor.u32 %v2924_v52, %v2923_v21  ;;  %v5306_v39 = vsel %vm1942_vm4, %v5303_v48, %v5305_v53 }
 0x273   : > { %8037 = vmatmul.mubr.bf16.gmra.mrb[8].mxu0 %v5140_v7  ;;  %7565 = vmatmul.mubr.bf16.gmra.mrb[4].mxu1 %v2754_v60  ;;  %v5307_v7 = vrot.slane %v11601_v56, 7  ;;  %v2932_v56 = vrot.slane %v9886_v4, 2  ;;  %v8905_v4 = vld [vmem:[%s11507_s1 + $0x6b0] sm:$0xff]  }
 0x274   : > { %8057 = vmatpush3.bf16.msra.mxu0 %v8888_v57  ;;  %8040 = vmatprep.mubr.msk.bf16.mxu0 %vm8951_vm2, %v11575_v42  ;;  %v2926_v57 = vsel %vm1240_vm13, %v2922_v61, %v2925_v2  ;;  %v2930_v16 = vsel %vm1240_vm13, %v2925_v2, %v2929_v34  ;;  %v5740_v2 = vpop.permute.xlu0 %5739 }
 0x275   : > { %7568 = vmatprep.mubr.msk.bf16.mxu1 %vm8951_vm2, %v11575_v42  ;;  %8058 = vmatprep.subr.bf16.mxu0 %v11575_v42  ;;  %v5308_v60 = vsel %vm1942_vm4, %v5305_v53, %v5307_v7  ;;  %v2933_v37 = vor.u32 %v2932_v56, %v2931_v51 }
 0x276   : > { %7584 = vmatprep.subr.bf16.mxu1 %v11575_v42 }
 0x277   : > { %7585 = vmatpush3.bf16.msra.mxu1 %v8891_v14  ;;  %v8904_v14 = vld [vmem:[%s11507_s1 + $0x6a8] sm:$0xff]   ;;  %v2934_v25 = vsel %vm1240_vm13, %v2929_v34, %v2933_v37 }
 0x278   : > { %8059 = vmatpush3.bf16.msra.mxu0 %v8890_v36  ;;  %7586 = vmatprep.subr.bf16.mxu1 %v11575_v42  ;;  %v5309_v36 = vrot.slane %v11603_v26, 7  ;;  %v2936_v26 = vrot.slane %v9954_v1, 2  ;;  %v5746_v51 = vpop.permute.xlu0 %5745 }
 0x279   : > { %8060 = vmatprep.subr.bf16.mxu0 %v11575_v42  ;;  %vm5770_vm8 = vcmp.eq.s32.totalorder %v5746_v51, 1 }
 0x27a   : > { %v5310_v11 = vsel %vm1942_vm4, %v5307_v7, %v5309_v36 }
 0x27b   : > { %8041 = vmatmul.mubr.bf16.gmra.mrb[12].mxu0 %v5144_v13  ;;  %7569 = vmatmul.mubr.bf16.gmra.mrb[8].mxu1 %v2758_v27  ;;  %v5311_v13 = vrot.slane %v9739_v59, 7  ;;  %v5468_v59 = vor.u32 %v5467_v19, %v10532_v5  ;;  %v5477_v5 = vor.u32 %v5476_v3, %v10613_v47  ;;  %v5481_v47 = vsel %vm2107_vm3, %v5476_v3, %v11615_v15 }
 0x27c   : > { %7587 = vmatpush3.bf16.msra.mxu1 %v8892_v41  ;;  %8061 = vmatpush3.bf16.msra.mxu0 %v8893_v55  ;;  %v2935_v41 = vrot.slane %v9951_v6, 1  ;;  %v8906_v55 = vld [vmem:[%s11507_s1 + $0x6b8] sm:$0xff]  }
 0x27d   : > { %8044 = vmatprep.mubr.msk.bf16.mxu0 %vm8951_vm2, %v11575_v42  ;;  %7572 = vmatprep.mubr.msk.bf16.mxu1 %vm8951_vm2, %v11575_v42  ;;  %v5312_v6 = vsel %vm1942_vm4, %v5309_v36, %v5311_v13  ;;  %v5469_v22 = vsel %vm2107_vm3, %v5466_v29, %v5468_v59 }
 0x27e   : > { %7588 = vmatprep.subr.bf16.mxu1 %v11575_v42  ;;  %8062 = vmatprep.subr.bf16.mxu0 %v11575_v42  ;;  %v2937_v27 = vor.u32 %v2936_v26, %v2935_v41 }
 0x280   : > { %7589 = vmatpush3.bf16.msra.mxu1 %v8894_v33  ;;  %8063 = vmatpush3.bf16.msra.mxu0 %v8895_v24  ;;  %v2938_v1 = vsel %vm1240_vm13, %v2933_v37, %v2937_v27  ;;  %v2942_v33 = vrot.slane %v11613_v8, 1  ;;  %v11614_v24 = vld [vmem:[#allocation19_spill] sm:$0xff] }
 0x281   : > { %7590 = vmatprep.subr.bf16.mxu1 %v11575_v42  ;;  %8084 = vmatprep.subr.bf16.mxu0 %v11575_v42  ;;  %v2945_v20 = vrot.slane %v11614_v24, 2 }
 0x283   : > { %8045 = vmatmul.mubr.bf16.gmra.mrb[16].mxu0 %v5148_v12  ;;  %7573 = vmatmul.mubr.bf16.gmra.mrb[12].mxu1 %v2762_v43  ;;  %v5470_v43 = vrot.slane %v10553_v50, 7  ;;  %v5478_v50 = vsel %vm2107_vm3, %v5473_v40, %v5477_v5 }
 0x284   : > { %7591 = vmatpush3.bf16.msra.mxu1 %v8896_v49  ;;  %8064 = vmatprep.mubr.msk.bf16.mxu0 %vm8951_vm2, %v11575_v42  ;;  %v2946_v49 = vor.u32 %v2945_v20, %v2942_v33 }
 0x285   : > { %7576 = vmatprep.mubr.msk.bf16.mxu1 %vm8951_vm2, %v11575_v42  ;;  %7592 = vmatprep.subr.bf16.mxu1 %v11575_v42  ;;  %v5471_v28 = vor.u32 %v5470_v43, %v10556_v45  ;;  %v5475_v45 = vsel %vm2107_vm3, %v5470_v43, %v5474_v46 }
 0x286   : > { %v2947_v12 = vsel %vm1240_vm13, %v2937_v27, %v2946_v49 }
 0x288   : > { %7593 = vmatpush3.bf16.msra.mxu1 %v8898_v18  ;;  %v5472_v18 = vsel %vm2107_vm3, %v5467_v19, %v5471_v28 }
 0x289   : > { %7594 = vmatprep.subr.bf16.mxu1 %v11575_v42 }
 0x28b   : > { %8065 = vmatmul.mubr.bf16.vlgmr.msra.gmra.mrb[0].mxu0 %v5304_v44  ;;  %7577 = vmatmul.mubr.bf16.gmra.mrb[16].mxu1 %v2766_v62 }
 0x28c   : > { %8085 = vmatpush3.bf16.msra.mxu0 %v8897_v10  ;;  %7595 = vmatpush3.bf16.msra.mxu1 %v8900_v23 }
 0x28d   : > { %8086 = vmatprep.subr.bf16.mxu0 %v11575_v42  ;;  %8068 = vmatprep.mubr.msk.bf16.mxu0 %vm8951_vm2, %v11575_v42 }
 0x28e   : > { %7596 = vmatprep.mubr.msk.bf16.mxu1 %vm8951_vm2, %v11575_v42  ;;  %8120 = vmatprep.subr.bf16.mxu1 %v11575_v42 }
 0x290   : > { %8087 = vmatpush3.bf16.msra.mxu0 %v8899_v38 }
 0x291   : > { %8088 = vmatprep.subr.bf16.mxu0 %v11575_v42 }
 0x293   : > { %8069 = vmatmul.mubr.bf16.gmra.mrb[4].mxu0 %v5306_v39  ;;  %7597 = vmatmul.mubr.bf16.vlgmr.msra.gmra.mrb[0].mxu1 %v2926_v57 }
 0x294   : > { %8089 = vmatpush3.bf16.msra.mxu0 %v8901_v0  ;;  %8072 = vmatprep.mubr.msk.bf16.mxu0 %vm8951_vm2, %v11575_v42 }
 0x295   : > { %8090 = vmatprep.subr.bf16.mxu0 %v11575_v42  ;;  %7600 = vmatprep.mubr.msk.bf16.mxu1 %vm8951_vm2, %v11575_v42 }
 0x296   : > { %8128 = vmatpush3.bf16.msra.mxu1 %v8897_v10 }
 0x297   : > { %8121 = vmatprep.subr.bf16.mxu1 %v11575_v42 }
 0x298   : > { %8091 = vmatpush3.bf16.msra.mxu0 %v8902_v9 }
 0x299   : > { %8092 = vmatprep.subr.bf16.mxu0 %v11575_v42 }
 0x29a   : > { %8129 = vmatpush3.bf16.msra.mxu1 %v8899_v38 }
 0x29b   : > { %8073 = vmatmul.mubr.bf16.gmra.mrb[8].mxu0 %v5308_v60  ;;  %7601 = vmatmul.mubr.bf16.gmra.mrb[4].mxu1 %v2930_v16  ;;  %v5743_v16 = vpop.permute.xlu1 %5742 }
 0x29c   : > { %8093 = vmatpush3.bf16.msra.mxu0 %v8903_v35  ;;  %8076 = vmatprep.mubr.msk.bf16.mxu0 %vm8951_vm2, %v11575_v42  ;;  %vm5769_vm6 = vcmp.eq.s32.totalorder %v5743_v16, 1 }
 0x29d   : > { %7604 = vmatprep.mubr.msk.bf16.mxu1 %vm8951_vm2, %v11575_v42  ;;  %8094 = vmatprep.subr.bf16.mxu0 %v11575_v42 }
 0x29e   : > { %8122 = vmatprep.subr.bf16.mxu1 %v11575_v42 }
 0x29f   : > { %8130 = vmatpush3.bf16.msra.mxu1 %v8901_v0  ;;  %v5749_v29 = vpop.permute.xlu1 %5748 }
 0x2a0   : > { %8095 = vmatpush3.bf16.msra.mxu0 %v8904_v14  ;;  %8123 = vmatprep.subr.bf16.mxu1 %v11575_v42  ;;  %vm5771_vm10 = vcmp.eq.s32.totalorder %v5749_v29, 1 }
 0x2a1   : > { %8096 = vmatprep.subr.bf16.mxu0 %v11575_v42 }
 0x2a3   : > { %8077 = vmatmul.mubr.bf16.gmra.mrb[12].mxu0 %v5310_v11  ;;  %7605 = vmatmul.mubr.bf16.gmra.mrb[8].mxu1 %v2934_v25 }
 0x2a4   : > { %8131 = vmatpush3.bf16.msra.mxu1 %v8902_v9  ;;  %8097 = vmatpush3.bf16.msra.mxu0 %v8905_v4 }
 0x2a5   : > { %8080 = vmatprep.mubr.msk.bf16.mxu0 %vm8951_vm2, %v11575_v42  ;;  %7608 = vmatprep.mubr.msk.bf16.mxu1 %vm8951_vm2, %v11575_v42 }
 0x2a6   : > { %8124 = vmatprep.subr.bf16.mxu1 %v11575_v42  ;;  %8098 = vmatprep.subr.bf16.mxu0 %v11575_v42 }
 0x2a8   : > { %8132 = vmatpush3.bf16.msra.mxu1 %v8903_v35  ;;  %8099 = vmatpush3.bf16.msra.mxu0 %v8906_v55 }
 0x2a9   : > { %8125 = vmatprep.subr.bf16.mxu1 %v11575_v42 }
 0x2ab   : > { %8081 = vmatmul.mubr.bf16.gmra.mrb[16].mxu0 %v5312_v6  ;;  %7609 = vmatmul.mubr.bf16.gmra.mrb[12].mxu1 %v2938_v1 }
 0x2ac   : > { %8133 = vmatpush3.bf16.msra.mxu1 %v8904_v14  ;;  %8100 = vmatprep.mubr.msk.bf16.mxu0 %vm8951_vm2, %v11575_v42 }
 0x2ad   : > { %7612 = vmatprep.mubr.msk.bf16.mxu1 %vm8951_vm2, %v11575_v42  ;;  %8126 = vmatprep.subr.bf16.mxu1 %v11575_v42 }
 0x2b0   : > { %8134 = vmatpush3.bf16.msra.mxu1 %v8905_v4 }
 0x2b1   : > { %8127 = vmatprep.subr.bf16.mxu1 %v11575_v42 }
 0x2b3   : > { %8101 = vmatmul.mubr.bf16.vlgmr.msra.gmra.mrb[0].mxu0 %v5469_v22  ;;  %7613 = vmatmul.mubr.bf16.gmra.mrb[16].mxu1 %v2947_v12  ;;  %v5752_v22 = vpop.permute.xlu0 %5751 }
 0x2b4   : > { %8135 = vmatpush3.bf16.msra.mxu1 %v8906_v55  ;;  %8104 = vmatprep.mubr.msk.bf16.mxu0 %vm8951_vm2, %v11575_v42  ;;  %vm5772_vm9 = vcmp.eq.s32.totalorder %v5752_v22, 1 }
 0x2b5   : > { %8112 = vmatprep.mubr.msk.bf16.mxu1 %vm8951_vm2, %v11575_v42 }
 0x2bb   : > { %8105 = vmatmul.mubr.bf16.gmra.mrb[4].mxu0 %v5472_v18  ;;  %8113 = vmatmul.mubr.bf16.vlgmr.msra.gmra.mrb[20].mxu1 %v5478_v50 }
 0x2bc   : > { %8108 = vmatprep.mubr.msk.bf16.mxu0 %vm8951_vm2, %v11575_v42  ;;  %8116 = vmatprep.mubr.msk.bf16.mxu1 %vm8951_vm2, %v11575_v42  ;;  %vm5768_vm2 = vcmp.eq.s32.totalorder %v5740_v2, 1 }
 0x2c3   : > { %8109 = vmatmul.mubr.bf16.gmra.mrb[8].mxu0 %v5475_v45  ;;  %8117 = vmatmul.mubr.bf16.gmra.mrb[24].mxu1 %v5481_v47 }
 0x366   : > { %v3035_v30 = vpop.f32.mrb[0].mxu1 }
 0x367   : > { %v7598_v48 = vpop.f32.mrb[1].mxu1 }
 0x368   : > { %v3038_v32 = vpop.f32.mrb[2].mxu1 }
 0x369   : > { %v7599_v10 = vpop.f32.mrb[3].mxu1 }
 0x36e   : > { %v3043_v23 = vpop.f32.mrb[4].mxu1 }
 0x36f   : > { %v7602_v44 = vpop.f32.mrb[5].mxu1 }
 0x370   : > { %v11428_v17 = vpop.f32.mrb[6].mxu1 }
 0x371   : > { %v7603_v62 = vpop.f32.mrb[7].mxu1 }
 0x376   : > { %v5424_v63 = vpop.f32.mrb[12].mxu0  ;;  %v11430_v42 = vpop.f32.mrb[8].mxu1 }
 0x377   : > { %v8078_v58 = vpop.f32.mrb[13].mxu0  ;;  %v7606_v21 = vpop.f32.mrb[9].mxu1 }
 0x378   : > { %v5427_v52 = vpop.f32.mrb[14].mxu0  ;;  %v11432_v38 = vpop.f32.mrb[10].mxu1 }
 0x379   : > { %v8079_v53 = vpop.f32.mrb[15].mxu0  ;;  %v7607_v61 = vpop.f32.mrb[11].mxu1 }
 0x37a   : > { %v5755_v61 = vpop.permute.xlu1 %5754 }
 0x37b   : > { %vm5773_vm12 = vcmp.eq.s32.totalorder %v5755_v61, 1 }
 0x37e   : > { %v5432_v0 = vpop.f32.mrb[16].mxu0  ;;  %v3059_v39 = vpop.f32.mrb[12].mxu1 }
 0x37f   : > { %v8142_v57 = vadd.f32 %v5424_v63, %v3059_v39  ;;  %v8082_v31 = vpop.f32.mrb[17].mxu0  ;;  %v7610_v54 = vpop.f32.mrb[13].mxu1 }
 0x380   : > { %v5435_v9 = vpop.f32.mrb[18].mxu0  ;;  %v3062_v7 = vpop.f32.mrb[14].mxu1 }
 0x381   : > { %v8144_v34 = vadd.f32 %v5427_v52, %v3062_v7  ;;  %v8083_v35 = vpop.f32.mrb[19].mxu0  ;;  %v7611_v60 = vpop.f32.mrb[15].mxu1 }
 0x386   : > { %v5569_v56 = vpop.f32.mrb[0].mxu0  ;;  %v3067_v14 = vpop.f32.mrb[16].mxu1 }
 0x387   : > { %v8136_v36 = vadd.f32 %v5569_v56, %v3035_v30  ;;  %v11434_v37 = vadd.f32 %v5432_v0, %v3067_v14  ;;  %v8102_v4 = vpop.f32.mrb[1].mxu0  ;;  %v7614_v11 = vpop.f32.mrb[17].mxu1 }
 0x388   : > { %v5572_v25 = vpop.f32.mrb[2].mxu0  ;;  %v3070_v41 = vpop.f32.mrb[18].mxu1 }
 0x389   : > { %v6685_v26 = vpack.c.bf16 %v8136_v36, %v8136_v36  ;;  %v5778_v55 = vsel %vm5768_vm2, %v8136_v36, 0.0  ;;  %v8137_v13 = vadd.f32 %v5572_v25, %v3038_v32  ;;  %v11436_v27 = vadd.f32 %v5435_v9, %v3070_v41  ;;  %v8103_v6 = vpop.f32.mrb[3].mxu0  ;;  %v7615_v1 = vpop.f32.mrb[19].mxu1 }
 0x38a   : > { %v5803_v24 = vmul.f32 %v5778_v55, %v5778_v55 }
 0x38b   : > { %v5654_v19 = vrot.slane %v6685_v26, 6  ;;  %v6686_v8 = vpack.c.bf16 %v8137_v13, %v8137_v13  ;;  %v5779_v33 = vsel %vm5769_vm6, %v8137_v13, 0.0 }
 0x38c   : > { %v5788_v59 = vadd.f32 %v5779_v33, %v5778_v55  ;;  %v5804_v49 = vmul.f32 %v5779_v33, %v5779_v33 }
 0x38d   : > { %v5655_v12 = vrot.slane %v5654_v19, 4  ;;  %5694 = vst [vmem:[%s9176_s20 + $0x8] sm:$0xc] %v5654_v19  ;;  %v5656_v43 = vrot.slane %v6686_v8, 6 }
 0x38e   : > { %v5813_v3 = vadd.f32 %v5804_v49, %v5803_v24  ;;  %v5577_v28 = vpop.f32.mrb[4].mxu0  ;;  %v5593_v5 = vpop.f32.mrb[20].mxu1 }
 0x38f   : > { %v5657_v40 = vsel %vm11438_vm7, %v5655_v12, %v5656_v43  ;;  %v8138_v18 = vadd.f32 %v5577_v28, %v3043_v23  ;;  %v8106_v50 = vpop.f32.mrb[5].mxu0  ;;  %v11445_v46 = vadd.f32 %v8142_v57, %v5593_v5  ;;  %v8114_v45 = vpop.f32.mrb[21].mxu1  ;;  %v5658_v58 = vrot.slane %v5656_v43, 4 }
 0x390   : > { %5695 = vst [vmem:[%s9176_s20 + $0xc] sm:$0xf] %v5657_v40  ;;  %v5580_v15 = vpop.f32.mrb[6].mxu0  ;;  %v5596_v47 = vpop.f32.mrb[22].mxu1 }
 0x391   : > { %v6687_v30 = vpack.c.bf16 %v8138_v18, %v8138_v18  ;;  %v5780_v48 = vsel %vm5770_vm8, %v8138_v18, 0.0  ;;  %v6691_v32 = vpack.c.bf16 %v11445_v46, %v11445_v46  ;;  %v8107_v10 = vpop.f32.mrb[7].mxu0  ;;  %v8115_v44 = vpop.f32.mrb[23].mxu1  ;;  %v8139_v23 = vadd.f32 %v5580_v15, %v11428_v17 }
 0x392   : > { %v5789_v62 = vadd.f32 %v5788_v59, %v5780_v48  ;;  %v5805_v63 = vmul.f32 %v5780_v48, %v5780_v48  ;;  %v8145_v53 = vadd.f32 %v8144_v34, %v5596_v47  ;;  %v5758_v57 = vpop.permute.xlu0 %5757 }
 0x393   : > { %v5659_v21 = vrot.slane %v6687_v30, 6  ;;  %v11451_v52 = vrot.slane %v6691_v32, 6  ;;  %v6688_v0 = vpack.c.bf16 %v8139_v23, %v8139_v23  ;;  %v5781_v39 = vsel %vm5771_vm10, %v8139_v23, 0.0 }
 0x394   : > { %v5814_v2 = vadd.f32 %v5813_v3, %v5805_v63  ;;  %v5790_v9 = vadd.f32 %v5789_v62, %v5781_v39  ;;  %v5806_v35 = vmul.f32 %v5781_v39, %v5781_v39  ;;  %v6692_v60 = vpack.c.bf16 %v8145_v53, %v8145_v53 }
 0x395   : > { %v5660_v31 = vsel %vm11438_vm7, %v5658_v58, %v5659_v21  ;;  %v5661_v54 = vrot.slane %v5659_v21, 4  ;;  %v5673_v7 = vrot.slane %v11451_v52, 4  ;;  %v5662_v17 = vrot.slane %v6688_v0, 6 }
 0x396   : > { %5696 = vst [vmem:[%s9176_s20 + $0x10] sm:$0xf] %v5660_v31  ;;  %v5585_v16 = vpop.f32.mrb[8].mxu0  ;;  %v5601_v51 = vpop.f32.mrb[24].mxu1  ;;  %v5815_v11 = vadd.f32 %v5814_v2, %v5806_v35  ;;  %v5674_v25 = vrot.slane %v6692_v60, 6  ;;  %vm5774_vm11 = vcmp.eq.s32.totalorder %v5758_v57, 1 }
 0x397   : > { %v8140_v34 = vadd.f32 %v5585_v16, %v11430_v42  ;;  %v8110_v56 = vpop.f32.mrb[9].mxu0  ;;  %v8147_v14 = vadd.f32 %v11434_v37, %v5601_v51  ;;  %v8118_v36 = vpop.f32.mrb[25].mxu1  ;;  %v5663_v4 = vsel %vm11438_vm7, %v5661_v54, %v5662_v17  ;;  %v5664_v8 = vrot.slane %v5662_v17, 4 }
 0x398   : > { %v5588_v41 = vpop.f32.mrb[10].mxu0  ;;  %v5604_v26 = vpop.f32.mrb[26].mxu1  ;;  %5697 = vst [vmem:[%s9176_s20 + $0x14] sm:$0xf] %v5663_v4  ;;  %v5675_v37 = vsel %vm11438_vm7, %v5673_v7, %v5674_v25  ;;  %v5676_v59 = vrot.slane %v5674_v25, 4  ;;  %v5784_v28 = vsel %vm5774_vm11, %v11445_v46, 0.0 }
 0x399   : > { %v6689_v55 = vpack.c.bf16 %v8140_v34, %v8140_v34  ;;  %v5782_v13 = vsel %vm5772_vm9, %v8140_v34, 0.0  ;;  %v6693_v6 = vpack.c.bf16 %v8147_v14, %v8147_v14  ;;  %v8111_v1 = vpop.f32.mrb[11].mxu0  ;;  %v8119_v19 = vpop.f32.mrb[27].mxu1  ;;  %5701 = vst [vmem:[%s9176_s20 + $0x24] sm:$0xf] %v5675_v37  ;;  %v8141_v22 = vadd.f32 %v5588_v41, %v11432_v38 }
 0x39a   : > { %v5761_v42 = vpop.permute.xlu1 %5760  ;;  %v5791_v33 = vadd.f32 %v5790_v9, %v5782_v13  ;;  %v5807_v24 = vmul.f32 %v5782_v13, %v5782_v13  ;;  %v8149_v43 = vadd.f32 %v11436_v27, %v5604_v26  ;;  %v5764_v3 = vpop.permute.xlu0 %5763  ;;  %v5809_v10 = vmul.f32 %v5784_v28, %v5784_v28 }
 0x39b   : > { %v5665_v49 = vrot.slane %v6689_v55, 6  ;;  %v5677_v29 = vrot.slane %v6693_v6, 6  ;;  %v6690_v45 = vpack.c.bf16 %v8141_v22, %v8141_v22  ;;  %v5783_v38 = vsel %vm5773_vm12, %v8141_v22, 0.0 }
 0x39c   : > { %v5816_v12 = vadd.f32 %v5815_v11, %v5807_v24  ;;  %v6694_v15 = vpack.c.bf16 %v8149_v43, %v8149_v43  ;;  %vm5775_vm13 = vcmp.eq.s32.totalorder %v5761_v42, 1  ;;  %v5792_v47 = vadd.f32 %v5791_v33, %v5783_v38 }
 0x39d   : > { %v5666_v5 = vsel %vm11438_vm7, %v5664_v8, %v5665_v49  ;;  %v5667_v40 = vrot.slane %v5665_v49, 4  ;;  %v5678_v18 = vsel %vm11438_vm7, %v5676_v59, %v5677_v29  ;;  %v5679_v50 = vrot.slane %v5677_v29, 4 }
 0x39e   : > { %5698 = vst [vmem:[%s9176_s20 + $0x18] sm:$0xf] %v5666_v5  ;;  %5702 = vst [vmem:[%s9176_s20 + $0x28] sm:$0xf] %v5678_v18  ;;  %v5808_v30 = vmul.f32 %v5783_v38, %v5783_v38  ;;  %v5767_v27 = vpop.permute.xlu1 %5766  ;;  %vm5776_vm15 = vcmp.eq.s32.totalorder %v5764_v3, 1  ;;  %v5785_v46 = vsel %vm5775_vm13, %v8145_v53, 0.0  ;;  %v5793_v62 = vadd.f32 %v5792_v47, %v5784_v28 }
 0x39f   : > { %v5668_v48 = vrot.slane %v6690_v45, 6  ;;  %v5680_v32 = vrot.slane %v6694_v15, 6  ;;  %v5786_v44 = vsel %vm5776_vm15, %v8147_v14, 0.0  ;;  %vm5777_vm0 = vcmp.eq.s32.totalorder %v5767_v27, 1 }
 0x3a0   : > { %v5817_v63 = vadd.f32 %v5816_v12, %v5808_v30  ;;  %v5810_v2 = vmul.f32 %v5785_v46, %v5785_v46  ;;  %v5794_v0 = vadd.f32 %v5793_v62, %v5785_v46  ;;  %v5787_v57 = vsel %vm5777_vm0, %v8149_v43, 0.0 }
 0x3a1   : > { %v5669_v23 = vsel %vm11438_vm7, %v5667_v40, %v5668_v48  ;;  %v5670_v58 = vrot.slane %v5668_v48, 4  ;;  %v5681_v21 = vsel %vm11438_vm7, %v5679_v50, %v5680_v32  ;;  %v5682_v61 = vrot.slane %v5680_v32, 4 }
 0x3a2   : > { %5699 = vst [vmem:[%s9176_s20 + $0x1c] sm:$0xf] %v5669_v23  ;;  %v5818_v53 = vadd.f32 %v5817_v63, %v5809_v10  ;;  %5703 = vst [vmem:[%s9176_s20 + $0x2c] sm:$0xf] %v5681_v21  ;;  %v5811_v31 = vmul.f32 %v5786_v44, %v5786_v44  ;;  %v5795_v54 = vadd.f32 %v5794_v0, %v5786_v44 }
 0x3a3   : > { %v5672_v39 = vsel %vm11438_vm7, %v5670_v58, %v11451_v52  ;;  %5704 = vst [vmem:[%s9176_s20 + $0x30] sm:$0x3] %v5682_v61  ;;  %v5812_v17 = vmul.f32 %v5787_v57, %v5787_v57 }
 0x3a4   : > { %5700 = vst [vmem:[%s9176_s20 + $0x20] sm:$0xf] %v5672_v39  ;;  %v5819_v9 = vadd.f32 %v5818_v53, %v5810_v2  ;;  %v5796_v7 = vadd.f32 %v5795_v54, %v5787_v57 }
 0x3a6   : > { %v5820_v35 = vadd.f32 %v5819_v9, %v5811_v31  ;;  %v5797_v60 = vrot.slane %v5796_v7, 4 }
 0x3a8   : > { %v5821_v16 = vadd.f32 %v5820_v35, %v5812_v17  ;;  %v5798_v51 = vadd.f32 %v5797_v60, %v5796_v7 }
 0x3aa   : > { %v5822_v34 = vrot.slane %v5821_v16, 4  ;;  %v5799_v56 = vrot.slane %v5798_v51, 2 }
 0x3ac   : > { %v5823_v14 = vadd.f32 %v5822_v34, %v5821_v16  ;;  %v5800_v20 = vadd.f32 %v5799_v56, %v5798_v51 }
 0x3ae   : > { %v5824_v52 = vrot.slane %v5823_v14, 2  ;;  %v5801_v36 = vrot.slane %v5800_v20, 1 }
 0x3b0   : > { %v5825_v4 = vadd.f32 %v5824_v52, %v5823_v14  ;;  %v5802_v25 = vadd.f32 %v5801_v36, %v5800_v20 }
 0x3b2   : > { %v5826_v11 = vrot.slane %v5825_v4, 1 }
 0x3b4   : > { %v5827_v41 = vadd.f32 %v5826_v11, %v5825_v4 }
 0x3b6   : > { %v5829_v26 = vsel %vm1942_vm4, %v5802_v25, %v5827_v41 }
 0x3b7   : > { %5830 = vst [vmem:[%s472_s14] sm:$0x3] %v5829_v26 }
 0x3b8 PF: > { %s19_s9 = sadd.s32 1, %s8947_s9   ;;  %s11618_s27 = smov %s8939_s29 }
 0x3b9   : > { %p16_p11 = scmp.ge.s32.totalorder %s19_s9, 18   ;;  %s11619_s28 = smov %s8943_s30 }
 0x3ba   : > { %s11620_s29 = smov %s11623_s10  ;;  %s11621_s30 = smov %s11627_s11 }
 0x3bb   :  { %18 = sbr.rel (!%p16_p11) target bundleno = 3 (0x3), region = 122 }

</bundles_post_ra>
